<compile_context>
chip_gen: v6e
topology: v6e:2x2x1
jax: 0.10.0
libtpu: 0.0.40
codegen_flags: <defaults>
</compile_context>

<pallas_src>
import functools

import numpy as np
import jax
import jax.numpy as jnp
from jax.experimental import pallas as pl
from jax.experimental.pallas import tpu as pltpu

LANE = 128


def _round_up(x, m):
    return ((x + m - 1) // m) * m


def _make_head_kernel(H, W, Cp, Coutp, L):
    """Fused 4x(conv3x3+ReLU) + conv3x3 head for one batch element."""
    HW = H * W

    def kernel(x_ref, wh_ref, bh_ref, wl_ref, bl_ref, out_ref,
               halo_a, halo_b, col_ref):
        # ---- zero only the 1-pixel border of both halo buffers ------------
        # Interiors are fully rewritten before every read, so only the border
        # has to be zero ("padding=1").  Done every grid step (cheap: 4 thin
        # strips per buffer) so it is megacore-safe.
        zrow = jnp.zeros((1, W + 2, Cp), jnp.float32)
        zcol = jnp.zeros((H + 2, 1, Cp), jnp.float32)
        for buf in (halo_a, halo_b):
            buf[0:1, :, :] = zrow
            buf[H + 1:H + 2, :, :] = zrow
            buf[:, 0:1, :] = zcol
            buf[:, W + 1:W + 2, :] = zcol

        # load this image's activations into halo A's interior
        halo_a[1:H + 1, 1:W + 1, :] = x_ref[0]
        bufs = (halo_a, halo_b)

        def im2col(src):
            # Build the (HW, 9*Cp) patch matrix.  Lane offsets t*Cp are
            # 128-aligned -> full-width stores into the col scratch.
            for t in range(9):                              # static, unrolled
                dh, dw = divmod(t, 3)
                col_ref[:, t * Cp:(t + 1) * Cp] = (
                    src[dh:dh + H, dw:dw + W, :].reshape(HW, Cp))

        # hidden layers: im2col -> single MXU matmul -> bias -> ReLU
        for l in range(L):                                  # static, unrolled
            src, dst = bufs[l % 2], bufs[(l + 1) % 2]
            im2col(src)
            y = jnp.dot(col_ref[...], wh_ref[l],
                        preferred_element_type=jnp.float32)
            y = jnp.maximum(y + bh_ref[l], 0.0)
            dst[1:H + 1, 1:W + 1, :] = y.reshape(H, W, Cp)

        # final conv (no ReLU); Coutp = round_up(num_anchors*num_classes, 128)
        im2col(bufs[L % 2])
        y = jnp.dot(col_ref[...], wl_ref[...],
                    preferred_element_type=jnp.float32)
        y = y + bl_ref[...]
        out_ref[...] = y.reshape(1, HW, Coutp).astype(out_ref.dtype)

    return kernel


@functools.partial(jax.jit, static_argnames=("num_anchors", "num_classes"))
def classification_head_forward(x, w_hidden, b_hidden, w_last, b_last, *,
                                num_anchors, num_classes):
    """ClassificationHead.forward.

    Args (PyTorch layouts):
      x:        (N, C, H, W)      float32
      w_hidden: (L, C, C, 3, 3)   Conv2d OIHW weights of the L hidden layers
      b_hidden: (L, C)
      w_last:   (A*K, C, 3, 3)    Conv2d OIHW weight of the final layer
      b_last:   (A*K,)
    Returns: (N, H*W*A, K) float32.
    """
    N, C, H, W = x.shape
    L = w_hidden.shape[0]
    A, K = num_anchors, num_classes
    Cout = A * K
    assert w_hidden.shape == (L, C, C, 3, 3)
    assert b_hidden.shape == (L, C)
    assert w_last.shape == (Cout, C, 3, 3)
    assert b_last.shape == (Cout,)

    Cp = _round_up(C, LANE)         # lane-dense channels
    Coutp = _round_up(Cout, LANE)   # lane-dense output block

    # activations: NCHW -> NHWC (channels on the lane axis), zero-pad C -> Cp
    x_nhwc = jnp.transpose(x, (0, 2, 3, 1))
    x_nhwc = jnp.pad(x_nhwc, ((0, 0), (0, 0), (0, 0), (0, Cp - C)))

    # weights: OIHW -> HWIO, zero-pad channels, concatenate the 9 taps along
    # the contraction axis so each layer is ONE (HW,9*Cp)@(9*Cp,*) matmul.
    wh = jnp.transpose(w_hidden, (0, 3, 4, 2, 1))            # (L,3,3,Cin,Cout)
    wh = jnp.pad(wh, ((0, 0), (0, 0), (0, 0), (0, Cp - C), (0, Cp - C)))
    wh = wh.reshape(L, 9 * Cp, Cp)
    bh = jnp.pad(b_hidden, ((0, 0), (0, Cp - C))).reshape(L, 1, Cp)

    wl = jnp.transpose(w_last, (2, 3, 1, 0))                 # (3,3,Cin,Cout)
    wl = jnp.pad(wl, ((0, 0), (0, 0), (0, Cp - C), (0, Coutp - Cout)))
    wl = wl.reshape(9 * Cp, Coutp)
    bl = jnp.pad(b_last, (0, Coutp - Cout)).reshape(1, Coutp)

    out_p = pl.pallas_call(
        _make_head_kernel(H, W, Cp, Coutp, L),
        out_shape=jax.ShapeDtypeStruct((N, H * W, Coutp), jnp.float32),
        grid_spec=pltpu.PrefetchScalarGridSpec(
            num_scalar_prefetch=0,
            grid=(N,),
            in_specs=[
                pl.BlockSpec((1, H, W, Cp), lambda n: (n, 0, 0, 0)),
                # grid-invariant parameter blocks -> DMA'd into VMEM once
                pl.BlockSpec((L, 9 * Cp, Cp), lambda n: (0, 0, 0)),
                pl.BlockSpec((L, 1, Cp), lambda n: (0, 0, 0)),
                pl.BlockSpec((9 * Cp, Coutp), lambda n: (0, 0)),
                pl.BlockSpec((1, Coutp), lambda n: (0, 0)),
            ],
            out_specs=pl.BlockSpec((1, H * W, Coutp), lambda n: (n, 0, 0)),
            scratch_shapes=[
                pltpu.VMEM((H + 2, W + 2, Cp), jnp.float32),   # halo buffer A
                pltpu.VMEM((H + 2, W + 2, Cp), jnp.float32),   # halo buffer B
                pltpu.VMEM((H * W, 9 * Cp), jnp.float32),      # im2col scratch
            ],
        ),
        compiler_params=pltpu.CompilerParams(
            dimension_semantics=("parallel",)),
    )(x_nhwc, wh, bh, wl, bl)

    # drop channel padding; (N, H*W, A*K) row-major == (N, H*W*A, K) row-major
    # (== view(N,A,K,H,W).permute(0,3,4,1,2).contiguous().view(N,-1,K)).
    return out_p[:, :, :Cout].reshape(N, H * W * A, K)


# --- pure-JAX reference mirroring the PyTorch module (OIHW weights) ----------
def _ref_forward(x, w_hidden, b_hidden, w_last, b_last, A, K):
    dn = ("NCHW", "OIHW", "NCHW")
    prec = jax.lax.Precision.HIGHEST
    h = x
    for l in range(w_hidden.shape[0]):
        h = jax.lax.conv_general_dilated(h, w_hidden[l], (1, 1), "SAME",
                                         dimension_numbers=dn, precision=prec)
        h = jnp.maximum(h + b_hidden[l][None, :, None, None], 0.0)
    h = jax.lax.conv_general_dilated(h, w_last, (1, 1), "SAME",
                                     dimension_numbers=dn, precision=prec)
    h = h + b_last[None, :, None, None]
    N, _, H, W = h.shape
    h = h.reshape(N, A, K, H, W).transpose(0, 3, 4, 1, 2)
    return h.reshape(N, -1, K)


if __name__ == "__main__":
    N, C, H, W = 2, 32, 16, 16      # batch, in_channels, spatial
    A, K, L = 9, 4, 4               # num_anchors, num_classes, num_layers

    key = jax.random.PRNGKey(0)
    kx, k1, k2, k3, k4 = jax.random.split(key, 5)
    x = jax.random.normal(kx, (N, C, H, W), jnp.float32)
    # PyTorch Conv2d layouts: weight (Cout, Cin, kh, kw), bias (Cout,)
    w_hidden = 0.05 * jax.random.normal(k1, (L, C, C, 3, 3), jnp.float32)
    b_hidden = 0.05 * jax.random.normal(k2, (L, C), jnp.float32)
    w_last = 0.05 * jax.random.normal(k3, (A * K, C, 3, 3), jnp.float32)
    b_last = 0.05 * jax.random.normal(k4, (A * K,), jnp.float32)

    out = classification_head_forward(x, w_hidden, b_hidden, w_last, b_last,
                                      num_anchors=A, num_classes=K)
    out = jax.block_until_ready(out)
    assert out.shape == (N, H * W * A, K), out.shape

    ref = _ref_forward(x, w_hidden, b_hidden, w_last, b_last, A, K)
    np.testing.assert_allclose(np.asarray(out), np.asarray(ref),
                               rtol=1e-2, atol=1e-2)
    print("KERNEL_OK")
</pallas_src>

<mosaic_0001>
module attributes {stable_mosaic.version = 11 : i64} {
  func.func @kernel(%arg0: i32, %arg1: memref<1x16x16x128xf32, #tpu.memory_space<vmem>>, %arg2: memref<4x1152x128xf32, #tpu.memory_space<vmem>>, %arg3: memref<4x1x128xf32, #tpu.memory_space<vmem>>, %arg4: memref<1152x128xf32, #tpu.memory_space<vmem>>, %arg5: memref<1x128xf32, #tpu.memory_space<vmem>>, %arg6: memref<1x256x128xf32, #tpu.memory_space<vmem>>, %arg7: memref<18x18x128xf32, #tpu.memory_space<vmem>>, %arg8: memref<18x18x128xf32, #tpu.memory_space<vmem>>, %arg9: memref<256x1152xf32, #tpu.memory_space<vmem>>) attributes {dimension_semantics = [#tpu.dimension_semantics<parallel>], iteration_bounds = array<i64: 2>, scalar_prefetch = 0 : i64, scratch_operands = 3 : i64, tpu.core_type = #tpu.core_type<tc>, window_params = [{transform_indices = @transform_0, window_bounds = array<i64: 1, 16, 16, 128>}, {pipeline_mode = #tpu.pipeline_mode<synchronous>, transform_indices = @transform_1, window_bounds = array<i64: 4, 1152, 128>}, {pipeline_mode = #tpu.pipeline_mode<synchronous>, transform_indices = @transform_2, window_bounds = array<i64: 4, 1, 128>}, {pipeline_mode = #tpu.pipeline_mode<synchronous>, transform_indices = @transform_3, window_bounds = array<i64: 1152, 128>}, {pipeline_mode = #tpu.pipeline_mode<synchronous>, transform_indices = @transform_4, window_bounds = array<i64: 1, 128>}, {transform_indices = @transform_5, window_bounds = array<i64: 1, 256, 128>}]} {
    %cst = arith.constant 0.000000e+00 : f32
    %0 = vector.broadcast %cst : f32 to vector<1x18x128xf32>
    %cst_0 = arith.constant 0.000000e+00 : f32
    %1 = vector.broadcast %cst_0 : f32 to vector<18x1x128xf32>
    %c0 = arith.constant 0 : index
    %c0_1 = arith.constant 0 : index
    %c0_2 = arith.constant 0 : index
    %2 = vector.load %arg7[%c0, %c0_1, %c0_2] : memref<18x18x128xf32, #tpu.memory_space<vmem>>, vector<1x18x128xf32>
    tpu.vector_store %arg7[%c0, %c0_1, %c0_2], %0 {strides = array<i32>} : memref<18x18x128xf32, #tpu.memory_space<vmem>>, vector<1x18x128xf32>,
    %c17 = arith.constant 17 : index
    %c0_3 = arith.constant 0 : index
    %c0_4 = arith.constant 0 : index
    %3 = vector.load %arg7[%c17, %c0_3, %c0_4] : memref<18x18x128xf32, #tpu.memory_space<vmem>>, vector<1x18x128xf32>
    tpu.vector_store %arg7[%c17, %c0_3, %c0_4], %0 {strides = array<i32>} : memref<18x18x128xf32, #tpu.memory_space<vmem>>, vector<1x18x128xf32>,
    %c0_5 = arith.constant 0 : index
    %c0_6 = arith.constant 0 : index
    %c0_7 = arith.constant 0 : index
    %4 = vector.load %arg7[%c0_5, %c0_6, %c0_7] : memref<18x18x128xf32, #tpu.memory_space<vmem>>, vector<18x1x128xf32>
    tpu.vector_store %arg7[%c0_5, %c0_6, %c0_7], %1 {strides = array<i32>} : memref<18x18x128xf32, #tpu.memory_space<vmem>>, vector<18x1x128xf32>,
    %c0_8 = arith.constant 0 : index
    %c17_9 = arith.constant 17 : index
    %c0_10 = arith.constant 0 : index
    %5 = vector.load %arg7[%c0_8, %c17_9, %c0_10] : memref<18x18x128xf32, #tpu.memory_space<vmem>>, vector<18x1x128xf32>
    tpu.vector_store %arg7[%c0_8, %c17_9, %c0_10], %1 {strides = array<i32>} : memref<18x18x128xf32, #tpu.memory_space<vmem>>, vector<18x1x128xf32>,
    %c0_11 = arith.constant 0 : index
    %c0_12 = arith.constant 0 : index
    %c0_13 = arith.constant 0 : index
    %6 = vector.load %arg8[%c0_11, %c0_12, %c0_13] : memref<18x18x128xf32, #tpu.memory_space<vmem>>, vector<1x18x128xf32>
    tpu.vector_store %arg8[%c0_11, %c0_12, %c0_13], %0 {strides = array<i32>} : memref<18x18x128xf32, #tpu.memory_space<vmem>>, vector<1x18x128xf32>,
    %c17_14 = arith.constant 17 : index
    %c0_15 = arith.constant 0 : index
    %c0_16 = arith.constant 0 : index
    %7 = vector.load %arg8[%c17_14, %c0_15, %c0_16] : memref<18x18x128xf32, #tpu.memory_space<vmem>>, vector<1x18x128xf32>
    tpu.vector_store %arg8[%c17_14, %c0_15, %c0_16], %0 {strides = array<i32>} : memref<18x18x128xf32, #tpu.memory_space<vmem>>, vector<1x18x128xf32>,
    %c0_17 = arith.constant 0 : index
    %c0_18 = arith.constant 0 : index
    %c0_19 = arith.constant 0 : index
    %8 = vector.load %arg8[%c0_17, %c0_18, %c0_19] : memref<18x18x128xf32, #tpu.memory_space<vmem>>, vector<18x1x128xf32>
    tpu.vector_store %arg8[%c0_17, %c0_18, %c0_19], %1 {strides = array<i32>} : memref<18x18x128xf32, #tpu.memory_space<vmem>>, vector<18x1x128xf32>,
    %c0_20 = arith.constant 0 : index
    %c17_21 = arith.constant 17 : index
    %c0_22 = arith.constant 0 : index
    %9 = vector.load %arg8[%c0_20, %c17_21, %c0_22] : memref<18x18x128xf32, #tpu.memory_space<vmem>>, vector<18x1x128xf32>
    tpu.vector_store %arg8[%c0_20, %c17_21, %c0_22], %1 {strides = array<i32>} : memref<18x18x128xf32, #tpu.memory_space<vmem>>, vector<18x1x128xf32>,
    %c0_23 = arith.constant 0 : index
    %c0_24 = arith.constant 0 : index
    %c0_25 = arith.constant 0 : index
    %c0_26 = arith.constant 0 : index
    %10 = vector.load %arg1[%c0_23, %c0_24, %c0_25, %c0_26] : memref<1x16x16x128xf32, #tpu.memory_space<vmem>>, vector<1x16x16x128xf32>
    %11 = vector.shape_cast %10 : vector<1x16x16x128xf32> to vector<16x16x128xf32>
    %c1 = arith.constant 1 : index
    %c1_27 = arith.constant 1 : index
    %c0_28 = arith.constant 0 : index
    %12 = vector.load %arg7[%c1, %c1_27, %c0_28] : memref<18x18x128xf32, #tpu.memory_space<vmem>>, vector<16x16x128xf32>
    tpu.vector_store %arg7[%c1, %c1_27, %c0_28], %11 {strides = array<i32>} : memref<18x18x128xf32, #tpu.memory_space<vmem>>, vector<16x16x128xf32>,
    %c0_29 = arith.constant 0 : index
    %c0_30 = arith.constant 0 : index
    %c0_31 = arith.constant 0 : index
    %13 = vector.load %arg7[%c0_29, %c0_30, %c0_31] : memref<18x18x128xf32, #tpu.memory_space<vmem>>, vector<16x16x128xf32>
    %14 = vector.shape_cast %13 : vector<16x16x128xf32> to vector<256x128xf32>
    %c0_32 = arith.constant 0 : index
    %c0_33 = arith.constant 0 : index
    %15 = vector.load %arg9[%c0_32, %c0_33] : memref<256x1152xf32, #tpu.memory_space<vmem>>, vector<256x128xf32>
    tpu.vector_store %arg9[%c0_32, %c0_33], %14 {strides = array<i32>} : memref<256x1152xf32, #tpu.memory_space<vmem>>, vector<256x128xf32>,
    %c0_34 = arith.constant 0 : index
    %c1_35 = arith.constant 1 : index
    %c0_36 = arith.constant 0 : index
    %16 = vector.load %arg7[%c0_34, %c1_35, %c0_36] : memref<18x18x128xf32, #tpu.memory_space<vmem>>, vector<16x16x128xf32>
    %17 = vector.shape_cast %16 : vector<16x16x128xf32> to vector<256x128xf32>
    %c0_37 = arith.constant 0 : index
    %c128 = arith.constant 128 : index
    %18 = vector.load %arg9[%c0_37, %c128] : memref<256x1152xf32, #tpu.memory_space<vmem>>, vector<256x128xf32>
    tpu.vector_store %arg9[%c0_37, %c128], %17 {strides = array<i32>} : memref<256x1152xf32, #tpu.memory_space<vmem>>, vector<256x128xf32>,
    %c0_38 = arith.constant 0 : index
    %c2 = arith.constant 2 : index
    %c0_39 = arith.constant 0 : index
    %19 = vector.load %arg7[%c0_38, %c2, %c0_39] : memref<18x18x128xf32, #tpu.memory_space<vmem>>, vector<16x16x128xf32>
    %20 = vector.shape_cast %19 : vector<16x16x128xf32> to vector<256x128xf32>
    %c0_40 = arith.constant 0 : index
    %c256 = arith.constant 256 : index
    %21 = vector.load %arg9[%c0_40, %c256] : memref<256x1152xf32, #tpu.memory_space<vmem>>, vector<256x128xf32>
    tpu.vector_store %arg9[%c0_40, %c256], %20 {strides = array<i32>} : memref<256x1152xf32, #tpu.memory_space<vmem>>, vector<256x128xf32>,
    %c1_41 = arith.constant 1 : index
    %c0_42 = arith.constant 0 : index
    %c0_43 = arith.constant 0 : index
    %22 = vector.load %arg7[%c1_41, %c0_42, %c0_43] : memref<18x18x128xf32, #tpu.memory_space<vmem>>, vector<16x16x128xf32>
    %23 = vector.shape_cast %22 : vector<16x16x128xf32> to vector<256x128xf32>
    %c0_44 = arith.constant 0 : index
    %c384 = arith.constant 384 : index
    %24 = vector.load %arg9[%c0_44, %c384] : memref<256x1152xf32, #tpu.memory_space<vmem>>, vector<256x128xf32>
    tpu.vector_store %arg9[%c0_44, %c384], %23 {strides = array<i32>} : memref<256x1152xf32, #tpu.memory_space<vmem>>, vector<256x128xf32>,
    %c1_45 = arith.constant 1 : index
    %c1_46 = arith.constant 1 : index
    %c0_47 = arith.constant 0 : index
    %25 = vector.load %arg7[%c1_45, %c1_46, %c0_47] : memref<18x18x128xf32, #tpu.memory_space<vmem>>, vector<16x16x128xf32>
    %26 = vector.shape_cast %25 : vector<16x16x128xf32> to vector<256x128xf32>
    %c0_48 = arith.constant 0 : index
    %c512 = arith.constant 512 : index
    %27 = vector.load %arg9[%c0_48, %c512] : memref<256x1152xf32, #tpu.memory_space<vmem>>, vector<256x128xf32>
    tpu.vector_store %arg9[%c0_48, %c512], %26 {strides = array<i32>} : memref<256x1152xf32, #tpu.memory_space<vmem>>, vector<256x128xf32>,
    %c1_49 = arith.constant 1 : index
    %c2_50 = arith.constant 2 : index
    %c0_51 = arith.constant 0 : index
    %28 = vector.load %arg7[%c1_49, %c2_50, %c0_51] : memref<18x18x128xf32, #tpu.memory_space<vmem>>, vector<16x16x128xf32>
    %29 = vector.shape_cast %28 : vector<16x16x128xf32> to vector<256x128xf32>
    %c0_52 = arith.constant 0 : index
    %c640 = arith.constant 640 : index
    %30 = vector.load %arg9[%c0_52, %c640] : memref<256x1152xf32, #tpu.memory_space<vmem>>, vector<256x128xf32>
    tpu.vector_store %arg9[%c0_52, %c640], %29 {strides = array<i32>} : memref<256x1152xf32, #tpu.memory_space<vmem>>, vector<256x128xf32>,
    %c2_53 = arith.constant 2 : index
    %c0_54 = arith.constant 0 : index
    %c0_55 = arith.constant 0 : index
    %31 = vector.load %arg7[%c2_53, %c0_54, %c0_55] : memref<18x18x128xf32, #tpu.memory_space<vmem>>, vector<16x16x128xf32>
    %32 = vector.shape_cast %31 : vector<16x16x128xf32> to vector<256x128xf32>
    %c0_56 = arith.constant 0 : index
    %c768 = arith.constant 768 : index
    %33 = vector.load %arg9[%c0_56, %c768] : memref<256x1152xf32, #tpu.memory_space<vmem>>, vector<256x128xf32>
    tpu.vector_store %arg9[%c0_56, %c768], %32 {strides = array<i32>} : memref<256x1152xf32, #tpu.memory_space<vmem>>, vector<256x128xf32>,
    %c2_57 = arith.constant 2 : index
    %c1_58 = arith.constant 1 : index
    %c0_59 = arith.constant 0 : index
    %34 = vector.load %arg7[%c2_57, %c1_58, %c0_59] : memref<18x18x128xf32, #tpu.memory_space<vmem>>, vector<16x16x128xf32>
    %35 = vector.shape_cast %34 : vector<16x16x128xf32> to vector<256x128xf32>
    %c0_60 = arith.constant 0 : index
    %c896 = arith.constant 896 : index
    %36 = vector.load %arg9[%c0_60, %c896] : memref<256x1152xf32, #tpu.memory_space<vmem>>, vector<256x128xf32>
    tpu.vector_store %arg9[%c0_60, %c896], %35 {strides = array<i32>} : memref<256x1152xf32, #tpu.memory_space<vmem>>, vector<256x128xf32>,
    %c2_61 = arith.constant 2 : index
    %c2_62 = arith.constant 2 : index
    %c0_63 = arith.constant 0 : index
    %37 = vector.load %arg7[%c2_61, %c2_62, %c0_63] : memref<18x18x128xf32, #tpu.memory_space<vmem>>, vector<16x16x128xf32>
    %38 = vector.shape_cast %37 : vector<16x16x128xf32> to vector<256x128xf32>
    %c0_64 = arith.constant 0 : index
    %c1024 = arith.constant 1024 : index
    %39 = vector.load %arg9[%c0_64, %c1024] : memref<256x1152xf32, #tpu.memory_space<vmem>>, vector<256x128xf32>
    tpu.vector_store %arg9[%c0_64, %c1024], %38 {strides = array<i32>} : memref<256x1152xf32, #tpu.memory_space<vmem>>, vector<256x128xf32>,
    %c0_65 = arith.constant 0 : index
    %c0_66 = arith.constant 0 : index
    %40 = vector.load %arg9[%c0_65, %c0_66] : memref<256x1152xf32, #tpu.memory_space<vmem>>, vector<256x1152xf32>
    %c0_67 = arith.constant 0 : index
    %c0_68 = arith.constant 0 : index
    %c0_69 = arith.constant 0 : index
    %41 = vector.load %arg2[%c0_67, %c0_68, %c0_69] : memref<4x1152x128xf32, #tpu.memory_space<vmem>>, vector<1x1152x128xf32>
    %42 = vector.shape_cast %41 : vector<1x1152x128xf32> to vector<1152x128xf32>
    %cst_70 = arith.constant dense<0.000000e+00> : vector<256x128xf32>
    %43 = tpu.matmul %40, %42, %cst_70 {dimension_numbers = #tpu.dot_dimension_numbers<[1], [0], [0], [1], [0, 0, 1, 1], [], []>} : vector<256x1152xf32>, vector<1152x128xf32>, vector<256x128xf32> -> vector<256x128xf32>
    %c0_71 = arith.constant 0 : index
    %c0_72 = arith.constant 0 : index
    %c0_73 = arith.constant 0 : index
    %44 = vector.load %arg3[%c0_71, %c0_72, %c0_73] : memref<4x1x128xf32, #tpu.memory_space<vmem>>, vector<1x1x128xf32>
    %45 = vector.shape_cast %44 : vector<1x1x128xf32> to vector<1x128xf32>
    %46 = vector.broadcast %45 : vector<1x128xf32> to vector<256x128xf32>
    %47 = arith.addf %43, %46 : vector<256x128xf32>
    %cst_74 = arith.constant 0.000000e+00 : f32
    %48 = vector.broadcast %cst_74 : f32 to vector<256x128xf32>
    %49 = arith.maximumf %47, %48 : vector<256x128xf32>
    %50 = vector.shape_cast %49 : vector<256x128xf32> to vector<16x16x128xf32>
    %c1_75 = arith.constant 1 : index
    %c1_76 = arith.constant 1 : index
    %c0_77 = arith.constant 0 : index
    %51 = vector.load %arg8[%c1_75, %c1_76, %c0_77] : memref<18x18x128xf32, #tpu.memory_space<vmem>>, vector<16x16x128xf32>
    tpu.vector_store %arg8[%c1_75, %c1_76, %c0_77], %50 {strides = array<i32>} : memref<18x18x128xf32, #tpu.memory_space<vmem>>, vector<16x16x128xf32>,
    %c0_78 = arith.constant 0 : index
    %c0_79 = arith.constant 0 : index
    %c0_80 = arith.constant 0 : index
    %52 = vector.load %arg8[%c0_78, %c0_79, %c0_80] : memref<18x18x128xf32, #tpu.memory_space<vmem>>, vector<16x16x128xf32>
    %53 = vector.shape_cast %52 : vector<16x16x128xf32> to vector<256x128xf32>
    %c0_81 = arith.constant 0 : index
    %c0_82 = arith.constant 0 : index
    %54 = vector.load %arg9[%c0_81, %c0_82] : memref<256x1152xf32, #tpu.memory_space<vmem>>, vector<256x128xf32>
    tpu.vector_store %arg9[%c0_81, %c0_82], %53 {strides = array<i32>} : memref<256x1152xf32, #tpu.memory_space<vmem>>, vector<256x128xf32>,
    %c0_83 = arith.constant 0 : index
    %c1_84 = arith.constant 1 : index
    %c0_85 = arith.constant 0 : index
    %55 = vector.load %arg8[%c0_83, %c1_84, %c0_85] : memref<18x18x128xf32, #tpu.memory_space<vmem>>, vector<16x16x128xf32>
    %56 = vector.shape_cast %55 : vector<16x16x128xf32> to vector<256x128xf32>
    %c0_86 = arith.constant 0 : index
    %c128_87 = arith.constant 128 : index
    %57 = vector.load %arg9[%c0_86, %c128_87] : memref<256x1152xf32, #tpu.memory_space<vmem>>, vector<256x128xf32>
    tpu.vector_store %arg9[%c0_86, %c128_87], %56 {strides = array<i32>} : memref<256x1152xf32, #tpu.memory_space<vmem>>, vector<256x128xf32>,
    %c0_88 = arith.constant 0 : index
    %c2_89 = arith.constant 2 : index
    %c0_90 = arith.constant 0 : index
    %58 = vector.load %arg8[%c0_88, %c2_89, %c0_90] : memref<18x18x128xf32, #tpu.memory_space<vmem>>, vector<16x16x128xf32>
    %59 = vector.shape_cast %58 : vector<16x16x128xf32> to vector<256x128xf32>
    %c0_91 = arith.constant 0 : index
    %c256_92 = arith.constant 256 : index
    %60 = vector.load %arg9[%c0_91, %c256_92] : memref<256x1152xf32, #tpu.memory_space<vmem>>, vector<256x128xf32>
    tpu.vector_store %arg9[%c0_91, %c256_92], %59 {strides = array<i32>} : memref<256x1152xf32, #tpu.memory_space<vmem>>, vector<256x128xf32>,
    %c1_93 = arith.constant 1 : index
    %c0_94 = arith.constant 0 : index
    %c0_95 = arith.constant 0 : index
    %61 = vector.load %arg8[%c1_93, %c0_94, %c0_95] : memref<18x18x128xf32, #tpu.memory_space<vmem>>, vector<16x16x128xf32>
    %62 = vector.shape_cast %61 : vector<16x16x128xf32> to vector<256x128xf32>
    %c0_96 = arith.constant 0 : index
    %c384_97 = arith.constant 384 : index
    %63 = vector.load %arg9[%c0_96, %c384_97] : memref<256x1152xf32, #tpu.memory_space<vmem>>, vector<256x128xf32>
    tpu.vector_store %arg9[%c0_96, %c384_97], %62 {strides = array<i32>} : memref<256x1152xf32, #tpu.memory_space<vmem>>, vector<256x128xf32>,
    %c1_98 = arith.constant 1 : index
    %c1_99 = arith.constant 1 : index
    %c0_100 = arith.constant 0 : index
    %64 = vector.load %arg8[%c1_98, %c1_99, %c0_100] : memref<18x18x128xf32, #tpu.memory_space<vmem>>, vector<16x16x128xf32>
    %65 = vector.shape_cast %64 : vector<16x16x128xf32> to vector<256x128xf32>
    %c0_101 = arith.constant 0 : index
    %c512_102 = arith.constant 512 : index
    %66 = vector.load %arg9[%c0_101, %c512_102] : memref<256x1152xf32, #tpu.memory_space<vmem>>, vector<256x128xf32>
    tpu.vector_store %arg9[%c0_101, %c512_102], %65 {strides = array<i32>} : memref<256x1152xf32, #tpu.memory_space<vmem>>, vector<256x128xf32>,
    %c1_103 = arith.constant 1 : index
    %c2_104 = arith.constant 2 : index
    %c0_105 = arith.constant 0 : index
    %67 = vector.load %arg8[%c1_103, %c2_104, %c0_105] : memref<18x18x128xf32, #tpu.memory_space<vmem>>, vector<16x16x128xf32>
    %68 = vector.shape_cast %67 : vector<16x16x128xf32> to vector<256x128xf32>
    %c0_106 = arith.constant 0 : index
    %c640_107 = arith.constant 640 : index
    %69 = vector.load %arg9[%c0_106, %c640_107] : memref<256x1152xf32, #tpu.memory_space<vmem>>, vector<256x128xf32>
    tpu.vector_store %arg9[%c0_106, %c640_107], %68 {strides = array<i32>} : memref<256x1152xf32, #tpu.memory_space<vmem>>, vector<256x128xf32>,
    %c2_108 = arith.constant 2 : index
    %c0_109 = arith.constant 0 : index
    %c0_110 = arith.constant 0 : index
    %70 = vector.load %arg8[%c2_108, %c0_109, %c0_110] : memref<18x18x128xf32, #tpu.memory_space<vmem>>, vector<16x16x128xf32>
    %71 = vector.shape_cast %70 : vector<16x16x128xf32> to vector<256x128xf32>
    %c0_111 = arith.constant 0 : index
    %c768_112 = arith.constant 768 : index
    %72 = vector.load %arg9[%c0_111, %c768_112] : memref<256x1152xf32, #tpu.memory_space<vmem>>, vector<256x128xf32>
    tpu.vector_store %arg9[%c0_111, %c768_112], %71 {strides = array<i32>} : memref<256x1152xf32, #tpu.memory_space<vmem>>, vector<256x128xf32>,
    %c2_113 = arith.constant 2 : index
    %c1_114 = arith.constant 1 : index
    %c0_115 = arith.constant 0 : index
    %73 = vector.load %arg8[%c2_113, %c1_114, %c0_115] : memref<18x18x128xf32, #tpu.memory_space<vmem>>, vector<16x16x128xf32>
    %74 = vector.shape_cast %73 : vector<16x16x128xf32> to vector<256x128xf32>
    %c0_116 = arith.constant 0 : index
    %c896_117 = arith.constant 896 : index
    %75 = vector.load %arg9[%c0_116, %c896_117] : memref<256x1152xf32, #tpu.memory_space<vmem>>, vector<256x128xf32>
    tpu.vector_store %arg9[%c0_116, %c896_117], %74 {strides = array<i32>} : memref<256x1152xf32, #tpu.memory_space<vmem>>, vector<256x128xf32>,
    %c2_118 = arith.constant 2 : index
    %c2_119 = arith.constant 2 : index
    %c0_120 = arith.constant 0 : index
    %76 = vector.load %arg8[%c2_118, %c2_119, %c0_120] : memref<18x18x128xf32, #tpu.memory_space<vmem>>, vector<16x16x128xf32>
    %77 = vector.shape_cast %76 : vector<16x16x128xf32> to vector<256x128xf32>
    %c0_121 = arith.constant 0 : index
    %c1024_122 = arith.constant 1024 : index
    %78 = vector.load %arg9[%c0_121, %c1024_122] : memref<256x1152xf32, #tpu.memory_space<vmem>>, vector<256x128xf32>
    tpu.vector_store %arg9[%c0_121, %c1024_122], %77 {strides = array<i32>} : memref<256x1152xf32, #tpu.memory_space<vmem>>, vector<256x128xf32>,
    %c0_123 = arith.constant 0 : index
    %c0_124 = arith.constant 0 : index
    %79 = vector.load %arg9[%c0_123, %c0_124] : memref<256x1152xf32, #tpu.memory_space<vmem>>, vector<256x1152xf32>
    %c1_125 = arith.constant 1 : index
    %c0_126 = arith.constant 0 : index
    %c0_127 = arith.constant 0 : index
    %80 = vector.load %arg2[%c1_125, %c0_126, %c0_127] : memref<4x1152x128xf32, #tpu.memory_space<vmem>>, vector<1x1152x128xf32>
    %81 = vector.shape_cast %80 : vector<1x1152x128xf32> to vector<1152x128xf32>
    %cst_128 = arith.constant dense<0.000000e+00> : vector<256x128xf32>
    %82 = tpu.matmul %79, %81, %cst_128 {dimension_numbers = #tpu.dot_dimension_numbers<[1], [0], [0], [1], [0, 0, 1, 1], [], []>} : vector<256x1152xf32>, vector<1152x128xf32>, vector<256x128xf32> -> vector<256x128xf32>
    %c1_129 = arith.constant 1 : index
    %c0_130 = arith.constant 0 : index
    %c0_131 = arith.constant 0 : index
    %83 = vector.load %arg3[%c1_129, %c0_130, %c0_131] : memref<4x1x128xf32, #tpu.memory_space<vmem>>, vector<1x1x128xf32>
    %84 = vector.shape_cast %83 : vector<1x1x128xf32> to vector<1x128xf32>
    %85 = vector.broadcast %84 : vector<1x128xf32> to vector<256x128xf32>
    %86 = arith.addf %82, %85 : vector<256x128xf32>
    %cst_132 = arith.constant 0.000000e+00 : f32
    %87 = vector.broadcast %cst_132 : f32 to vector<256x128xf32>
    %88 = arith.maximumf %86, %87 : vector<256x128xf32>
    %89 = vector.shape_cast %88 : vector<256x128xf32> to vector<16x16x128xf32>
    %c1_133 = arith.constant 1 : index
    %c1_134 = arith.constant 1 : index
    %c0_135 = arith.constant 0 : index
    %90 = vector.load %arg7[%c1_133, %c1_134, %c0_135] : memref<18x18x128xf32, #tpu.memory_space<vmem>>, vector<16x16x128xf32>
    tpu.vector_store %arg7[%c1_133, %c1_134, %c0_135], %89 {strides = array<i32>} : memref<18x18x128xf32, #tpu.memory_space<vmem>>, vector<16x16x128xf32>,
    %c0_136 = arith.constant 0 : index
    %c0_137 = arith.constant 0 : index
    %c0_138 = arith.constant 0 : index
    %91 = vector.load %arg7[%c0_136, %c0_137, %c0_138] : memref<18x18x128xf32, #tpu.memory_space<vmem>>, vector<16x16x128xf32>
    %92 = vector.shape_cast %91 : vector<16x16x128xf32> to vector<256x128xf32>
    %c0_139 = arith.constant 0 : index
    %c0_140 = arith.constant 0 : index
    %93 = vector.load %arg9[%c0_139, %c0_140] : memref<256x1152xf32, #tpu.memory_space<vmem>>, vector<256x128xf32>
    tpu.vector_store %arg9[%c0_139, %c0_140], %92 {strides = array<i32>} : memref<256x1152xf32, #tpu.memory_space<vmem>>, vector<256x128xf32>,
    %c0_141 = arith.constant 0 : index
    %c1_142 = arith.constant 1 : index
    %c0_143 = arith.constant 0 : index
    %94 = vector.load %arg7[%c0_141, %c1_142, %c0_143] : memref<18x18x128xf32, #tpu.memory_space<vmem>>, vector<16x16x128xf32>
    %95 = vector.shape_cast %94 : vector<16x16x128xf32> to vector<256x128xf32>
    %c0_144 = arith.constant 0 : index
    %c128_145 = arith.constant 128 : index
    %96 = vector.load %arg9[%c0_144, %c128_145] : memref<256x1152xf32, #tpu.memory_space<vmem>>, vector<256x128xf32>
    tpu.vector_store %arg9[%c0_144, %c128_145], %95 {strides = array<i32>} : memref<256x1152xf32, #tpu.memory_space<vmem>>, vector<256x128xf32>,
    %c0_146 = arith.constant 0 : index
    %c2_147 = arith.constant 2 : index
    %c0_148 = arith.constant 0 : index
    %97 = vector.load %arg7[%c0_146, %c2_147, %c0_148] : memref<18x18x128xf32, #tpu.memory_space<vmem>>, vector<16x16x128xf32>
    %98 = vector.shape_cast %97 : vector<16x16x128xf32> to vector<256x128xf32>
    %c0_149 = arith.constant 0 : index
    %c256_150 = arith.constant 256 : index
    %99 = vector.load %arg9[%c0_149, %c256_150] : memref<256x1152xf32, #tpu.memory_space<vmem>>, vector<256x128xf32>
    tpu.vector_store %arg9[%c0_149, %c256_150], %98 {strides = array<i32>} : memref<256x1152xf32, #tpu.memory_space<vmem>>, vector<256x128xf32>,
    %c1_151 = arith.constant 1 : index
    %c0_152 = arith.constant 0 : index
    %c0_153 = arith.constant 0 : index
    %100 = vector.load %arg7[%c1_151, %c0_152, %c0_153] : memref<18x18x128xf32, #tpu.memory_space<vmem>>, vector<16x16x128xf32>
    %101 = vector.shape_cast %100 : vector<16x16x128xf32> to vector<256x128xf32>
    %c0_154 = arith.constant 0 : index
    %c384_155 = arith.constant 384 : index
    %102 = vector.load %arg9[%c0_154, %c384_155] : memref<256x1152xf32, #tpu.memory_space<vmem>>, vector<256x128xf32>
    tpu.vector_store %arg9[%c0_154, %c384_155], %101 {strides = array<i32>} : memref<256x1152xf32, #tpu.memory_space<vmem>>, vector<256x128xf32>,
    %c1_156 = arith.constant 1 : index
    %c1_157 = arith.constant 1 : index
    %c0_158 = arith.constant 0 : index
    %103 = vector.load %arg7[%c1_156, %c1_157, %c0_158] : memref<18x18x128xf32, #tpu.memory_space<vmem>>, vector<16x16x128xf32>
    %104 = vector.shape_cast %103 : vector<16x16x128xf32> to vector<256x128xf32>
    %c0_159 = arith.constant 0 : index
    %c512_160 = arith.constant 512 : index
    %105 = vector.load %arg9[%c0_159, %c512_160] : memref<256x1152xf32, #tpu.memory_space<vmem>>, vector<256x128xf32>
    tpu.vector_store %arg9[%c0_159, %c512_160], %104 {strides = array<i32>} : memref<256x1152xf32, #tpu.memory_space<vmem>>, vector<256x128xf32>,
    %c1_161 = arith.constant 1 : index
    %c2_162 = arith.constant 2 : index
    %c0_163 = arith.constant 0 : index
    %106 = vector.load %arg7[%c1_161, %c2_162, %c0_163] : memref<18x18x128xf32, #tpu.memory_space<vmem>>, vector<16x16x128xf32>
    %107 = vector.shape_cast %106 : vector<16x16x128xf32> to vector<256x128xf32>
    %c0_164 = arith.constant 0 : index
    %c640_165 = arith.constant 640 : index
    %108 = vector.load %arg9[%c0_164, %c640_165] : memref<256x1152xf32, #tpu.memory_space<vmem>>, vector<256x128xf32>
    tpu.vector_store %arg9[%c0_164, %c640_165], %107 {strides = array<i32>} : memref<256x1152xf32, #tpu.memory_space<vmem>>, vector<256x128xf32>,
    %c2_166 = arith.constant 2 : index
    %c0_167 = arith.constant 0 : index
    %c0_168 = arith.constant 0 : index
    %109 = vector.load %arg7[%c2_166, %c0_167, %c0_168] : memref<18x18x128xf32, #tpu.memory_space<vmem>>, vector<16x16x128xf32>
    %110 = vector.shape_cast %109 : vector<16x16x128xf32> to vector<256x128xf32>
    %c0_169 = arith.constant 0 : index
    %c768_170 = arith.constant 768 : index
    %111 = vector.load %arg9[%c0_169, %c768_170] : memref<256x1152xf32, #tpu.memory_space<vmem>>, vector<256x128xf32>
    tpu.vector_store %arg9[%c0_169, %c768_170], %110 {strides = array<i32>} : memref<256x1152xf32, #tpu.memory_space<vmem>>, vector<256x128xf32>,
    %c2_171 = arith.constant 2 : index
    %c1_172 = arith.constant 1 : index
    %c0_173 = arith.constant 0 : index
    %112 = vector.load %arg7[%c2_171, %c1_172, %c0_173] : memref<18x18x128xf32, #tpu.memory_space<vmem>>, vector<16x16x128xf32>
    %113 = vector.shape_cast %112 : vector<16x16x128xf32> to vector<256x128xf32>
    %c0_174 = arith.constant 0 : index
    %c896_175 = arith.constant 896 : index
    %114 = vector.load %arg9[%c0_174, %c896_175] : memref<256x1152xf32, #tpu.memory_space<vmem>>, vector<256x128xf32>
    tpu.vector_store %arg9[%c0_174, %c896_175], %113 {strides = array<i32>} : memref<256x1152xf32, #tpu.memory_space<vmem>>, vector<256x128xf32>,
    %c2_176 = arith.constant 2 : index
    %c2_177 = arith.constant 2 : index
    %c0_178 = arith.constant 0 : index
    %115 = vector.load %arg7[%c2_176, %c2_177, %c0_178] : memref<18x18x128xf32, #tpu.memory_space<vmem>>, vector<16x16x128xf32>
    %116 = vector.shape_cast %115 : vector<16x16x128xf32> to vector<256x128xf32>
    %c0_179 = arith.constant 0 : index
    %c1024_180 = arith.constant 1024 : index
    %117 = vector.load %arg9[%c0_179, %c1024_180] : memref<256x1152xf32, #tpu.memory_space<vmem>>, vector<256x128xf32>
    tpu.vector_store %arg9[%c0_179, %c1024_180], %116 {strides = array<i32>} : memref<256x1152xf32, #tpu.memory_space<vmem>>, vector<256x128xf32>,
    %c0_181 = arith.constant 0 : index
    %c0_182 = arith.constant 0 : index
    %118 = vector.load %arg9[%c0_181, %c0_182] : memref<256x1152xf32, #tpu.memory_space<vmem>>, vector<256x1152xf32>
    %c2_183 = arith.constant 2 : index
    %c0_184 = arith.constant 0 : index
    %c0_185 = arith.constant 0 : index
    %119 = vector.load %arg2[%c2_183, %c0_184, %c0_185] : memref<4x1152x128xf32, #tpu.memory_space<vmem>>, vector<1x1152x128xf32>
    %120 = vector.shape_cast %119 : vector<1x1152x128xf32> to vector<1152x128xf32>
    %cst_186 = arith.constant dense<0.000000e+00> : vector<256x128xf32>
    %121 = tpu.matmul %118, %120, %cst_186 {dimension_numbers = #tpu.dot_dimension_numbers<[1], [0], [0], [1], [0, 0, 1, 1], [], []>} : vector<256x1152xf32>, vector<1152x128xf32>, vector<256x128xf32> -> vector<256x128xf32>
    %c2_187 = arith.constant 2 : index
    %c0_188 = arith.constant 0 : index
    %c0_189 = arith.constant 0 : index
    %122 = vector.load %arg3[%c2_187, %c0_188, %c0_189] : memref<4x1x128xf32, #tpu.memory_space<vmem>>, vector<1x1x128xf32>
    %123 = vector.shape_cast %122 : vector<1x1x128xf32> to vector<1x128xf32>
    %124 = vector.broadcast %123 : vector<1x128xf32> to vector<256x128xf32>
    %125 = arith.addf %121, %124 : vector<256x128xf32>
    %cst_190 = arith.constant 0.000000e+00 : f32
    %126 = vector.broadcast %cst_190 : f32 to vector<256x128xf32>
    %127 = arith.maximumf %125, %126 : vector<256x128xf32>
    %128 = vector.shape_cast %127 : vector<256x128xf32> to vector<16x16x128xf32>
    %c1_191 = arith.constant 1 : index
    %c1_192 = arith.constant 1 : index
    %c0_193 = arith.constant 0 : index
    %129 = vector.load %arg8[%c1_191, %c1_192, %c0_193] : memref<18x18x128xf32, #tpu.memory_space<vmem>>, vector<16x16x128xf32>
    tpu.vector_store %arg8[%c1_191, %c1_192, %c0_193], %128 {strides = array<i32>} : memref<18x18x128xf32, #tpu.memory_space<vmem>>, vector<16x16x128xf32>,
    %c0_194 = arith.constant 0 : index
    %c0_195 = arith.constant 0 : index
    %c0_196 = arith.constant 0 : index
    %130 = vector.load %arg8[%c0_194, %c0_195, %c0_196] : memref<18x18x128xf32, #tpu.memory_space<vmem>>, vector<16x16x128xf32>
    %131 = vector.shape_cast %130 : vector<16x16x128xf32> to vector<256x128xf32>
    %c0_197 = arith.constant 0 : index
    %c0_198 = arith.constant 0 : index
    %132 = vector.load %arg9[%c0_197, %c0_198] : memref<256x1152xf32, #tpu.memory_space<vmem>>, vector<256x128xf32>
    tpu.vector_store %arg9[%c0_197, %c0_198], %131 {strides = array<i32>} : memref<256x1152xf32, #tpu.memory_space<vmem>>, vector<256x128xf32>,
    %c0_199 = arith.constant 0 : index
    %c1_200 = arith.constant 1 : index
    %c0_201 = arith.constant 0 : index
    %133 = vector.load %arg8[%c0_199, %c1_200, %c0_201] : memref<18x18x128xf32, #tpu.memory_space<vmem>>, vector<16x16x128xf32>
    %134 = vector.shape_cast %133 : vector<16x16x128xf32> to vector<256x128xf32>
    %c0_202 = arith.constant 0 : index
    %c128_203 = arith.constant 128 : index
    %135 = vector.load %arg9[%c0_202, %c128_203] : memref<256x1152xf32, #tpu.memory_space<vmem>>, vector<256x128xf32>
    tpu.vector_store %arg9[%c0_202, %c128_203], %134 {strides = array<i32>} : memref<256x1152xf32, #tpu.memory_space<vmem>>, vector<256x128xf32>,
    %c0_204 = arith.constant 0 : index
    %c2_205 = arith.constant 2 : index
    %c0_206 = arith.constant 0 : index
    %136 = vector.load %arg8[%c0_204, %c2_205, %c0_206] : memref<18x18x128xf32, #tpu.memory_space<vmem>>, vector<16x16x128xf32>
    %137 = vector.shape_cast %136 : vector<16x16x128xf32> to vector<256x128xf32>
    %c0_207 = arith.constant 0 : index
    %c256_208 = arith.constant 256 : index
    %138 = vector.load %arg9[%c0_207, %c256_208] : memref<256x1152xf32, #tpu.memory_space<vmem>>, vector<256x128xf32>
    tpu.vector_store %arg9[%c0_207, %c256_208], %137 {strides = array<i32>} : memref<256x1152xf32, #tpu.memory_space<vmem>>, vector<256x128xf32>,
    %c1_209 = arith.constant 1 : index
    %c0_210 = arith.constant 0 : index
    %c0_211 = arith.constant 0 : index
    %139 = vector.load %arg8[%c1_209, %c0_210, %c0_211] : memref<18x18x128xf32, #tpu.memory_space<vmem>>, vector<16x16x128xf32>
    %140 = vector.shape_cast %139 : vector<16x16x128xf32> to vector<256x128xf32>
    %c0_212 = arith.constant 0 : index
    %c384_213 = arith.constant 384 : index
    %141 = vector.load %arg9[%c0_212, %c384_213] : memref<256x1152xf32, #tpu.memory_space<vmem>>, vector<256x128xf32>
    tpu.vector_store %arg9[%c0_212, %c384_213], %140 {strides = array<i32>} : memref<256x1152xf32, #tpu.memory_space<vmem>>, vector<256x128xf32>,
    %c1_214 = arith.constant 1 : index
    %c1_215 = arith.constant 1 : index
    %c0_216 = arith.constant 0 : index
    %142 = vector.load %arg8[%c1_214, %c1_215, %c0_216] : memref<18x18x128xf32, #tpu.memory_space<vmem>>, vector<16x16x128xf32>
    %143 = vector.shape_cast %142 : vector<16x16x128xf32> to vector<256x128xf32>
    %c0_217 = arith.constant 0 : index
    %c512_218 = arith.constant 512 : index
    %144 = vector.load %arg9[%c0_217, %c512_218] : memref<256x1152xf32, #tpu.memory_space<vmem>>, vector<256x128xf32>
    tpu.vector_store %arg9[%c0_217, %c512_218], %143 {strides = array<i32>} : memref<256x1152xf32, #tpu.memory_space<vmem>>, vector<256x128xf32>,
    %c1_219 = arith.constant 1 : index
    %c2_220 = arith.constant 2 : index
    %c0_221 = arith.constant 0 : index
    %145 = vector.load %arg8[%c1_219, %c2_220, %c0_221] : memref<18x18x128xf32, #tpu.memory_space<vmem>>, vector<16x16x128xf32>
    %146 = vector.shape_cast %145 : vector<16x16x128xf32> to vector<256x128xf32>
    %c0_222 = arith.constant 0 : index
    %c640_223 = arith.constant 640 : index
    %147 = vector.load %arg9[%c0_222, %c640_223] : memref<256x1152xf32, #tpu.memory_space<vmem>>, vector<256x128xf32>
    tpu.vector_store %arg9[%c0_222, %c640_223], %146 {strides = array<i32>} : memref<256x1152xf32, #tpu.memory_space<vmem>>, vector<256x128xf32>,
    %c2_224 = arith.constant 2 : index
    %c0_225 = arith.constant 0 : index
    %c0_226 = arith.constant 0 : index
    %148 = vector.load %arg8[%c2_224, %c0_225, %c0_226] : memref<18x18x128xf32, #tpu.memory_space<vmem>>, vector<16x16x128xf32>
    %149 = vector.shape_cast %148 : vector<16x16x128xf32> to vector<256x128xf32>
    %c0_227 = arith.constant 0 : index
    %c768_228 = arith.constant 768 : index
    %150 = vector.load %arg9[%c0_227, %c768_228] : memref<256x1152xf32, #tpu.memory_space<vmem>>, vector<256x128xf32>
    tpu.vector_store %arg9[%c0_227, %c768_228], %149 {strides = array<i32>} : memref<256x1152xf32, #tpu.memory_space<vmem>>, vector<256x128xf32>,
    %c2_229 = arith.constant 2 : index
    %c1_230 = arith.constant 1 : index
    %c0_231 = arith.constant 0 : index
    %151 = vector.load %arg8[%c2_229, %c1_230, %c0_231] : memref<18x18x128xf32, #tpu.memory_space<vmem>>, vector<16x16x128xf32>
    %152 = vector.shape_cast %151 : vector<16x16x128xf32> to vector<256x128xf32>
    %c0_232 = arith.constant 0 : index
    %c896_233 = arith.constant 896 : index
    %153 = vector.load %arg9[%c0_232, %c896_233] : memref<256x1152xf32, #tpu.memory_space<vmem>>, vector<256x128xf32>
    tpu.vector_store %arg9[%c0_232, %c896_233], %152 {strides = array<i32>} : memref<256x1152xf32, #tpu.memory_space<vmem>>, vector<256x128xf32>,
    %c2_234 = arith.constant 2 : index
    %c2_235 = arith.constant 2 : index
    %c0_236 = arith.constant 0 : index
    %154 = vector.load %arg8[%c2_234, %c2_235, %c0_236] : memref<18x18x128xf32, #tpu.memory_space<vmem>>, vector<16x16x128xf32>
    %155 = vector.shape_cast %154 : vector<16x16x128xf32> to vector<256x128xf32>
    %c0_237 = arith.constant 0 : index
    %c1024_238 = arith.constant 1024 : index
    %156 = vector.load %arg9[%c0_237, %c1024_238] : memref<256x1152xf32, #tpu.memory_space<vmem>>, vector<256x128xf32>
    tpu.vector_store %arg9[%c0_237, %c1024_238], %155 {strides = array<i32>} : memref<256x1152xf32, #tpu.memory_space<vmem>>, vector<256x128xf32>,
    %c0_239 = arith.constant 0 : index
    %c0_240 = arith.constant 0 : index
    %157 = vector.load %arg9[%c0_239, %c0_240] : memref<256x1152xf32, #tpu.memory_space<vmem>>, vector<256x1152xf32>
    %c3 = arith.constant 3 : index
    %c0_241 = arith.constant 0 : index
    %c0_242 = arith.constant 0 : index
    %158 = vector.load %arg2[%c3, %c0_241, %c0_242] : memref<4x1152x128xf32, #tpu.memory_space<vmem>>, vector<1x1152x128xf32>
    %159 = vector.shape_cast %158 : vector<1x1152x128xf32> to vector<1152x128xf32>
    %cst_243 = arith.constant dense<0.000000e+00> : vector<256x128xf32>
    %160 = tpu.matmul %157, %159, %cst_243 {dimension_numbers = #tpu.dot_dimension_numbers<[1], [0], [0], [1], [0, 0, 1, 1], [], []>} : vector<256x1152xf32>, vector<1152x128xf32>, vector<256x128xf32> -> vector<256x128xf32>
    %c3_244 = arith.constant 3 : index
    %c0_245 = arith.constant 0 : index
    %c0_246 = arith.constant 0 : index
    %161 = vector.load %arg3[%c3_244, %c0_245, %c0_246] : memref<4x1x128xf32, #tpu.memory_space<vmem>>, vector<1x1x128xf32>
    %162 = vector.shape_cast %161 : vector<1x1x128xf32> to vector<1x128xf32>
    %163 = vector.broadcast %162 : vector<1x128xf32> to vector<256x128xf32>
    %164 = arith.addf %160, %163 : vector<256x128xf32>
    %cst_247 = arith.constant 0.000000e+00 : f32
    %165 = vector.broadcast %cst_247 : f32 to vector<256x128xf32>
    %166 = arith.maximumf %164, %165 : vector<256x128xf32>
    %167 = vector.shape_cast %166 : vector<256x128xf32> to vector<16x16x128xf32>
    %c1_248 = arith.constant 1 : index
    %c1_249 = arith.constant 1 : index
    %c0_250 = arith.constant 0 : index
    %168 = vector.load %arg7[%c1_248, %c1_249, %c0_250] : memref<18x18x128xf32, #tpu.memory_space<vmem>>, vector<16x16x128xf32>
    tpu.vector_store %arg7[%c1_248, %c1_249, %c0_250], %167 {strides = array<i32>} : memref<18x18x128xf32, #tpu.memory_space<vmem>>, vector<16x16x128xf32>,
    %c0_251 = arith.constant 0 : index
    %c0_252 = arith.constant 0 : index
    %c0_253 = arith.constant 0 : index
    %169 = vector.load %arg7[%c0_251, %c0_252, %c0_253] : memref<18x18x128xf32, #tpu.memory_space<vmem>>, vector<16x16x128xf32>
    %170 = vector.shape_cast %169 : vector<16x16x128xf32> to vector<256x128xf32>
    %c0_254 = arith.constant 0 : index
    %c0_255 = arith.constant 0 : index
    %171 = vector.load %arg9[%c0_254, %c0_255] : memref<256x1152xf32, #tpu.memory_space<vmem>>, vector<256x128xf32>
    tpu.vector_store %arg9[%c0_254, %c0_255], %170 {strides = array<i32>} : memref<256x1152xf32, #tpu.memory_space<vmem>>, vector<256x128xf32>,
    %c0_256 = arith.constant 0 : index
    %c1_257 = arith.constant 1 : index
    %c0_258 = arith.constant 0 : index
    %172 = vector.load %arg7[%c0_256, %c1_257, %c0_258] : memref<18x18x128xf32, #tpu.memory_space<vmem>>, vector<16x16x128xf32>
    %173 = vector.shape_cast %172 : vector<16x16x128xf32> to vector<256x128xf32>
    %c0_259 = arith.constant 0 : index
    %c128_260 = arith.constant 128 : index
    %174 = vector.load %arg9[%c0_259, %c128_260] : memref<256x1152xf32, #tpu.memory_space<vmem>>, vector<256x128xf32>
    tpu.vector_store %arg9[%c0_259, %c128_260], %173 {strides = array<i32>} : memref<256x1152xf32, #tpu.memory_space<vmem>>, vector<256x128xf32>,
    %c0_261 = arith.constant 0 : index
    %c2_262 = arith.constant 2 : index
    %c0_263 = arith.constant 0 : index
    %175 = vector.load %arg7[%c0_261, %c2_262, %c0_263] : memref<18x18x128xf32, #tpu.memory_space<vmem>>, vector<16x16x128xf32>
    %176 = vector.shape_cast %175 : vector<16x16x128xf32> to vector<256x128xf32>
    %c0_264 = arith.constant 0 : index
    %c256_265 = arith.constant 256 : index
    %177 = vector.load %arg9[%c0_264, %c256_265] : memref<256x1152xf32, #tpu.memory_space<vmem>>, vector<256x128xf32>
    tpu.vector_store %arg9[%c0_264, %c256_265], %176 {strides = array<i32>} : memref<256x1152xf32, #tpu.memory_space<vmem>>, vector<256x128xf32>,
    %c1_266 = arith.constant 1 : index
    %c0_267 = arith.constant 0 : index
    %c0_268 = arith.constant 0 : index
    %178 = vector.load %arg7[%c1_266, %c0_267, %c0_268] : memref<18x18x128xf32, #tpu.memory_space<vmem>>, vector<16x16x128xf32>
    %179 = vector.shape_cast %178 : vector<16x16x128xf32> to vector<256x128xf32>
    %c0_269 = arith.constant 0 : index
    %c384_270 = arith.constant 384 : index
    %180 = vector.load %arg9[%c0_269, %c384_270] : memref<256x1152xf32, #tpu.memory_space<vmem>>, vector<256x128xf32>
    tpu.vector_store %arg9[%c0_269, %c384_270], %179 {strides = array<i32>} : memref<256x1152xf32, #tpu.memory_space<vmem>>, vector<256x128xf32>,
    %c1_271 = arith.constant 1 : index
    %c1_272 = arith.constant 1 : index
    %c0_273 = arith.constant 0 : index
    %181 = vector.load %arg7[%c1_271, %c1_272, %c0_273] : memref<18x18x128xf32, #tpu.memory_space<vmem>>, vector<16x16x128xf32>
    %182 = vector.shape_cast %181 : vector<16x16x128xf32> to vector<256x128xf32>
    %c0_274 = arith.constant 0 : index
    %c512_275 = arith.constant 512 : index
    %183 = vector.load %arg9[%c0_274, %c512_275] : memref<256x1152xf32, #tpu.memory_space<vmem>>, vector<256x128xf32>
    tpu.vector_store %arg9[%c0_274, %c512_275], %182 {strides = array<i32>} : memref<256x1152xf32, #tpu.memory_space<vmem>>, vector<256x128xf32>,
    %c1_276 = arith.constant 1 : index
    %c2_277 = arith.constant 2 : index
    %c0_278 = arith.constant 0 : index
    %184 = vector.load %arg7[%c1_276, %c2_277, %c0_278] : memref<18x18x128xf32, #tpu.memory_space<vmem>>, vector<16x16x128xf32>
    %185 = vector.shape_cast %184 : vector<16x16x128xf32> to vector<256x128xf32>
    %c0_279 = arith.constant 0 : index
    %c640_280 = arith.constant 640 : index
    %186 = vector.load %arg9[%c0_279, %c640_280] : memref<256x1152xf32, #tpu.memory_space<vmem>>, vector<256x128xf32>
    tpu.vector_store %arg9[%c0_279, %c640_280], %185 {strides = array<i32>} : memref<256x1152xf32, #tpu.memory_space<vmem>>, vector<256x128xf32>,
    %c2_281 = arith.constant 2 : index
    %c0_282 = arith.constant 0 : index
    %c0_283 = arith.constant 0 : index
    %187 = vector.load %arg7[%c2_281, %c0_282, %c0_283] : memref<18x18x128xf32, #tpu.memory_space<vmem>>, vector<16x16x128xf32>
    %188 = vector.shape_cast %187 : vector<16x16x128xf32> to vector<256x128xf32>
    %c0_284 = arith.constant 0 : index
    %c768_285 = arith.constant 768 : index
    %189 = vector.load %arg9[%c0_284, %c768_285] : memref<256x1152xf32, #tpu.memory_space<vmem>>, vector<256x128xf32>
    tpu.vector_store %arg9[%c0_284, %c768_285], %188 {strides = array<i32>} : memref<256x1152xf32, #tpu.memory_space<vmem>>, vector<256x128xf32>,
    %c2_286 = arith.constant 2 : index
    %c1_287 = arith.constant 1 : index
    %c0_288 = arith.constant 0 : index
    %190 = vector.load %arg7[%c2_286, %c1_287, %c0_288] : memref<18x18x128xf32, #tpu.memory_space<vmem>>, vector<16x16x128xf32>
    %191 = vector.shape_cast %190 : vector<16x16x128xf32> to vector<256x128xf32>
    %c0_289 = arith.constant 0 : index
    %c896_290 = arith.constant 896 : index
    %192 = vector.load %arg9[%c0_289, %c896_290] : memref<256x1152xf32, #tpu.memory_space<vmem>>, vector<256x128xf32>
    tpu.vector_store %arg9[%c0_289, %c896_290], %191 {strides = array<i32>} : memref<256x1152xf32, #tpu.memory_space<vmem>>, vector<256x128xf32>,
    %c2_291 = arith.constant 2 : index
    %c2_292 = arith.constant 2 : index
    %c0_293 = arith.constant 0 : index
    %193 = vector.load %arg7[%c2_291, %c2_292, %c0_293] : memref<18x18x128xf32, #tpu.memory_space<vmem>>, vector<16x16x128xf32>
    %194 = vector.shape_cast %193 : vector<16x16x128xf32> to vector<256x128xf32>
    %c0_294 = arith.constant 0 : index
    %c1024_295 = arith.constant 1024 : index
    %195 = vector.load %arg9[%c0_294, %c1024_295] : memref<256x1152xf32, #tpu.memory_space<vmem>>, vector<256x128xf32>
    tpu.vector_store %arg9[%c0_294, %c1024_295], %194 {strides = array<i32>} : memref<256x1152xf32, #tpu.memory_space<vmem>>, vector<256x128xf32>,
    %c0_296 = arith.constant 0 : index
    %c0_297 = arith.constant 0 : index
    %196 = vector.load %arg9[%c0_296, %c0_297] : memref<256x1152xf32, #tpu.memory_space<vmem>>, vector<256x1152xf32>
    %c0_298 = arith.constant 0 : index
    %c0_299 = arith.constant 0 : index
    %197 = vector.load %arg4[%c0_298, %c0_299] : memref<1152x128xf32, #tpu.memory_space<vmem>>, vector<1152x128xf32>
    %cst_300 = arith.constant dense<0.000000e+00> : vector<256x128xf32>
    %198 = tpu.matmul %196, %197, %cst_300 {dimension_numbers = #tpu.dot_dimension_numbers<[1], [0], [0], [1], [0, 0, 1, 1], [], []>} : vector<256x1152xf32>, vector<1152x128xf32>, vector<256x128xf32> -> vector<256x128xf32>
    %c0_301 = arith.constant 0 : index
    %c0_302 = arith.constant 0 : index
    %199 = vector.load %arg5[%c0_301, %c0_302] : memref<1x128xf32, #tpu.memory_space<vmem>>, vector<1x128xf32>
    %200 = vector.broadcast %199 : vector<1x128xf32> to vector<256x128xf32>
    %201 = arith.addf %198, %200 : vector<256x128xf32>
    %202 = vector.shape_cast %201 : vector<256x128xf32> to vector<1x256x128xf32>
    %c0_303 = arith.constant 0 : index
    %c0_304 = arith.constant 0 : index
    %c0_305 = arith.constant 0 : index
    %203 = vector.load %arg6[%c0_303, %c0_304, %c0_305] : memref<1x256x128xf32, #tpu.memory_space<vmem>>, vector<1x256x128xf32>
    tpu.vector_store %arg6[%c0_303, %c0_304, %c0_305], %202 {strides = array<i32>} : memref<1x256x128xf32, #tpu.memory_space<vmem>>, vector<1x256x128xf32>,
    return
  }
  func.func @transform_0(%arg0: i32) -> (i32, i32, i32, i32) {
    %c0_i32 = arith.constant 0 : i32
    %c0_i32_0 = arith.constant 0 : i32
    %c0_i32_1 = arith.constant 0 : i32
    %c0_i32_2 = arith.constant 0 : i32
    return %arg0, %c0_i32, %c0_i32_0, %c0_i32_1 : i32, i32, i32, i32
  }
  func.func @transform_1(%arg0: i32) -> (i32, i32, i32) {
    %c0_i32 = arith.constant 0 : i32
    %c0_i32_0 = arith.constant 0 : i32
    %c0_i32_1 = arith.constant 0 : i32
    %c0_i32_2 = arith.constant 0 : i32
    return %c0_i32, %c0_i32_0, %c0_i32_1 : i32, i32, i32
  }
  func.func @transform_2(%arg0: i32) -> (i32, i32, i32) {
    %c0_i32 = arith.constant 0 : i32
    %c0_i32_0 = arith.constant 0 : i32
    %c0_i32_1 = arith.constant 0 : i32
    %c0_i32_2 = arith.constant 0 : i32
    return %c0_i32, %c0_i32_0, %c0_i32_1 : i32, i32, i32
  }
  func.func @transform_3(%arg0: i32) -> (i32, i32) {
    %c0_i32 = arith.constant 0 : i32
    %c0_i32_0 = arith.constant 0 : i32
    %c0_i32_1 = arith.constant 0 : i32
    return %c0_i32, %c0_i32_0 : i32, i32
  }
  func.func @transform_4(%arg0: i32) -> (i32, i32) {
    %c0_i32 = arith.constant 0 : i32
    %c0_i32_0 = arith.constant 0 : i32
    %c0_i32_1 = arith.constant 0 : i32
    return %c0_i32, %c0_i32_0 : i32, i32
  }
  func.func @transform_5(%arg0: i32) -> (i32, i32, i32) {
    %c0_i32 = arith.constant 0 : i32
    %c0_i32_0 = arith.constant 0 : i32
    %c0_i32_1 = arith.constant 0 : i32
    return %arg0, %c0_i32, %c0_i32_0 : i32, i32, i32
  }
}

</mosaic_0001>

<bundles_post_ra>
// kernel: classification_head_forward.1
= control target key start
LH: loop header
LB: loop body
LE: loop exit
PB: predicated region body
PF: predicated region fallthrough
CT: control target
= control target key end

     0   :  { %s12677_s18 = smov 0   ;;  %s19342_s0 = inlined_call_operand.vmem [shape: f32[2,16,16,128], index: 0, kind: input, shape index: {}]   ;;  %s19343_s1 = inlined_call_operand.vmem [shape: f32[4,1152,128], index: 1, kind: input, shape index: {}]   ;;  %s19344_s2 = inlined_call_operand.vmem [shape: f32[4,1,128], index: 2, kind: input, shape index: {}]   ;;  %s19345_s3 = inlined_call_operand.vmem [shape: f32[1152,128], index: 3, kind: input, shape index: {}]   ;;  %s19346_s4 = inlined_call_operand.vmem [shape: f32[1,128], index: 4, kind: input, shape index: {}]   ;;  %s19347_s5 = inlined_call_operand.vmem [shape: f32[2,256,128], index: 5, kind: output, shape index: {}]  }
   0x1 LB: > { %s11428_s19 = sadd.s32 4294967295, %s12644_s18   ;;  %p11432_p0 = scmp.ge.s32.totalorder %s12644_s18, 1  ;;  %s12644_s18 = sphi %s12677_s18, %s15_s18  }
   0x2   : > { %p187_p1 = scmp.lt.s32.totalorder %s12644_s18, 3 }
   0x4   : > { %p188_p2 = pnand %p11432_p0, %p187_p1 }
   0x6   : > { %191 = sbr.rel (%p188_p2) target bundleno = 2442 (0x98a), region = 40 }
   0xb   : > { %v12688_v0 = vld [vmem:[%s19343_s1 + $0x78] sm:$0xff]  ;;  %v12646_v2 = vmov 0.0   ;;  %v1255_v3 = vld [vmem:[%s19343_s1 + $0x70] sm:$0xff]  ;;  %v1254_v5 = vld [vmem:[%s19343_s1 + $0x68] sm:$0xff]  ;;  %p215_p3 = scmp.lt.s32.totalorder %s11428_s19, 1 }
   0xc   : > { %v12693_v1 = vld [vmem:[%s19343_s1 + $0x178] sm:$0xff]  ;;  %1392 = vmatprep.subr.mxu0 %v12646_v2  ;;  %225 = vst [vmem:[#allocation2] sm:$0xff] %v12646_v2  ;;  %226 = vst [vmem:[#allocation2 + $0x8] sm:$0xff] %v12646_v2  ;;  %1617 = vmatprep.subr.mxu1 %v12646_v2  ;;  %v1287_v4 = vld [vmem:[%s19343_s1 + $0x170] sm:$0xff] }
   0xd   : > { %227 = vst [vmem:[#allocation2 + $0x10] sm:$0x3] %v12646_v2  ;;  %229 = vst [vmem:[#allocation2 + $0x198] sm:$0xff] %v12646_v2  ;;  %1393 = vmatpush1.msra.mxu0 %v12688_v0  ;;  %1618 = vmatpush1.msra.mxu1 %v12693_v1  ;;  %v1286_v6 = vld [vmem:[%s19343_s1 + $0x168] sm:$0xff]  ;;  %v1253_v7 = vld [vmem:[%s19343_s1 + $0x60] sm:$0xff]  ;;  %s19518_s19 = smov (!%p215_p3, %s11428_s19), 1 }
   0xe   : > { %230 = vst [vmem:[#allocation2 + $0x1a0] sm:$0xff] %v12646_v2  ;;  %231 = vst [vmem:[#allocation2 + $0x1a8] sm:$0x3] %v12646_v2  ;;  %1394 = vmatprep.subr.mxu0 %v12646_v2  ;;  %1619 = vmatprep.subr.mxu1 %v12646_v2  ;;  %v1285_v8 = vld [vmem:[%s19343_s1 + $0x160] sm:$0xff]  ;;  %v1252_v9 = vld [vmem:[%s19343_s1 + $0x58] sm:$0xff]  ;;  %s11879_s8 = sshll.u32 %s19518_s19, 8 }
   0xf   : > { %233 = vst [vmem:[#allocation2 + $0x18] sm:$0x1] %v12646_v2  ;;  %234 = vst [vmem:[#allocation2 + $0x30] sm:$0x1] %v12646_v2  ;;  %1395 = vmatpush1.msra.mxu0 %v1255_v3  ;;  %1620 = vmatpush1.msra.mxu1 %v1287_v4  ;;  %v1284_v10 = vld [vmem:[%s19343_s1 + $0x158] sm:$0xff]  ;;  %v1251_v11 = vld [vmem:[%s19343_s1 + $0x50] sm:$0xff]  ;;  %s12873_s21 = scalar_lea.vmem %s19342_s0, %s11879_s8  ;;  %s19263_s26 = scalar_lea.vmem %s19347_s5, %s11879_s8 }
  0x10   : > { %235 = vst [vmem:[#allocation2 + $0x48] sm:$0x1] %v12646_v2  ;;  %236 = vst [vmem:[#allocation2 + $0x60] sm:$0x1] %v12646_v2  ;;  %1396 = vmatprep.subr.mxu0 %v12646_v2  ;;  %1621 = vmatprep.subr.mxu1 %v12646_v2  ;;  %v1283_v12 = vld [vmem:[%s19343_s1 + $0x150] sm:$0xff]  ;;  %v1250_v13 = vld [vmem:[%s19343_s1 + $0x48] sm:$0xff] }
  0x11   : > { %237 = vst [vmem:[#allocation2 + $0x78] sm:$0x1] %v12646_v2  ;;  %238 = vst [vmem:[#allocation2 + $0x90] sm:$0x1] %v12646_v2  ;;  %1397 = vmatpush1.msra.mxu0 %v1254_v5  ;;  %1622 = vmatpush1.msra.mxu1 %v1286_v6  ;;  %v1282_v14 = vld [vmem:[%s19343_s1 + $0x148] sm:$0xff]  ;;  %v1249_v15 = vld [vmem:[%s19343_s1 + $0x40] sm:$0xff] }
  0x12   : > { %239 = vst [vmem:[#allocation2 + $0xa8] sm:$0x1] %v12646_v2  ;;  %240 = vst [vmem:[#allocation2 + $0xc0] sm:$0x1] %v12646_v2  ;;  %1398 = vmatprep.subr.mxu0 %v12646_v2  ;;  %1623 = vmatprep.subr.mxu1 %v12646_v2  ;;  %v1281_v16 = vld [vmem:[%s19343_s1 + $0x140] sm:$0xff]  ;;  %v1248_v17 = vld [vmem:[%s19343_s1 + $0x38] sm:$0xff] }
  0x13   : > { %241 = vst [vmem:[#allocation2 + $0xd8] sm:$0x1] %v12646_v2  ;;  %242 = vst [vmem:[#allocation2 + $0xf0] sm:$0x1] %v12646_v2  ;;  %1399 = vmatpush1.msra.mxu0 %v1253_v7  ;;  %1624 = vmatpush1.msra.mxu1 %v1285_v8  ;;  %v1280_v18 = vld [vmem:[%s19343_s1 + $0x138] sm:$0xff]  ;;  %v1247_v19 = vld [vmem:[%s19343_s1 + $0x30] sm:$0xff] }
  0x14   : > { %243 = vst [vmem:[#allocation2 + $0x108] sm:$0x1] %v12646_v2  ;;  %244 = vst [vmem:[#allocation2 + $0x120] sm:$0x1] %v12646_v2  ;;  %1400 = vmatprep.subr.mxu0 %v12646_v2  ;;  %1625 = vmatprep.subr.mxu1 %v12646_v2  ;;  %v1279_v20 = vld [vmem:[%s19343_s1 + $0x130] sm:$0xff]  ;;  %v1246_v21 = vld [vmem:[%s19343_s1 + $0x28] sm:$0xff] }
  0x15   : > { %245 = vst [vmem:[#allocation2 + $0x138] sm:$0x1] %v12646_v2  ;;  %246 = vst [vmem:[#allocation2 + $0x150] sm:$0x1] %v12646_v2  ;;  %1401 = vmatpush1.msra.mxu0 %v1252_v9  ;;  %1626 = vmatpush1.msra.mxu1 %v1284_v10  ;;  %v1278_v22 = vld [vmem:[%s19343_s1 + $0x128] sm:$0xff]  ;;  %v1245_v23 = vld [vmem:[%s19343_s1 + $0x20] sm:$0xff] }
  0x16   : > { %247 = vst [vmem:[#allocation2 + $0x168] sm:$0x1] %v12646_v2  ;;  %248 = vst [vmem:[#allocation2 + $0x180] sm:$0x1] %v12646_v2  ;;  %1402 = vmatprep.subr.mxu0 %v12646_v2  ;;  %1627 = vmatprep.subr.mxu1 %v12646_v2  ;;  %v1277_v24 = vld [vmem:[%s19343_s1 + $0x120] sm:$0xff]  ;;  %v1244_v26 = vld [vmem:[%s19343_s1 + $0x18] sm:$0xff] }
  0x17   : > { %251 = vst [vmem:[#allocation2 + $0x29] sm:$0x1] %v12646_v2  ;;  %252 = vst [vmem:[#allocation2 + $0x41] sm:$0x1] %v12646_v2  ;;  %1403 = vmatpush1.msra.mxu0 %v1251_v11  ;;  %1628 = vmatpush1.msra.mxu1 %v1283_v12  ;;  %v12884_v25 = vld [vmem:[%s12873_s21] sm:$0xff]  ;;  %v1276_v27 = vld [vmem:[%s19343_s1 + $0x118] sm:$0xff] }
  0x18   : > { %253 = vst [vmem:[#allocation2 + $0x59] sm:$0x1] %v12646_v2  ;;  %254 = vst [vmem:[#allocation2 + $0x71] sm:$0x1] %v12646_v2  ;;  %1404 = vmatprep.subr.mxu0 %v12646_v2  ;;  %1629 = vmatprep.subr.mxu1 %v12646_v2  ;;  %v12896_v28 = vld [vmem:[%s12873_s21 + $0x8] sm:$0xff]  ;;  %v1243_v29 = vld [vmem:[%s19343_s1 + $0x10] sm:$0xff] }
  0x19   : > { %255 = vst [vmem:[#allocation2 + $0x89] sm:$0x1] %v12646_v2  ;;  %256 = vst [vmem:[#allocation2 + $0xa1] sm:$0x1] %v12646_v2  ;;  %1405 = vmatpush1.msra.mxu0 %v1250_v13  ;;  %1630 = vmatpush1.msra.mxu1 %v1282_v14  ;;  %v12903_v30 = vld [vmem:[%s12873_s21 + $0x10] sm:$0xff]  ;;  %v12912_v32 = vld [vmem:[%s12873_s21 + $0x18] sm:$0xff] }
  0x1a   : > { %257 = vst [vmem:[#allocation2 + $0xb9] sm:$0x1] %v12646_v2  ;;  %258 = vst [vmem:[#allocation2 + $0xd1] sm:$0x1] %v12646_v2  ;;  %1406 = vmatprep.subr.mxu0 %v12646_v2  ;;  %1631 = vmatprep.subr.mxu1 %v12646_v2  ;;  %v1275_v31 = vld [vmem:[%s19343_s1 + $0x110] sm:$0xff]  ;;  %v12915_v33 = vld [vmem:[%s12873_s21 + $0x20] sm:$0xff] }
  0x1b   : > { %259 = vst [vmem:[#allocation2 + $0xe9] sm:$0x1] %v12646_v2  ;;  %260 = vst [vmem:[#allocation2 + $0x101] sm:$0x1] %v12646_v2  ;;  %1407 = vmatpush1.msra.mxu0 %v1249_v15  ;;  %1632 = vmatpush1.msra.mxu1 %v1281_v16  ;;  %v1242_v34 = vld [vmem:[%s19343_s1 + $0x8] sm:$0xff]  ;;  %v12932_v37 = vld [vmem:[%s12873_s21 + $0x30] sm:$0xff] }
  0x1c   : > { %261 = vst [vmem:[#allocation2 + $0x119] sm:$0x1] %v12646_v2  ;;  %262 = vst [vmem:[#allocation2 + $0x131] sm:$0x1] %v12646_v2  ;;  %1408 = vmatprep.subr.mxu0 %v12646_v2  ;;  %1633 = vmatprep.subr.mxu1 %v12646_v2  ;;  %v12923_v35 = vld [vmem:[%s12873_s21 + $0x28] sm:$0xff]  ;;  %v12935_v38 = vld [vmem:[%s12873_s21 + $0x38] sm:$0xff] }
  0x1d   : > { %263 = vst [vmem:[#allocation2 + $0x149] sm:$0x1] %v12646_v2  ;;  %264 = vst [vmem:[#allocation2 + $0x161] sm:$0x1] %v12646_v2  ;;  %1409 = vmatpush1.msra.mxu0 %v1248_v17  ;;  %1634 = vmatpush1.msra.mxu1 %v1280_v18  ;;  %v1274_v36 = vld [vmem:[%s19343_s1 + $0x108] sm:$0xff]  ;;  %v1241_v39 = vld [vmem:[%s19343_s1] sm:$0xff] }
  0x1e   : > { %265 = vst [vmem:[#allocation2 + $0x179] sm:$0x1] %v12646_v2  ;;  %266 = vst [vmem:[#allocation2 + $0x191] sm:$0x1] %v12646_v2  ;;  %1410 = vmatprep.subr.mxu0 %v12646_v2  ;;  %1635 = vmatprep.subr.mxu1 %v12646_v2  ;;  %v12943_v40 = vld [vmem:[%s12873_s21 + $0x40] sm:$0xff]  ;;  %v12952_v42 = vld [vmem:[%s12873_s21 + $0x48] sm:$0xff] }
  0x1f   : > { %268 = vst [vmem:[#allocation3] sm:$0xff] %v12646_v2  ;;  %269 = vst [vmem:[#allocation3 + $0x8] sm:$0xff] %v12646_v2  ;;  %1411 = vmatpush1.msra.mxu0 %v1247_v19  ;;  %1636 = vmatpush1.msra.mxu1 %v1279_v20  ;;  %v1273_v41 = vld [vmem:[%s19343_s1 + $0x100] sm:$0xff]  ;;  %v12955_v43 = vld [vmem:[%s12873_s21 + $0x50] sm:$0xff] }
  0x20   : > { %270 = vst [vmem:[#allocation3 + $0x10] sm:$0x3] %v12646_v2  ;;  %272 = vst [vmem:[#allocation3 + $0x198] sm:$0xff] %v12646_v2  ;;  %1412 = vmatprep.subr.mxu0 %v12646_v2  ;;  %1637 = vmatprep.subr.mxu1 %v12646_v2  ;;  %v12960_v44 = vld [vmem:[%s12873_s21 + $0x58] sm:$0xff]  ;;  %v12972_v47 = vld [vmem:[%s12873_s21 + $0x60] sm:$0xff] }
  0x21   : > { %273 = vst [vmem:[#allocation3 + $0x1a0] sm:$0xff] %v12646_v2  ;;  %274 = vst [vmem:[#allocation3 + $0x1a8] sm:$0x3] %v12646_v2  ;;  %1413 = vmatpush1.msra.mxu0 %v1246_v21  ;;  %1638 = vmatpush1.msra.mxu1 %v1278_v22  ;;  %v1272_v45 = vld [vmem:[%s19343_s1 + $0xf8] sm:$0xff]  ;;  %v1271_v48 = vld [vmem:[%s19343_s1 + $0xf0] sm:$0xff] }
  0x22   : > { %276 = vst [vmem:[#allocation3 + $0x18] sm:$0x1] %v12646_v2  ;;  %277 = vst [vmem:[#allocation3 + $0x30] sm:$0x1] %v12646_v2  ;;  %1414 = vmatprep.subr.mxu0 %v12646_v2  ;;  %1639 = vmatprep.subr.mxu1 %v12646_v2  ;;  %v1304_v46 = vld [vmem:[%s19343_s1 + $0x1f8] sm:$0xff]  ;;  %v1303_v49 = vld [vmem:[%s19343_s1 + $0x1f0] sm:$0xff] }
  0x23   : > { %278 = vst [vmem:[#allocation3 + $0x48] sm:$0x1] %v12646_v2  ;;  %279 = vst [vmem:[#allocation3 + $0x60] sm:$0x1] %v12646_v2  ;;  %1415 = vmatpush1.msra.mxu0 %v1245_v23  ;;  %1640 = vmatpush1.msra.mxu1 %v1277_v24  ;;  %v1270_v50 = vld [vmem:[%s19343_s1 + $0xe8] sm:$0xff]  ;;  %v1269_v52 = vld [vmem:[%s19343_s1 + $0xe0] sm:$0xff] }
  0x24   : > { %280 = vst [vmem:[#allocation3 + $0x78] sm:$0x1] %v12646_v2  ;;  %281 = vst [vmem:[#allocation3 + $0x90] sm:$0x1] %v12646_v2  ;;  %1416 = vmatprep.subr.mxu0 %v12646_v2  ;;  %1641 = vmatprep.subr.mxu1 %v12646_v2  ;;  %v1302_v51 = vld [vmem:[%s19343_s1 + $0x1e8] sm:$0xff]  ;;  %v1301_v53 = vld [vmem:[%s19343_s1 + $0x1e0] sm:$0xff] }
  0x25   : > { %282 = vst [vmem:[#allocation3 + $0xa8] sm:$0x1] %v12646_v2  ;;  %283 = vst [vmem:[#allocation3 + $0xc0] sm:$0x1] %v12646_v2  ;;  %1417 = vmatpush1.msra.mxu0 %v1244_v26  ;;  %1642 = vmatpush1.msra.mxu1 %v1276_v27  ;;  %v1268_v54 = vld [vmem:[%s19343_s1 + $0xd8] sm:$0xff]  ;;  %v13008_v56 = vld [vmem:[%s12873_s21 + $0x68] sm:$0xff] }
  0x26   : > { %284 = vst [vmem:[#allocation3 + $0xd8] sm:$0x1] %v12646_v2  ;;  %285 = vst [vmem:[#allocation3 + $0xf0] sm:$0x1] %v12646_v2  ;;  %1418 = vmatprep.subr.mxu0 %v12646_v2  ;;  %1643 = vmatprep.subr.mxu1 %v12646_v2  ;;  %v1300_v55 = vld [vmem:[%s19343_s1 + $0x1d8] sm:$0xff]  ;;  %v13012_v57 = vld [vmem:[%s12873_s21 + $0x70] sm:$0xff] }
  0x27   : > { %286 = vst [vmem:[#allocation3 + $0x108] sm:$0x1] %v12646_v2  ;;  %287 = vst [vmem:[#allocation3 + $0x120] sm:$0x1] %v12646_v2  ;;  %1419 = vmatpush1.msra.mxu0 %v1243_v29  ;;  %1644 = vmatpush1.msra.mxu1 %v1275_v31  ;;  %v1267_v58 = vld [vmem:[%s19343_s1 + $0xd0] sm:$0xff]  ;;  %v13024_v60 = vld [vmem:[%s12873_s21 + $0x78] sm:$0xff] }
  0x28   : > { %288 = vst [vmem:[#allocation3 + $0x138] sm:$0x1] %v12646_v2  ;;  %289 = vst [vmem:[#allocation3 + $0x150] sm:$0x1] %v12646_v2  ;;  %1420 = vmatprep.subr.mxu0 %v12646_v2  ;;  %1645 = vmatprep.subr.mxu1 %v12646_v2  ;;  %v1299_v59 = vld [vmem:[%s19343_s1 + $0x1d0] sm:$0xff]  ;;  %v13028_v61 = vld [vmem:[%s12873_s21 + $0x80] sm:$0xff] }
  0x29   : > { %290 = vst [vmem:[#allocation3 + $0x168] sm:$0x1] %v12646_v2  ;;  %291 = vst [vmem:[#allocation3 + $0x180] sm:$0x1] %v12646_v2  ;;  %1421 = vmatpush1.msra.mxu0 %v1242_v34  ;;  %1646 = vmatpush1.msra.mxu1 %v1274_v36  ;;  %v1266_v62 = vld [vmem:[%s19343_s1 + $0xc8] sm:$0xff]  ;;  %v13044_v1 = vld [vmem:[%s12873_s21 + $0x90] sm:$0xff] }
  0x2a   : > { %294 = vst [vmem:[#allocation3 + $0x29] sm:$0x1] %v12646_v2  ;;  %295 = vst [vmem:[#allocation3 + $0x41] sm:$0x1] %v12646_v2  ;;  %1422 = vmatprep.subr.mxu0 %v12646_v2  ;;  %1647 = vmatprep.subr.mxu1 %v12646_v2  ;;  %v1298_v63 = vld [vmem:[%s19343_s1 + $0x1c8] sm:$0xff]  ;;  %v1265_v3 = vld [vmem:[%s19343_s1 + $0xc0] sm:$0xff] }
  0x2b   : > { %296 = vst [vmem:[#allocation3 + $0x59] sm:$0x1] %v12646_v2  ;;  %297 = vst [vmem:[#allocation3 + $0x71] sm:$0x1] %v12646_v2  ;;  %1423 = vmatpush1.msra.mxu0 %v1241_v39  ;;  %1648 = vmatpush1.msra.mxu1 %v1273_v41  ;;  %v13040_v0 = vld [vmem:[%s12873_s21 + $0x88] sm:$0xff]  ;;  %v1297_v4 = vld [vmem:[%s19343_s1 + $0x1c0] sm:$0xff] }
  0x2c   : > { %298 = vst [vmem:[#allocation3 + $0x89] sm:$0x1] %v12646_v2  ;;  %299 = vst [vmem:[#allocation3 + $0xa1] sm:$0x1] %v12646_v2  ;;  %1424 = vmatprep.subr.mxu0 %v12646_v2  ;;  %1649 = vmatprep.subr.mxu1 %v12646_v2  ;;  %v13056_v5 = vld [vmem:[%s12873_s21 + $0x98] sm:$0xff]  ;;  %v13068_v8 = vld [vmem:[%s12873_s21 + $0xa0] sm:$0xff] }
  0x2d   : > { %300 = vst [vmem:[#allocation3 + $0xb9] sm:$0x1] %v12646_v2  ;;  %301 = vst [vmem:[#allocation3 + $0xd1] sm:$0x1] %v12646_v2  ;;  %1425 = vmatpush2.msra.mxu0 %v1272_v45  ;;  %1650 = vmatpush2.msra.mxu1 %v1304_v46  ;;  %v1264_v6 = vld [vmem:[%s19343_s1 + $0xb8] sm:$0xff]  ;;  %v1263_v9 = vld [vmem:[%s19343_s1 + $0xb0] sm:$0xff] }
  0x2e   : > { %302 = vst [vmem:[#allocation3 + $0xe9] sm:$0x1] %v12646_v2  ;;  %303 = vst [vmem:[#allocation3 + $0x101] sm:$0x1] %v12646_v2  ;;  %1426 = vmatprep.subr.mxu0 %v12646_v2  ;;  %1651 = vmatprep.subr.mxu1 %v12646_v2  ;;  %v1296_v7 = vld [vmem:[%s19343_s1 + $0x1b8] sm:$0xff]  ;;  %v1295_v10 = vld [vmem:[%s19343_s1 + $0x1b0] sm:$0xff] }
  0x2f   : > { %304 = vst [vmem:[#allocation3 + $0x119] sm:$0x1] %v12646_v2  ;;  %305 = vst [vmem:[#allocation3 + $0x131] sm:$0x1] %v12646_v2  ;;  %1427 = vmatpush2.msra.mxu0 %v1271_v48  ;;  %1652 = vmatpush2.msra.mxu1 %v1303_v49  ;;  %v1262_v11 = vld [vmem:[%s19343_s1 + $0xa8] sm:$0xff]  ;;  %v1261_v14 = vld [vmem:[%s19343_s1 + $0xa0] sm:$0xff] }
  0x30   : > { %306 = vst [vmem:[#allocation3 + $0x149] sm:$0x1] %v12646_v2  ;;  %307 = vst [vmem:[#allocation3 + $0x161] sm:$0x1] %v12646_v2  ;;  %1428 = vmatprep.subr.mxu0 %v12646_v2  ;;  %1653 = vmatprep.subr.mxu1 %v12646_v2  ;;  %v1294_v12 = vld [vmem:[%s19343_s1 + $0x1a8] sm:$0xff]  ;;  %v1293_v15 = vld [vmem:[%s19343_s1 + $0x1a0] sm:$0xff] }
  0x31   : > { %308 = vst [vmem:[#allocation3 + $0x179] sm:$0x1] %v12646_v2  ;;  %309 = vst [vmem:[#allocation3 + $0x191] sm:$0x1] %v12646_v2  ;;  %1429 = vmatpush2.msra.mxu0 %v1270_v50  ;;  %1654 = vmatpush2.msra.mxu1 %v1302_v51  ;;  %v13088_v13 = vld [vmem:[%s12873_s21 + $0xa8] sm:$0xff]  ;;  %v13100_v16 = vld [vmem:[%s12873_s21 + $0xb0] sm:$0xff] }
  0x32   : > { %232 = vst [vmem:[#allocation2] sm:$0x1] %v12646_v2  ;;  %249 = vst [vmem:[#allocation2 + $0x198] sm:$0x1] %v12646_v2  ;;  %1430 = vmatprep.subr.mxu0 %v12646_v2  ;;  %1655 = vmatprep.subr.mxu1 %v12646_v2  ;;  %v1260_v17 = vld [vmem:[%s19343_s1 + $0x98] sm:$0xff]  ;;  %v1259_v20 = vld [vmem:[%s19343_s1 + $0x90] sm:$0xff] }
  0x33   : > { %250 = vst [vmem:[#allocation2 + $0x11] sm:$0x1] %v12646_v2  ;;  %267 = vst [vmem:[#allocation2 + $0x1a9] sm:$0x1] %v12646_v2  ;;  %1431 = vmatpush2.msra.mxu0 %v1269_v52  ;;  %1656 = vmatpush2.msra.mxu1 %v1301_v53  ;;  %v1292_v18 = vld [vmem:[%s19343_s1 + $0x198] sm:$0xff]  ;;  %v1291_v21 = vld [vmem:[%s19343_s1 + $0x190] sm:$0xff] }
  0x34   : > { %275 = vst [vmem:[#allocation3] sm:$0x1] %v12646_v2  ;;  %292 = vst [vmem:[#allocation3 + $0x198] sm:$0x1] %v12646_v2  ;;  %1432 = vmatprep.subr.mxu0 %v12646_v2  ;;  %1657 = vmatprep.subr.mxu1 %v12646_v2  ;;  %v13112_v19 = vld [vmem:[%s12873_s21 + $0xb8] sm:$0xff]  ;;  %v13124_v22 = vld [vmem:[%s12873_s21 + $0xc0] sm:$0xff] }
  0x35   : > { %293 = vst [vmem:[#allocation3 + $0x11] sm:$0x1] %v12646_v2  ;;  %310 = vst [vmem:[#allocation3 + $0x1a9] sm:$0x1] %v12646_v2  ;;  %1433 = vmatpush2.msra.mxu0 %v1268_v54  ;;  %1658 = vmatpush2.msra.mxu1 %v1300_v55  ;;  %v1258_v23 = vld [vmem:[%s19343_s1 + $0x88] sm:$0xff]  ;;  %v1257_v29 = vld [vmem:[%s19343_s1 + $0x80] sm:$0xff] }
  0x36   : > { %344 = vst [vmem:[#allocation2 + $0x19] sm:$0xff] %v12884_v25  ;;  %345 = vst [vmem:[#allocation2 + $0x21] sm:$0xff] %v12896_v28  ;;  %1434 = vmatprep.subr.mxu0 %v12646_v2  ;;  %1659 = vmatprep.subr.mxu1 %v12646_v2  ;;  %v440_v24 = vld [vmem:[#allocation2 + $0x1] sm:$0xff]  ;;  %v13145_v31 = vld [vmem:[%s12873_s21 + $0xd0] sm:$0xff] }
  0x37   : > { %346 = vst [vmem:[#allocation2 + $0x31] sm:$0xff] %v12903_v30  ;;  %347 = vst [vmem:[#allocation2 + $0x39] sm:$0xff] %v12912_v32  ;;  %1435 = vmatpush2.msra.mxu0 %v1267_v58  ;;  %1660 = vmatpush2.msra.mxu1 %v1299_v59  ;;  %v13133_v26 = vld [vmem:[%s12873_s21 + $0xc8] sm:$0xff]  ;;  %v1289_v36 = vld [vmem:[%s19343_s1 + $0x180] sm:$0xff] }
  0x38   : > { %348 = vst [vmem:[#allocation2 + $0x49] sm:$0xff] %v12915_v33  ;;  %349 = vst [vmem:[#allocation2 + $0x51] sm:$0xff] %v12923_v35  ;;  %1436 = vmatprep.subr.mxu0 %v12646_v2  ;;  %1661 = vmatprep.subr.mxu1 %v12646_v2  ;;  %v1290_v27 = vld [vmem:[%s19343_s1 + $0x188] sm:$0xff]  ;;  %v13153_v41 = vld [vmem:[%s12873_s21 + $0xd8] sm:$0xff] }
  0x39   : > { %350 = vst [vmem:[#allocation2 + $0x61] sm:$0xff] %v12932_v37  ;;  %351 = vst [vmem:[#allocation2 + $0x69] sm:$0xff] %v12935_v38  ;;  %1437 = vmatpush2.msra.mxu0 %v1266_v62  ;;  %1662 = vmatpush2.msra.mxu1 %v1298_v63  ;;  %v376_v34 = vld [vmem:[#allocation2] sm:$0xff]  ;;  %v1320_v45 = vld [vmem:[%s19343_s1 + $0x278] sm:$0xff] }
  0x3a   : > { %352 = vst [vmem:[#allocation2 + $0x79] sm:$0xff] %v12943_v40  ;;  %353 = vst [vmem:[#allocation2 + $0x81] sm:$0xff] %v12952_v42  ;;  %1438 = vmatprep.subr.mxu0 %v12646_v2  ;;  %1663 = vmatprep.subr.mxu1 %v12646_v2  ;;  %v504_v46 = vld [vmem:[#allocation2 + $0x2] sm:$0xff]  ;;  %v1319_v51 = vld [vmem:[%s19343_s1 + $0x270] sm:$0xff] }
  0x3b   : > { %354 = vst [vmem:[#allocation2 + $0x91] sm:$0xff] %v12955_v43  ;;  %355 = vst [vmem:[#allocation2 + $0x99] sm:$0xff] %v12960_v44  ;;  %1439 = vmatpush2.msra.mxu0 %v1265_v3  ;;  %1664 = vmatpush2.msra.mxu1 %v1297_v4  ;;  %v441_v48 = vld [vmem:[#allocation2 + $0x9] sm:$0xff]  ;;  %v13162_v49 = vld [vmem:[%s12873_s21 + $0xe0] sm:$0xff] }
  0x3c   : > { %356 = vst [vmem:[#allocation2 + $0xa9] sm:$0xff] %v12972_v47  ;;  %357 = vst [vmem:[#allocation2 + $0xb1] sm:$0xff] %v13008_v56  ;;  %1440 = vmatprep.subr.mxu0 %v12646_v2  ;;  %1665 = vmatprep.subr.mxu1 %v12646_v2  ;;  %v505_v52 = vld [vmem:[#allocation2 + $0xa] sm:$0xff]  ;;  %v1317_v59 = vld [vmem:[%s19343_s1 + $0x260] sm:$0xff] }
  0x3d   : > { %358 = vst [vmem:[#allocation2 + $0xc1] sm:$0xff] %v13012_v57  ;;  %359 = vst [vmem:[#allocation2 + $0xc9] sm:$0xff] %v13024_v60  ;;  %1441 = vmatpush2.msra.mxu0 %v1264_v6  ;;  %1666 = vmatpush2.msra.mxu1 %v1296_v7  ;;  %v568_v39 = vld [vmem:[#allocation2 + $0x18] sm:$0xff]  ;;  %v569_v50 = vld [vmem:[#allocation2 + $0x20] sm:$0xff] }
  0x3e   : > { %360 = vst [vmem:[#allocation2 + $0xd9] sm:$0xff] %v13028_v61  ;;  %361 = vst [vmem:[#allocation2 + $0xe1] sm:$0xff] %v13040_v0  ;;  %1442 = vmatprep.subr.mxu0 %v12646_v2  ;;  %1667 = vmatprep.subr.mxu1 %v12646_v2  ;;  %v13170_v53 = vld [vmem:[%s12873_s21 + $0xe8] sm:$0xff]  ;;  %v13173_v54 = vld [vmem:[#allocation2 + $0x30] sm:$0xff] }
  0x3f   : > { %362 = vst [vmem:[#allocation2 + $0xf1] sm:$0xff] %v13044_v1  ;;  %363 = vst [vmem:[#allocation2 + $0xf9] sm:$0xff] %v13056_v5  ;;  %1443 = vmatpush2.msra.mxu0 %v1263_v9  ;;  %1668 = vmatpush2.msra.mxu1 %v1295_v10  ;;  %v1318_v55 = vld [vmem:[%s19343_s1 + $0x268] sm:$0xff]  ;;  %v341_v58 = vld [vmem:[%s12873_s21 + $0xf0] sm:$0xff] }
  0x40   : > { %364 = vst [vmem:[#allocation2 + $0x109] sm:$0xff] %v13068_v8  ;;  %1444 = vmatprep.subr.mxu0 %v12646_v2  ;;  %1669 = vmatprep.subr.mxu1 %v12646_v2  ;;  %365 = vst [vmem:[#allocation2 + $0x111] sm:$0xff] %v13088_v13  ;;  %v13186_v62 = vld [vmem:[#allocation2 + $0x1a] sm:$0xff]  ;;  %v1315_v4 = vld [vmem:[%s19343_s1 + $0x250] sm:$0xff] }
  0x41   : > { %1445 = vmatpush2.msra.mxu0 %v1262_v11  ;;  %1670 = vmatpush2.msra.mxu1 %v1294_v12  ;;  %366 = vst [vmem:[#allocation2 + $0x121] sm:$0xff] %v13100_v16  ;;  %367 = vst [vmem:[#allocation2 + $0x129] sm:$0xff] %v13112_v19  ;;  %v342_v63 = vld [vmem:[%s12873_s21 + $0xf8] sm:$0xff]  ;;  %v13202_v6 = vld [vmem:[#allocation2 + $0x22] sm:$0xff] }
  0x42   : > { %1446 = vmatprep.subr.mxu0 %v12646_v2  ;;  %1671 = vmatprep.subr.mxu1 %v12646_v2  ;;  %368 = vst [vmem:[#allocation2 + $0x139] sm:$0xff] %v13124_v22  ;;  %369 = vst [vmem:[#allocation2 + $0x141] sm:$0xff] %v13133_v26  ;;  %v13190_v3 = vld [vmem:[#allocation2 + $0x38] sm:$0xff]  ;;  %v13204_v7 = vld [vmem:[#allocation2 + $0x48] sm:$0xff] }
  0x43   : > { %1447 = vmatpush2.msra.mxu0 %v1261_v14  ;;  %1672 = vmatpush2.msra.mxu1 %v1293_v15  ;;  %370 = vst [vmem:[#allocation2 + $0x151] sm:$0xff] %v13145_v31  ;;  %371 = vst [vmem:[#allocation2 + $0x159] sm:$0xff] %v13153_v41  ;;  %v1313_v9 = vld [vmem:[%s19343_s1 + $0x240] sm:$0xff]  ;;  %v13217_v10 = vld [vmem:[#allocation2 + $0x32] sm:$0xff] }
  0x44   : > { %1448 = vmatprep.subr.mxu0 %v12646_v2  ;;  %1673 = vmatprep.subr.mxu1 %v12646_v2  ;;  %372 = vst [vmem:[#allocation2 + $0x169] sm:$0xff] %v13162_v49  ;;  %373 = vst [vmem:[#allocation2 + $0x171] sm:$0xff] %v13170_v53  ;;  %v13220_v11 = vld [vmem:[#allocation2 + $0x50] sm:$0xff]  ;;  %v13233_v14 = vld [vmem:[#allocation2 + $0x3a] sm:$0xff] }
  0x45   : > { %1449 = vmatpush2.msra.mxu0 %v1260_v17  ;;  %1674 = vmatpush2.msra.mxu1 %v1292_v18  ;;  %374 = vst [vmem:[#allocation2 + $0x181] sm:$0xff] %v341_v58  ;;  %375 = vst [vmem:[#allocation2 + $0x189] sm:$0xff] %v342_v63  ;;  %v1311_v12 = vld [vmem:[%s19343_s1 + $0x230] sm:$0xff]  ;;  %v13236_v15 = vld [vmem:[#allocation2 + $0x60] sm:$0xff] }
  0x46   : > { %1450 = vmatprep.subr.mxu0 %v12646_v2  ;;  %1675 = vmatprep.subr.mxu1 %v12646_v2  ;;  %v1309_v17 = vld [vmem:[%s19343_s1 + $0x220] sm:$0xff]  ;;  %v13249_v18 = vld [vmem:[#allocation2 + $0x4a] sm:$0xff]  ;;  %v1348_v58 = vld [vmem:[%s19343_s1 + $0x358] sm:$0xff] }
  0x47   : > { %1451 = vmatpush2.msra.mxu0 %v1259_v20  ;;  %1676 = vmatpush2.msra.mxu1 %v1291_v21  ;;  %v13252_v20 = vld [vmem:[#allocation2 + $0x68] sm:$0xff]  ;;  %v1307_v21 = vld [vmem:[%s19343_s1 + $0x210] sm:$0xff] }
  0x48   : > { %1452 = vmatprep.subr.mxu0 %v12646_v2  ;;  %1677 = vmatprep.subr.mxu1 %v12646_v2  ;;  %v13348_v63 = vld [vmem:[#allocation2 + $0xb0] sm:$0xff] }
  0x49   : > { %1453 = vmatpush2.msra.mxu0 %v1258_v23  ;;  %1456 = vmatprep.mubr.f32.mxu0 %v440_v24  ;;  %v13265_v23 = vld [vmem:[#allocation2 + $0x52] sm:$0xff] }
  0x4a   : > { %1454 = vmatprep.subr.mxu0 %v12646_v2  ;;  %1678 = vmatpush2.msra.mxu1 %v1290_v27  ;;  %v13268_v24 = vld [vmem:[#allocation2 + $0x78] sm:$0xff]  ;;  %v1305_v27 = vld [vmem:[%s19343_s1 + $0x200] sm:$0xff] }
  0x4b   : > { %1455 = vmatpush2.msra.mxu0 %v1257_v29  ;;  %1679 = vmatprep.subr.mxu1 %v12646_v2  ;;  %v13281_v29 = vld [vmem:[#allocation2 + $0x62] sm:$0xff] }
  0x4c   : > { %1457 = vmatmul.mubr.f32.vlgmr.msra.gmra.mxu0 %v376_v34  ;;  %1842 = vmatprep.subr.mxu0 %v12646_v2  ;;  %v13284_v34 = vld [vmem:[#allocation2 + $0x80] sm:$0xff] }
  0x4d   : > { %1680 = vmatpush2.msra.mxu1 %v1289_v36  ;;  %1681 = vmatprep.mubr.f32.mxu1 %v568_v39  ;;  %v1352_v36 = vld [vmem:[%s19343_s1 + $0x378] sm:$0xff] }
  0x4e   : > { %1843 = vmatpush1.msra.mxu0 %v1320_v45  ;;  %1682 = vmatmul.mubr.f32.vlgmr.msra.gmra.mxu1 %v504_v46  ;;  %v13300_v45 = vld [vmem:[#allocation2 + $0x90] sm:$0xff] }
  0x4f   : > { %1461 = vmatprep.mubr.f32.mxu0 %v441_v48  ;;  %1844 = vmatprep.subr.mxu0 %v12646_v2  ;;  %v1335_v46 = vld [vmem:[%s19343_s1 + $0x2f0] sm:$0xff]  ;;  %v13313_v48 = vld [vmem:[#allocation2 + $0x7a] sm:$0xff] }
  0x50   : > { %1462 = vmatmul.mubr.f32.gmra.mxu0 %v12646_v2  ;;  %1686 = vmatprep.mubr.f32.mxu1 %v569_v50 }
  0x51   : > { %1845 = vmatpush1.msra.mxu0 %v1319_v51  ;;  %1466 = vmatprep.mubr.f32.mxu0 %v12884_v25  ;;  %v1316_v25 = vld [vmem:[%s19343_s1 + $0x258] sm:$0xff]  ;;  %v13326_v51 = vld [vmem:[#allocation2 + $0x82] sm:$0xff] }
  0x52   : > { %1687 = vmatmul.mubr.f32.gmra.mxu1 %v505_v52  ;;  %1846 = vmatprep.subr.mxu0 %v12646_v2  ;;  %v1334_v52 = vld [vmem:[%s19343_s1 + $0x2e8] sm:$0xff] }
  0x53   : > { %1691 = vmatprep.mubr.f32.mxu1 %v13173_v54  ;;  %1847 = vmatpush1.msra.mxu0 %v1318_v55  ;;  %v13332_v55 = vld [vmem:[#allocation2 + $0xa8] sm:$0xff] }
  0x54   : > { %1467 = vmatmul.mubr.f32.gmra.mxu0 %v568_v39  ;;  %1848 = vmatprep.subr.mxu0 %v12646_v2  ;;  %v13297_v39 = vld [vmem:[#allocation2 + $0x6a] sm:$0xff] }
  0x55   : > { %1471 = vmatprep.mubr.f32.mxu0 %v12896_v28  ;;  %1849 = vmatpush1.msra.mxu0 %v1317_v59  ;;  %v1314_v28 = vld [vmem:[%s19343_s1 + $0x248] sm:$0xff]  ;;  %v13345_v59 = vld [vmem:[#allocation2 + $0x92] sm:$0xff] }
  0x56   : > { %1692 = vmatmul.mubr.f32.gmra.mxu1 %v13186_v62  ;;  %1850 = vmatprep.subr.mxu0 %v12646_v2 }
  0x57   : > { %1696 = vmatprep.mubr.f32.mxu1 %v13190_v3  ;;  %1851 = vmatpush1.msra.mxu0 %v1316_v25  ;;  %v1333_v25 = vld [vmem:[%s19343_s1 + $0x2e0] sm:$0xff] }
  0x58   : > { %1472 = vmatmul.mubr.f32.gmra.mxu0 %v569_v50  ;;  %1852 = vmatprep.subr.mxu0 %v12646_v2  ;;  %v1350_v50 = vld [vmem:[%s19343_s1 + $0x368] sm:$0xff] }
  0x59   : > { %1476 = vmatprep.mubr.f32.mxu0 %v12903_v30  ;;  %1853 = vmatpush1.msra.mxu0 %v1315_v4  ;;  %v1312_v30 = vld [vmem:[%s19343_s1 + $0x238] sm:$0xff] }
  0x5a   : > { %1697 = vmatmul.mubr.f32.gmra.mxu1 %v13202_v6  ;;  %1854 = vmatprep.subr.mxu0 %v12646_v2  ;;  %v13361_v4 = vld [vmem:[#allocation2 + $0x9a] sm:$0xff] }
  0x5b   : > { %1701 = vmatprep.mubr.f32.mxu1 %v13204_v7  ;;  %1855 = vmatpush1.msra.mxu0 %v1314_v28  ;;  %v1346_v28 = vld [vmem:[%s19343_s1 + $0x348] sm:$0xff] }
  0x5c   : > { %1477 = vmatmul.mubr.f32.gmra.mxu0 %v13173_v54  ;;  %1856 = vmatprep.subr.mxu0 %v12646_v2 }
  0x5d   : > { %1481 = vmatprep.mubr.f32.mxu0 %v12912_v32  ;;  %1857 = vmatpush1.msra.mxu0 %v1313_v9  ;;  %v1310_v32 = vld [vmem:[%s19343_s1 + $0x228] sm:$0xff] }
  0x5e   : > { %1702 = vmatmul.mubr.f32.gmra.mxu1 %v13217_v10  ;;  %1858 = vmatprep.subr.mxu0 %v12646_v2  ;;  %v13374_v9 = vld [vmem:[#allocation2 + $0xaa] sm:$0xff] }
  0x5f   : > { %1706 = vmatprep.mubr.f32.mxu1 %v13220_v11  ;;  %1859 = vmatpush1.msra.mxu0 %v1312_v30  ;;  %v1332_v30 = vld [vmem:[%s19343_s1 + $0x2d8] sm:$0xff] }
  0x60   : > { %1482 = vmatmul.mubr.f32.gmra.mxu0 %v13190_v3  ;;  %1860 = vmatprep.subr.mxu0 %v12646_v2 }
  0x61   : > { %1486 = vmatprep.mubr.f32.mxu0 %v12915_v33  ;;  %1861 = vmatpush1.msra.mxu0 %v1311_v12  ;;  %v1308_v33 = vld [vmem:[%s19343_s1 + $0x218] sm:$0xff]  ;;  %v13380_v12 = vld [vmem:[#allocation2 + $0xc8] sm:$0xff] }
  0x62   : > { %1707 = vmatmul.mubr.f32.gmra.mxu1 %v13233_v14  ;;  %1862 = vmatprep.subr.mxu0 %v12646_v2 }
  0x63   : > { %1711 = vmatprep.mubr.f32.mxu1 %v13236_v15  ;;  %1863 = vmatpush1.msra.mxu0 %v1310_v32  ;;  %v13382_v32 = vld [vmem:[#allocation2 + $0x8] sm:$0xff] }
  0x64   : > { %1487 = vmatmul.mubr.f32.gmra.mxu0 %v13204_v7  ;;  %1864 = vmatprep.subr.mxu0 %v12646_v2 }
  0x65   : > { %1491 = vmatprep.mubr.f32.mxu0 %v12923_v35  ;;  %1865 = vmatpush1.msra.mxu0 %v1309_v17  ;;  %v1306_v35 = vld [vmem:[%s19343_s1 + $0x208] sm:$0xff]  ;;  %v13395_v17 = vld [vmem:[#allocation2 + $0xb2] sm:$0xff] }
  0x66   : > { %1712 = vmatmul.mubr.f32.gmra.mxu1 %v13249_v18  ;;  %1866 = vmatprep.subr.mxu0 %v12646_v2 }
  0x67   : > { %1716 = vmatprep.mubr.f32.mxu1 %v13252_v20  ;;  %1867 = vmatpush1.msra.mxu0 %v1308_v33  ;;  %v13398_v33 = vld [vmem:[#allocation2 + $0xd8] sm:$0xff] }
  0x68   : > { %1492 = vmatmul.mubr.f32.gmra.mxu0 %v13220_v11  ;;  %1868 = vmatprep.subr.mxu0 %v12646_v2 }
  0x69   : > { %1496 = vmatprep.mubr.f32.mxu0 %v12932_v37  ;;  %1869 = vmatpush1.msra.mxu0 %v1307_v21  ;;  %v1336_v37 = vld [vmem:[%s19343_s1 + $0x2f8] sm:$0xff]  ;;  %v1331_v21 = vld [vmem:[%s19343_s1 + $0x2d0] sm:$0xff] }
  0x6a   : > { %1717 = vmatmul.mubr.f32.gmra.mxu1 %v13265_v23  ;;  %1870 = vmatprep.subr.mxu0 %v12646_v2 }
  0x6b   : > { %1721 = vmatprep.mubr.f32.mxu1 %v13268_v24  ;;  %1871 = vmatpush1.msra.mxu0 %v1306_v35  ;;  %v13411_v35 = vld [vmem:[#allocation2 + $0xc2] sm:$0xff] }
  0x6c   : > { %1497 = vmatmul.mubr.f32.gmra.mxu0 %v13236_v15  ;;  %1872 = vmatprep.subr.mxu0 %v12646_v2 }
  0x6d   : > { %1501 = vmatprep.mubr.f32.mxu0 %v12935_v38  ;;  %1873 = vmatpush1.msra.mxu0 %v1305_v27  ;;  %v1351_v38 = vld [vmem:[%s19343_s1 + $0x370] sm:$0xff]  ;;  %v1342_v27 = vld [vmem:[%s19343_s1 + $0x328] sm:$0xff] }
  0x6e   : > { %1722 = vmatmul.mubr.f32.gmra.mxu1 %v13281_v29  ;;  %1874 = vmatprep.subr.mxu0 %v12646_v2 }
  0x6f   : > { %1726 = vmatprep.mubr.f32.mxu1 %v13284_v34  ;;  %1875 = vmatpush2.msra.mxu0 %v1336_v37  ;;  %v13424_v37 = vld [vmem:[#allocation2 + $0xca] sm:$0xff] }
  0x70   : > { %1502 = vmatmul.mubr.f32.gmra.mxu0 %v13252_v20  ;;  %2067 = vmatprep.subr.mxu1 %v12646_v2 }
  0x71   : > { %1506 = vmatprep.mubr.f32.mxu0 %v12943_v40  ;;  %2068 = vmatpush1.msra.mxu1 %v1352_v36  ;;  %v13317_v40 = vld [vmem:[#allocation2 + $0x98] sm:$0xff]  ;;  %v1330_v36 = vld [vmem:[%s19343_s1 + $0x2c8] sm:$0xff] }
  0x72   : > { %1727 = vmatmul.mubr.f32.gmra.mxu1 %v13297_v39  ;;  %1876 = vmatprep.subr.mxu0 %v12646_v2 }
  0x73   : > { %1731 = vmatprep.mubr.f32.mxu1 %v13300_v45  ;;  %2069 = vmatprep.subr.mxu1 %v12646_v2 }
  0x74   : > { %1507 = vmatmul.mubr.f32.gmra.mxu0 %v13268_v24  ;;  %2070 = vmatpush1.msra.mxu1 %v1351_v38  ;;  %v13430_v38 = vld [vmem:[#allocation2 + $0xf0] sm:$0xff] }
  0x75   : > { %1511 = vmatprep.mubr.f32.mxu0 %v12952_v42  ;;  %1877 = vmatpush2.msra.mxu0 %v1335_v46  ;;  %v1349_v42 = vld [vmem:[%s19343_s1 + $0x360] sm:$0xff]  ;;  %v1340_v46 = vld [vmem:[%s19343_s1 + $0x318] sm:$0xff] }
  0x76   : > { %1732 = vmatmul.mubr.f32.gmra.mxu1 %v13313_v48  ;;  %2071 = vmatprep.subr.mxu1 %v12646_v2 }
  0x77   : > { %1736 = vmatprep.mubr.f32.mxu1 %v13317_v40  ;;  %2072 = vmatpush1.msra.mxu1 %v1350_v50  ;;  %v13443_v50 = vld [vmem:[#allocation2 + $0xda] sm:$0xff] }
  0x78   : > { %1512 = vmatmul.mubr.f32.gmra.mxu0 %v13284_v34  ;;  %1878 = vmatprep.subr.mxu0 %v12646_v2 }
  0x79   : > { %1516 = vmatprep.mubr.f32.mxu0 %v12955_v43  ;;  %2073 = vmatprep.subr.mxu1 %v12646_v2  ;;  %v1347_v43 = vld [vmem:[%s19343_s1 + $0x350] sm:$0xff] }
  0x7a   : > { %1737 = vmatmul.mubr.f32.gmra.mxu1 %v13326_v51  ;;  %1879 = vmatpush2.msra.mxu0 %v1334_v52  ;;  %v13446_v52 = vld [vmem:[#allocation2 + $0xf8] sm:$0xff] }
  0x7b   : > { %1741 = vmatprep.mubr.f32.mxu1 %v13332_v55  ;;  %2074 = vmatpush1.msra.mxu1 %v1349_v42  ;;  %v1329_v42 = vld [vmem:[%s19343_s1 + $0x2c0] sm:$0xff] }
  0x7c   : > { %1517 = vmatmul.mubr.f32.gmra.mxu0 %v13300_v45  ;;  %2075 = vmatprep.subr.mxu1 %v12646_v2 }
  0x7d   : > { %1521 = vmatprep.mubr.f32.mxu0 %v12960_v44  ;;  %2076 = vmatpush1.msra.mxu1 %v1348_v58  ;;  %v13365_v44 = vld [vmem:[#allocation2 + $0xc0] sm:$0xff] }
  0x7e   : > { %1742 = vmatmul.mubr.f32.gmra.mxu1 %v13345_v59  ;;  %1880 = vmatprep.subr.mxu0 %v12646_v2  ;;  %v13459_v58 = vld [vmem:[#allocation2 + $0xe2] sm:$0xff] }
  0x7f   : > { %1746 = vmatprep.mubr.f32.mxu1 %v13348_v63  ;;  %2077 = vmatprep.subr.mxu1 %v12646_v2 }
  0x80   : > { %1522 = vmatmul.mubr.f32.gmra.mxu0 %v13317_v40  ;;  %2078 = vmatpush1.msra.mxu1 %v1347_v43  ;;  %v1338_v43 = vld [vmem:[%s19343_s1 + $0x308] sm:$0xff] }
  0x81   : > { %1526 = vmatprep.mubr.f32.mxu0 %v12972_v47  ;;  %1881 = vmatpush2.msra.mxu0 %v1333_v25  ;;  %v1344_v47 = vld [vmem:[%s19343_s1 + $0x338] sm:$0xff] }
  0x82   : > { %1747 = vmatmul.mubr.f32.gmra.mxu1 %v13361_v4  ;;  %2079 = vmatprep.subr.mxu1 %v12646_v2  ;;  %v1345_v2 = vld [vmem:[%s19343_s1 + $0x340] sm:$0xff]  ;;  %v13472_v25 = vld [vmem:[#allocation2 + $0xf2] sm:$0xff] }
  0x83   : > { %1751 = vmatprep.mubr.f32.mxu1 %v13365_v44  ;;  %2080 = vmatpush1.msra.mxu1 %v1346_v28  ;;  %v1328_v28 = vld [vmem:[%s19343_s1 + $0x2b8] sm:$0xff] }
  0x84   : > { %1527 = vmatmul.mubr.f32.gmra.mxu0 %v13332_v55  ;;  %1882 = vmatprep.subr.mxu0 %v13382_v32 }
  0x85   : > { %1531 = vmatprep.mubr.f32.mxu0 %v13008_v56  ;;  %2081 = vmatprep.subr.mxu1 %v13382_v32  ;;  %v1343_v56 = vld [vmem:[%s19343_s1 + $0x330] sm:$0xff] }
  0x86   : > { %1752 = vmatmul.mubr.f32.gmra.mxu1 %v13374_v9  ;;  %1883 = vmatpush2.msra.mxu0 %v1332_v30  ;;  %v13478_v30 = vld [vmem:[#allocation2 + $0x110] sm:$0xff] }
  0x87   : > { %1756 = vmatprep.mubr.f32.mxu1 %v13380_v12  ;;  %2082 = vmatpush1.msra.mxu1 %v1345_v2  ;;  %v1368_v2 = vld [vmem:[%s19343_s1 + $0x3f8] sm:$0xff] }
  0x88   : > { %1532 = vmatmul.mubr.f32.gmra.mxu0 %v13348_v63  ;;  %2083 = vmatprep.subr.mxu1 %v13382_v32 }
  0x89   : > { %1536 = vmatprep.mubr.f32.mxu0 %v13012_v57  ;;  %2084 = vmatpush1.msra.mxu1 %v1344_v47  ;;  %v13415_v57 = vld [vmem:[#allocation2 + $0xe0] sm:$0xff] }
  0x8a   : > { %1757 = vmatmul.mubr.f32.gmra.mxu1 %v13395_v17  ;;  %1884 = vmatprep.subr.mxu0 %v13382_v32  ;;  %v13491_v47 = vld [vmem:[#allocation2 + $0xfa] sm:$0xff] }
  0x8b   : > { %1761 = vmatprep.mubr.f32.mxu1 %v13398_v33  ;;  %2085 = vmatprep.subr.mxu1 %v13382_v32 }
  0x8c   : > { %1537 = vmatmul.mubr.f32.gmra.mxu0 %v13365_v44  ;;  %2086 = vmatpush1.msra.mxu1 %v1343_v56  ;;  %v13494_v56 = vld [vmem:[#allocation2 + $0x120] sm:$0xff] }
  0x8d   : > { %1541 = vmatprep.mubr.f32.mxu0 %v13024_v60  ;;  %1885 = vmatpush2.msra.mxu0 %v1331_v21  ;;  %v1341_v60 = vld [vmem:[%s19343_s1 + $0x320] sm:$0xff]  ;;  %v1327_v21 = vld [vmem:[%s19343_s1 + $0x2b0] sm:$0xff] }
  0x8e   : > { %1762 = vmatmul.mubr.f32.gmra.mxu1 %v13411_v35  ;;  %2087 = vmatprep.subr.mxu1 %v13382_v32 }
  0x8f   : > { %1766 = vmatprep.mubr.f32.mxu1 %v13415_v57  ;;  %2088 = vmatpush1.msra.mxu1 %v1342_v27  ;;  %v13507_v27 = vld [vmem:[#allocation2 + $0x10a] sm:$0xff] }
  0x90   : > { %1542 = vmatmul.mubr.f32.gmra.mxu0 %v13380_v12  ;;  %1886 = vmatprep.subr.mxu0 %v13382_v32 }
  0x91   : > { %1546 = vmatprep.mubr.f32.mxu0 %v13028_v61  ;;  %2089 = vmatprep.subr.mxu1 %v13382_v32  ;;  %v1339_v61 = vld [vmem:[%s19343_s1 + $0x310] sm:$0xff] }
  0x92   : > { %1767 = vmatmul.mubr.f32.gmra.mxu1 %v13424_v37  ;;  %1887 = vmatpush2.msra.mxu0 %v1330_v36  ;;  %v1366_v36 = vld [vmem:[%s19343_s1 + $0x3e8] sm:$0xff] }
  0x93   : > { %1771 = vmatprep.mubr.f32.mxu1 %v13430_v38  ;;  %2090 = vmatpush1.msra.mxu1 %v1341_v60  ;;  %v13520_v60 = vld [vmem:[#allocation2 + $0x112] sm:$0xff] }
  0x94   : > { %1547 = vmatmul.mubr.f32.gmra.mxu0 %v13398_v33  ;;  %2091 = vmatprep.subr.mxu1 %v13382_v32 }
  0x95   : > { %1551 = vmatprep.mubr.f32.mxu0 %v13040_v0  ;;  %2092 = vmatpush1.msra.mxu1 %v1340_v46  ;;  %v13463_v0 = vld [vmem:[#allocation2 + $0x108] sm:$0xff] }
  0x96   : > { %1772 = vmatmul.mubr.f32.gmra.mxu1 %v13443_v50  ;;  %1888 = vmatprep.subr.mxu0 %v13382_v32  ;;  %v1326_v46 = vld [vmem:[%s19343_s1 + $0x2a8] sm:$0xff] }
  0x97   : > { %1776 = vmatprep.mubr.f32.mxu1 %v13446_v52  ;;  %2093 = vmatprep.subr.mxu1 %v13382_v32 }
  0x98   : > { %1552 = vmatmul.mubr.f32.gmra.mxu0 %v13415_v57  ;;  %2094 = vmatpush1.msra.mxu1 %v1339_v61  ;;  %v13526_v61 = vld [vmem:[#allocation2 + $0x138] sm:$0xff] }
  0x99   : > { %1556 = vmatprep.mubr.f32.mxu0 %v13044_v1  ;;  %1889 = vmatpush2.msra.mxu0 %v1329_v42  ;;  %v1337_v1 = vld [vmem:[%s19343_s1 + $0x300] sm:$0xff]  ;;  %v1364_v42 = vld [vmem:[%s19343_s1 + $0x3d8] sm:$0xff] }
  0x9a   : > { %1777 = vmatmul.mubr.f32.gmra.mxu1 %v13459_v58  ;;  %2095 = vmatprep.subr.mxu1 %v13382_v32 }
  0x9b   : > { %1781 = vmatprep.mubr.f32.mxu1 %v13463_v0  ;;  %2096 = vmatpush1.msra.mxu1 %v1338_v43  ;;  %v13539_v43 = vld [vmem:[#allocation2 + $0x122] sm:$0xff] }
  0x9c   : > { %1557 = vmatmul.mubr.f32.gmra.mxu0 %v13430_v38  ;;  %1890 = vmatprep.subr.mxu0 %v13382_v32 }
  0x9d   : > { %1561 = vmatprep.mubr.f32.mxu0 %v13056_v5  ;;  %2097 = vmatprep.subr.mxu1 %v13382_v32  ;;  %v1367_v5 = vld [vmem:[%s19343_s1 + $0x3f0] sm:$0xff] }
  0x9e   : > { %1782 = vmatmul.mubr.f32.gmra.mxu1 %v13472_v25  ;;  %1891 = vmatpush2.msra.mxu0 %v1328_v28  ;;  %v13542_v28 = vld [vmem:[#allocation2 + $0x140] sm:$0xff] }
  0x9f   : > { %1786 = vmatprep.mubr.f32.mxu1 %v13478_v30  ;;  %2098 = vmatpush1.msra.mxu1 %v1337_v1  ;;  %v1325_v1 = vld [vmem:[%s19343_s1 + $0x2a0] sm:$0xff] }
  0xa0   : > { %1562 = vmatmul.mubr.f32.gmra.mxu0 %v13446_v52  ;;  %2099 = vmatprep.subr.mxu1 %v13382_v32 }
  0xa1   : > { %1566 = vmatprep.mubr.f32.mxu0 %v13068_v8  ;;  %2100 = vmatpush2.msra.mxu1 %v1368_v2  ;;  %v13511_v8 = vld [vmem:[#allocation2 + $0x128] sm:$0xff] }
  0xa2   : > { %1787 = vmatmul.mubr.f32.gmra.mxu1 %v13491_v47  ;;  %1892 = vmatprep.subr.mxu0 %v13382_v32  ;;  %v13555_v2 = vld [vmem:[#allocation2 + $0x12a] sm:$0xff] }
  0xa3   : > { %1791 = vmatprep.mubr.f32.mxu1 %v13494_v56  ;;  %2101 = vmatprep.subr.mxu1 %v13382_v32 }
  0xa4   : > { %1567 = vmatmul.mubr.f32.gmra.mxu0 %v13463_v0  ;;  %2102 = vmatpush2.msra.mxu1 %v1367_v5  ;;  %v1362_v5 = vld [vmem:[%s19343_s1 + $0x3c8] sm:$0xff] }
  0xa5   : > { %1571 = vmatprep.mubr.f32.mxu0 %v13088_v13  ;;  %1893 = vmatpush2.msra.mxu0 %v1327_v21  ;;  %v1365_v13 = vld [vmem:[%s19343_s1 + $0x3e0] sm:$0xff] }
  0xa6   : > { %1792 = vmatmul.mubr.f32.gmra.mxu1 %v13507_v27  ;;  %2103 = vmatprep.subr.mxu1 %v13382_v32  ;;  %v13568_v21 = vld [vmem:[#allocation2 + $0x13a] sm:$0xff] }
  0xa7   : > { %1796 = vmatprep.mubr.f32.mxu1 %v13511_v8  ;;  %2104 = vmatpush2.msra.mxu1 %v1366_v36  ;;  %v1324_v36 = vld [vmem:[%s19343_s1 + $0x298] sm:$0xff] }
  0xa8   : > { %1572 = vmatmul.mubr.f32.gmra.mxu0 %v13478_v30  ;;  %1894 = vmatprep.subr.mxu0 %v13382_v32 }
  0xa9   : > { %1576 = vmatprep.mubr.f32.mxu0 %v13100_v16  ;;  %2105 = vmatprep.subr.mxu1 %v13382_v32  ;;  %v1363_v16 = vld [vmem:[%s19343_s1 + $0x3d0] sm:$0xff] }
  0xaa   : > { %1797 = vmatmul.mubr.f32.gmra.mxu1 %v13520_v60  ;;  %1895 = vmatpush2.msra.mxu0 %v1326_v46  ;;  %v13574_v46 = vld [vmem:[#allocation2 + $0x158] sm:$0xff] }
  0xab   : > { %1801 = vmatprep.mubr.f32.mxu1 %v13526_v61  ;;  %2106 = vmatpush2.msra.mxu1 %v1365_v13  ;;  %19412 = vst [vmem:[#allocation5_spill] sm:$0xff] %v13574_v46  ;;  %v1360_v13 = vld [vmem:[%s19343_s1 + $0x3b8] sm:$0xff] }
  0xac   : > { %1577 = vmatmul.mubr.f32.gmra.mxu0 %v13494_v56  ;;  %2107 = vmatprep.subr.mxu1 %v13382_v32 }
  0xad   : > { %1581 = vmatprep.mubr.f32.mxu0 %v13112_v19  ;;  %2108 = vmatpush2.msra.mxu1 %v1364_v42  ;;  %v13559_v19 = vld [vmem:[#allocation2 + $0x150] sm:$0xff]  ;;  %v13587_v42 = vld [vmem:[#allocation2 + $0x142] sm:$0xff] }
  0xae   : > { %1802 = vmatmul.mubr.f32.gmra.mxu1 %v13539_v43  ;;  %1896 = vmatprep.subr.mxu0 %v13382_v32 }
  0xaf   : > { %1806 = vmatprep.mubr.f32.mxu1 %v13542_v28  ;;  %2109 = vmatprep.subr.mxu1 %v13382_v32 }
  0xb0   : > { %1582 = vmatmul.mubr.f32.gmra.mxu0 %v13511_v8  ;;  %2110 = vmatpush2.msra.mxu1 %v1363_v16  ;;  %v13590_v16 = vld [vmem:[#allocation2 + $0x168] sm:$0xff] }
  0xb1   : > { %1586 = vmatprep.mubr.f32.mxu0 %v13124_v22  ;;  %1897 = vmatpush2.msra.mxu0 %v1325_v1  ;;  %v1361_v22 = vld [vmem:[%s19343_s1 + $0x3c0] sm:$0xff]  ;;  %v1323_v1 = vld [vmem:[%s19343_s1 + $0x290] sm:$0xff] }
  0xb2   : > { %1807 = vmatmul.mubr.f32.gmra.mxu1 %v13555_v2  ;;  %2111 = vmatprep.subr.mxu1 %v13382_v32 }
  0xb3   : > { %1811 = vmatprep.mubr.f32.mxu1 %v13559_v19  ;;  %2112 = vmatpush2.msra.mxu1 %v1362_v5  ;;  %v13603_v5 = vld [vmem:[#allocation2 + $0x152] sm:$0xff] }
  0xb4   : > { %1587 = vmatmul.mubr.f32.gmra.mxu0 %v13526_v61  ;;  %1898 = vmatprep.subr.mxu0 %v13382_v32 }
  0xb5   : > { %1591 = vmatprep.mubr.f32.mxu0 %v13133_v26  ;;  %2113 = vmatprep.subr.mxu1 %v13382_v32  ;;  %v1359_v26 = vld [vmem:[%s19343_s1 + $0x3b0] sm:$0xff] }
  0xb6   : > { %1812 = vmatmul.mubr.f32.gmra.mxu1 %v13568_v21  ;;  %1899 = vmatpush2.msra.mxu0 %v1324_v36  ;;  %v1358_v36 = vld [vmem:[%s19343_s1 + $0x3a8] sm:$0xff] }
  0xb7   : > { %1816 = vmatprep.mubr.f32.mxu1 %v13574_v46  ;;  %2114 = vmatpush2.msra.mxu1 %v1361_v22  ;;  %v13616_v22 = vld [vmem:[#allocation2 + $0x15a] sm:$0xff] }
  0xb8   : > { %1592 = vmatmul.mubr.f32.gmra.mxu0 %v13542_v28  ;;  %2115 = vmatprep.subr.mxu1 %v13382_v32 }
  0xb9   : > { %1596 = vmatprep.mubr.f32.mxu0 %v13145_v31  ;;  %2116 = vmatpush2.msra.mxu1 %v1360_v13  ;;  %v13607_v31 = vld [vmem:[#allocation2 + $0x170] sm:$0xff]  ;;  %v1322_v13 = vld [vmem:[%s19343_s1 + $0x288] sm:$0xff] }
  0xba   : > { %1817 = vmatmul.mubr.f32.gmra.mxu1 %v13587_v42  ;;  %1900 = vmatprep.subr.mxu0 %v13382_v32 }
  0xbb   : > { %1821 = vmatprep.mubr.f32.mxu1 %v13590_v16  ;;  %2117 = vmatprep.subr.mxu1 %v13382_v32 }
  0xbc   : > { %1597 = vmatmul.mubr.f32.gmra.mxu0 %v13559_v19  ;;  %2118 = vmatpush2.msra.mxu1 %v1359_v26  ;;  %v13623_v26 = vld [vmem:[#allocation2 + $0x180] sm:$0xff] }
  0xbd   : > { %1601 = vmatprep.mubr.f32.mxu0 %v13153_v41  ;;  %1901 = vmatpush2.msra.mxu0 %v1323_v1  ;;  %19413 = vst [vmem:[#allocation6_spill] sm:$0xff] %v13623_v26  ;;  %v1357_v41 = vld [vmem:[%s19343_s1 + $0x3a0] sm:$0xff]  ;;  %v1356_v1 = vld [vmem:[%s19343_s1 + $0x398] sm:$0xff] }
  0xbe   : > { %1822 = vmatmul.mubr.f32.gmra.mxu1 %v13603_v5  ;;  %2119 = vmatprep.subr.mxu1 %v13382_v32 }
  0xbf   : > { %1826 = vmatprep.mubr.f32.mxu1 %v13607_v31  ;;  %2120 = vmatpush2.msra.mxu1 %v1358_v36  ;;  %v13635_v36 = vld [vmem:[#allocation2 + $0x16a] sm:$0xff] }
  0xc0   : > { %1602 = vmatmul.mubr.f32.gmra.mxu0 %v13574_v46  ;;  %1902 = vmatprep.subr.mxu0 %v13382_v32  ;;  %v13639_v46 = vld [vmem:[#allocation2 + $0x188] sm:$0xff] }
  0xc1   : > { %1606 = vmatprep.mubr.f32.mxu0 %v13162_v49  ;;  %2121 = vmatprep.subr.mxu1 %v13382_v32  ;;  %19414 = vst [vmem:[#allocation7_spill] sm:$0xff] %v13639_v46  ;;  %v1355_v49 = vld [vmem:[%s19343_s1 + $0x390] sm:$0xff] }
  0xc2   : > { %1827 = vmatmul.mubr.f32.gmra.mxu1 %v13616_v22  ;;  %1903 = vmatpush2.msra.mxu0 %v1322_v13  ;;  %v1321_v13 = vld [vmem:[%s19343_s1 + $0x280] sm:$0xff] }
  0xc3   : > { %1831 = vmatprep.mubr.f32.mxu1 %v13623_v26  ;;  %2122 = vmatpush2.msra.mxu1 %v1357_v41  ;;  %v13652_v41 = vld [vmem:[#allocation2 + $0x172] sm:$0xff] }
  0xc4   : > { %1607 = vmatmul.mubr.f32.gmra.mxu0 %v13590_v16  ;;  %2123 = vmatprep.subr.mxu1 %v13382_v32  ;;  %v12596_v26 = vld [vmem:[#allocation2 + $0x31] sm:$0xff] }
  0xc5   : > { %1611 = vmatprep.mubr.f32.mxu0 %v13170_v53  ;;  %2124 = vmatpush2.msra.mxu1 %v1356_v1  ;;  %v1354_v53 = vld [vmem:[%s19343_s1 + $0x388] sm:$0xff]  ;;  %v1384_v1 = vld [vmem:[%s19343_s1 + $0x478] sm:$0xff] }
  0xc6   : > { %1832 = vmatmul.mubr.f32.gmra.mxu1 %v13635_v36  ;;  %1904 = vmatprep.subr.mxu0 %v13382_v32 }
  0xc7   : > { %2125 = vmatprep.subr.mxu1 %v13382_v32  ;;  %1836 = vmatprep.mubr.f32.mxu1 %v13639_v46  ;;  %v1353_v46 = vld [vmem:[%s19343_s1 + $0x380] sm:$0xff] }
  0xc8   : > { %1612 = vmatmul.mubr.f32.gmra.mxu0 %v13607_v31  ;;  %2126 = vmatpush2.msra.mxu1 %v1355_v49  ;;  %v12595_v49 = vld [vmem:[#allocation2 + $0x19] sm:$0xff] }
  0xc9   : > { %1905 = vmatpush2.msra.mxu0 %v1321_v13  ;;  %2127 = vmatprep.subr.mxu1 %v13382_v32  ;;  %v1383_v13 = vld [vmem:[%s19343_s1 + $0x470] sm:$0xff] }
  0xca   : > { %1837 = vmatmul.mubr.f32.gmra.mxu1 %v13652_v41  ;;  %1906 = vmatprep.mubr.f32.mxu0 %v13186_v62  ;;  %v12597_v62 = vld [vmem:[#allocation2 + $0x39] sm:$0xff] }
  0xcb   : > { %2128 = vmatpush2.msra.mxu1 %v1354_v53  ;;  %12121 = vmatprep.subr.mxu0 %v1384_v1  ;;  %v1382_v53 = vld [vmem:[%s19343_s1 + $0x468] sm:$0xff] }
  0xcc   : > { %1907 = vmatmul.mubr.f32.vlgmr.msra.gmra.mxu0 %v12595_v49  ;;  %2129 = vmatprep.subr.mxu1 %v13382_v32  ;;  %v12598_v49 = vld [vmem:[#allocation2 + $0x21] sm:$0xff] }
  0xcd   : > { %2130 = vmatpush2.msra.mxu1 %v1353_v46  ;;  %2131 = vmatprep.mubr.f32.mxu1 %v12596_v26  ;;  %v1381_v46 = vld [vmem:[%s19343_s1 + $0x460] sm:$0xff] }
  0xce   : > { %12122 = vmatpush3.msra.mxu0 %v1384_v1  ;;  %2132 = vmatmul.mubr.f32.vlgmr.msra.gmra.mxu1 %v13173_v54  ;;  %v12599_v54 = vld [vmem:[#allocation2 + $0x49] sm:$0xff] }
  0xcf   : > { %1911 = vmatprep.mubr.f32.mxu0 %v13202_v6  ;;  %2136 = vmatprep.mubr.f32.mxu1 %v12597_v62  ;;  %v1380_v6 = vld [vmem:[%s19343_s1 + $0x458] sm:$0xff]  ;;  %v1378_v1 = vld [vmem:[%s19343_s1 + $0x448] sm:$0xff] }
  0xd0   : > { %1912 = vmatmul.mubr.f32.gmra.mxu0 %v12598_v49  ;;  %12123 = vmatprep.subr.mxu0 %v1383_v13 }
  0xd1   : > { %1916 = vmatprep.mubr.f32.mxu0 %v13217_v10  ;;  %12124 = vmatpush3.msra.mxu0 %v1383_v13  ;;  %v1379_v10 = vld [vmem:[%s19343_s1 + $0x450] sm:$0xff]  ;;  %v1374_v13 = vld [vmem:[%s19343_s1 + $0x428] sm:$0xff] }
  0xd2   : > { %2137 = vmatmul.mubr.f32.gmra.mxu1 %v13190_v3  ;;  %12125 = vmatprep.subr.mxu0 %v1382_v53  ;;  %v12600_v3 = vld [vmem:[#allocation2 + $0x51] sm:$0xff] }
  0xd3   : > { %2141 = vmatprep.mubr.f32.mxu1 %v12599_v54  ;;  %12126 = vmatpush3.msra.mxu0 %v1382_v53  ;;  %v1370_v53 = vld [vmem:[%s19343_s1 + $0x408] sm:$0xff] }
  0xd4   : > { %1917 = vmatmul.mubr.f32.gmra.mxu0 %v12596_v26  ;;  %12127 = vmatprep.subr.mxu0 %v1381_v46  ;;  %v1376_v26 = vld [vmem:[%s19343_s1 + $0x438] sm:$0xff] }
  0xd5   : > { %1921 = vmatprep.mubr.f32.mxu0 %v13233_v14  ;;  %12128 = vmatpush3.msra.mxu0 %v1381_v46  ;;  %v1377_v14 = vld [vmem:[%s19343_s1 + $0x440] sm:$0xff] }
  0xd6   : > { %2142 = vmatmul.mubr.f32.gmra.mxu1 %v13204_v7  ;;  %12129 = vmatprep.subr.mxu0 %v1380_v6  ;;  %v12601_v7 = vld [vmem:[#allocation2 + $0x61] sm:$0xff] }
  0xd7   : > { %2146 = vmatprep.mubr.f32.mxu1 %v12600_v3  ;;  %12130 = vmatpush3.msra.mxu0 %v1380_v6 }
  0xd8   : > { %1922 = vmatmul.mubr.f32.gmra.mxu0 %v12597_v62  ;;  %12131 = vmatprep.subr.mxu0 %v1379_v10  ;;  %v1372_v62 = vld [vmem:[%s19343_s1 + $0x418] sm:$0xff] }
  0xd9   : > { %1926 = vmatprep.mubr.f32.mxu0 %v13249_v18  ;;  %12132 = vmatpush3.msra.mxu0 %v1379_v10  ;;  %v1375_v18 = vld [vmem:[%s19343_s1 + $0x430] sm:$0xff] }
  0xda   : > { %2147 = vmatmul.mubr.f32.gmra.mxu1 %v13220_v11  ;;  %12133 = vmatprep.subr.mxu0 %v1378_v1  ;;  %v12602_v11 = vld [vmem:[#allocation2 + $0x69] sm:$0xff] }
  0xdb   : > { %2151 = vmatprep.mubr.f32.mxu1 %v12601_v7  ;;  %12134 = vmatpush3.msra.mxu0 %v1378_v1 }
  0xdc   : > { %1927 = vmatmul.mubr.f32.gmra.mxu0 %v12599_v54  ;;  %12135 = vmatprep.subr.mxu0 %v1377_v14  ;;  %v12615_v54 = vld [vmem:[#allocation2 + $0x109] sm:$0xff] }
  0xdd   : > { %1931 = vmatprep.mubr.f32.mxu0 %v13265_v23  ;;  %12136 = vmatpush3.msra.mxu0 %v1377_v14  ;;  %v1373_v23 = vld [vmem:[%s19343_s1 + $0x420] sm:$0xff]  ;;  %v12616_v14 = vld [vmem:[#allocation2 + $0x111] sm:$0xff] }
  0xde   : > { %2152 = vmatmul.mubr.f32.gmra.mxu1 %v13236_v15  ;;  %12137 = vmatprep.subr.mxu0 %v1376_v26  ;;  %v12603_v15 = vld [vmem:[#allocation2 + $0x79] sm:$0xff] }
  0xdf   : > { %2156 = vmatprep.mubr.f32.mxu1 %v12602_v11  ;;  %12138 = vmatpush3.msra.mxu0 %v1376_v26 }
  0xe0   : > { %1932 = vmatmul.mubr.f32.gmra.mxu0 %v12600_v3  ;;  %12139 = vmatprep.subr.mxu0 %v1375_v18  ;;  %v11453_v3 = vld [vmem:[%s19343_s1 + $0x4f8] sm:$0xff] }
  0xe1   : > { %1936 = vmatprep.mubr.f32.mxu0 %v13281_v29  ;;  %12140 = vmatpush3.msra.mxu0 %v1375_v18  ;;  %v1371_v29 = vld [vmem:[%s19343_s1 + $0x410] sm:$0xff] }
  0xe2   : > { %2157 = vmatmul.mubr.f32.gmra.mxu1 %v13252_v20  ;;  %12141 = vmatprep.subr.mxu0 %v1374_v13  ;;  %v12604_v20 = vld [vmem:[#allocation2 + $0x81] sm:$0xff]  ;;  %v11452_v18 = vld [vmem:[%s19343_s1 + $0x4f0] sm:$0xff] }
  0xe3   : > { %2161 = vmatprep.mubr.f32.mxu1 %v12603_v15  ;;  %12142 = vmatpush3.msra.mxu0 %v1374_v13 }
  0xe4   : > { %1937 = vmatmul.mubr.f32.gmra.mxu0 %v12601_v7  ;;  %12143 = vmatprep.subr.mxu0 %v1373_v23 }
  0xe5   : > { %1941 = vmatprep.mubr.f32.mxu0 %v13297_v39  ;;  %12144 = vmatpush3.msra.mxu0 %v1373_v23  ;;  %v1369_v39 = vld [vmem:[%s19343_s1 + $0x400] sm:$0xff] }
  0xe6   : > { %2162 = vmatmul.mubr.f32.gmra.mxu1 %v13268_v24  ;;  %12145 = vmatprep.subr.mxu0 %v1372_v62  ;;  %v12605_v24 = vld [vmem:[#allocation2 + $0x91] sm:$0xff]  ;;  %v12617_v23 = vld [vmem:[#allocation2 + $0x121] sm:$0xff] }
  0xe7   : > { %2166 = vmatprep.mubr.f32.mxu1 %v12604_v20  ;;  %12146 = vmatpush3.msra.mxu0 %v1372_v62 }
  0xe8   : > { %1942 = vmatmul.mubr.f32.gmra.mxu0 %v12602_v11  ;;  %12147 = vmatprep.subr.mxu0 %v1371_v29 }
  0xe9   : > { %1946 = vmatprep.mubr.f32.mxu0 %v13313_v48  ;;  %12148 = vmatpush3.msra.mxu0 %v1371_v29  ;;  %v12606_v48 = vld [vmem:[#allocation2 + $0x99] sm:$0xff]  ;;  %v11451_v29 = vld [vmem:[%s19343_s1 + $0x4e8] sm:$0xff] }
  0xea   : > { %2167 = vmatmul.mubr.f32.gmra.mxu1 %v13284_v34  ;;  %12149 = vmatprep.subr.mxu0 %v1370_v53  ;;  %v12607_v34 = vld [vmem:[#allocation2 + $0xa9] sm:$0xff] }
  0xeb   : > { %2171 = vmatprep.mubr.f32.mxu1 %v12605_v24  ;;  %12150 = vmatpush3.msra.mxu0 %v1370_v53 }
  0xec   : > { %1947 = vmatmul.mubr.f32.gmra.mxu0 %v12603_v15  ;;  %12151 = vmatprep.subr.mxu0 %v1369_v39 }
  0xed   : > { %1951 = vmatprep.mubr.f32.mxu0 %v13326_v51  ;;  %12152 = vmatpush3.msra.mxu0 %v1369_v39  ;;  %v12608_v51 = vld [vmem:[#allocation2 + $0xb1] sm:$0xff]  ;;  %v12618_v39 = vld [vmem:[#allocation2 + $0x129] sm:$0xff] }
  0xee   : > { %2172 = vmatmul.mubr.f32.gmra.mxu1 %v13300_v45  ;;  %3600 = vmatprep.subr.mxu1 %v13382_v32  ;;  %v12609_v45 = vld [vmem:[#allocation2 + $0xc1] sm:$0xff] }
  0xef   : > { %2176 = vmatprep.mubr.f32.mxu1 %v12606_v48  ;;  %3825 = vmatprep.subr.mxu0 %v13382_v32 }
  0xf0   : > { %1952 = vmatmul.mubr.f32.gmra.mxu0 %v12604_v20  ;;  %3601 = vmatpush1.msra.mxu1 %v11453_v3  ;;  %v12622_v3 = vld [vmem:[#allocation2 + $0x159] sm:$0xff] }
  0xf1   : > { %1956 = vmatprep.mubr.f32.mxu0 %v13345_v59  ;;  %v12612_v59 = vld [vmem:[#allocation2 + $0xe1] sm:$0xff]  ;;  %3602 = vmatprep.subr.mxu1 %v13382_v32 }
  0xf2   : > { %2177 = vmatmul.mubr.f32.gmra.mxu1 %v13317_v40  ;;  %v12610_v40 = vld [vmem:[#allocation2 + $0xc9] sm:$0xff] }
  0xf3   : > { %2181 = vmatprep.mubr.f32.mxu1 %v12607_v34  ;;  %3603 = vmatpush1.msra.mxu1 %v11452_v18  ;;  %v12623_v18 = vld [vmem:[#allocation2 + $0x169] sm:$0xff] }
  0xf4   : > { %1957 = vmatmul.mubr.f32.gmra.mxu0 %v12605_v24  ;;  %3604 = vmatprep.subr.mxu1 %v13382_v32 }
  0xf5   : > { %1961 = vmatprep.mubr.f32.mxu0 %v13361_v4  ;;  %v12613_v4 = vld [vmem:[#allocation2 + $0xf1] sm:$0xff]  ;;  %3605 = vmatpush1.msra.mxu1 %v11451_v29 }
  0xf6   : > { %2182 = vmatmul.mubr.f32.gmra.mxu1 %v13332_v55  ;;  %v12611_v55 = vld [vmem:[#allocation2 + $0xd9] sm:$0xff]  ;;  %3606 = vmatprep.subr.mxu1 %v13382_v32  ;;  %v12624_v29 = vld [vmem:[#allocation2 + $0x171] sm:$0xff] }
  0xf7   : > { %2186 = vmatprep.mubr.f32.mxu1 %v12608_v51 }
  0xf8   : > { %1962 = vmatmul.mubr.f32.gmra.mxu0 %v12606_v48 }
  0xf9   : > { %1966 = vmatprep.mubr.f32.mxu0 %v13374_v9 }
  0xfa   : > { %2187 = vmatmul.mubr.f32.gmra.mxu1 %v13348_v63  ;;  %v13750_v63 = vld [vmem:[%s19344_s2] ss:$0 sm:$0xff] }
  0xfb   : > { %2191 = vmatprep.mubr.f32.mxu1 %v12609_v45 }
  0xfc   : > { %1967 = vmatmul.mubr.f32.gmra.mxu0 %v12607_v34  ;;  %v11450_v34 = vld [vmem:[%s19343_s1 + $0x4e0] sm:$0xff] }
  0xfd   : > { %1971 = vmatprep.mubr.f32.mxu0 %v13395_v17  ;;  %3607 = vmatpush1.msra.mxu1 %v11450_v34 }
  0xfe   : > { %2192 = vmatmul.mubr.f32.gmra.mxu1 %v13365_v44  ;;  %3608 = vmatprep.subr.mxu1 %v13382_v32 }
  0xff   : > { %2196 = vmatprep.mubr.f32.mxu1 %v12610_v40 }
 0x100   : > { %1972 = vmatmul.mubr.f32.gmra.mxu0 %v12608_v51 }
 0x101   : > { %1976 = vmatprep.mubr.f32.mxu0 %v13411_v35  ;;  %v12614_v35 = vld [vmem:[#allocation2 + $0xf9] sm:$0xff] }
 0x102   : > { %2197 = vmatmul.mubr.f32.gmra.mxu1 %v13380_v12 }
 0x103   : > { %2201 = vmatprep.mubr.f32.mxu1 %v12611_v55 }
 0x104   : > { %1977 = vmatmul.mubr.f32.gmra.mxu0 %v12609_v45 }
 0x105   : > { %1981 = vmatprep.mubr.f32.mxu0 %v13424_v37 }
 0x106   : > { %2202 = vmatmul.mubr.f32.gmra.mxu1 %v13398_v33 }
 0x107   : > { %2206 = vmatprep.mubr.f32.mxu1 %v12612_v59 }
 0x108   : > { %1982 = vmatmul.mubr.f32.gmra.mxu0 %v12610_v40  ;;  %v12619_v40 = vld [vmem:[#allocation2 + $0x139] sm:$0xff] }
 0x109   : > { %1986 = vmatprep.mubr.f32.mxu0 %v13443_v50 }
 0x10a   : > { %2207 = vmatmul.mubr.f32.gmra.mxu1 %v13415_v57 }
 0x10b   : > { %2211 = vmatprep.mubr.f32.mxu1 %v12613_v4 }
 0x10c   : > { %v1458_v44 = vpop.f32.mrf.mxu0  ;;  %1987 = vmatmul.mubr.f32.gmra.mxu0 %v12611_v55 }
 0x10d   : > { %v1459_v9 = vadd.f32 %v13750_v63, %v1458_v44  ;;  %1991 = vmatprep.mubr.f32.mxu0 %v13459_v58 }
 0x10e   : > { %v1460_v12 = vpop.f32.mrf.mxu0  ;;  %v1683_v17 = vpop.f32.mrf.mxu1  ;;  %2212 = vmatmul.mubr.f32.gmra.mxu1 %v13430_v38 }
 0x10f   : > { %v13755_v33 = vadd.f32 %v1683_v17, %v1459_v9  ;;  %2216 = vmatprep.mubr.f32.mxu1 %v12614_v35  ;;  %v12620_v12 = vld [vmem:[#allocation2 + $0x141] sm:$0xff] }
 0x110   : > { %v1463_v57 = vpop.f32.mrf.mxu0  ;;  %v1685_v37 = vpop.f32.mrf.mxu1  ;;  %1992 = vmatmul.mubr.f32.gmra.mxu0 %v12612_v59 }
 0x111   : > { %v1464_v50 = vadd.f32 %v13750_v63, %v1463_v57  ;;  %1996 = vmatprep.mubr.f32.mxu0 %v13472_v25  ;;  %v11448_v57 = vld [vmem:[%s19343_s1 + $0x4d0] sm:$0xff] }
 0x112   : > { %v1465_v49 = vpop.f32.mrf.mxu0  ;;  %v1688_v46 = vpop.f32.mrf.mxu1  ;;  %2217 = vmatmul.mubr.f32.gmra.mxu1 %v13446_v52 }
 0x113   : > { %v13760_v58 = vadd.f32 %v1688_v46, %v1464_v50  ;;  %2221 = vmatprep.mubr.f32.mxu1 %v12615_v54  ;;  %v12621_v49 = vld [vmem:[#allocation2 + $0x151] sm:$0xff] }
 0x114   : > { %v1468_v38 = vpop.f32.mrf.mxu0  ;;  %v1690_v6 = vpop.f32.mrf.mxu1  ;;  %1997 = vmatmul.mubr.f32.gmra.mxu0 %v12613_v4  ;;  %v11449_v4 = vld [vmem:[%s19343_s1 + $0x4d8] sm:$0xff] }
 0x115   : > { %v1469_v10 = vadd.f32 %v13750_v63, %v1468_v38  ;;  %2001 = vmatprep.mubr.f32.mxu0 %v13491_v47  ;;  %3609 = vmatpush1.msra.mxu1 %v11449_v4  ;;  %v11447_v38 = vld [vmem:[%s19343_s1 + $0x4c8] sm:$0xff] }
 0x116   : > { %v1470_v25 = vpop.f32.mrf.mxu0  ;;  %v1693_v1 = vpop.f32.mrf.mxu1  ;;  %2222 = vmatmul.mubr.f32.gmra.mxu1 %v13463_v0  ;;  %3610 = vmatprep.subr.mxu1 %v13382_v32  ;;  %v12626_v4 = vld [vmem:[#allocation2 + $0x189] sm:$0xff] }
 0x117   : > { %v13768_v52 = vadd.f32 %v1693_v1, %v1469_v10  ;;  %2226 = vmatprep.mubr.f32.mxu1 %v12616_v14  ;;  %3611 = vmatpush1.msra.mxu1 %v11448_v57  ;;  %v19417_v57 = vld [vmem:[#allocation7_spill] sm:$0xff] }
 0x118   : > { %v1473_v7 = vpop.f32.mrf.mxu0  ;;  %v1695_v26 = vpop.f32.mrf.mxu1  ;;  %2002 = vmatmul.mubr.f32.gmra.mxu0 %v12614_v35  ;;  %3612 = vmatprep.subr.mxu1 %v13382_v32 }
 0x119   : > { %v1474_v47 = vadd.f32 %v13750_v63, %v1473_v7  ;;  %2006 = vmatprep.mubr.f32.mxu0 %v13507_v27  ;;  %3613 = vmatpush1.msra.mxu1 %v11447_v38  ;;  %v19415_v26 = vld [vmem:[#allocation5_spill] sm:$0xff] }
 0x11a   : > { %v1475_v11 = vpop.f32.mrf.mxu0  ;;  %v1698_v0 = vpop.f32.mrf.mxu1  ;;  %2227 = vmatmul.mubr.f32.gmra.mxu1 %v13478_v30  ;;  %3614 = vmatprep.subr.mxu1 %v13382_v32 }
 0x11b   : > { %v13777_v13 = vadd.f32 %v1698_v0, %v1474_v47  ;;  %2231 = vmatprep.mubr.f32.mxu1 %v12617_v23 }
 0x11c   : > { %v1478_v15 = vpop.f32.mrf.mxu0  ;;  %v1700_v62 = vpop.f32.mrf.mxu1  ;;  %2007 = vmatmul.mubr.f32.gmra.mxu0 %v12615_v54 }
 0x11d   : > { %v1479_v27 = vadd.f32 %v13750_v63, %v1478_v15  ;;  %2011 = vmatprep.mubr.f32.mxu0 %v13520_v60 }
 0x11e   : > { %v1480_v20 = vpop.f32.mrf.mxu0  ;;  %v1703_v30 = vpop.f32.mrf.mxu1  ;;  %2232 = vmatmul.mubr.f32.gmra.mxu1 %v13494_v56 }
 0x11f   : > { %v13786_v53 = vadd.f32 %v1703_v30, %v1479_v27  ;;  %2236 = vmatprep.mubr.f32.mxu1 %v12618_v39 }
 0x120   : > { %v1483_v24 = vpop.f32.mrf.mxu0  ;;  %v1705_v48 = vpop.f32.mrf.mxu1  ;;  %2012 = vmatmul.mubr.f32.gmra.mxu0 %v12616_v14  ;;  %v11446_v14 = vld [vmem:[%s19343_s1 + $0x4c0] sm:$0xff] }
 0x121   : > { %v1484_v60 = vadd.f32 %v13750_v63, %v1483_v24  ;;  %2016 = vmatprep.mubr.f32.mxu0 %v13539_v43  ;;  %3615 = vmatpush1.msra.mxu1 %v11446_v14 }
 0x122   : > { %v1485_v51 = vpop.f32.mrf.mxu0  ;;  %v1708_v56 = vpop.f32.mrf.mxu1  ;;  %2237 = vmatmul.mubr.f32.gmra.mxu1 %v13511_v8  ;;  %3616 = vmatprep.subr.mxu1 %v13382_v32 }
 0x123   : > { %v13795_v45 = vadd.f32 %v1708_v56, %v1484_v60  ;;  %2241 = vmatprep.mubr.f32.mxu1 %v12619_v40  ;;  %v12625_v60 = vld [vmem:[#allocation2 + $0x181] sm:$0xff] }
 0x124   : > { %v1488_v55 = vpop.f32.mrf.mxu0  ;;  %v1710_v59 = vpop.f32.mrf.mxu1  ;;  %2017 = vmatmul.mubr.f32.gmra.mxu0 %v12617_v23  ;;  %v11445_v23 = vld [vmem:[%s19343_s1 + $0x4b8] sm:$0xff]  ;;  %v11443_v56 = vld [vmem:[%s19343_s1 + $0x4a8] sm:$0xff] }
 0x125   : > { %v1489_v43 = vadd.f32 %v13750_v63, %v1488_v55  ;;  %2021 = vmatprep.mubr.f32.mxu0 %v13555_v2  ;;  %3617 = vmatpush1.msra.mxu1 %v11445_v23  ;;  %v19416_v55 = vld [vmem:[#allocation6_spill] sm:$0xff] }
 0x126   : > { %v1490_v44 = vpop.f32.mrf.mxu0  ;;  %v1713_v8 = vpop.f32.mrf.mxu1  ;;  %2242 = vmatmul.mubr.f32.gmra.mxu1 %v13526_v61  ;;  %3618 = vmatprep.subr.mxu1 %v13382_v32  ;;  %v13858_v59 = vld [vmem:[#allocation2 + $0x182] sm:$0xff] }
 0x127   : > { %v13804_v9 = vadd.f32 %v1713_v8, %v1489_v43  ;;  %2246 = vmatprep.mubr.f32.mxu1 %v12620_v12 }
 0x128   : > { %v1493_v17 = vpop.f32.mrf.mxu0  ;;  %v1715_v35 = vpop.f32.mrf.mxu1  ;;  %2022 = vmatmul.mubr.f32.gmra.mxu0 %v12618_v39  ;;  %v11444_v39 = vld [vmem:[%s19343_s1 + $0x4b0] sm:$0xff] }
 0x129   : > { %v1494_v2 = vadd.f32 %v13750_v63, %v1493_v17  ;;  %2026 = vmatprep.mubr.f32.mxu0 %v13568_v21  ;;  %3619 = vmatpush1.msra.mxu1 %v11444_v39  ;;  %v11442_v17 = vld [vmem:[%s19343_s1 + $0x4a0] sm:$0xff] }
 0x12a   : > { %v1495_v37 = vpop.f32.mrf.mxu0  ;;  %v1718_v61 = vpop.f32.mrf.mxu1  ;;  %2247 = vmatmul.mubr.f32.gmra.mxu1 %v13542_v28  ;;  %3620 = vmatprep.subr.mxu1 %v13382_v32  ;;  %v893_v39 = vld [vmem:[#allocation2 + $0x62] sm:$0xff] }
 0x12b   : > { %v13813_v50 = vadd.f32 %v1718_v61, %v1494_v2  ;;  %2251 = vmatprep.mubr.f32.mxu1 %v12621_v49  ;;  %3621 = vmatpush1.msra.mxu1 %v11443_v56  ;;  %v13869_v37 = vld [vmem:[#allocation2 + $0x18a] sm:$0xff] }
 0x12c   : > { %v1498_v46 = vpop.f32.mrf.mxu0  ;;  %v1720_v54 = vpop.f32.mrf.mxu1  ;;  %2027 = vmatmul.mubr.f32.gmra.mxu0 %v12619_v40  ;;  %3622 = vmatprep.subr.mxu1 %v13382_v32 }
 0x12d   : > { %v1499_v21 = vadd.f32 %v13750_v63, %v1498_v46  ;;  %2031 = vmatprep.mubr.f32.mxu0 %v13587_v42  ;;  %3623 = vmatpush1.msra.mxu1 %v11442_v17 }
 0x12e   : > { %v1500_v6 = vpop.f32.mrf.mxu0  ;;  %v1723_v28 = vpop.f32.mrf.mxu1  ;;  %2252 = vmatmul.mubr.f32.gmra.mxu1 %v13559_v19  ;;  %3624 = vmatprep.subr.mxu1 %v13382_v32  ;;  %v13881_v32 = vld [vmem:[#allocation2 + $0x8] sm:$0xff] }
 0x12f   : > { %v13822_v10 = vadd.f32 %v1723_v28, %v1499_v21  ;;  %2256 = vmatprep.mubr.f32.mxu1 %v12622_v3  ;;  %v856_v21 = vld [vmem:[#allocation2 + $0x1a1] sm:$0xff]  ;;  %v11441_v6 = vld [vmem:[%s19343_s1 + $0x498] sm:$0xff] }
 0x130   : > { %v1503_v25 = vpop.f32.mrf.mxu0  ;;  %v1725_v1 = vpop.f32.mrf.mxu1  ;;  %2032 = vmatmul.mubr.f32.gmra.mxu0 %v12620_v12  ;;  %v855_v12 = vld [vmem:[#allocation2 + $0x199] sm:$0xff]  ;;  %3625 = vmatpush1.msra.mxu1 %v11441_v6 }
 0x131   : > { %v1504_v42 = vadd.f32 %v13750_v63, %v1503_v25  ;;  %2036 = vmatprep.mubr.f32.mxu0 %v13603_v5  ;;  %v889_v25 = vld [vmem:[#allocation2 + $0x32] sm:$0xff]  ;;  %3626 = vmatprep.subr.mxu1 %v13881_v32 }
 0x132   : > { %v1505_v7 = vpop.f32.mrf.mxu0  ;;  %v1728_v19 = vpop.f32.mrf.mxu1  ;;  %2257 = vmatmul.mubr.f32.gmra.mxu1 %v19415_v26  ;;  %v11440_v26 = vld [vmem:[%s19343_s1 + $0x490] sm:$0xff] }
 0x133   : > { %v13831_v47 = vadd.f32 %v1728_v19, %v1504_v42  ;;  %2261 = vmatprep.mubr.f32.mxu1 %v12623_v18  ;;  %v890_v19 = vld [vmem:[#allocation2 + $0x3a] sm:$0xff]  ;;  %3627 = vmatpush1.msra.mxu1 %v11440_v26  ;;  %v900_v26 = vld [vmem:[#allocation2 + $0xb2] sm:$0xff] }
 0x134   : > { %v1508_v11 = vpop.f32.mrf.mxu0  ;;  %v1730_v0 = vpop.f32.mrf.mxu1  ;;  %2037 = vmatmul.mubr.f32.gmra.mxu0 %v12621_v49  ;;  %v791_v49 = vld [vmem:[#allocation2 + $0x198] sm:$0xff]  ;;  %3628 = vmatprep.subr.mxu1 %v13881_v32 }
 0x135   : > { %v1509_v5 = vadd.f32 %v13750_v63, %v1508_v11  ;;  %2041 = vmatprep.mubr.f32.mxu0 %v13616_v22  ;;  %v891_v0 = vld [vmem:[#allocation2 + $0x4a] sm:$0xff] }
 0x136   : > { %v1510_v15 = vpop.f32.mrf.mxu0  ;;  %v1733_v62 = vpop.f32.mrf.mxu1  ;;  %2262 = vmatmul.mubr.f32.gmra.mxu1 %v13590_v16 }
 0x137   : > { %v13840_v27 = vadd.f32 %v1733_v62, %v1509_v5  ;;  %2266 = vmatprep.mubr.f32.mxu1 %v12624_v29 }
 0x138   : > { %v1513_v20 = vpop.f32.mrf.mxu0  ;;  %v1735_v30 = vpop.f32.mrf.mxu1  ;;  %2042 = vmatmul.mubr.f32.gmra.mxu0 %v12622_v3 }
 0x139   : > { %v1514_v22 = vadd.f32 %v13750_v63, %v1513_v20  ;;  %2046 = vmatprep.mubr.f32.mxu0 %v13635_v36  ;;  %v11439_v20 = vld [vmem:[%s19343_s1 + $0x488] sm:$0xff] }
 0x13a   : > { %v1515_v24 = vpop.f32.mrf.mxu0  ;;  %v1738_v16 = vpop.f32.mrf.mxu1  ;;  %2267 = vmatmul.mubr.f32.gmra.mxu1 %v13607_v31 }
 0x13b   : > { %v13849_v48 = vadd.f32 %v1738_v16, %v1514_v22  ;;  %2271 = vmatprep.mubr.f32.mxu1 %v12625_v60  ;;  %3629 = vmatpush1.msra.mxu1 %v11439_v20 }
 0x13c   : > { %v1518_v34 = vpop.f32.mrf.mxu0  ;;  %v1740_v51 = vpop.f32.mrf.mxu1  ;;  %2047 = vmatmul.mubr.f32.gmra.mxu0 %v12623_v18  ;;  %3630 = vmatprep.subr.mxu1 %v13881_v32 }
 0x13d   : > { %v1519_v36 = vadd.f32 %v13750_v63, %v1518_v34  ;;  %2051 = vmatprep.mubr.f32.mxu0 %v13652_v41  ;;  %v894_v51 = vld [vmem:[#allocation2 + $0x6a] sm:$0xff] }
 0x13e   : > { %v1520_v40 = vpop.f32.mrf.mxu0  ;;  %v1743_v31 = vpop.f32.mrf.mxu1  ;;  %2272 = vmatmul.mubr.f32.gmra.mxu1 %v19416_v55 }
 0x13f   : > { %v13860_v43 = vadd.f32 %v1743_v31, %v1519_v36  ;;  %2276 = vmatprep.mubr.f32.mxu1 %v12626_v4  ;;  %v11438_v36 = vld [vmem:[%s19343_s1 + $0x480] sm:$0xff] }
 0x140   : > { %v1523_v44 = vpop.f32.mrf.mxu0  ;;  %v1745_v8 = vpop.f32.mrf.mxu1  ;;  %2052 = vmatmul.mubr.f32.gmra.mxu0 %v12624_v29  ;;  %v892_v29 = vld [vmem:[#allocation2 + $0x52] sm:$0xff]  ;;  %v895_v31 = vld [vmem:[#allocation2 + $0x7a] sm:$0xff]  ;;  %3631 = vmatpush1.msra.mxu1 %v11438_v36 }
 0x141   : > { %v1524_v41 = vadd.f32 %v13750_v63, %v1523_v44  ;;  %2056 = vmatprep.mubr.f32.mxu0 %v13858_v59  ;;  %3632 = vmatprep.subr.mxu1 %v13881_v32  ;;  %v11482_v36 = vld [vmem:[%s19343_s1 + $0x5e0] sm:$0xff] }
 0x142   : > { %v1525_v35 = vpop.f32.mrf.mxu0  ;;  %v1748_v2 = vpop.f32.mrf.mxu1  ;;  %2277 = vmatmul.mubr.f32.gmra.mxu1 %v19417_v57 }
 0x143   : > { %v13871_v61 = vadd.f32 %v1748_v2, %v1524_v41  ;;  %2281 = vmatprep.mubr.f32.mxu1 %v855_v12  ;;  %v896_v12 = vld [vmem:[#allocation2 + $0x82] sm:$0xff]  ;;  %v11469_v41 = vld [vmem:[%s19343_s1 + $0x578] sm:$0xff] }
 0x144   : > { %v1528_v46 = vpop.f32.mrf.mxu0  ;;  %v1750_v54 = vpop.f32.mrf.mxu1  ;;  %2057 = vmatmul.mubr.f32.gmra.mxu0 %v12625_v60  ;;  %v897_v2 = vld [vmem:[#allocation2 + $0x92] sm:$0xff]  ;;  %3633 = vmatpush2.msra.mxu1 %v11469_v41 }
 0x145   : > { %v1529_v38 = vadd.f32 %v13750_v63, %v1528_v46  ;;  %2061 = vmatprep.mubr.f32.mxu0 %v13869_v37  ;;  %3634 = vmatprep.subr.mxu1 %v13881_v32 }
 0x146   : > { %v1530_v28 = vpop.f32.mrf.mxu0  ;;  %v1753_v3 = vpop.f32.mrf.mxu1  ;;  %2282 = vmatmul.mubr.f32.gmra.mxu1 %v791_v49 }
 0x147   : > { %v13879_v1 = vadd.f32 %v1753_v3, %v1529_v38  ;;  %2286 = vmatprep.mubr.f32.mxu1 %v856_v21  ;;  %v898_v21 = vld [vmem:[#allocation2 + $0x9a] sm:$0xff]  ;;  %v11468_v38 = vld [vmem:[%s19343_s1 + $0x570] sm:$0xff] }
 0x148   : > { %v1533_v42 = vpop.f32.mrf.mxu0  ;;  %v1755_v14 = vpop.f32.mrf.mxu1  ;;  %2062 = vmatmul.mubr.f32.gmra.mxu0 %v12626_v4  ;;  %v899_v3 = vld [vmem:[#allocation2 + $0xaa] sm:$0xff]  ;;  %3635 = vmatpush2.msra.mxu1 %v11468_v38 }
 0x149   : > { %v1534_v7 = vadd.f32 %v13750_v63, %v1533_v42  ;;  %12153 = vmatprep.mubr.f32.mxu0 %v889_v25  ;;  %3636 = vmatprep.subr.mxu1 %v13881_v32 }
 0x14a   : > { %v1535_v18 = vpop.f32.mrf.mxu0  ;;  %v1758_v11 = vpop.f32.mrf.mxu1  ;;  %2287 = vmatmul.mubr.f32.gmra.mxu1 %v13881_v32 }
 0x14b   : > { %v13889_v5 = vadd.f32 %v1758_v11, %v1534_v7  ;;  %v11485_v7 = vld [vmem:[%s19343_s1 + $0x5f8] sm:$0xff]  ;;  %v11467_v18 = vld [vmem:[%s19343_s1 + $0x568] sm:$0xff] }
 0x14c   : > { %v1538_v23 = vpop.f32.mrf.mxu0  ;;  %v1760_v15 = vpop.f32.mrf.mxu1  ;;  %12154 = vmatmul.mubr.f32.vlgmr.msra.gmra.mxu0 %v890_v19  ;;  %3637 = vmatpush2.msra.mxu1 %v11467_v18 }
 0x14d   : > { %v1539_v62 = vadd.f32 %v13750_v63, %v1538_v23  ;;  %12156 = vmatprep.mubr.f32.mxu0 %v891_v0  ;;  %3826 = vmatpush1.msra.mxu0 %v11485_v7  ;;  %v901_v23 = vld [vmem:[#allocation2 + $0xc2] sm:$0xff]  ;;  %v11484_v15 = vld [vmem:[%s19343_s1 + $0x5f0] sm:$0xff] }
 0x14e   : > { %v1540_v30 = vpop.f32.mrf.mxu0  ;;  %v1763_v22 = vpop.f32.mrf.mxu1  ;;  %3827 = vmatprep.subr.mxu0 %v13881_v32  ;;  %3638 = vmatprep.subr.mxu1 %v13881_v32  ;;  %v11478_v7 = vld [vmem:[%s19343_s1 + $0x5c0] sm:$0xff] }
 0x14f   : > { %v13896_v24 = vadd.f32 %v1763_v22, %v1539_v62  ;;  %3828 = vmatpush1.msra.mxu0 %v11484_v15  ;;  %v11483_v30 = vld [vmem:[%s19343_s1 + $0x5e8] sm:$0xff] }
 0x150   : > { %v1543_v16 = vpop.f32.mrf.mxu0  ;;  %v1765_v60 = vpop.f32.mrf.mxu1  ;;  %12157 = vmatmul.mubr.f32.gmra.mxu0 %v892_v29  ;;  %3829 = vmatprep.subr.mxu0 %v13881_v32  ;;  %v11463_v15 = vld [vmem:[%s19343_s1 + $0x548] sm:$0xff] }
 0x151   : > { %v1544_v34 = vadd.f32 %v13750_v63, %v1543_v16  ;;  %12159 = vmatprep.mubr.f32.mxu0 %v893_v39  ;;  %v902_v39 = vld [vmem:[#allocation2 + $0xca] sm:$0xff]  ;;  %v11466_v16 = vld [vmem:[%s19343_s1 + $0x560] sm:$0xff]  ;;  %3830 = vmatpush1.msra.mxu0 %v11483_v30 }
 0x152   : > { %v1545_v56 = vpop.f32.mrf.mxu0  ;;  %v1768_v40 = vpop.f32.mrf.mxu1  ;;  %3639 = vmatpush2.msra.mxu1 %v11466_v16  ;;  %3831 = vmatprep.subr.mxu0 %v13881_v32  ;;  %v909_v30 = vld [vmem:[#allocation2 + $0x122] sm:$0xff] }
 0x153   : > { %v13903_v55 = vadd.f32 %v1768_v40, %v1544_v34  ;;  %3832 = vmatpush1.msra.mxu0 %v11482_v36  ;;  %3640 = vmatprep.subr.mxu1 %v13881_v32  ;;  %v910_v36 = vld [vmem:[#allocation2 + $0x12a] sm:$0xff] }
 0x154   : > { %v1548_v4 = vpop.f32.mrf.mxu0  ;;  %v1770_v44 = vpop.f32.mrf.mxu1  ;;  %12160 = vmatmul.mubr.f32.gmra.mxu0 %v894_v51  ;;  %v903_v51 = vld [vmem:[#allocation2 + $0xda] sm:$0xff]  ;;  %3833 = vmatprep.subr.mxu0 %v13881_v32 }
 0x155   : > { %v1549_v8 = vadd.f32 %v13750_v63, %v1548_v4  ;;  %12162 = vmatprep.mubr.f32.mxu0 %v895_v31  ;;  %v11481_v4 = vld [vmem:[%s19343_s1 + $0x5d8] sm:$0xff] }
 0x156   : > { %v1550_v17 = vpop.f32.mrf.mxu0  ;;  %v1773_v35 = vpop.f32.mrf.mxu1  ;;  %3834 = vmatpush1.msra.mxu0 %v11481_v4 }
 0x157   : > { %v13910_v57 = vadd.f32 %v1773_v35, %v1549_v8  ;;  %v904_v8 = vld [vmem:[#allocation2 + $0xe2] sm:$0xff]  ;;  %v905_v35 = vld [vmem:[#allocation2 + $0xf2] sm:$0xff]  ;;  %3835 = vmatprep.subr.mxu0 %v13881_v32 }
 0x158   : > { %v1553_v49 = vpop.f32.mrf.mxu0  ;;  %v1775_v46 = vpop.f32.mrf.mxu1  ;;  %12163 = vmatmul.mubr.f32.gmra.mxu0 %v896_v12  ;;  %v11465_v12 = vld [vmem:[%s19343_s1 + $0x558] sm:$0xff] }
 0x159   : > { %v1554_v54 = vadd.f32 %v13750_v63, %v1553_v49  ;;  %12165 = vmatprep.mubr.f32.mxu0 %v897_v2  ;;  %3641 = vmatpush2.msra.mxu1 %v11465_v12  ;;  %v11480_v2 = vld [vmem:[%s19343_s1 + $0x5d0] sm:$0xff] }
 0x15a   : > { %v1555_v6 = vpop.f32.mrf.mxu0  ;;  %v1778_v28 = vpop.f32.mrf.mxu1  ;;  %3836 = vmatpush1.msra.mxu0 %v11480_v2  ;;  %3642 = vmatprep.subr.mxu1 %v13881_v32 }
 0x15b   : > { %v13917_v25 = vadd.f32 %v1778_v28, %v1554_v54  ;;  %3837 = vmatprep.subr.mxu0 %v13881_v32  ;;  %v906_v6 = vld [vmem:[#allocation2 + $0xfa] sm:$0xff]  ;;  %v11464_v28 = vld [vmem:[%s19343_s1 + $0x550] sm:$0xff] }
 0x15c   : > { %v1558_v42 = vpop.f32.mrf.mxu0  ;;  %v1780_v14 = vpop.f32.mrf.mxu1  ;;  %12166 = vmatmul.mubr.f32.gmra.mxu0 %v898_v21  ;;  %v11479_v21 = vld [vmem:[%s19343_s1 + $0x5c8] sm:$0xff]  ;;  %3643 = vmatpush2.msra.mxu1 %v11464_v28  ;;  %v11472_v28 = vld [vmem:[%s19343_s1 + $0x590] sm:$0xff] }
 0x15d   : > { %v1559_v19 = vadd.f32 %v13750_v63, %v1558_v42  ;;  %12168 = vmatprep.mubr.f32.mxu0 %v899_v3  ;;  %3838 = vmatpush1.msra.mxu0 %v11479_v21  ;;  %v907_v14 = vld [vmem:[#allocation2 + $0x10a] sm:$0xff] }
 0x15e   : > { %v1560_v11 = vpop.f32.mrf.mxu0  ;;  %v1783_v0 = vpop.f32.mrf.mxu1  ;;  %3839 = vmatprep.subr.mxu0 %v13881_v32  ;;  %3644 = vmatprep.subr.mxu1 %v13881_v32 }
 0x15f   : > { %v13931_v62 = vadd.f32 %v1783_v0, %v1559_v19  ;;  %3840 = vmatpush1.msra.mxu0 %v11478_v7  ;;  %v11477_v11 = vld [vmem:[%s19343_s1 + $0x5b8] sm:$0xff]  ;;  %3645 = vmatpush2.msra.mxu1 %v11463_v15  ;;  %v11471_v7 = vld [vmem:[%s19343_s1 + $0x588] sm:$0xff] }
 0x160   : > { %v1563_v29 = vpop.f32.mrf.mxu0  ;;  %v1785_v20 = vpop.f32.mrf.mxu1  ;;  %12169 = vmatmul.mubr.f32.gmra.mxu0 %v900_v26  ;;  %3841 = vmatprep.subr.mxu0 %v13881_v32  ;;  %v915_v15 = vld [vmem:[#allocation2 + $0x16a] sm:$0xff] }
 0x161   : > { %v1564_v22 = vadd.f32 %v13750_v63, %v1563_v29  ;;  %12171 = vmatprep.mubr.f32.mxu0 %v901_v23  ;;  %v908_v23 = vld [vmem:[#allocation2 + $0x112] sm:$0xff]  ;;  %3842 = vmatpush1.msra.mxu0 %v11477_v11 }
 0x162   : > { %v1565_v60 = vpop.f32.mrf.mxu0  ;;  %v1788_v34 = vpop.f32.mrf.mxu1  ;;  %3843 = vmatprep.subr.mxu0 %v13881_v32  ;;  %3646 = vmatprep.subr.mxu1 %v13881_v32  ;;  %v11460_v11 = vld [vmem:[%s19343_s1 + $0x530] sm:$0xff] }
 0x163   : > { %v13946_v56 = vadd.f32 %v1788_v34, %v1564_v22  ;;  %v11476_v22 = vld [vmem:[%s19343_s1 + $0x5b0] sm:$0xff]  ;;  %v11475_v34 = vld [vmem:[%s19343_s1 + $0x5a8] sm:$0xff] }
 0x164   : > { %v1568_v40 = vpop.f32.mrf.mxu0  ;;  %v1790_v31 = vpop.f32.mrf.mxu1  ;;  %12172 = vmatmul.mubr.f32.gmra.mxu0 %v902_v39 }
 0x165   : > { %v1569_v44 = vadd.f32 %v13750_v63, %v1568_v40  ;;  %12174 = vmatprep.mubr.f32.mxu0 %v903_v51  ;;  %3844 = vmatpush1.msra.mxu0 %v11476_v22  ;;  %v11462_v40 = vld [vmem:[%s19343_s1 + $0x540] sm:$0xff] }
 0x166   : > { %v1570_v41 = vpop.f32.mrf.mxu0  ;;  %v1793_v17 = vpop.f32.mrf.mxu1  ;;  %3845 = vmatprep.subr.mxu0 %v13881_v32  ;;  %3647 = vmatpush2.msra.mxu1 %v11462_v40 }
 0x167   : > { %v13961_v49 = vadd.f32 %v1793_v17, %v1569_v44  ;;  %3846 = vmatpush1.msra.mxu0 %v11475_v34  ;;  %v911_v44 = vld [vmem:[#allocation2 + $0x13a] sm:$0xff]  ;;  %3648 = vmatprep.subr.mxu1 %v13881_v32  ;;  %v916_v34 = vld [vmem:[#allocation2 + $0x172] sm:$0xff] }
 0x168   : > { %v1573_v46 = vpop.f32.mrf.mxu0  ;;  %v1795_v54 = vpop.f32.mrf.mxu1  ;;  %12175 = vmatmul.mubr.f32.gmra.mxu0 %v904_v8  ;;  %3847 = vmatprep.subr.mxu0 %v13881_v32  ;;  %v11474_v8 = vld [vmem:[%s19343_s1 + $0x5a0] sm:$0xff] }
 0x169   : > { %v1574_v38 = vadd.f32 %v13750_v63, %v1573_v46  ;;  %12177 = vmatprep.mubr.f32.mxu0 %v905_v35  ;;  %3848 = vmatpush1.msra.mxu0 %v11474_v8  ;;  %v11473_v35 = vld [vmem:[%s19343_s1 + $0x598] sm:$0xff]  ;;  %v912_v46 = vld [vmem:[#allocation2 + $0x142] sm:$0xff] }
 0x16a   : > { %v1575_v3 = vpop.f32.mrf.mxu0  ;;  %v1798_v42 = vpop.f32.mrf.mxu1  ;;  %3849 = vmatprep.subr.mxu0 %v13881_v32  ;;  %v11461_v54 = vld [vmem:[%s19343_s1 + $0x538] sm:$0xff] }
 0x16b   : > { %v13976_v19 = vadd.f32 %v1798_v42, %v1574_v38  ;;  %3850 = vmatpush1.msra.mxu0 %v11473_v35  ;;  %3649 = vmatpush2.msra.mxu1 %v11461_v54  ;;  %v11458_v35 = vld [vmem:[%s19343_s1 + $0x520] sm:$0xff] }
 0x16c   : > { %v1578_v26 = vpop.f32.mrf.mxu0  ;;  %v1800_v18 = vpop.f32.mrf.mxu1  ;;  %12178 = vmatmul.mubr.f32.gmra.mxu0 %v906_v6  ;;  %v913_v6 = vld [vmem:[#allocation2 + $0x152] sm:$0xff]  ;;  %3851 = vmatprep.subr.mxu0 %v13881_v32  ;;  %v919_v54 = vld [vmem:[#allocation2 + $0x19a] sm:$0xff] }
 0x16d   : > { %v1579_v0 = vadd.f32 %v13750_v63, %v1578_v26  ;;  %12180 = vmatprep.mubr.f32.mxu0 %v907_v14  ;;  %3852 = vmatpush1.msra.mxu0 %v11472_v28  ;;  %v914_v18 = vld [vmem:[#allocation2 + $0x15a] sm:$0xff] }
 0x16e   : > { %v1580_v29 = vpop.f32.mrf.mxu0  ;;  %v1803_v20 = vpop.f32.mrf.mxu1  ;;  %3650 = vmatprep.subr.mxu1 %v13881_v32  ;;  %3853 = vmatprep.subr.mxu0 %v13881_v32  ;;  %v11497_v28 = vld [vmem:[%s19343_s1 + $0x658] sm:$0xff] }
 0x16f   : > { %v13991_v39 = vadd.f32 %v1803_v20, %v1579_v0  ;;  %3854 = vmatpush1.msra.mxu0 %v11471_v7  ;;  %3651 = vmatpush2.msra.mxu1 %v11460_v11  ;;  %v11470_v29 = vld [vmem:[%s19343_s1 + $0x580] sm:$0xff]  ;;  %v11457_v7 = vld [vmem:[%s19343_s1 + $0x518] sm:$0xff] }
 0x170   : > { %v1583_v16 = vpop.f32.mrf.mxu0  ;;  %v1805_v60 = vpop.f32.mrf.mxu1  ;;  %12181 = vmatmul.mubr.f32.gmra.mxu0 %v908_v23  ;;  %3855 = vmatprep.subr.mxu0 %v13881_v32 }
 0x171   : > { %v1584_v51 = vadd.f32 %v13750_v63, %v1583_v16  ;;  %12183 = vmatprep.mubr.f32.mxu0 %v909_v30  ;;  %3856 = vmatpush1.msra.mxu0 %v11470_v29  ;;  %v11501_v16 = vld [vmem:[%s19343_s1 + $0x678] sm:$0xff]  ;;  %v11495_v29 = vld [vmem:[%s19343_s1 + $0x648] sm:$0xff] }
 0x172   : > { %v1585_v31 = vpop.f32.mrf.mxu0  ;;  %v1808_v4 = vpop.f32.mrf.mxu1  ;;  %3652 = vmatprep.subr.mxu1 %v13881_v32  ;;  %3857 = vmatprep.subr.mxu0 %v13881_v32 }
 0x173   : > { %v14006_v12 = vadd.f32 %v1808_v4, %v1584_v51  ;;  %v11459_v51 = vld [vmem:[%s19343_s1 + $0x528] sm:$0xff]  ;;  %3858 = vmatpush2.msra.mxu0 %v11501_v16  ;;  %v11500_v31 = vld [vmem:[%s19343_s1 + $0x670] sm:$0xff] }
 0x174   : > { %v1588_v41 = vpop.f32.mrf.mxu0  ;;  %v1810_v17 = vpop.f32.mrf.mxu1  ;;  %12184 = vmatmul.mubr.f32.gmra.mxu0 %v910_v36  ;;  %3653 = vmatpush2.msra.mxu1 %v11459_v51 }
 0x175   : > { %v1589_v2 = vadd.f32 %v13750_v63, %v1588_v41  ;;  %12186 = vmatprep.mubr.f32.mxu0 %v911_v44  ;;  %3859 = vmatprep.subr.mxu0 %v13881_v32  ;;  %v11499_v41 = vld [vmem:[%s19343_s1 + $0x668] sm:$0xff] }
 0x176   : > { %v1590_v21 = vpop.f32.mrf.mxu0  ;;  %v1813_v38 = vpop.f32.mrf.mxu1  ;;  %3860 = vmatpush2.msra.mxu0 %v11500_v31  ;;  %3654 = vmatprep.subr.mxu1 %v13881_v32  ;;  %v11454_v31 = vld [vmem:[%s19343_s1 + $0x500] sm:$0xff] }
 0x177   : > { %v14021_v3 = vadd.f32 %v1813_v38, %v1589_v2  ;;  %3861 = vmatprep.subr.mxu0 %v13881_v32  ;;  %3655 = vmatpush2.msra.mxu1 %v11458_v35  ;;  %v11498_v21 = vld [vmem:[%s19343_s1 + $0x660] sm:$0xff] }
 0x178   : > { %v1593_v42 = vpop.f32.mrf.mxu0  ;;  %v1815_v14 = vpop.f32.mrf.mxu1  ;;  %12187 = vmatmul.mubr.f32.gmra.mxu0 %v912_v46  ;;  %3656 = vmatprep.subr.mxu1 %v13881_v32 }
 0x179   : > { %v1594_v26 = vadd.f32 %v13750_v63, %v1593_v42  ;;  %12189 = vmatprep.mubr.f32.mxu0 %v913_v6  ;;  %3862 = vmatpush2.msra.mxu0 %v11499_v41  ;;  %v920_v14 = vld [vmem:[#allocation2 + $0x1a2] sm:$0xff]  ;;  %v2582_v41 = vld [vmem:[#allocation3] sm:$0xff] }
 0x17a   : > { %v1595_v0 = vpop.f32.mrf.mxu0  ;;  %v1818_v23 = vpop.f32.mrf.mxu1  ;;  %3863 = vmatprep.subr.mxu0 %v13881_v32  ;;  %3657 = vmatpush2.msra.mxu1 %v11457_v7 }
 0x17b   : > { %v14036_v20 = vadd.f32 %v1818_v23, %v1594_v26  ;;  %3864 = vmatpush2.msra.mxu0 %v11498_v21  ;;  %3658 = vmatprep.subr.mxu1 %v13881_v32 }
 0x17c   : > { %v1598_v30 = vpop.f32.mrf.mxu0  ;;  %v1820_v22 = vpop.f32.mrf.mxu1  ;;  %12190 = vmatmul.mubr.f32.gmra.mxu0 %v914_v18  ;;  %3865 = vmatprep.subr.mxu0 %v13881_v32 }
 0x17d   : > { %v1599_v60 = vadd.f32 %v13750_v63, %v1598_v30  ;;  %12192 = vmatprep.mubr.f32.mxu0 %v915_v15  ;;  %3866 = vmatpush2.msra.mxu0 %v11497_v28  ;;  %v11456_v15 = vld [vmem:[%s19343_s1 + $0x510] sm:$0xff] }
 0x17e   : > { %v1600_v36 = vpop.f32.mrf.mxu0  ;;  %v1823_v40 = vpop.f32.mrf.mxu1  ;;  %3867 = vmatprep.subr.mxu0 %v13881_v32  ;;  %3659 = vmatpush2.msra.mxu1 %v11456_v15  ;;  %v11488_v15 = vld [vmem:[%s19343_s1 + $0x610] sm:$0xff] }
 0x17f   : > { %v14051_v4 = vadd.f32 %v1823_v40, %v1599_v60  ;;  %v11494_v60 = vld [vmem:[%s19343_s1 + $0x640] sm:$0xff]  ;;  %3660 = vmatprep.subr.mxu1 %v13881_v32  ;;  %v11493_v40 = vld [vmem:[%s19343_s1 + $0x638] sm:$0xff] }
 0x180   : > { %v1603_v44 = vpop.f32.mrf.mxu0  ;;  %v1825_v8 = vpop.f32.mrf.mxu1  ;;  %12193 = vmatmul.mubr.f32.gmra.mxu0 %v916_v34  ;;  %v11455_v34 = vld [vmem:[%s19343_s1 + $0x508] sm:$0xff] }
 0x181   : > { %v1604_v17 = vadd.f32 %v13750_v63, %v1603_v44  ;;  %12195 = vmatprep.mubr.f32.mxu0 %v13858_v59  ;;  %3661 = vmatpush2.msra.mxu1 %v11455_v34  ;;  %v2646_v44 = vld [vmem:[#allocation3 + $0x1] sm:$0xff] }
 0x182   : > { %v1605_v2 = vpop.f32.mrf.mxu0  ;;  %v1828_v46 = vpop.f32.mrf.mxu1  ;;  %3662 = vmatprep.subr.mxu1 %v13881_v32  ;;  %3664 = vmatprep.mubr.f32.mxu1 %v2646_v44 }
 0x183   : > { %v14067_v38 = vadd.f32 %v1828_v46, %v1604_v17  ;;  %3663 = vmatpush2.msra.mxu1 %v11454_v31  ;;  %v11492_v2 = vld [vmem:[%s19343_s1 + $0x630] sm:$0xff] }
 0x184   : > { %v1608_v59 = vpop.f32.mrf.mxu0  ;;  %v1830_v6 = vpop.f32.mrf.mxu1  ;;  %12196 = vmatmul.mubr.f32.gmra.mxu0 %v13869_v37  ;;  %v11496_v37 = vld [vmem:[%s19343_s1 + $0x650] sm:$0xff]  ;;  %3665 = vmatmul.mubr.f32.vlgmr.msra.gmra.mxu1 %v2582_v41 }
 0x185   : > { %v1609_v42 = vadd.f32 %v13750_v63, %v1608_v59  ;;  %12198 = vmatprep.mubr.f32.mxu0 %v919_v54  ;;  %3868 = vmatpush2.msra.mxu0 %v11496_v37  ;;  %v2647_v59 = vld [vmem:[#allocation3 + $0x9] sm:$0xff] }
 0x186   : > { %v1610_v26 = vpop.f32.mrf.mxu0  ;;  %v1833_v18 = vpop.f32.mrf.mxu1  ;;  %3869 = vmatprep.subr.mxu0 %v13881_v32  ;;  %4050 = vmatprep.subr.mxu1 %v13881_v32 }
 0x187   : > { %v14083_v11 = vadd.f32 %v1833_v18, %v1609_v42  ;;  %3870 = vmatpush2.msra.mxu0 %v11495_v29  ;;  %3669 = vmatprep.mubr.f32.mxu1 %v2647_v59 }
 0x188   : > { %v1613_v0 = vpop.f32.mrf.mxu0  ;;  %v1835_v23 = vpop.f32.mrf.mxu1  ;;  %12199 = vmatmul.mubr.f32.gmra.mxu0 %v920_v14  ;;  %3871 = vmatprep.subr.mxu0 %v13881_v32  ;;  %v11490_v14 = vld [vmem:[%s19343_s1 + $0x620] sm:$0xff] }
 0x189   : > { %v1614_v30 = vadd.f32 %v13750_v63, %v1613_v0  ;;  %3872 = vmatpush2.msra.mxu0 %v11494_v60  ;;  %3670 = vmatmul.mubr.f32.gmra.mxu1 %v13881_v32  ;;  %v11517_v60 = vld [vmem:[%s19343_s1 + $0x6f8] sm:$0xff] }
 0x18a   : > { %v1615_v22 = vpop.f32.mrf.mxu0  ;;  %v1838_v16 = vpop.f32.mrf.mxu1  ;;  %3873 = vmatprep.subr.mxu0 %v13881_v32  ;;  %4051 = vmatpush1.msra.mxu1 %v11517_v60 }
 0x18b   : > { %v14102_v51 = vadd.f32 %v1838_v16, %v1614_v30  ;;  %3874 = vmatpush2.msra.mxu0 %v11493_v40  ;;  %4052 = vmatprep.subr.mxu1 %v13881_v32 }
 0x18c   : > { %v1840_v63 = vpop.f32.mrf.mxu1  ;;  %v1908_v36 = vpop.f32.mrf.mxu0  ;;  %3875 = vmatprep.subr.mxu0 %v13881_v32 }
 0x18d   : > { %v1909_v8 = vadd.f32 %v1908_v36, %v13755_v33  ;;  %3876 = vmatpush2.msra.mxu0 %v11492_v2  ;;  %v11491_v33 = vld [vmem:[%s19343_s1 + $0x628] sm:$0xff]  ;;  %v11486_v36 = vld [vmem:[%s19343_s1 + $0x600] sm:$0xff] }
 0x18e   : > { %v1910_v17 = vpop.f32.mrf.mxu0  ;;  %v2133_v35 = vpop.f32.mrf.mxu1  ;;  %3877 = vmatprep.subr.mxu0 %v13881_v32 }
 0x18f   : > { %v14117_v46 = vadd.f32 %v2133_v35, %v1909_v8  ;;  %3878 = vmatpush2.msra.mxu0 %v11491_v33  ;;  %v11516_v8 = vld [vmem:[%s19343_s1 + $0x6f0] sm:$0xff]  ;;  %v11515_v33 = vld [vmem:[%s19343_s1 + $0x6e8] sm:$0xff] }
 0x190   : > { %v1913_v54 = vpop.f32.mrf.mxu0  ;;  %v2135_v21 = vpop.f32.mrf.mxu1  ;;  %3879 = vmatprep.subr.mxu0 %v13881_v32  ;;  %4053 = vmatpush1.msra.mxu1 %v11516_v8  ;;  %v11511_v8 = vld [vmem:[%s19343_s1 + $0x6c8] sm:$0xff] }
 0x191   : > { %v1914_v6 = vadd.f32 %v1913_v54, %v13760_v58  ;;  %3880 = vmatpush2.msra.mxu0 %v11490_v14  ;;  %v11489_v58 = vld [vmem:[%s19343_s1 + $0x618] sm:$0xff]  ;;  %4054 = vmatprep.subr.mxu1 %v13881_v32 }
 0x192   : > { %v1915_v28 = vpop.f32.mrf.mxu0  ;;  %v2138_v42 = vpop.f32.mrf.mxu1  ;;  %3881 = vmatprep.subr.mxu0 %v13881_v32  ;;  %4055 = vmatpush1.msra.mxu1 %v11515_v33  ;;  %v11510_v33 = vld [vmem:[%s19343_s1 + $0x6c0] sm:$0xff] }
 0x193   : > { %v14129_v7 = vadd.f32 %v2138_v42, %v1914_v6  ;;  %3882 = vmatpush2.msra.mxu0 %v11489_v58  ;;  %4056 = vmatprep.subr.mxu1 %v13881_v32 }
 0x194   : > { %v1918_v26 = vpop.f32.mrf.mxu0  ;;  %v2140_v18 = vpop.f32.mrf.mxu1  ;;  %3883 = vmatprep.subr.mxu0 %v13881_v32 }
 0x195   : > { %v1919_v37 = vadd.f32 %v1918_v26, %v13768_v52  ;;  %3884 = vmatpush2.msra.mxu0 %v11488_v15  ;;  %v11487_v52 = vld [vmem:[%s19343_s1 + $0x608] sm:$0xff]  ;;  %v11514_v26 = vld [vmem:[%s19343_s1 + $0x6e0] sm:$0xff]  ;;  %v11513_v15 = vld [vmem:[%s19343_s1 + $0x6d8] sm:$0xff] }
 0x196   : > { %v1920_v0 = vpop.f32.mrf.mxu0  ;;  %v2143_v23 = vpop.f32.mrf.mxu1  ;;  %3885 = vmatprep.subr.mxu0 %v13881_v32  ;;  %4057 = vmatpush1.msra.mxu1 %v11514_v26  ;;  %v11509_v26 = vld [vmem:[%s19343_s1 + $0x6b8] sm:$0xff] }
 0x197   : > { %v14141_v29 = vadd.f32 %v2143_v23, %v1919_v37  ;;  %3886 = vmatpush2.msra.mxu0 %v11487_v52  ;;  %4058 = vmatprep.subr.mxu1 %v13881_v32 }
 0x198   : > { %v1923_v30 = vpop.f32.mrf.mxu0  ;;  %v2145_v22 = vpop.f32.mrf.mxu1  ;;  %3887 = vmatprep.subr.mxu0 %v13881_v32  ;;  %4059 = vmatpush1.msra.mxu1 %v11513_v15  ;;  %v11508_v15 = vld [vmem:[%s19343_s1 + $0x6b0] sm:$0xff] }
 0x199   : > { %v1924_v16 = vadd.f32 %v1923_v30, %v13777_v13  ;;  %3888 = vmatpush2.msra.mxu0 %v11486_v36  ;;  %4060 = vmatprep.subr.mxu1 %v13881_v32 }
 0x19a   : > { %v1925_v34 = vpop.f32.mrf.mxu0  ;;  %v2148_v63 = vpop.f32.mrf.mxu1  ;;  %4275 = vmatprep.subr.mxu0 %v13881_v32 }
 0x19b   : > { %v14155_v40 = vadd.f32 %v2148_v63, %v1924_v16  ;;  %v11512_v34 = vld [vmem:[%s19343_s1 + $0x6d0] sm:$0xff] }
 0x19c   : > { %v1928_v13 = vpop.f32.mrf.mxu0  ;;  %v2150_v31 = vpop.f32.mrf.mxu1  ;;  %4061 = vmatpush1.msra.mxu1 %v11512_v34  ;;  %v11507_v34 = vld [vmem:[%s19343_s1 + $0x6a8] sm:$0xff] }
 0x19d   : > { %v1929_v44 = vadd.f32 %v1928_v13, %v13786_v53  ;;  %4062 = vmatprep.subr.mxu1 %v13881_v32 }
 0x19e   : > { %v1930_v41 = vpop.f32.mrf.mxu0  ;;  %v2153_v17 = vpop.f32.mrf.mxu1  ;;  %4063 = vmatpush1.msra.mxu1 %v11511_v8  ;;  %v11506_v8 = vld [vmem:[%s19343_s1 + $0x6a0] sm:$0xff] }
 0x19f   : > { %v14163_v35 = vadd.f32 %v2153_v17, %v1929_v44  ;;  %4064 = vmatprep.subr.mxu1 %v13881_v32 }
 0x1a0   : > { %v1933_v2 = vpop.f32.mrf.mxu0  ;;  %v2155_v54 = vpop.f32.mrf.mxu1  ;;  %4065 = vmatpush1.msra.mxu1 %v11510_v33  ;;  %v11505_v33 = vld [vmem:[%s19343_s1 + $0x698] sm:$0xff] }
 0x1a1   : > { %v1934_v21 = vadd.f32 %v1933_v2, %v13795_v45  ;;  %4066 = vmatprep.subr.mxu1 %v13881_v32 }
 0x1a2   : > { %v1935_v53 = vpop.f32.mrf.mxu0  ;;  %v2158_v59 = vpop.f32.mrf.mxu1  ;;  %4067 = vmatpush1.msra.mxu1 %v11509_v26  ;;  %v11504_v26 = vld [vmem:[%s19343_s1 + $0x690] sm:$0xff] }
 0x1a3   : > { %v14170_v6 = vadd.f32 %v2158_v59, %v1934_v21  ;;  %4068 = vmatprep.subr.mxu1 %v13881_v32 }
 0x1a4   : > { %v1938_v28 = vpop.f32.mrf.mxu0  ;;  %v2160_v42 = vpop.f32.mrf.mxu1  ;;  %4069 = vmatpush1.msra.mxu1 %v11508_v15  ;;  %v11502_v15 = vld [vmem:[%s19343_s1 + $0x680] sm:$0xff] }
 0x1a5   : > { %v1939_v14 = vadd.f32 %v1938_v28, %v13804_v9  ;;  %4070 = vmatprep.subr.mxu1 %v13881_v32 }
 0x1a6   : > { %v1940_v45 = vpop.f32.mrf.mxu0  ;;  %v2163_v18 = vpop.f32.mrf.mxu1  ;;  %4071 = vmatpush1.msra.mxu1 %v11507_v34 }
 0x1a7   : > { %v14177_v58 = vadd.f32 %v2163_v18, %v1939_v14  ;;  %4072 = vmatprep.subr.mxu1 %v13881_v32 }
 0x1a8   : > { %v1943_v37 = vpop.f32.mrf.mxu0  ;;  %v2165_v0 = vpop.f32.mrf.mxu1  ;;  %4073 = vmatpush1.msra.mxu1 %v11506_v8 }
 0x1a9   : > { %v1944_v23 = vadd.f32 %v1943_v37, %v13813_v50  ;;  %4074 = vmatprep.subr.mxu1 %v13881_v32 }
 0x1aa   : > { %v1945_v9 = vpop.f32.mrf.mxu0  ;;  %v2168_v30 = vpop.f32.mrf.mxu1  ;;  %4075 = vmatpush1.msra.mxu1 %v11505_v33 }
 0x1ab   : > { %v14184_v22 = vadd.f32 %v2168_v30, %v1944_v23  ;;  %4076 = vmatprep.subr.mxu1 %v13881_v32 }
 0x1ac   : > { %v1948_v52 = vpop.f32.mrf.mxu0  ;;  %v2170_v16 = vpop.f32.mrf.mxu1  ;;  %4077 = vmatpush1.msra.mxu1 %v11504_v26 }
 0x1ad   : > { %v1949_v60 = vadd.f32 %v1948_v52, %v13822_v10  ;;  %4078 = vmatprep.subr.mxu1 %v13881_v32 }
 0x1ae   : > { %v1950_v50 = vpop.f32.mrf.mxu0  ;;  %v2173_v63 = vpop.f32.mrf.mxu1 }
 0x1af   : > { %v14191_v36 = vadd.f32 %v2173_v63, %v1949_v60 }
 0x1b0   : > { %v1953_v13 = vpop.f32.mrf.mxu0  ;;  %v2175_v31 = vpop.f32.mrf.mxu1 }
 0x1b1   : > { %v1954_v44 = vadd.f32 %v1953_v13, %v13831_v47 }
 0x1b2   : > { %v1955_v10 = vpop.f32.mrf.mxu0  ;;  %v2178_v41 = vpop.f32.mrf.mxu1 }
 0x1b3   : > { %v14198_v17 = vadd.f32 %v2178_v41, %v1954_v44 }
 0x1b4   : > { %v1958_v2 = vpop.f32.mrf.mxu0  ;;  %v2180_v54 = vpop.f32.mrf.mxu1 }
 0x1b5   : > { %v1959_v21 = vadd.f32 %v1958_v2, %v13840_v27 }
 0x1b6   : > { %v1960_v47 = vpop.f32.mrf.mxu0  ;;  %v2183_v53 = vpop.f32.mrf.mxu1 }
 0x1b7   : > { %v14205_v59 = vadd.f32 %v2183_v53, %v1959_v21 }
 0x1b8   : > { %v1963_v28 = vpop.f32.mrf.mxu0  ;;  %v2185_v42 = vpop.f32.mrf.mxu1 }
 0x1b9   : > { %v1964_v14 = vadd.f32 %v1963_v28, %v13849_v48 }
 0x1ba   : > { %v1965_v27 = vpop.f32.mrf.mxu0  ;;  %v2188_v45 = vpop.f32.mrf.mxu1 }
 0x1bb   : > { %v14212_v18 = vadd.f32 %v2188_v45, %v1964_v14 }
 0x1bc   : > { %v1968_v37 = vpop.f32.mrf.mxu0  ;;  %v2190_v0 = vpop.f32.mrf.mxu1 }
 0x1bd   : > { %v1969_v23 = vadd.f32 %v1968_v37, %v13860_v43  ;;  %v11503_v37 = vld [vmem:[%s19343_s1 + $0x688] sm:$0xff] }
 0x1be   : > { %v1970_v48 = vpop.f32.mrf.mxu0  ;;  %v2193_v9 = vpop.f32.mrf.mxu1  ;;  %4079 = vmatpush1.msra.mxu1 %v11503_v37 }
 0x1bf   : > { %v14219_v30 = vadd.f32 %v2193_v9, %v1969_v23  ;;  %4080 = vmatprep.subr.mxu1 %v13881_v32 }
 0x1c0   : > { %v1973_v52 = vpop.f32.mrf.mxu0  ;;  %v2195_v16 = vpop.f32.mrf.mxu1  ;;  %4081 = vmatpush1.msra.mxu1 %v11502_v15 }
 0x1c1   : > { %v1974_v60 = vadd.f32 %v1973_v52, %v13871_v61  ;;  %4082 = vmatprep.subr.mxu1 %v13881_v32 }
 0x1c2   : > { %v1975_v43 = vpop.f32.mrf.mxu0  ;;  %v2198_v50 = vpop.f32.mrf.mxu1 }
 0x1c3   : > { %v14226_v63 = vadd.f32 %v2198_v50, %v1974_v60 }
 0x1c4   : > { %v1978_v13 = vpop.f32.mrf.mxu0  ;;  %v2200_v31 = vpop.f32.mrf.mxu1 }
 0x1c5   : > { %v1979_v44 = vadd.f32 %v1978_v13, %v13879_v1 }
 0x1c6   : > { %v1980_v61 = vpop.f32.mrf.mxu0  ;;  %v2203_v10 = vpop.f32.mrf.mxu1 }
 0x1c7   : > { %v14233_v41 = vadd.f32 %v2203_v10, %v1979_v44  ;;  %v11532_v61 = vld [vmem:[%s19343_s1 + $0x770] sm:$0xff] }
 0x1c8   : > { %v1983_v2 = vpop.f32.mrf.mxu0  ;;  %v2205_v54 = vpop.f32.mrf.mxu1 }
 0x1c9   : > { %v1984_v21 = vadd.f32 %v1983_v2, %v13889_v5 }
 0x1ca   : > { %v1985_v1 = vpop.f32.mrf.mxu0  ;;  %v2208_v47 = vpop.f32.mrf.mxu1 }
 0x1cb   : > { %v14240_v53 = vadd.f32 %v2208_v47, %v1984_v21  ;;  %v11531_v1 = vld [vmem:[%s19343_s1 + $0x768] sm:$0xff] }
 0x1cc   : > { %v1988_v28 = vpop.f32.mrf.mxu0  ;;  %v2210_v42 = vpop.f32.mrf.mxu1 }
 0x1cd   : > { %v1989_v14 = vadd.f32 %v1988_v28, %v13896_v24 }
 0x1ce   : > { %v1990_v5 = vpop.f32.mrf.mxu0  ;;  %v2213_v27 = vpop.f32.mrf.mxu1 }
 0x1cf   : > { %v14247_v45 = vadd.f32 %v2213_v27, %v1989_v14  ;;  %v11530_v5 = vld [vmem:[%s19343_s1 + $0x760] sm:$0xff] }
 0x1d0   : > { %v1993_v0 = vpop.f32.mrf.mxu0  ;;  %v2215_v23 = vpop.f32.mrf.mxu1 }
 0x1d1   : > { %v1994_v24 = vadd.f32 %v1993_v0, %v13903_v55  ;;  %v11533_v55 = vld [vmem:[%s19343_s1 + $0x778] sm:$0xff]  ;;  %v14288_v0 = vld [vmem:[#allocation2 + $0x8] sm:$0xff] }
 0x1d2   : > { %v1995_v48 = vpop.f32.mrf.mxu0  ;;  %v2218_v9 = vpop.f32.mrf.mxu1  ;;  %4083 = vmatpush2.msra.mxu1 %v11533_v55  ;;  %v11528_v55 = vld [vmem:[%s19343_s1 + $0x750] sm:$0xff] }
 0x1d3   : > { %v14258_v52 = vadd.f32 %v2218_v9, %v1994_v24  ;;  %4084 = vmatprep.subr.mxu1 %v13881_v32 }
 0x1d4   : > { %v1998_v16 = vpop.f32.mrf.mxu0  ;;  %v2220_v60 = vpop.f32.mrf.mxu1  ;;  %4085 = vmatpush2.msra.mxu1 %v11532_v61  ;;  %v11527_v61 = vld [vmem:[%s19343_s1 + $0x748] sm:$0xff] }
 0x1d5   : > { %v1999_v34 = vadd.f32 %v1998_v16, %v13910_v57  ;;  %4086 = vmatprep.subr.mxu1 %v13881_v32 }
 0x1d6   : > { %v2000_v43 = vpop.f32.mrf.mxu0  ;;  %v2223_v50 = vpop.f32.mrf.mxu1  ;;  %4087 = vmatpush2.msra.mxu1 %v11531_v1  ;;  %v11526_v1 = vld [vmem:[%s19343_s1 + $0x740] sm:$0xff] }
 0x1d7   : > { %v14265_v13 = vadd.f32 %v2223_v50, %v1999_v34  ;;  %4088 = vmatprep.subr.mxu1 %v13881_v32 }
 0x1d8   : > { %v2003_v31 = vpop.f32.mrf.mxu0  ;;  %v2225_v44 = vpop.f32.mrf.mxu1  ;;  %4089 = vmatpush2.msra.mxu1 %v11530_v5  ;;  %v11525_v5 = vld [vmem:[%s19343_s1 + $0x738] sm:$0xff] }
 0x1d9   : > { %v2004_v8 = vadd.f32 %v2003_v31, %v13917_v25  ;;  %4090 = vmatprep.subr.mxu1 %v14288_v0 }
 0x1da   : > { %v2005_v57 = vpop.f32.mrf.mxu0  ;;  %v2228_v10 = vpop.f32.mrf.mxu1 }
 0x1db   : > { %v14272_v2 = vadd.f32 %v2228_v10, %v2004_v8 }
 0x1dc   : > { %v2008_v54 = vpop.f32.mrf.mxu0  ;;  %v2230_v21 = vpop.f32.mrf.mxu1 }
 0x1dd   : > { %v2009_v33 = vadd.f32 %v2008_v54, %v13931_v62 }
 0x1de   : > { %v2010_v25 = vpop.f32.mrf.mxu0  ;;  %v2233_v47 = vpop.f32.mrf.mxu1 }
 0x1df   : > { %v14279_v28 = vadd.f32 %v2233_v47, %v2009_v33 }
 0x1e0   : > { %v2013_v42 = vpop.f32.mrf.mxu0  ;;  %v2235_v14 = vpop.f32.mrf.mxu1 }
 0x1e1   : > { %v2014_v26 = vadd.f32 %v2013_v42, %v13946_v56  ;;  %v11529_v56 = vld [vmem:[%s19343_s1 + $0x758] sm:$0xff] }
 0x1e2   : > { %v2015_v62 = vpop.f32.mrf.mxu0  ;;  %v2238_v27 = vpop.f32.mrf.mxu1  ;;  %4091 = vmatpush2.msra.mxu1 %v11529_v56  ;;  %v11524_v56 = vld [vmem:[%s19343_s1 + $0x730] sm:$0xff] }
 0x1e3   : > { %v14286_v37 = vadd.f32 %v2238_v27, %v2014_v26  ;;  %4092 = vmatprep.subr.mxu1 %v14288_v0 }
 0x1e4   : > { %v2018_v23 = vpop.f32.mrf.mxu0  ;;  %v2240_v24 = vpop.f32.mrf.mxu1  ;;  %4093 = vmatpush2.msra.mxu1 %v11528_v55  ;;  %v11523_v55 = vld [vmem:[%s19343_s1 + $0x728] sm:$0xff] }
 0x1e5   : > { %v2019_v32 = vadd.f32 %v2018_v23, %v13961_v49  ;;  %4094 = vmatprep.subr.mxu1 %v14288_v0 }
 0x1e6   : > { %v2020_v15 = vpop.f32.mrf.mxu0  ;;  %v2243_v48 = vpop.f32.mrf.mxu1  ;;  %4095 = vmatpush2.msra.mxu1 %v11527_v61  ;;  %v11522_v61 = vld [vmem:[%s19343_s1 + $0x720] sm:$0xff] }
 0x1e7   : > { %v14295_v9 = vadd.f32 %v2243_v48, %v2019_v32  ;;  %4096 = vmatprep.subr.mxu1 %v14288_v0 }
 0x1e8   : > { %v2023_v16 = vpop.f32.mrf.mxu0  ;;  %v2245_v60 = vpop.f32.mrf.mxu1  ;;  %4097 = vmatpush2.msra.mxu1 %v11526_v1  ;;  %v11521_v1 = vld [vmem:[%s19343_s1 + $0x718] sm:$0xff] }
 0x1e9   : > { %v2024_v34 = vadd.f32 %v2023_v16, %v13976_v19  ;;  %4098 = vmatprep.subr.mxu1 %v14288_v0 }
 0x1ea   : > { %v2025_v49 = vpop.f32.mrf.mxu0  ;;  %v2248_v43 = vpop.f32.mrf.mxu1  ;;  %4099 = vmatpush2.msra.mxu1 %v11525_v5 }
 0x1eb   : > { %v14302_v50 = vadd.f32 %v2248_v43, %v2024_v34  ;;  %4100 = vmatprep.subr.mxu1 %v14288_v0 }
 0x1ec   : > { %v2028_v31 = vpop.f32.mrf.mxu0  ;;  %v2250_v44 = vpop.f32.mrf.mxu1  ;;  %4101 = vmatpush2.msra.mxu1 %v11524_v56 }
 0x1ed   : > { %v2029_v8 = vadd.f32 %v2028_v31, %v13991_v39  ;;  %4102 = vmatprep.subr.mxu1 %v14288_v0 }
 0x1ee   : > { %v2030_v19 = vpop.f32.mrf.mxu0  ;;  %v2253_v57 = vpop.f32.mrf.mxu1  ;;  %4103 = vmatpush2.msra.mxu1 %v11523_v55 }
 0x1ef   : > { %v14309_v10 = vadd.f32 %v2253_v57, %v2029_v8  ;;  %4104 = vmatprep.subr.mxu1 %v14288_v0 }
 0x1f0   : > { %v2033_v54 = vpop.f32.mrf.mxu0  ;;  %v2255_v21 = vpop.f32.mrf.mxu1  ;;  %4105 = vmatpush2.msra.mxu1 %v11522_v61 }
 0x1f1   : > { %v2034_v33 = vadd.f32 %v2033_v54, %v14006_v12  ;;  %4106 = vmatprep.subr.mxu1 %v14288_v0 }
 0x1f2   : > { %v2035_v39 = vpop.f32.mrf.mxu0  ;;  %v2258_v25 = vpop.f32.mrf.mxu1  ;;  %4107 = vmatpush2.msra.mxu1 %v11521_v1 }
 0x1f3   : > { %v14316_v47 = vadd.f32 %v2258_v25, %v2034_v33  ;;  %4108 = vmatprep.subr.mxu1 %v14288_v0 }
 0x1f4   : > { %v2038_v42 = vpop.f32.mrf.mxu0  ;;  %v2260_v14 = vpop.f32.mrf.mxu1 }
 0x1f5   : > { %v2039_v26 = vadd.f32 %v2038_v42, %v14021_v3 }
 0x1f6   : > { %v2040_v12 = vpop.f32.mrf.mxu0  ;;  %v2263_v62 = vpop.f32.mrf.mxu1 }
 0x1f7   : > { %v14323_v27 = vadd.f32 %v2263_v62, %v2039_v26  ;;  %v11520_v26 = vld [vmem:[%s19343_s1 + $0x710] sm:$0xff] }
 0x1f8   : > { %v2043_v23 = vpop.f32.mrf.mxu0  ;;  %v2265_v24 = vpop.f32.mrf.mxu1  ;;  %4109 = vmatpush2.msra.mxu1 %v11520_v26 }
 0x1f9   : > { %v2044_v32 = vadd.f32 %v2043_v23, %v14036_v20  ;;  %4110 = vmatprep.subr.mxu1 %v14288_v0  ;;  %v11519_v24 = vld [vmem:[%s19343_s1 + $0x708] sm:$0xff] }
 0x1fa   : > { %v2045_v3 = vpop.f32.mrf.mxu0  ;;  %v2268_v15 = vpop.f32.mrf.mxu1  ;;  %4111 = vmatpush2.msra.mxu1 %v11519_v24 }
 0x1fb   : > { %v14330_v48 = vadd.f32 %v2268_v15, %v2044_v32  ;;  %4112 = vmatprep.subr.mxu1 %v14288_v0 }
 0x1fc   : > { %v2048_v16 = vpop.f32.mrf.mxu0  ;;  %v2270_v60 = vpop.f32.mrf.mxu1 }
 0x1fd   : > { %v2049_v34 = vadd.f32 %v2048_v16, %v14051_v4 }
 0x1fe   : > { %v2050_v20 = vpop.f32.mrf.mxu0  ;;  %v2273_v49 = vpop.f32.mrf.mxu1 }
 0x1ff   : > { %v14337_v43 = vadd.f32 %v2273_v49, %v2049_v34 }
 0x200   : > { %v2053_v31 = vpop.f32.mrf.mxu0  ;;  %v2275_v44 = vpop.f32.mrf.mxu1 }
 0x201   : > { %v2054_v8 = vadd.f32 %v2053_v31, %v14067_v38 }
 0x202   : > { %v2055_v4 = vpop.f32.mrf.mxu0  ;;  %v2278_v19 = vpop.f32.mrf.mxu1 }
 0x203   : > { %v14344_v57 = vadd.f32 %v2278_v19, %v2054_v8  ;;  %v2710_v19 = vld [vmem:[#allocation3 + $0x2] sm:$0xff] }
 0x204   : > { %v2058_v54 = vpop.f32.mrf.mxu0  ;;  %v2280_v21 = vpop.f32.mrf.mxu1 }
 0x205   : > { %v2059_v33 = vadd.f32 %v2058_v54, %v14083_v11  ;;  %v14395_v21 = vld [vmem:[%s19343_s1 + $0x7f8] sm:$0xff] }
 0x206   : > { %v2060_v38 = vpop.f32.mrf.mxu0  ;;  %v2283_v39 = vpop.f32.mrf.mxu1 }
 0x207   : > { %v14351_v25 = vadd.f32 %v2283_v39, %v2059_v33  ;;  %v14406_v38 = vld [vmem:[%s19343_s1 + $0x7f0] sm:$0xff] }
 0x208   : > { %v14354_v42 = vpop.f32.mrf.mxu0  ;;  %v2285_v14 = vpop.f32.mrf.mxu1 }
 0x20a   : > { %v2065_v5 = vpop.f32.mrf.mxu0  ;;  %v14359_v11 = vpop.f32.mrf.mxu1 }
 0x20c   : > { %v12155_v12 = vpop.f32.mrf.mxu0  ;;  %v2290_v62 = vpop.f32.mrf.mxu1 }
 0x20d   : > { %v2364_v23 = vadd.f32 %v12155_v12, %v14129_v7  ;;  %v11518_v7 = vld [vmem:[%s19343_s1 + $0x700] sm:$0xff] }
 0x20e   : > { %v2358_v32 = vpop.f32.mrf.mxu0  ;;  %4113 = vmatpush2.msra.mxu1 %v11518_v7 }
 0x20f   : > { %v2518_v56 = vmax.f32 %v2364_v23, 0.0  ;;  %v2359_v3 = vadd.f32 %v2358_v32, %v14117_v46  ;;  %12521 = vmatprep.subr.mxu1 %v14288_v0 }
 0x210   : > { %v12158_v15 = vpop.f32.mrf.mxu0 }
 0x211   : > { %2551 = vst [vmem:[#allocation3 + $0x21] sm:$0xff] %v2518_v56  ;;  %v2517_v16 = vmax.f32 %v2359_v3, 0.0  ;;  %v14369_v60 = vadd.f32 %v12158_v15, %v14155_v40 }
 0x212   : > { %v2368_v34 = vpop.f32.mrf.mxu0 }
 0x213   : > { %2550 = vst [vmem:[#allocation3 + $0x19] sm:$0xff] %v2517_v16  ;;  %v2520_v55 = vmax.f32 %v14369_v60, 0.0  ;;  %v2369_v20 = vadd.f32 %v2368_v34, %v14141_v29  ;;  %3674 = vmatprep.mubr.f32.mxu1 %v2517_v16  ;;  %v14458_v34 = vld [vmem:[%s19343_s1 + $0x7d8] sm:$0xff] }
 0x214   : > { %v12161_v46 = vpop.f32.mrf.mxu0 }
 0x215   : > { %2553 = vst [vmem:[#allocation3 + $0x39] sm:$0xff] %v2520_v55  ;;  %v2519_v40 = vmax.f32 %v2369_v20, 0.0  ;;  %v14380_v49 = vadd.f32 %v12161_v46, %v14170_v6 }
 0x216   : > { %v2378_v31 = vpop.f32.mrf.mxu0 }
 0x217   : > { %2552 = vst [vmem:[#allocation3 + $0x31] sm:$0xff] %v2519_v40  ;;  %v2522_v44 = vmax.f32 %v14380_v49, 0.0  ;;  %v14384_v8 = vadd.f32 %v2378_v31, %v14163_v35 }
 0x218   : > { %v12164_v61 = vpop.f32.mrf.mxu0 }
 0x219   : > { %2555 = vst [vmem:[#allocation3 + $0x51] sm:$0xff] %v2522_v44  ;;  %v2521_v29 = vmax.f32 %v14384_v8, 0.0  ;;  %v14390_v4 = vadd.f32 %v12164_v61, %v14184_v22  ;;  %v14501_v8 = vld [vmem:[%s19343_s1 + $0x7c8] sm:$0xff] }
 0x21a   : > { %v2388_v54 = vpop.f32.mrf.mxu0  ;;  %v2774_v6 = vld [vmem:[#allocation3 + $0x18] sm:$0xff]  ;;  %v2775_v1 = vld [vmem:[#allocation3 + $0x20] sm:$0xff] }
 0x21b   : > { %2554 = vst [vmem:[#allocation3 + $0x49] sm:$0xff] %v2521_v29  ;;  %v2524_v35 = vmax.f32 %v14390_v4, 0.0  ;;  %v14401_v33 = vadd.f32 %v2388_v54, %v14177_v58  ;;  %3889 = vmatprep.mubr.f32.mxu0 %v2774_v6  ;;  %3675 = vmatmul.mubr.f32.gmra.mxu1 %v2774_v6  ;;  %v2711_v58 = vld [vmem:[#allocation3 + $0xa] sm:$0xff] }
 0x21c   : > { %v12167_v22 = vpop.f32.mrf.mxu0  ;;  %3890 = vmatmul.mubr.f32.vlgmr.msra.gmra.mxu0 %v2710_v19  ;;  %3679 = vmatprep.mubr.f32.mxu1 %v2518_v56  ;;  %v14439_v56 = vld [vmem:[%s19343_s1 + $0x7e0] sm:$0xff] }
 0x21d   : > { %2557 = vst [vmem:[#allocation3 + $0x69] sm:$0xff] %v2524_v35  ;;  %v2523_v39 = vmax.f32 %v14401_v33, 0.0  ;;  %v14412_v14 = vadd.f32 %v12167_v22, %v14198_v17  ;;  %3894 = vmatprep.mubr.f32.mxu0 %v2775_v1  ;;  %4276 = vmatpush1.msra.mxu0 %v14395_v21  ;;  %v14426_v17 = vld [vmem:[%s19343_s1 + $0x7e8] sm:$0xff]  ;;  %v14564_v33 = vld [vmem:[%s19343_s1 + $0x7b0] sm:$0xff] }
 0x21e   : > { %v2398_v26 = vpop.f32.mrf.mxu0  ;;  %4277 = vmatprep.subr.mxu0 %v14288_v0  ;;  %v2776_v23 = vld [vmem:[#allocation3 + $0x30] sm:$0xff]  ;;  %v14453_v7 = vld [vmem:[#allocation3 + $0x38] sm:$0xff] }
 0x21f   : > { %2556 = vst [vmem:[#allocation3 + $0x61] sm:$0xff] %v2523_v39  ;;  %v2526_v5 = vmax.f32 %v14412_v14, 0.0  ;;  %v14420_v12 = vadd.f32 %v2398_v26, %v14191_v36  ;;  %3680 = vmatmul.mubr.f32.gmra.mxu1 %v2775_v1  ;;  %4278 = vmatpush1.msra.mxu0 %v14406_v38  ;;  %v14510_v6 = vld [vmem:[#allocation3 + $0x32] sm:$0xff] }
 0x220   : > { %v12170_v62 = vpop.f32.mrf.mxu0  ;;  %3895 = vmatmul.mubr.f32.gmra.mxu0 %v2711_v58  ;;  %3684 = vmatprep.mubr.f32.mxu1 %v2519_v40  ;;  %v14476_v40 = vld [vmem:[#allocation3 + $0x22] sm:$0xff]  ;;  %v14521_v58 = vld [vmem:[%s19343_s1 + $0x7c0] sm:$0xff] }
 0x221   : > { %2559 = vst [vmem:[#allocation3 + $0x81] sm:$0xff] %v2526_v5  ;;  %v2525_v24 = vmax.f32 %v14420_v12, 0.0  ;;  %v14432_v36 = vadd.f32 %v12170_v62, %v14212_v18  ;;  %3899 = vmatprep.mubr.f32.mxu0 %v2776_v23  ;;  %4279 = vmatprep.subr.mxu0 %v14288_v0  ;;  %v14447_v18 = vld [vmem:[#allocation3 + $0x1a] sm:$0xff]  ;;  %v14627_v12 = vld [vmem:[%s19343_s1 + $0x798] sm:$0xff] }
 0x222   : > { %v2408_v32 = vpop.f32.mrf.mxu0  ;;  %4280 = vmatpush1.msra.mxu0 %v14426_v17  ;;  %v14487_v61 = vld [vmem:[#allocation3 + $0x48] sm:$0xff]  ;;  %v14516_v1 = vld [vmem:[#allocation3 + $0x50] sm:$0xff] }
 0x223   : > { %2558 = vst [vmem:[#allocation3 + $0x79] sm:$0xff] %v2525_v24  ;;  %v2528_v3 = vmax.f32 %v14432_v36, 0.0  ;;  %v14445_v15 = vadd.f32 %v2408_v32, %v14205_v59  ;;  %3685 = vmatmul.mubr.f32.gmra.mxu1 %v2776_v23  ;;  %4281 = vmatprep.subr.mxu0 %v14288_v0  ;;  %v14539_v23 = vld [vmem:[#allocation3 + $0x3a] sm:$0xff] }
 0x224   : > { %v12173_v16 = vpop.f32.mrf.mxu0  ;;  %3900 = vmatmul.mubr.f32.gmra.mxu0 %v14447_v18  ;;  %3689 = vmatprep.mubr.f32.mxu1 %v2520_v55 }
 0x225   : > { %2561 = vst [vmem:[#allocation3 + $0x99] sm:$0xff] %v2528_v3  ;;  %v2527_v59 = vmax.f32 %v14445_v15, 0.0  ;;  %v14464_v20 = vadd.f32 %v12173_v16, %v14226_v63  ;;  %3904 = vmatprep.mubr.f32.mxu0 %v14453_v7  ;;  %4282 = vmatpush1.msra.mxu0 %v14439_v56  ;;  %v14482_v63 = vld [vmem:[%s19343_s1 + $0x7d0] sm:$0xff]  ;;  %v14690_v15 = vld [vmem:[%s19343_s1 + $0x780] sm:$0xff] }
 0x226   : > { %v2418_v60 = vpop.f32.mrf.mxu0  ;;  %4283 = vmatprep.subr.mxu0 %v14288_v0  ;;  %v14550_v16 = vld [vmem:[#allocation3 + $0x60] sm:$0xff] }
 0x227   : > { %2560 = vst [vmem:[#allocation3 + $0x91] sm:$0xff] %v2527_v59  ;;  %v19361_v55 = vmax.f32 %v14464_v20, 0.0  ;;  %v14473_v46 = vadd.f32 %v2418_v60, %v14219_v30  ;;  %3690 = vmatmul.mubr.f32.gmra.mxu1 %v14453_v7  ;;  %4284 = vmatpush1.msra.mxu0 %v14458_v34 }
 0x228   : > { %v12176_v31 = vpop.f32.mrf.mxu0  ;;  %3905 = vmatmul.mubr.f32.gmra.mxu0 %v14476_v40  ;;  %3694 = vmatprep.mubr.f32.mxu1 %v2521_v29 }
 0x229   : > { %2563 = vst [vmem:[#allocation3 + $0xb1] sm:$0xff] %v19361_v55  ;;  %v19363_v30 = vmax.f32 %v14473_v46, 0.0  ;;  %v14493_v19 = vadd.f32 %v12176_v31, %v14240_v53  ;;  %3909 = vmatprep.mubr.f32.mxu0 %v14487_v61  ;;  %4285 = vmatprep.subr.mxu0 %v14288_v0 }
 0x22a   : > { %v2428_v54 = vpop.f32.mrf.mxu0  ;;  %4286 = vmatpush1.msra.mxu0 %v14482_v63 }
 0x22b   : > { %2562 = vst [vmem:[#allocation3 + $0xa9] sm:$0xff] %v19363_v30  ;;  %v19356_v29 = vmax.f32 %v14493_v19, 0.0  ;;  %v14507_v53 = vadd.f32 %v2428_v54, %v14233_v41  ;;  %3695 = vmatmul.mubr.f32.gmra.mxu1 %v14487_v61  ;;  %4287 = vmatprep.subr.mxu0 %v14288_v0  ;;  %v14573_v54 = vld [vmem:[#allocation3 + $0x4a] sm:$0xff] }
 0x22c   : > { %v12179_v22 = vpop.f32.mrf.mxu0  ;;  %3910 = vmatmul.mubr.f32.gmra.mxu0 %v14510_v6  ;;  %3699 = vmatprep.mubr.f32.mxu1 %v2522_v44 }
 0x22d   : > { %2565 = vst [vmem:[#allocation3 + $0xc9] sm:$0xff] %v19356_v29  ;;  %v19358_v41 = vmax.f32 %v14507_v53, 0.0  ;;  %v14527_v26 = vadd.f32 %v12179_v22, %v14258_v52  ;;  %3914 = vmatprep.mubr.f32.mxu0 %v14516_v1  ;;  %4288 = vmatpush1.msra.mxu0 %v14501_v8  ;;  %v14545_v52 = vld [vmem:[%s19343_s1 + $0x7b8] sm:$0xff]  ;;  %v14642_v29 = vld [vmem:[#allocation3 + $0x80] sm:$0xff] }
 0x22e   : > { %v2438_v49 = vpop.f32.mrf.mxu0  ;;  %4289 = vmatprep.subr.mxu0 %v14288_v0 }
 0x22f   : > { %2564 = vst [vmem:[#allocation3 + $0xc1] sm:$0xff] %v19358_v41  ;;  %v19351_v44 = vmax.f32 %v14527_v26, 0.0  ;;  %v14536_v62 = vadd.f32 %v2438_v49, %v14247_v45  ;;  %3700 = vmatmul.mubr.f32.gmra.mxu1 %v14516_v1  ;;  %4290 = vmatpush1.msra.mxu0 %v14521_v58  ;;  %v14579_v49 = vld [vmem:[#allocation3 + $0x68] sm:$0xff] }
 0x230   : > { %v12182_v32 = vpop.f32.mrf.mxu0  ;;  %3915 = vmatmul.mubr.f32.gmra.mxu0 %v14539_v23  ;;  %3704 = vmatprep.mubr.f32.mxu1 %v2523_v39 }
 0x231   : > { %2567 = vst [vmem:[#allocation3 + $0xe1] sm:$0xff] %v19351_v44  ;;  %v19354_v45 = vmax.f32 %v14536_v62, 0.0  ;;  %v14556_v60 = vadd.f32 %v12182_v32, %v14272_v2  ;;  %3919 = vmatprep.mubr.f32.mxu0 %v14550_v16  ;;  %4291 = vmatprep.subr.mxu0 %v14288_v0  ;;  %v14584_v32 = vld [vmem:[%s19343_s1 + $0x7a8] sm:$0xff] }
 0x232   : > { %v2448_v31 = vpop.f32.mrf.mxu0  ;;  %4292 = vmatpush1.msra.mxu0 %v14545_v52 }
 0x233   : > { %2566 = vst [vmem:[#allocation3 + $0xd9] sm:$0xff] %v19354_v45  ;;  %v19352_v39 = vmax.f32 %v14556_v60, 0.0  ;;  %v14570_v2 = vadd.f32 %v2448_v31, %v14265_v13  ;;  %3705 = vmatmul.mubr.f32.gmra.mxu1 %v14550_v16  ;;  %4293 = vmatprep.subr.mxu0 %v14288_v0 }
 0x234   : > { %v12185_v22 = vpop.f32.mrf.mxu0  ;;  %3920 = vmatmul.mubr.f32.gmra.mxu0 %v14573_v54  ;;  %3709 = vmatprep.mubr.f32.mxu1 %v2524_v35 }
 0x235   : > { %2569 = vst [vmem:[#allocation3 + $0xf9] sm:$0xff] %v19352_v39  ;;  %v19353_v13 = vmax.f32 %v14570_v2, 0.0  ;;  %v14590_v31 = vadd.f32 %v12185_v22, %v14286_v37  ;;  %3924 = vmatprep.mubr.f32.mxu0 %v14579_v49  ;;  %4294 = vmatpush1.msra.mxu0 %v14564_v33  ;;  %v14602_v39 = vld [vmem:[#allocation3 + $0x52] sm:$0xff] }
 0x236   : > { %v2458_v4 = vpop.f32.mrf.mxu0  ;;  %4295 = vmatprep.subr.mxu0 %v14288_v0  ;;  %v14608_v37 = vld [vmem:[%s19343_s1 + $0x7a0] sm:$0xff] }
 0x237   : > { %2568 = vst [vmem:[#allocation3 + $0xf1] sm:$0xff] %v19353_v13  ;;  %v19355_v35 = vmax.f32 %v14590_v31, 0.0  ;;  %v14599_v44 = vadd.f32 %v2458_v4, %v14279_v28  ;;  %3710 = vmatmul.mubr.f32.gmra.mxu1 %v14579_v49  ;;  %4296 = vmatpush1.msra.mxu0 %v14584_v32  ;;  %v14613_v13 = vld [vmem:[#allocation3 + $0x78] sm:$0xff] }
 0x238   : > { %v12188_v22 = vpop.f32.mrf.mxu0  ;;  %3925 = vmatmul.mubr.f32.gmra.mxu0 %v14602_v39  ;;  %3714 = vmatprep.mubr.f32.mxu1 %v2525_v24 }
 0x239   : > { %2571 = vst [vmem:[#allocation3 + $0x111] sm:$0xff] %v19355_v35  ;;  %v19357_v28 = vmax.f32 %v14599_v44, 0.0  ;;  %v14619_v4 = vadd.f32 %v12188_v22, %v14302_v50  ;;  %3929 = vmatprep.mubr.f32.mxu0 %v14613_v13  ;;  %4297 = vmatprep.subr.mxu0 %v14288_v0  ;;  %v14636_v22 = vld [vmem:[#allocation3 + $0x62] sm:$0xff] }
 0x23a   : > { %v2468_v45 = vpop.f32.mrf.mxu0  ;;  %4298 = vmatpush1.msra.mxu0 %v14608_v37 }
 0x23b   : > { %2570 = vst [vmem:[#allocation3 + $0x109] sm:$0xff] %v19357_v28  ;;  %v19359_v24 = vmax.f32 %v14619_v4, 0.0  ;;  %v14633_v50 = vadd.f32 %v2468_v45, %v14295_v9  ;;  %3715 = vmatmul.mubr.f32.gmra.mxu1 %v14613_v13  ;;  %4299 = vmatprep.subr.mxu0 %v14288_v0  ;;  %v14647_v28 = vld [vmem:[%s19343_s1 + $0x790] sm:$0xff] }
 0x23c   : > { %v12191_v35 = vpop.f32.mrf.mxu0  ;;  %3930 = vmatmul.mubr.f32.gmra.mxu0 %v14636_v22  ;;  %3719 = vmatprep.mubr.f32.mxu1 %v2526_v5 }
 0x23d   : > { %2573 = vst [vmem:[#allocation3 + $0x129] sm:$0xff] %v19359_v24  ;;  %v19360_v9 = vmax.f32 %v14633_v50, 0.0  ;;  %v14653_v45 = vadd.f32 %v12191_v35, %v14316_v47  ;;  %3934 = vmatprep.mubr.f32.mxu0 %v14642_v29  ;;  %4300 = vmatpush1.msra.mxu0 %v14627_v12  ;;  %v14665_v24 = vld [vmem:[#allocation3 + $0x6a] sm:$0xff]  ;;  %v14671_v47 = vld [vmem:[%s19343_s1 + $0x788] sm:$0xff] }
 0x23e   : > { %v2478_v14 = vpop.f32.mrf.mxu0  ;;  %4301 = vmatprep.subr.mxu0 %v14288_v0 }
 0x23f   : > { %2572 = vst [vmem:[#allocation3 + $0x121] sm:$0xff] %v19360_v9  ;;  %v19362_v5 = vmax.f32 %v14653_v45, 0.0  ;;  %v14662_v41 = vadd.f32 %v2478_v14, %v14309_v10  ;;  %3720 = vmatmul.mubr.f32.gmra.mxu1 %v14642_v29  ;;  %4302 = vmatpush1.msra.mxu0 %v14647_v28  ;;  %v14676_v9 = vld [vmem:[#allocation3 + $0x90] sm:$0xff] }
 0x240   : > { %v12194_v35 = vpop.f32.mrf.mxu0  ;;  %3935 = vmatmul.mubr.f32.gmra.mxu0 %v14665_v24  ;;  %3724 = vmatprep.mubr.f32.mxu1 %v2527_v59  ;;  %v2064_v59 = vadd.f32 %v14354_v42, %v14102_v51  ;;  %v14707_v51 = vld [vmem:[#allocation3 + $0x98] sm:$0xff]  ;;  %v14712_v42 = vld [vmem:[%s19343_s1 + $0x878] sm:$0xff] }
 0x241   : > { %2575 = vst [vmem:[#allocation3 + $0x141] sm:$0xff] %v19362_v5  ;;  %v19364_v10 = vmax.f32 %v14662_v41, 0.0  ;;  %v14682_v14 = vadd.f32 %v12194_v35, %v14330_v48  ;;  %3939 = vmatprep.mubr.f32.mxu0 %v14676_v9  ;;  %4303 = vmatprep.subr.mxu0 %v14288_v0  ;;  %v14701_v5 = vld [vmem:[#allocation3 + $0x7a] sm:$0xff]  ;;  %19418 = vst [vmem:[#allocation5_spill] sm:$0xff] %v14712_v42 }
 0x242   : > { %v2488_v55 = vpop.f32.mrf.mxu0  ;;  %4304 = vmatpush1.msra.mxu0 %v14671_v47 }
 0x243   : > { %2574 = vst [vmem:[#allocation3 + $0x139] sm:$0xff] %v19364_v10  ;;  %v19365_v48 = vmax.f32 %v14682_v14, 0.0  ;;  %v14698_v35 = vadd.f32 %v2488_v55, %v14323_v27  ;;  %3725 = vmatmul.mubr.f32.gmra.mxu1 %v14676_v9  ;;  %4305 = vmatprep.subr.mxu0 %v14288_v0 }
 0x244   : > { %v12197_v30 = vpop.f32.mrf.mxu0  ;;  %3940 = vmatmul.mubr.f32.gmra.mxu0 %v14701_v5  ;;  %3729 = vmatprep.mubr.f32.mxu1 %v2528_v3  ;;  %v2289_v3 = vadd.f32 %v14359_v11, %v2064_v59  ;;  %v19420_v59 = vmax.f32 %v14473_v46, 0.0  ;;  %v14753_v46 = vld [vmem:[%s19343_s1 + $0x868] sm:$0xff] }
 0x245   : > { %2577 = vst [vmem:[#allocation3 + $0x159] sm:$0xff] %v19365_v48  ;;  %v19366_v27 = vmax.f32 %v14698_v35, 0.0  ;;  %v14718_v55 = vadd.f32 %v12197_v30, %v14344_v57  ;;  %3944 = vmatprep.mubr.f32.mxu0 %v14707_v51  ;;  %4306 = vmatpush1.msra.mxu0 %v14690_v15  ;;  %v14731_v57 = vld [vmem:[#allocation3 + $0x82] sm:$0xff]  ;;  %19421 = vst [vmem:[#allocation7_spill] sm:$0xff] %v14753_v46 }
 0x246   : > { %v2498_v36 = vpop.f32.mrf.mxu0  ;;  %4307 = vmatprep.subr.mxu0 %v14288_v0  ;;  %v14737_v30 = vld [vmem:[%s19343_s1 + $0x870] sm:$0xff] }
 0x247   : > { %2576 = vst [vmem:[#allocation3 + $0x151] sm:$0xff] %v19366_v27  ;;  %v19368_v10 = vmax.f32 %v14718_v55, 0.0  ;;  %v14728_v48 = vadd.f32 %v2498_v36, %v14337_v43  ;;  %3730 = vmatmul.mubr.f32.gmra.mxu1 %v14707_v51  ;;  %4308 = vmatpush2.msra.mxu0 %v14712_v42  ;;  %19419 = vst [vmem:[#allocation6_spill] sm:$0xff] %v14737_v30  ;;  %v14742_v27 = vld [vmem:[#allocation3 + $0xa8] sm:$0xff] }
 0x248   : > { %v12200_v11 = vpop.f32.mrf.mxu0  ;;  %3945 = vmatmul.mubr.f32.gmra.mxu0 %v14731_v57  ;;  %3734 = vmatprep.mubr.f32.mxu1 %v19420_v59 }
 0x249   : > { %2579 = vst [vmem:[#allocation3 + $0x171] sm:$0xff] %v19368_v10  ;;  %v19370_v43 = vmax.f32 %v14728_v48, 0.0  ;;  %v2514_v36 = vadd.f32 %v12200_v11, %v2289_v3  ;;  %3949 = vmatprep.mubr.f32.mxu0 %v14742_v27  ;;  %4309 = vmatprep.subr.mxu0 %v14288_v0  ;;  %v14759_v3 = vld [vmem:[#allocation3 + $0x92] sm:$0xff]  ;;  %v19422_v11 = vmax.f32 %v14464_v20, 0.0  ;;  %v14776_v20 = vld [vmem:[#allocation3 + $0x9a] sm:$0xff] }
 0x24a   : > { %v2508_v42 = vpop.f32.mrf.mxu0  ;;  %4310 = vmatpush2.msra.mxu0 %v14737_v30  ;;  %v14765_v30 = vld [vmem:[#allocation3 + $0xb0] sm:$0xff] }
 0x24b   : > { %2578 = vst [vmem:[#allocation3 + $0x169] sm:$0xff] %v19370_v43  ;;  %v2548_v59 = vmax.f32 %v2514_v36, 0.0  ;;  %v2509_v10 = vadd.f32 %v2508_v42, %v14351_v25  ;;  %3735 = vmatmul.mubr.f32.gmra.mxu1 %v14742_v27  ;;  %4311 = vmatprep.subr.mxu0 %v14288_v0  ;;  %v14770_v43 = vld [vmem:[%s19343_s1 + $0x860] sm:$0xff]  ;;  %v14782_v42 = vld [vmem:[%s19343_s1 + $0x858] sm:$0xff]  ;;  %v14787_v36 = vld [vmem:[#allocation3 + $0xc0] sm:$0xff] }
 0x24c   : > { %3950 = vmatmul.mubr.f32.gmra.mxu0 %v14759_v3  ;;  %3739 = vmatprep.mubr.f32.mxu1 %v19422_v11  ;;  %19423 = vst [vmem:[#allocation8_spill] sm:$0xff] %v14770_v43  ;;  %19424 = vst [vmem:[#allocation9_spill] sm:$0xff] %v14782_v42  ;;  %v14797_v11 = vld [vmem:[%s19343_s1 + $0x850] sm:$0xff] }
 0x24d   : > { %2581 = vst [vmem:[#allocation3 + $0x189] sm:$0xff] %v2548_v59  ;;  %v2547_v25 = vmax.f32 %v2509_v10, 0.0  ;;  %3954 = vmatprep.mubr.f32.mxu0 %v14765_v30  ;;  %4312 = vmatpush2.msra.mxu0 %v14753_v46  ;;  %v19425_v10 = vmax.f32 %v14507_v53, 0.0  ;;  %v14791_v59 = vpop.f32.mrf.mxu1  ;;  %19427 = vst [vmem:[#allocation11_spill] sm:$0xff] %v14797_v11 }
 0x24e   : > { %4313 = vmatprep.subr.mxu0 %v14288_v0  ;;  %19426 = vst [vmem:[#allocation10_spill] sm:$0xff] %v14791_v59  ;;  %v14858_v59 = vld [vmem:[#allocation3 + $0xca] sm:$0xff] }
 0x24f   : > { %2580 = vst [vmem:[#allocation3 + $0x181] sm:$0xff] %v2547_v25  ;;  %3740 = vmatmul.mubr.f32.gmra.mxu1 %v14765_v30  ;;  %4314 = vmatpush2.msra.mxu0 %v14770_v43  ;;  %v14800_v25 = vld [vmem:[#allocation3 + $0xaa] sm:$0xff]  ;;  %v3668_v53 = vpop.f32.mrf.mxu1 }
 0x250   : > { %3955 = vmatmul.mubr.f32.gmra.mxu0 %v14776_v20  ;;  %3744 = vmatprep.mubr.f32.mxu1 %v19425_v10  ;;  %v19428_v10 = vmax.f32 %v14493_v19, 0.0  ;;  %v14806_v43 = vld [vmem:[#allocation3 + $0xc8] sm:$0xff]  ;;  %v14819_v53 = vld [vmem:[#allocation3 + $0xb2] sm:$0xff] }
 0x251   : > { %3959 = vmatprep.mubr.f32.mxu0 %v14787_v36  ;;  %4315 = vmatprep.subr.mxu0 %v14288_v0  ;;  %v14815_v46 = vpop.f32.mrf.mxu1  ;;  %v14825_v19 = vld [vmem:[%s19343_s1 + $0x840] sm:$0xff] }
 0x252   : > { %4316 = vmatpush2.msra.mxu0 %v14782_v42  ;;  %v14811_v42 = vld [vmem:[%s19343_s1 + $0x848] sm:$0xff]  ;;  %19430 = vst [vmem:[#allocation13_spill] sm:$0xff] %v14815_v46  ;;  %19431 = vst [vmem:[#allocation14_spill] sm:$0xff] %v14825_v19 }
 0x253   : > { %3745 = vmatmul.mubr.f32.gmra.mxu1 %v14787_v36  ;;  %4317 = vmatprep.subr.mxu0 %v14288_v0  ;;  %19429 = vst [vmem:[#allocation12_spill] sm:$0xff] %v14811_v42  ;;  %v14830_v46 = vld [vmem:[#allocation3 + $0xd8] sm:$0xff] }
 0x254   : > { %3960 = vmatmul.mubr.f32.gmra.mxu0 %v14800_v25  ;;  %3749 = vmatprep.mubr.f32.mxu1 %v19428_v10  ;;  %v3673_v10 = vpop.f32.mrf.mxu1  ;;  %19433 = vst [vmem:[#allocation15_spill] sm:$0xff] %v14830_v46 }
 0x255   : > { %3964 = vmatprep.mubr.f32.mxu0 %v14806_v43  ;;  %4318 = vmatpush2.msra.mxu0 %v14797_v11  ;;  %v19432_v11 = vmax.f32 %v14536_v62, 0.0  ;;  %v14841_v10 = vld [vmem:[#allocation3 + $0xc2] sm:$0xff]  ;;  %v19435_v62 = vmax.f32 %v14527_v26, 0.0  ;;  %v14864_v26 = vld [vmem:[%s19343_s1 + $0x828] sm:$0xff] }
 0x256   : > { %4319 = vmatprep.subr.mxu0 %v14288_v0  ;;  %19438 = vst [vmem:[#allocation19_spill] sm:$0xff] %v14864_v26 }
 0x257   : > { %3750 = vmatmul.mubr.f32.gmra.mxu1 %v14806_v43  ;;  %4320 = vmatpush2.msra.mxu0 %v14811_v42  ;;  %v14838_v42 = vld [vmem:[%s19343_s1 + $0x838] sm:$0xff] }
 0x258   : > { %3965 = vmatmul.mubr.f32.gmra.mxu0 %v14819_v53  ;;  %3754 = vmatprep.mubr.f32.mxu1 %v19432_v11  ;;  %19434 = vst [vmem:[#allocation16_spill] sm:$0xff] %v14838_v42  ;;  %v14847_v11 = vld [vmem:[#allocation3 + $0xe0] sm:$0xff] }
 0x259   : > { %3969 = vmatprep.mubr.f32.mxu0 %v14830_v46  ;;  %4321 = vmatprep.subr.mxu0 %v14288_v0  ;;  %19436 = vst [vmem:[#allocation17_spill] sm:$0xff] %v14847_v11 }
 0x25a   : > { %4322 = vmatpush2.msra.mxu0 %v14825_v19  ;;  %v14852_v19 = vld [vmem:[%s19343_s1 + $0x830] sm:$0xff] }
 0x25b   : > { %3755 = vmatmul.mubr.f32.gmra.mxu1 %v14830_v46  ;;  %4323 = vmatprep.subr.mxu0 %v14288_v0  ;;  %19437 = vst [vmem:[#allocation18_spill] sm:$0xff] %v14852_v19  ;;  %v14869_v46 = vld [vmem:[#allocation3 + $0xf0] sm:$0xff] }
 0x25c   : > { %3970 = vmatmul.mubr.f32.gmra.mxu0 %v14841_v10  ;;  %3759 = vmatprep.mubr.f32.mxu1 %v19435_v62  ;;  %v19439_v62 = vmax.f32 %v14570_v2, 0.0  ;;  %19440 = vst [vmem:[#allocation20_spill] sm:$0xff] %v14869_v46  ;;  %v19442_v2 = vmax.f32 %v14556_v60, 0.0  ;;  %v14903_v60 = vld [vmem:[%s19343_s1 + $0x810] sm:$0xff] }
 0x25d   : > { %3974 = vmatprep.mubr.f32.mxu0 %v14847_v11  ;;  %4324 = vmatpush2.msra.mxu0 %v14838_v42  ;;  %v14880_v42 = vld [vmem:[#allocation3 + $0xda] sm:$0xff]  ;;  %19444 = vst [vmem:[#allocation23_spill] sm:$0xff] %v14903_v60 }
 0x25e   : > { %4325 = vmatprep.subr.mxu0 %v14288_v0 }
 0x25f   : > { %3760 = vmatmul.mubr.f32.gmra.mxu1 %v14847_v11  ;;  %4326 = vmatpush2.msra.mxu0 %v14852_v19  ;;  %v14877_v19 = vld [vmem:[%s19343_s1 + $0x820] sm:$0xff]  ;;  %v14908_v11 = vld [vmem:[#allocation3 + $0x108] sm:$0xff] }
 0x260   : > { %3975 = vmatmul.mubr.f32.gmra.mxu0 %v14858_v59  ;;  %3764 = vmatprep.mubr.f32.mxu1 %v19439_v62  ;;  %19441 = vst [vmem:[#allocation21_spill] sm:$0xff] %v14877_v19  ;;  %v14886_v62 = vld [vmem:[#allocation3 + $0xf8] sm:$0xff]  ;;  %19446 = vst [vmem:[#allocation24_spill] sm:$0xff] %v14908_v11 }
 0x261   : > { %3979 = vmatprep.mubr.f32.mxu0 %v14869_v46  ;;  %4327 = vmatprep.subr.mxu0 %v14288_v0 }
 0x262   : > { %4328 = vmatpush2.msra.mxu0 %v14864_v26  ;;  %v14891_v26 = vld [vmem:[%s19343_s1 + $0x818] sm:$0xff] }
 0x263   : > { %3765 = vmatmul.mubr.f32.gmra.mxu1 %v14869_v46  ;;  %4329 = vmatprep.subr.mxu0 %v14288_v0  ;;  %19443 = vst [vmem:[#allocation22_spill] sm:$0xff] %v14891_v26  ;;  %v14897_v46 = vld [vmem:[#allocation3 + $0xe2] sm:$0xff] }
 0x264   : > { %3980 = vmatmul.mubr.f32.gmra.mxu0 %v14880_v42  ;;  %3769 = vmatprep.mubr.f32.mxu1 %v19442_v2  ;;  %v19445_v2 = vmax.f32 %v14599_v44, 0.0  ;;  %v19448_v44 = vmax.f32 %v14590_v31, 0.0  ;;  %v19451_v31 = vmax.f32 %v14633_v50, 0.0  ;;  %v14956_v50 = vld [vmem:[#allocation3 + $0x112] sm:$0xff] }
 0x265   : > { %3984 = vmatprep.mubr.f32.mxu0 %v14886_v62  ;;  %4330 = vmatpush2.msra.mxu0 %v14877_v19  ;;  %v14919_v19 = vld [vmem:[#allocation3 + $0xf2] sm:$0xff] }
 0x266   : > { %4331 = vmatprep.subr.mxu0 %v14288_v0 }
 0x267   : > { %3770 = vmatmul.mubr.f32.gmra.mxu1 %v14886_v62  ;;  %4332 = vmatpush2.msra.mxu0 %v14891_v26  ;;  %v14916_v26 = vld [vmem:[%s19343_s1 + $0x808] sm:$0xff] }
 0x268   : > { %3985 = vmatmul.mubr.f32.gmra.mxu0 %v14897_v46  ;;  %3774 = vmatprep.mubr.f32.mxu1 %v19445_v2  ;;  %19447 = vst [vmem:[#allocation25_spill] sm:$0xff] %v14916_v26  ;;  %v14925_v2 = vld [vmem:[#allocation3 + $0x110] sm:$0xff] }
 0x269   : > { %3989 = vmatprep.mubr.f32.mxu0 %v14908_v11  ;;  %4333 = vmatprep.subr.mxu0 %v14288_v0  ;;  %19449 = vst [vmem:[#allocation26_spill] sm:$0xff] %v14925_v2 }
 0x26a   : > { %4334 = vmatpush2.msra.mxu0 %v14903_v60  ;;  %v14930_v60 = vld [vmem:[%s19343_s1 + $0x800] sm:$0xff] }
 0x26b   : > { %3775 = vmatmul.mubr.f32.gmra.mxu1 %v14908_v11  ;;  %4335 = vmatprep.subr.mxu0 %v14288_v0  ;;  %19450 = vst [vmem:[#allocation27_spill] sm:$0xff] %v14930_v60  ;;  %v14936_v11 = vld [vmem:[#allocation3 + $0xfa] sm:$0xff] }
 0x26c   : > { %3990 = vmatmul.mubr.f32.gmra.mxu0 %v14919_v19  ;;  %3779 = vmatprep.mubr.f32.mxu1 %v19448_v44  ;;  %v14942_v44 = vld [vmem:[#allocation3 + $0x120] sm:$0xff] }
 0x26d   : > { %3994 = vmatprep.mubr.f32.mxu0 %v14925_v2  ;;  %4336 = vmatpush2.msra.mxu0 %v14916_v26  ;;  %v14947_v26 = vld [vmem:[#allocation3 + $0x10a] sm:$0xff] }
 0x26e   : > { %4337 = vmatprep.subr.mxu0 %v14288_v0 }
 0x26f   : > { %3780 = vmatmul.mubr.f32.gmra.mxu1 %v14925_v2  ;;  %4338 = vmatpush2.msra.mxu0 %v14930_v60  ;;  %v19452_v2 = vmax.f32 %v14619_v4, 0.0  ;;  %v14952_v60 = vld [vmem:[#allocation3 + $0x128] sm:$0xff] }
 0x270   : > { %3995 = vmatmul.mubr.f32.gmra.mxu0 %v14936_v11  ;;  %3784 = vmatprep.mubr.f32.mxu1 %v19451_v31  ;;  %19453 = vst [vmem:[#allocation28_spill] sm:$0xff] %v14952_v60  ;;  %v14961_v31 = vld [vmem:[#allocation3 + $0x138] sm:$0xff]  ;;  %v14965_v4 = vld [vmem:[#allocation3 + $0x122] sm:$0xff] }
 0x271   : > { %3999 = vmatprep.mubr.f32.mxu0 %v14942_v44  ;;  %5806 = vmatprep.subr.mxu0 %v14288_v0  ;;  %v19454_v0 = vmax.f32 %v14662_v41, 0.0  ;;  %19455 = vst [vmem:[#allocation29_spill] sm:$0xff] %v14961_v31  ;;  %v14974_v41 = vld [vmem:[#allocation3 + $0x12a] sm:$0xff] }
 0x273   : > { %3785 = vmatmul.mubr.f32.gmra.mxu1 %v14942_v44 }
 0x274   : > { %4000 = vmatmul.mubr.f32.gmra.mxu0 %v14947_v26  ;;  %3789 = vmatprep.mubr.f32.mxu1 %v19452_v2  ;;  %v19456_v2 = vmax.f32 %v14653_v45, 0.0  ;;  %v14983_v45 = vld [vmem:[#allocation3 + $0x13a] sm:$0xff] }
 0x275   : > { %4004 = vmatprep.mubr.f32.mxu0 %v14952_v60 }
 0x277   : > { %3790 = vmatmul.mubr.f32.gmra.mxu1 %v14952_v60  ;;  %v14970_v60 = vld [vmem:[#allocation3 + $0x140] sm:$0xff] }
 0x278   : > { %4005 = vmatmul.mubr.f32.gmra.mxu0 %v14956_v50  ;;  %3794 = vmatprep.mubr.f32.mxu1 %v19454_v0  ;;  %19457 = vst [vmem:[#allocation30_spill] sm:$0xff] %v14970_v60  ;;  %v19458_v0 = vmax.f32 %v14698_v35, 0.0  ;;  %v14992_v35 = vld [vmem:[#allocation3 + $0x142] sm:$0xff] }
 0x279   : > { %4009 = vmatprep.mubr.f32.mxu0 %v14961_v31 }
 0x27b   : > { %3795 = vmatmul.mubr.f32.gmra.mxu1 %v14961_v31  ;;  %v14979_v31 = vld [vmem:[#allocation3 + $0x150] sm:$0xff] }
 0x27c   : > { %4010 = vmatmul.mubr.f32.gmra.mxu0 %v14965_v4  ;;  %3799 = vmatprep.mubr.f32.mxu1 %v19456_v2  ;;  %19459 = vst [vmem:[#allocation31_spill] sm:$0xff] %v14979_v31  ;;  %v19460_v2 = vmax.f32 %v14682_v14, 0.0  ;;  %v15001_v14 = vld [vmem:[#allocation3 + $0x152] sm:$0xff] }
 0x27d   : > { %4014 = vmatprep.mubr.f32.mxu0 %v14970_v60  ;;  %19464 = vst [vmem:[#allocation34_spill] sm:$0xff] %v15001_v14 }
 0x27f   : > { %3800 = vmatmul.mubr.f32.gmra.mxu1 %v14970_v60  ;;  %v14988_v60 = vld [vmem:[#allocation3 + $0x158] sm:$0xff] }
 0x280   : > { %4015 = vmatmul.mubr.f32.gmra.mxu0 %v14974_v41  ;;  %3804 = vmatprep.mubr.f32.mxu1 %v19458_v0  ;;  %19461 = vst [vmem:[#allocation32_spill] sm:$0xff] %v14988_v60  ;;  %v19462_v0 = vmax.f32 %v14728_v48, 0.0  ;;  %v15010_v48 = vld [vmem:[#allocation3 + $0x15a] sm:$0xff] }
 0x281   : > { %4019 = vmatprep.mubr.f32.mxu0 %v14979_v31 }
 0x283   : > { %3805 = vmatmul.mubr.f32.gmra.mxu1 %v14979_v31  ;;  %v14997_v31 = vld [vmem:[#allocation3 + $0x168] sm:$0xff] }
 0x284   : > { %4020 = vmatmul.mubr.f32.gmra.mxu0 %v14983_v45  ;;  %3809 = vmatprep.mubr.f32.mxu1 %v19460_v2  ;;  %19463 = vst [vmem:[#allocation33_spill] sm:$0xff] %v14997_v31  ;;  %v19465_v2 = vmax.f32 %v14718_v55, 0.0  ;;  %v15020_v55 = vld [vmem:[#allocation3 + $0x188] sm:$0xff] }
 0x285   : > { %4024 = vmatprep.mubr.f32.mxu0 %v14988_v60 }
 0x287   : > { %3810 = vmatmul.mubr.f32.gmra.mxu1 %v14988_v60  ;;  %v15006_v60 = vld [vmem:[#allocation3 + $0x170] sm:$0xff] }
 0x288   : > { %4025 = vmatmul.mubr.f32.gmra.mxu0 %v14992_v35  ;;  %3814 = vmatprep.mubr.f32.mxu1 %v19462_v0  ;;  %19466 = vst [vmem:[#allocation35_spill] sm:$0xff] %v15006_v60  ;;  %v15013_v0 = vld [vmem:[#allocation3 + $0x180] sm:$0xff] }
 0x289   : > { %4029 = vmatprep.mubr.f32.mxu0 %v14997_v31 }
 0x28b   : > { %3815 = vmatmul.mubr.f32.gmra.mxu1 %v14997_v31  ;;  %v2838_v31 = vld [vmem:[#allocation3 + $0x19] sm:$0xff] }
 0x28c   : > { %4030 = vmatmul.mubr.f32.gmra.mxu0 %v15001_v14  ;;  %3819 = vmatprep.mubr.f32.mxu1 %v19465_v2  ;;  %v15017_v14 = vld [vmem:[#allocation3 + $0x16a] sm:$0xff]  ;;  %v2839_v2 = vld [vmem:[#allocation3 + $0x21] sm:$0xff] }
 0x28d   : > { %4034 = vmatprep.mubr.f32.mxu0 %v15006_v60 }
 0x28f   : > { %3820 = vmatmul.mubr.f32.gmra.mxu1 %v15006_v60  ;;  %v15025_v60 = vld [vmem:[#allocation2 + $0x8] sm:$0xff] }
 0x290   : > { %4035 = vmatmul.mubr.f32.gmra.mxu0 %v15010_v48  ;;  %4114 = vmatprep.mubr.f32.mxu1 %v14447_v18  ;;  %v15028_v18 = vld [vmem:[#allocation3 + $0x172] sm:$0xff] }
 0x291   : > { %4039 = vmatprep.mubr.f32.mxu0 %v15013_v0 }
 0x293   : > { %4115 = vmatmul.mubr.f32.vlgmr.msra.gmra.mxu1 %v2838_v31  ;;  %v3031_v31 = vld [vmem:[#allocation3 + $0x31] sm:$0xff] }
 0x294   : > { %4040 = vmatmul.mubr.f32.gmra.mxu0 %v15017_v14  ;;  %4119 = vmatprep.mubr.f32.mxu1 %v14476_v40  ;;  %v3032_v40 = vld [vmem:[#allocation3 + $0x39] sm:$0xff] }
 0x295   : > { %4044 = vmatprep.mubr.f32.mxu0 %v15020_v55  ;;  %12553 = vmatpush1.msra.mxu1 %v14395_v21  ;;  %v2967_v21 = vld [vmem:[#allocation3 + $0x30] sm:$0xff] }
 0x296   : > { %12522 = vmatprep.subr.mxu1 %v15025_v60 }
 0x297   : > { %4120 = vmatmul.mubr.f32.gmra.mxu1 %v2839_v2 }
 0x298   : > { %4045 = vmatmul.mubr.f32.gmra.mxu0 %v15028_v18  ;;  %4124 = vmatprep.mubr.f32.mxu1 %v14510_v6  ;;  %v3042_v6 = vld [vmem:[#allocation3 + $0xb1] sm:$0xff] }
 0x299   : > { %12554 = vmatpush1.msra.mxu1 %v14406_v38  ;;  %4339 = vmatprep.mubr.f32.mxu0 %v3031_v31  ;;  %v3033_v38 = vld [vmem:[#allocation3 + $0x49] sm:$0xff] }
 0x29a   : > { %12523 = vmatprep.subr.mxu1 %v15025_v60 }
 0x29b   : > { %4125 = vmatmul.mubr.f32.gmra.mxu1 %v3031_v31 }
 0x29c   : > { %4340 = vmatmul.mubr.f32.vlgmr.msra.gmra.mxu0 %v2967_v21  ;;  %4129 = vmatprep.mubr.f32.mxu1 %v14539_v23  ;;  %v3045_v23 = vld [vmem:[#allocation3 + $0xd9] sm:$0xff] }
 0x29d   : > { %12555 = vmatpush1.msra.mxu1 %v14426_v17  ;;  %4344 = vmatprep.mubr.f32.mxu0 %v3032_v40  ;;  %v3034_v17 = vld [vmem:[#allocation3 + $0x51] sm:$0xff] }
 0x29e   : > { %12524 = vmatprep.subr.mxu1 %v15025_v60 }
 0x29f   : > { %4130 = vmatmul.mubr.f32.gmra.mxu1 %v3032_v40  ;;  %v19478_v40 = vld [vmem:[#allocation26_spill] sm:$0xff] }
 0x2a0   : > { %4345 = vmatmul.mubr.f32.gmra.mxu0 %v14453_v7  ;;  %4134 = vmatprep.mubr.f32.mxu1 %v14573_v54  ;;  %v3036_v7 = vld [vmem:[#allocation3 + $0x69] sm:$0xff] }
 0x2a1   : > { %12556 = vmatpush1.msra.mxu1 %v14439_v56  ;;  %4349 = vmatprep.mubr.f32.mxu0 %v3033_v38  ;;  %v3035_v56 = vld [vmem:[#allocation3 + $0x61] sm:$0xff]  ;;  %v19469_v54 = vld [vmem:[#allocation17_spill] sm:$0xff] }
 0x2a2   : > { %12525 = vmatprep.subr.mxu1 %v15025_v60 }
 0x2a3   : > { %4135 = vmatmul.mubr.f32.gmra.mxu1 %v3033_v38 }
 0x2a4   : > { %4350 = vmatmul.mubr.f32.gmra.mxu0 %v14487_v61  ;;  %4139 = vmatprep.mubr.f32.mxu1 %v14602_v39  ;;  %v3039_v61 = vld [vmem:[#allocation3 + $0x91] sm:$0xff] }
 0x2a5   : > { %12557 = vmatpush1.msra.mxu1 %v14458_v34  ;;  %4354 = vmatprep.mubr.f32.mxu0 %v3034_v17  ;;  %v3037_v34 = vld [vmem:[#allocation3 + $0x79] sm:$0xff]  ;;  %v15096_v39 = vld [vmem:[%s19344_s2 + $0x1] ss:$0 sm:$0xff] }
 0x2a6   : > { %12526 = vmatprep.subr.mxu1 %v15025_v60 }
 0x2a7   : > { %4140 = vmatmul.mubr.f32.gmra.mxu1 %v3034_v17  ;;  %v19479_v17 = vld [vmem:[#allocation11_spill] sm:$0xff] }
 0x2a8   : > { %4355 = vmatmul.mubr.f32.gmra.mxu0 %v14516_v1  ;;  %4144 = vmatprep.mubr.f32.mxu1 %v14636_v22  ;;  %v3043_v1 = vld [vmem:[#allocation3 + $0xc1] sm:$0xff]  ;;  %v3048_v22 = vld [vmem:[#allocation3 + $0xf9] sm:$0xff] }
 0x2a9   : > { %12558 = vmatpush1.msra.mxu1 %v14482_v63  ;;  %4359 = vmatprep.mubr.f32.mxu0 %v3035_v56  ;;  %v3038_v63 = vld [vmem:[#allocation3 + $0x81] sm:$0xff] }
 0x2aa   : > { %12527 = vmatprep.subr.mxu1 %v15025_v60 }
 0x2ab   : > { %4145 = vmatmul.mubr.f32.gmra.mxu1 %v3035_v56 }
 0x2ac   : > { %4360 = vmatmul.mubr.f32.gmra.mxu0 %v14550_v16  ;;  %4149 = vmatprep.mubr.f32.mxu1 %v14665_v24  ;;  %v3046_v16 = vld [vmem:[#allocation3 + $0xe1] sm:$0xff] }
 0x2ad   : > { %12559 = vmatpush1.msra.mxu1 %v14501_v8  ;;  %4364 = vmatprep.mubr.f32.mxu0 %v3036_v7  ;;  %v3040_v8 = vld [vmem:[#allocation3 + $0x99] sm:$0xff]  ;;  %v19472_v24 = vld [vmem:[#allocation20_spill] sm:$0xff] }
 0x2ae   : > { %12528 = vmatprep.subr.mxu1 %v15025_v60 }
 0x2af   : > { %4150 = vmatmul.mubr.f32.gmra.mxu1 %v3036_v7 }
 0x2b0   : > { %4365 = vmatmul.mubr.f32.gmra.mxu0 %v14579_v49  ;;  %4154 = vmatprep.mubr.f32.mxu1 %v14701_v5  ;;  %v3047_v49 = vld [vmem:[#allocation3 + $0xf1] sm:$0xff]  ;;  %v19473_v5 = vld [vmem:[#allocation7_spill] sm:$0xff] }
 0x2b1   : > { %12560 = vmatpush1.msra.mxu1 %v14521_v58  ;;  %4369 = vmatprep.mubr.f32.mxu0 %v3037_v34  ;;  %v3044_v58 = vld [vmem:[#allocation3 + $0xc9] sm:$0xff] }
 0x2b2   : > { %12529 = vmatprep.subr.mxu1 %v15025_v60 }
 0x2b3   : > { %4155 = vmatmul.mubr.f32.gmra.mxu1 %v3037_v34 }
 0x2b4   : > { %4370 = vmatmul.mubr.f32.gmra.mxu0 %v14613_v13  ;;  %4159 = vmatprep.mubr.f32.mxu1 %v14731_v57  ;;  %v19471_v13 = vld [vmem:[#allocation10_spill] sm:$0xff] }
 0x2b5   : > { %12561 = vmatpush1.msra.mxu1 %v14545_v52  ;;  %4374 = vmatprep.mubr.f32.mxu0 %v3038_v63  ;;  %v19467_v52 = vld [vmem:[#allocation15_spill] sm:$0xff] }
 0x2b6   : > { %12530 = vmatprep.subr.mxu1 %v15025_v60 }
 0x2b7   : > { %4160 = vmatmul.mubr.f32.gmra.mxu1 %v3038_v63 }
 0x2b8   : > { %4375 = vmatmul.mubr.f32.gmra.mxu0 %v14642_v29  ;;  %4164 = vmatprep.mubr.f32.mxu1 %v14759_v3  ;;  %v3041_v29 = vld [vmem:[#allocation3 + $0xa9] sm:$0xff] }
 0x2b9   : > { %12562 = vmatpush1.msra.mxu1 %v14564_v33  ;;  %4379 = vmatprep.mubr.f32.mxu0 %v3039_v61  ;;  %v19468_v33 = vld [vmem:[#allocation5_spill] sm:$0xff]  ;;  %v19475_v3 = vld [vmem:[#allocation8_spill] sm:$0xff] }
 0x2ba   : > { %12531 = vmatprep.subr.mxu1 %v15025_v60 }
 0x2bb   : > { %4165 = vmatmul.mubr.f32.gmra.mxu1 %v3039_v61 }
 0x2bc   : > { %4380 = vmatmul.mubr.f32.gmra.mxu0 %v14676_v9  ;;  %4169 = vmatprep.mubr.f32.mxu1 %v14776_v20 }
 0x2bd   : > { %12563 = vmatpush1.msra.mxu1 %v14584_v32  ;;  %4384 = vmatprep.mubr.f32.mxu0 %v3040_v8  ;;  %v19470_v32 = vld [vmem:[#allocation6_spill] sm:$0xff] }
 0x2be   : > { %12532 = vmatprep.subr.mxu1 %v15025_v60 }
 0x2bf   : > { %4170 = vmatmul.mubr.f32.gmra.mxu1 %v3040_v8 }
 0x2c0   : > { %4385 = vmatmul.mubr.f32.gmra.mxu0 %v14707_v51  ;;  %4174 = vmatprep.mubr.f32.mxu1 %v14800_v25  ;;  %v19474_v51 = vld [vmem:[#allocation13_spill] sm:$0xff] }
 0x2c1   : > { %12564 = vmatpush1.msra.mxu1 %v14608_v37  ;;  %4389 = vmatprep.mubr.f32.mxu0 %v3041_v29  ;;  %v3667_v37 = vadd.f32 %v15096_v39, %v19471_v13 }
 0x2c2   : > { %12533 = vmatprep.subr.mxu1 %v15025_v60 }
 0x2c3   : > { %4175 = vmatmul.mubr.f32.gmra.mxu1 %v3041_v29  ;;  %v19480_v29 = vld [vmem:[#allocation12_spill] sm:$0xff] }
 0x2c4   : > { %4390 = vmatmul.mubr.f32.gmra.mxu0 %v14742_v27  ;;  %4179 = vmatprep.mubr.f32.mxu1 %v14819_v53  ;;  %v3672_v27 = vadd.f32 %v15096_v39, %v19474_v51  ;;  %v19476_v53 = vld [vmem:[#allocation24_spill] sm:$0xff] }
 0x2c5   : > { %12565 = vmatpush1.msra.mxu1 %v14627_v12  ;;  %4394 = vmatprep.mubr.f32.mxu0 %v3042_v6 }
 0x2c6   : > { %12534 = vmatprep.subr.mxu1 %v15025_v60 }
 0x2c7   : > { %4180 = vmatmul.mubr.f32.gmra.mxu1 %v3042_v6 }
 0x2c8   : > { %4395 = vmatmul.mubr.f32.gmra.mxu0 %v14765_v30  ;;  %4184 = vmatprep.mubr.f32.mxu1 %v14841_v10 }
 0x2c9   : > { %12566 = vmatpush1.msra.mxu1 %v14647_v28  ;;  %4399 = vmatprep.mubr.f32.mxu0 %v3043_v1 }
 0x2ca   : > { %12535 = vmatprep.subr.mxu1 %v15025_v60 }
 0x2cb   : > { %4185 = vmatmul.mubr.f32.gmra.mxu1 %v3043_v1 }
 0x2cc   : > { %4400 = vmatmul.mubr.f32.gmra.mxu0 %v14787_v36  ;;  %4189 = vmatprep.mubr.f32.mxu1 %v14858_v59 }
 0x2cd   : > { %12567 = vmatpush1.msra.mxu1 %v14671_v47  ;;  %4404 = vmatprep.mubr.f32.mxu0 %v3044_v58 }
 0x2ce   : > { %12536 = vmatprep.subr.mxu1 %v15025_v60 }
 0x2cf   : > { %4190 = vmatmul.mubr.f32.gmra.mxu1 %v3044_v58 }
 0x2d0   : > { %4405 = vmatmul.mubr.f32.gmra.mxu0 %v14806_v43  ;;  %4194 = vmatprep.mubr.f32.mxu1 %v14880_v42  ;;  %v3049_v43 = vld [vmem:[#allocation3 + $0x109] sm:$0xff] }
 0x2d1   : > { %12568 = vmatpush1.msra.mxu1 %v14690_v15  ;;  %4409 = vmatprep.mubr.f32.mxu0 %v3045_v23 }
 0x2d2   : > { %12537 = vmatprep.subr.mxu1 %v15025_v60 }
 0x2d3   : > { %4195 = vmatmul.mubr.f32.gmra.mxu1 %v3045_v23 }
 0x2d4   : > { %4410 = vmatmul.mubr.f32.gmra.mxu0 %v19467_v52  ;;  %4199 = vmatprep.mubr.f32.mxu1 %v14897_v46 }
 0x2d5   : > { %12569 = vmatpush2.msra.mxu1 %v19468_v33  ;;  %4414 = vmatprep.mubr.f32.mxu0 %v3046_v16  ;;  %v19482_v33 = vld [vmem:[#allocation14_spill] sm:$0xff] }
 0x2d6   : > { %12538 = vmatprep.subr.mxu1 %v15025_v60 }
 0x2d7   : > { %4200 = vmatmul.mubr.f32.gmra.mxu1 %v3046_v16  ;;  %v19481_v16 = vld [vmem:[#allocation28_spill] sm:$0xff] }
 0x2d8   : > { %4415 = vmatmul.mubr.f32.gmra.mxu0 %v19469_v54  ;;  %4204 = vmatprep.mubr.f32.mxu1 %v14919_v19  ;;  %v3050_v19 = vld [vmem:[#allocation3 + $0x111] sm:$0xff] }
 0x2d9   : > { %12570 = vmatpush2.msra.mxu1 %v19470_v32  ;;  %4419 = vmatprep.mubr.f32.mxu0 %v3047_v49 }
 0x2da   : > { %12539 = vmatprep.subr.mxu1 %v15025_v60 }
 0x2db   : > { %v3676_v28 = vpop.f32.mrf.mxu1  ;;  %4205 = vmatmul.mubr.f32.gmra.mxu1 %v3047_v49 }
 0x2dc   : > { %v3891_v12 = vpop.f32.mrf.mxu0  ;;  %4420 = vmatmul.mubr.f32.gmra.mxu0 %v19472_v24  ;;  %4209 = vmatprep.mubr.f32.mxu1 %v14936_v11  ;;  %v3677_v36 = vadd.f32 %v15096_v39, %v3676_v28  ;;  %v19477_v11 = vld [vmem:[#allocation9_spill] sm:$0xff]  ;;  %v19484_v24 = vld [vmem:[#allocation16_spill] sm:$0xff] }
 0x2dd   : > { %v15106_v9 = vadd.f32 %v3891_v12, %v3667_v37  ;;  %12571 = vmatpush2.msra.mxu1 %v19473_v5  ;;  %4424 = vmatprep.mubr.f32.mxu0 %v3048_v22  ;;  %v3678_v47 = vpop.f32.mrf.mxu1  ;;  %v19483_v28 = vld [vmem:[#allocation29_spill] sm:$0xff] }
 0x2de   : > { %v3893_v15 = vpop.f32.mrf.mxu0  ;;  %12540 = vmatprep.subr.mxu1 %v15025_v60 }
 0x2df   : > { %v3681_v57 = vpop.f32.mrf.mxu1  ;;  %4210 = vmatmul.mubr.f32.gmra.mxu1 %v3048_v22 }
 0x2e0   : > { %v3896_v30 = vpop.f32.mrf.mxu0  ;;  %4425 = vmatmul.mubr.f32.gmra.mxu0 %v14886_v62  ;;  %4214 = vmatprep.mubr.f32.mxu1 %v14947_v26  ;;  %v3682_v2 = vadd.f32 %v15096_v39, %v3681_v57  ;;  %v19486_v57 = vld [vmem:[#allocation34_spill] sm:$0xff] }
 0x2e1   : > { %v15114_v46 = vadd.f32 %v3896_v30, %v3672_v27  ;;  %12572 = vmatpush2.msra.mxu1 %v19475_v3  ;;  %4429 = vmatprep.mubr.f32.mxu0 %v3049_v43  ;;  %v3683_v20 = vpop.f32.mrf.mxu1  ;;  %v19485_v27 = vld [vmem:[#allocation30_spill] sm:$0xff] }
 0x2e2   : > { %v3898_v42 = vpop.f32.mrf.mxu0  ;;  %12541 = vmatprep.subr.mxu1 %v15025_v60  ;;  %v19487_v30 = vld [vmem:[#allocation18_spill] sm:$0xff] }
 0x2e3   : > { %v3686_v59 = vpop.f32.mrf.mxu1  ;;  %4215 = vmatmul.mubr.f32.gmra.mxu1 %v3049_v43  ;;  %v15159_v20 = vld [vmem:[#allocation3 + $0x151] sm:$0xff] }
 0x2e4   : > { %v3901_v25 = vpop.f32.mrf.mxu0  ;;  %4430 = vmatmul.mubr.f32.gmra.mxu0 %v19476_v53  ;;  %4219 = vmatprep.mubr.f32.mxu1 %v14956_v50  ;;  %v3051_v50 = vld [vmem:[#allocation3 + $0x121] sm:$0xff]  ;;  %v3687_v34 = vadd.f32 %v15096_v39, %v3686_v59 }
 0x2e5   : > { %v15121_v10 = vadd.f32 %v3901_v25, %v3677_v36  ;;  %12573 = vmatpush2.msra.mxu1 %v19477_v11  ;;  %4434 = vmatprep.mubr.f32.mxu0 %v3050_v19  ;;  %v3688_v26 = vpop.f32.mrf.mxu1  ;;  %v19488_v25 = vld [vmem:[#allocation19_spill] sm:$0xff] }
 0x2e6   : > { %v3903_v62 = vpop.f32.mrf.mxu0  ;;  %12542 = vmatprep.subr.mxu1 %v15025_v60  ;;  %v2865_v26 = vld [vmem:[#allocation3 + $0x159] sm:$0xff] }
 0x2e7   : > { %v3691_v31 = vpop.f32.mrf.mxu1  ;;  %4220 = vmatmul.mubr.f32.gmra.mxu1 %v3050_v19  ;;  %v19489_v62 = vld [vmem:[#allocation21_spill] sm:$0xff] }
 0x2e8   : > { %v3906_v21 = vpop.f32.mrf.mxu0  ;;  %4435 = vmatmul.mubr.f32.gmra.mxu0 %v19478_v40  ;;  %4224 = vmatprep.mubr.f32.mxu1 %v14965_v4  ;;  %v3052_v4 = vld [vmem:[#allocation3 + $0x129] sm:$0xff]  ;;  %v3692_v58 = vadd.f32 %v15096_v39, %v3691_v31 }
 0x2e9   : > { %v15128_v38 = vadd.f32 %v3906_v21, %v3682_v2  ;;  %12574 = vmatpush2.msra.mxu1 %v19479_v17  ;;  %4439 = vmatprep.mubr.f32.mxu0 %v3051_v50  ;;  %v3693_v56 = vpop.f32.mrf.mxu1 }
 0x2ea   : > { %v3908_v7 = vpop.f32.mrf.mxu0  ;;  %12543 = vmatprep.subr.mxu1 %v15025_v60  ;;  %v15177_v56 = vld [vmem:[#allocation3 + $0x169] sm:$0xff] }
 0x2eb   : > { %v3696_v63 = vpop.f32.mrf.mxu1  ;;  %4225 = vmatmul.mubr.f32.gmra.mxu1 %v3051_v50  ;;  %v19491_v7 = vld [vmem:[#allocation23_spill] sm:$0xff] }
 0x2ec   : > { %v3911_v61 = vpop.f32.mrf.mxu0  ;;  %4440 = vmatmul.mubr.f32.gmra.mxu0 %v14942_v44  ;;  %4229 = vmatprep.mubr.f32.mxu1 %v14974_v41  ;;  %v3053_v44 = vld [vmem:[#allocation3 + $0x139] sm:$0xff]  ;;  %v3697_v32 = vadd.f32 %v15096_v39, %v3696_v63 }
 0x2ed   : > { %v15135_v8 = vadd.f32 %v3911_v61, %v3687_v34  ;;  %12575 = vmatpush2.msra.mxu1 %v19480_v29  ;;  %4444 = vmatprep.mubr.f32.mxu0 %v3052_v4  ;;  %v3698_v6 = vpop.f32.mrf.mxu1  ;;  %v19492_v61 = vld [vmem:[#allocation25_spill] sm:$0xff] }
 0x2ee   : > { %v3913_v1 = vpop.f32.mrf.mxu0  ;;  %12544 = vmatprep.subr.mxu1 %v15025_v60 }
 0x2ef   : > { %v3701_v23 = vpop.f32.mrf.mxu1  ;;  %4230 = vmatmul.mubr.f32.gmra.mxu1 %v3052_v4  ;;  %v11581_v4 = vld [vmem:[%s19343_s1 + $0x8f8] sm:$0xff] }
 0x2f0   : > { %v3916_v52 = vpop.f32.mrf.mxu0  ;;  %4445 = vmatmul.mubr.f32.gmra.mxu0 %v19481_v16  ;;  %4234 = vmatprep.mubr.f32.mxu1 %v14983_v45  ;;  %v3054_v45 = vld [vmem:[#allocation3 + $0x141] sm:$0xff]  ;;  %v3702_v47 = vadd.f32 %v15096_v39, %v3701_v23 }
 0x2f1   : > { %v15142_v41 = vadd.f32 %v3916_v52, %v3692_v58  ;;  %12576 = vmatpush2.msra.mxu1 %v19482_v33  ;;  %4449 = vmatprep.mubr.f32.mxu0 %v3053_v44  ;;  %v3703_v54 = vpop.f32.mrf.mxu1  ;;  %v15191_v58 = vld [vmem:[#allocation3 + $0x171] sm:$0xff]  ;;  %v19493_v23 = vld [vmem:[#allocation27_spill] sm:$0xff] }
 0x2f2   : > { %v3918_v49 = vpop.f32.mrf.mxu0  ;;  %12545 = vmatprep.subr.mxu1 %v15025_v60 }
 0x2f3   : > { %v3706_v13 = vpop.f32.mrf.mxu1  ;;  %4235 = vmatmul.mubr.f32.gmra.mxu1 %v3053_v44 }
 0x2f4   : > { %v3921_v37 = vpop.f32.mrf.mxu0  ;;  %4450 = vmatmul.mubr.f32.gmra.mxu0 %v19483_v28  ;;  %4239 = vmatprep.mubr.f32.mxu1 %v14992_v35  ;;  %v3707_v42 = vadd.f32 %v15096_v39, %v3706_v13  ;;  %v15205_v28 = vld [vmem:[#allocation3 + $0x18a] sm:$0xff] }
 0x2f5   : > { %v15149_v12 = vadd.f32 %v3921_v37, %v3697_v32  ;;  %12577 = vmatpush2.msra.mxu1 %v19484_v24  ;;  %4454 = vmatprep.mubr.f32.mxu0 %v3054_v45  ;;  %v3708_v22 = vpop.f32.mrf.mxu1  ;;  %v15201_v32 = vld [vmem:[#allocation3 + $0x181] sm:$0xff] }
 0x2f6   : > { %v3923_v5 = vpop.f32.mrf.mxu0  ;;  %12546 = vmatprep.subr.mxu1 %v15025_v60 }
 0x2f7   : > { %v3711_v15 = vpop.f32.mrf.mxu1  ;;  %4240 = vmatmul.mubr.f32.gmra.mxu1 %v3054_v45 }
 0x2f8   : > { %v3926_v51 = vpop.f32.mrf.mxu0  ;;  %4455 = vmatmul.mubr.f32.gmra.mxu0 %v19485_v27  ;;  %4244 = vmatprep.mubr.f32.mxu1 %v19486_v57  ;;  %v3712_v2 = vadd.f32 %v15096_v39, %v3711_v15 }
 0x2f9   : > { %v15156_v35 = vadd.f32 %v3926_v51, %v3702_v47  ;;  %12578 = vmatpush2.msra.mxu1 %v19487_v30  ;;  %v3713_v43 = vpop.f32.mrf.mxu1  ;;  %v15210_v47 = vld [vmem:[#allocation3 + $0x189] sm:$0xff] }
 0x2fa   : > { %v3928_v3 = vpop.f32.mrf.mxu0  ;;  %12547 = vmatprep.subr.mxu1 %v15025_v60 }
 0x2fb   : > { %v3716_v36 = vpop.f32.mrf.mxu1  ;;  %4245 = vmatmul.mubr.f32.gmra.mxu1 %v15159_v20  ;;  %v11580_v3 = vld [vmem:[%s19343_s1 + $0x8f0] sm:$0xff] }
 0x2fc   : > { %v3931_v59 = vpop.f32.mrf.mxu0  ;;  %4249 = vmatprep.mubr.f32.mxu1 %v15010_v48  ;;  %12579 = vmatpush2.msra.mxu1 %v19488_v25  ;;  %v19490_v48 = vld [vmem:[#allocation22_spill] sm:$0xff]  ;;  %v3717_v34 = vadd.f32 %v15096_v39, %v3716_v36 }
 0x2fd   : > { %v15166_v53 = vadd.f32 %v3931_v59, %v3707_v42  ;;  %v3718_v19 = vpop.f32.mrf.mxu1  ;;  %12548 = vmatprep.subr.mxu1 %v15025_v60  ;;  %v19494_v59 = vld [vmem:[#allocation31_spill] sm:$0xff] }
 0x2fe   : > { %v3933_v11 = vpop.f32.mrf.mxu0  ;;  %12580 = vmatpush2.msra.mxu1 %v19489_v62 }
 0x2ff   : > { %v3721_v31 = vpop.f32.mrf.mxu1  ;;  %4250 = vmatmul.mubr.f32.gmra.mxu1 %v2865_v26  ;;  %12549 = vmatprep.subr.mxu1 %v15025_v60 }
 0x300   : > { %v3936_v21 = vpop.f32.mrf.mxu0  ;;  %4254 = vmatprep.mubr.f32.mxu1 %v15017_v14  ;;  %12581 = vmatpush2.msra.mxu1 %v19490_v48  ;;  %v3722_v52 = vadd.f32 %v15096_v39, %v3721_v31  ;;  %v19495_v48 = vld [vmem:[#allocation32_spill] sm:$0xff] }
 0x301   : > { %v15174_v40 = vadd.f32 %v3936_v21, %v3712_v2  ;;  %v3723_v50 = vpop.f32.mrf.mxu1  ;;  %12550 = vmatprep.subr.mxu1 %v15025_v60  ;;  %v11578_v2 = vld [vmem:[%s19343_s1 + $0x8e0] sm:$0xff] }
 0x302   : > { %v3938_v17 = vpop.f32.mrf.mxu0  ;;  %12582 = vmatpush2.msra.mxu1 %v19491_v7  ;;  %v11577_v50 = vld [vmem:[%s19343_s1 + $0x8d8] sm:$0xff] }
 0x303   : > { %v3726_v63 = vpop.f32.mrf.mxu1  ;;  %4255 = vmatmul.mubr.f32.gmra.mxu1 %v15177_v56  ;;  %12551 = vmatprep.subr.mxu1 %v15025_v60 }
 0x304   : > { %v3941_v14 = vpop.f32.mrf.mxu0  ;;  %4259 = vmatprep.mubr.f32.mxu1 %v15028_v18  ;;  %12583 = vmatpush2.msra.mxu1 %v19492_v61  ;;  %v15196_v18 = vld [vmem:[#allocation3 + $0x182] sm:$0xff]  ;;  %v3727_v13 = vadd.f32 %v15096_v39, %v3726_v63 }
 0x305   : > { %v15188_v29 = vadd.f32 %v3941_v14, %v3717_v34  ;;  %v3728_v6 = vpop.f32.mrf.mxu1  ;;  %12552 = vmatprep.subr.mxu1 %v15025_v60  ;;  %v11576_v63 = vld [vmem:[%s19343_s1 + $0x8d0] sm:$0xff] }
 0x306   : > { %v3943_v1 = vpop.f32.mrf.mxu0  ;;  %12584 = vmatpush2.msra.mxu1 %v19493_v23  ;;  %v11575_v6 = vld [vmem:[%s19343_s1 + $0x8c8] sm:$0xff] }
 0x307   : > { %v3731_v16 = vpop.f32.mrf.mxu1  ;;  %4260 = vmatmul.mubr.f32.gmra.mxu1 %v15191_v58  ;;  %12201 = vmatprep.subr.mxu1 %v11581_v4 }
 0x308   : > { %v3946_v44 = vpop.f32.mrf.mxu0  ;;  %4264 = vmatprep.mubr.f32.mxu1 %v15196_v18  ;;  %v3732_v15 = vadd.f32 %v15096_v39, %v3731_v16 }
 0x309   : > { %v15199_v33 = vadd.f32 %v3946_v44, %v3722_v52  ;;  %v3733_v54 = vpop.f32.mrf.mxu1  ;;  %v11599_v52 = vld [vmem:[%s19343_s1 + $0x978] sm:$0xff]  ;;  %v11574_v44 = vld [vmem:[%s19343_s1 + $0x8c0] sm:$0xff] }
 0x30a   : > { %v3948_v49 = vpop.f32.mrf.mxu0  ;;  %5807 = vmatpush1.msra.mxu0 %v11599_v52 }
 0x30b   : > { %v3736_v37 = vpop.f32.mrf.mxu1  ;;  %4265 = vmatmul.mubr.f32.gmra.mxu1 %v15201_v32  ;;  %v19497_v49 = vld [vmem:[#allocation35_spill] sm:$0xff]  ;;  %5808 = vmatprep.subr.mxu0 %v15025_v60 }
 0x30c   : > { %v3951_v45 = vpop.f32.mrf.mxu0  ;;  %4269 = vmatprep.mubr.f32.mxu1 %v15205_v28  ;;  %v3737_v42 = vadd.f32 %v15096_v39, %v3736_v37  ;;  %v11573_v37 = vld [vmem:[%s19343_s1 + $0x8b8] sm:$0xff] }
 0x30d   : > { %v15208_v24 = vadd.f32 %v3951_v45, %v3727_v13  ;;  %v3738_v22 = vpop.f32.mrf.mxu1 }
 0x30e   : > { %v3953_v5 = vpop.f32.mrf.mxu0 }
 0x30f   : > { %v3741_v51 = vpop.f32.mrf.mxu1  ;;  %4270 = vmatmul.mubr.f32.gmra.mxu1 %v15210_v47  ;;  %v11598_v5 = vld [vmem:[%s19343_s1 + $0x970] sm:$0xff] }
 0x310   : > { %v3956_v27 = vpop.f32.mrf.mxu0  ;;  %4459 = vmatprep.mubr.f32.mxu1 %v15159_v20  ;;  %v11579_v20 = vld [vmem:[%s19343_s1 + $0x8e8] sm:$0xff]  ;;  %v3742_v31 = vadd.f32 %v15096_v39, %v3741_v51  ;;  %5809 = vmatpush1.msra.mxu0 %v11598_v5 }
 0x311   : > { %v15215_v57 = vadd.f32 %v3956_v27, %v3732_v15  ;;  %v3743_v30 = vpop.f32.mrf.mxu1  ;;  %5810 = vmatprep.subr.mxu0 %v15025_v60  ;;  %v3096_v5 = vld [vmem:[#allocation3 + $0x3a] sm:$0xff] }
 0x312   : > { %v3958_v43 = vpop.f32.mrf.mxu0  ;;  %v11597_v30 = vld [vmem:[%s19343_s1 + $0x968] sm:$0xff] }
 0x313   : > { %v3746_v36 = vpop.f32.mrf.mxu1  ;;  %4460 = vmatmul.mubr.f32.vlgmr.msra.gmra.mxu1 %v19494_v59  ;;  %v3061_v59 = vld [vmem:[#allocation3 + $0x199] sm:$0xff]  ;;  %5811 = vmatpush1.msra.mxu0 %v11597_v30 }
 0x314   : > { %v3961_v25 = vpop.f32.mrf.mxu0  ;;  %4464 = vmatprep.mubr.f32.mxu1 %v2865_v26  ;;  %12202 = vmatpush3.msra.mxu1 %v11581_v4  ;;  %v3747_v14 = vadd.f32 %v15096_v39, %v3746_v36  ;;  %v19496_v4 = vld [vmem:[#allocation33_spill] sm:$0xff] }
 0x315   : > { %v15225_v19 = vadd.f32 %v3961_v25, %v3737_v42  ;;  %v3748_v11 = vpop.f32.mrf.mxu1  ;;  %12203 = vmatprep.subr.mxu1 %v11580_v3  ;;  %v11570_v25 = vld [vmem:[%s19343_s1 + $0x8a0] sm:$0xff]  ;;  %5812 = vmatprep.subr.mxu0 %v15025_v60 }
 0x316   : > { %v3963_v62 = vpop.f32.mrf.mxu0  ;;  %12204 = vmatpush3.msra.mxu1 %v11580_v3  ;;  %v11571_v3 = vld [vmem:[%s19343_s1 + $0x8a8] sm:$0xff]  ;;  %v11596_v11 = vld [vmem:[%s19343_s1 + $0x960] sm:$0xff] }
 0x317   : > { %v3751_v21 = vpop.f32.mrf.mxu1  ;;  %4465 = vmatmul.mubr.f32.gmra.mxu1 %v19495_v48  ;;  %12205 = vmatprep.subr.mxu1 %v11579_v20 }
 0x318   : > { %v3966_v26 = vpop.f32.mrf.mxu0  ;;  %4469 = vmatprep.mubr.f32.mxu1 %v15177_v56  ;;  %12206 = vmatpush3.msra.mxu1 %v11579_v20 }
 0x319   : > { %v15236_v17 = vadd.f32 %v3966_v26, %v3742_v31  ;;  %v3753_v7 = vpop.f32.mrf.mxu1  ;;  %12207 = vmatprep.subr.mxu1 %v11578_v2  ;;  %v11569_v31 = vld [vmem:[%s19343_s1 + $0x898] sm:$0xff]  ;;  %5813 = vmatpush1.msra.mxu0 %v11596_v11 }
 0x31a   : > { %v3968_v34 = vpop.f32.mrf.mxu0  ;;  %12208 = vmatpush3.msra.mxu1 %v11578_v2  ;;  %v2997_v2 = vld [vmem:[#allocation3 + $0x198] sm:$0xff]  ;;  %v3062_v26 = vld [vmem:[#allocation3 + $0x1a1] sm:$0xff]  ;;  %5814 = vmatprep.subr.mxu0 %v15025_v60 }
 0x31b   : > { %v3756_v61 = vpop.f32.mrf.mxu1  ;;  %4470 = vmatmul.mubr.f32.gmra.mxu1 %v19496_v4  ;;  %12209 = vmatprep.subr.mxu1 %v11577_v50 }
 0x31c   : > { %v3971_v56 = vpop.f32.mrf.mxu0  ;;  %4474 = vmatprep.mubr.f32.mxu1 %v15191_v58  ;;  %12210 = vmatpush3.msra.mxu1 %v11577_v50  ;;  %v3752_v58 = vadd.f32 %v15096_v39, %v3751_v21  ;;  %v3757_v51 = vadd.f32 %v15096_v39, %v3756_v61  ;;  %v11568_v50 = vld [vmem:[%s19343_s1 + $0x890] sm:$0xff]  ;;  %v11567_v61 = vld [vmem:[%s19343_s1 + $0x888] sm:$0xff] }
 0x31d   : > { %v15247_v1 = vadd.f32 %v3971_v56, %v3747_v14  ;;  %v3758_v23 = vpop.f32.mrf.mxu1  ;;  %12211 = vmatprep.subr.mxu1 %v11576_v63 }
 0x31e   : > { %v3973_v16 = vpop.f32.mrf.mxu0  ;;  %12212 = vmatpush3.msra.mxu1 %v11576_v63  ;;  %v11595_v63 = vld [vmem:[%s19343_s1 + $0x958] sm:$0xff]  ;;  %v11566_v23 = vld [vmem:[%s19343_s1 + $0x880] sm:$0xff] }
 0x31f   : > { %v3761_v54 = vpop.f32.mrf.mxu1  ;;  %4475 = vmatmul.mubr.f32.gmra.mxu1 %v19497_v49  ;;  %12213 = vmatprep.subr.mxu1 %v11575_v6 }
 0x320   : > { %v3976_v13 = vpop.f32.mrf.mxu0  ;;  %4479 = vmatprep.mubr.f32.mxu1 %v15201_v32  ;;  %12214 = vmatpush3.msra.mxu1 %v11575_v6  ;;  %v11572_v32 = vld [vmem:[%s19343_s1 + $0x8b0] sm:$0xff] }
 0x321   : > { %v15261_v45 = vadd.f32 %v3976_v13, %v3752_v58  ;;  %v3763_v22 = vpop.f32.mrf.mxu1  ;;  %12215 = vmatprep.subr.mxu1 %v11574_v44  ;;  %5815 = vmatpush1.msra.mxu0 %v11595_v63  ;;  %v11594_v58 = vld [vmem:[%s19343_s1 + $0x950] sm:$0xff] }
 0x322   : > { %v3978_v15 = vpop.f32.mrf.mxu0  ;;  %12216 = vmatpush3.msra.mxu1 %v11574_v44  ;;  %v3095_v44 = vld [vmem:[#allocation3 + $0x32] sm:$0xff]  ;;  %5816 = vmatprep.subr.mxu0 %v15025_v60 }
 0x323   : > { %v3766_v27 = vpop.f32.mrf.mxu1  ;;  %4480 = vmatmul.mubr.f32.gmra.mxu1 %v15013_v0  ;;  %12217 = vmatprep.subr.mxu1 %v11573_v37 }
 0x324   : > { %v3981_v43 = vpop.f32.mrf.mxu0  ;;  %4484 = vmatprep.mubr.f32.mxu1 %v15210_v47  ;;  %12218 = vmatpush3.msra.mxu1 %v11573_v37  ;;  %v3762_v47 = vadd.f32 %v15096_v39, %v3761_v54  ;;  %v3767_v7 = vadd.f32 %v15096_v39, %v3766_v27  ;;  %v11593_v37 = vld [vmem:[%s19343_s1 + $0x948] sm:$0xff]  ;;  %v11592_v27 = vld [vmem:[%s19343_s1 + $0x940] sm:$0xff] }
 0x325   : > { %v15279_v42 = vadd.f32 %v3981_v43, %v3757_v51  ;;  %v3768_v36 = vpop.f32.mrf.mxu1  ;;  %12219 = vmatprep.subr.mxu1 %v11572_v32  ;;  %5817 = vmatpush1.msra.mxu0 %v11594_v58  ;;  %v3097_v51 = vld [vmem:[#allocation3 + $0x4a] sm:$0xff] }
 0x326   : > { %v3983_v0 = vpop.f32.mrf.mxu0  ;;  %12220 = vmatpush3.msra.mxu1 %v11572_v32  ;;  %5818 = vmatprep.subr.mxu0 %v15025_v60  ;;  %v11591_v36 = vld [vmem:[%s19343_s1 + $0x938] sm:$0xff] }
 0x327   : > { %v3771_v20 = vpop.f32.mrf.mxu1  ;;  %4485 = vmatmul.mubr.f32.gmra.mxu1 %v15020_v55  ;;  %12221 = vmatprep.subr.mxu1 %v11571_v3  ;;  %v3098_v0 = vld [vmem:[#allocation3 + $0x52] sm:$0xff] }
 0x328   : > { %v3986_v62 = vpop.f32.mrf.mxu0  ;;  %12222 = vmatpush3.msra.mxu1 %v11571_v3  ;;  %4489 = vmatprep.mubr.f32.mxu1 %v3061_v59  ;;  %v3772_v52 = vadd.f32 %v15096_v39, %v3771_v20  ;;  %v3099_v20 = vld [vmem:[#allocation3 + $0x62] sm:$0xff] }
 0x329   : > { %v15293_v21 = vadd.f32 %v3986_v62, %v3762_v47  ;;  %v3773_v48 = vpop.f32.mrf.mxu1  ;;  %12223 = vmatprep.subr.mxu1 %v11570_v25  ;;  %5819 = vmatpush1.msra.mxu0 %v11593_v37 }
 0x32a   : > { %v3988_v55 = vpop.f32.mrf.mxu0  ;;  %12224 = vmatpush3.msra.mxu1 %v11570_v25  ;;  %5820 = vmatprep.subr.mxu0 %v15025_v60 }
 0x32b   : > { %v3776_v34 = vpop.f32.mrf.mxu1  ;;  %4490 = vmatmul.mubr.f32.gmra.mxu1 %v2997_v2  ;;  %12225 = vmatprep.subr.mxu1 %v11569_v31  ;;  %v11589_v55 = vld [vmem:[%s19343_s1 + $0x928] sm:$0xff] }
 0x32c   : > { %v3991_v14 = vpop.f32.mrf.mxu0  ;;  %12226 = vmatpush3.msra.mxu1 %v11569_v31  ;;  %4494 = vmatprep.mubr.f32.mxu1 %v3062_v26  ;;  %v3777_v15 = vadd.f32 %v15096_v39, %v3776_v34  ;;  %v11590_v31 = vld [vmem:[%s19343_s1 + $0x930] sm:$0xff]  ;;  %v3100_v26 = vld [vmem:[#allocation3 + $0x6a] sm:$0xff] }
 0x32d   : > { %v15306_v4 = vadd.f32 %v3991_v14, %v3767_v7  ;;  %v3778_v56 = vpop.f32.mrf.mxu1  ;;  %12227 = vmatprep.subr.mxu1 %v11568_v50  ;;  %5821 = vmatpush1.msra.mxu0 %v11592_v27  ;;  %v3101_v34 = vld [vmem:[#allocation3 + $0x7a] sm:$0xff] }
 0x32e   : > { %v3993_v6 = vpop.f32.mrf.mxu0  ;;  %12228 = vmatpush3.msra.mxu1 %v11568_v50  ;;  %5822 = vmatprep.subr.mxu0 %v15025_v60  ;;  %v11588_v56 = vld [vmem:[%s19343_s1 + $0x920] sm:$0xff] }
 0x32f   : > { %v3781_v16 = vpop.f32.mrf.mxu1  ;;  %4495 = vmatmul.mubr.f32.gmra.mxu1 %v15025_v60  ;;  %12229 = vmatprep.subr.mxu1 %v11567_v61 }
 0x330   : > { %v3996_v54 = vpop.f32.mrf.mxu0  ;;  %12230 = vmatpush3.msra.mxu1 %v11567_v61  ;;  %12233 = vmatprep.mubr.f32.mxu1 %v3095_v44  ;;  %v3782_v25 = vadd.f32 %v15096_v39, %v3781_v16  ;;  %v3103_v44 = vld [vmem:[#allocation3 + $0x92] sm:$0xff] }
 0x331   : > { %v15317_v49 = vadd.f32 %v3996_v54, %v3772_v52  ;;  %v3783_v13 = vpop.f32.mrf.mxu1  ;;  %12231 = vmatprep.subr.mxu1 %v11566_v23  ;;  %5823 = vmatpush1.msra.mxu0 %v11591_v36  ;;  %v11587_v54 = vld [vmem:[%s19343_s1 + $0x918] sm:$0xff] }
 0x332   : > { %v3998_v22 = vpop.f32.mrf.mxu0  ;;  %12232 = vmatpush3.msra.mxu1 %v11566_v23  ;;  %5824 = vmatprep.subr.mxu0 %v15025_v60  ;;  %v3102_v23 = vld [vmem:[#allocation3 + $0x82] sm:$0xff] }
 0x333   : > { %v3786_v32 = vpop.f32.mrf.mxu1  ;;  %12234 = vmatmul.mubr.f32.vlgmr.msra.gmra.mxu1 %v3096_v5  ;;  %6031 = vmatprep.subr.mxu1 %v15025_v60  ;;  %v3104_v5 = vld [vmem:[#allocation3 + $0x9a] sm:$0xff] }
 0x334   : > { %v4001_v30 = vpop.f32.mrf.mxu0  ;;  %12236 = vmatprep.mubr.f32.mxu1 %v3097_v51  ;;  %5825 = vmatpush1.msra.mxu0 %v11590_v31  ;;  %v3787_v50 = vadd.f32 %v15096_v39, %v3786_v32  ;;  %v3105_v51 = vld [vmem:[#allocation3 + $0xaa] sm:$0xff]  ;;  %v3107_v31 = vld [vmem:[#allocation3 + $0xc2] sm:$0xff] }
 0x335   : > { %v15328_v43 = vadd.f32 %v4001_v30, %v3777_v15  ;;  %v3788_v3 = vpop.f32.mrf.mxu1  ;;  %5826 = vmatprep.subr.mxu0 %v15025_v60  ;;  %v11586_v30 = vld [vmem:[%s19343_s1 + $0x910] sm:$0xff] }
 0x336   : > { %v4003_v59 = vpop.f32.mrf.mxu0  ;;  %5827 = vmatpush1.msra.mxu0 %v11589_v55  ;;  %v11631_v3 = vld [vmem:[%s19343_s1 + $0xa78] sm:$0xff] }
 0x337   : > { %v3791_v47 = vpop.f32.mrf.mxu1  ;;  %12237 = vmatmul.mubr.f32.gmra.mxu1 %v3098_v0  ;;  %5828 = vmatprep.subr.mxu0 %v15025_v60  ;;  %v11585_v0 = vld [vmem:[%s19343_s1 + $0x908] sm:$0xff] }
 0x338   : > { %v4006_v11 = vpop.f32.mrf.mxu0  ;;  %12239 = vmatprep.mubr.f32.mxu1 %v3099_v20  ;;  %5829 = vmatpush1.msra.mxu0 %v11588_v56  ;;  %v3792_v52 = vadd.f32 %v15096_v39, %v3791_v47  ;;  %v3106_v20 = vld [vmem:[#allocation3 + $0xb2] sm:$0xff] }
 0x339   : > { %v15337_v62 = vadd.f32 %v4006_v11, %v3782_v25  ;;  %v3793_v2 = vpop.f32.mrf.mxu1  ;;  %5830 = vmatprep.subr.mxu0 %v15025_v60  ;;  %6032 = vmatpush1.msra.mxu1 %v11631_v3  ;;  %v11630_v25 = vld [vmem:[%s19343_s1 + $0xa70] sm:$0xff] }
 0x33a   : > { %v4008_v48 = vpop.f32.mrf.mxu0  ;;  %5831 = vmatpush1.msra.mxu0 %v11587_v54  ;;  %6033 = vmatprep.subr.mxu1 %v15025_v60 }
 0x33b   : > { %v3796_v7 = vpop.f32.mrf.mxu1  ;;  %12240 = vmatmul.mubr.f32.gmra.mxu1 %v3100_v26  ;;  %5832 = vmatprep.subr.mxu0 %v15025_v60  ;;  %v11629_v26 = vld [vmem:[%s19343_s1 + $0xa68] sm:$0xff] }
 0x33c   : > { %v4011_v63 = vpop.f32.mrf.mxu0  ;;  %12242 = vmatprep.mubr.f32.mxu1 %v3101_v34  ;;  %v3797_v15 = vadd.f32 %v15096_v39, %v3796_v7  ;;  %5833 = vmatpush1.msra.mxu0 %v11586_v30  ;;  %v15385_v7 = vld [vmem:[#allocation2 + $0x8] sm:$0xff]  ;;  %v11628_v34 = vld [vmem:[%s19343_s1 + $0xa60] sm:$0xff]  ;;  %v11614_v30 = vld [vmem:[%s19343_s1 + $0x9f0] sm:$0xff] }
 0x33d   : > { %v15348_v14 = vadd.f32 %v4011_v63, %v3787_v50  ;;  %v3798_v61 = vpop.f32.mrf.mxu1  ;;  %5834 = vmatprep.subr.mxu0 %v15025_v60  ;;  %6034 = vmatpush1.msra.mxu1 %v11630_v25  ;;  %v11584_v60 = vld [vmem:[%s19343_s1 + $0x900] sm:$0xff]  ;;  %v11613_v25 = vld [vmem:[%s19343_s1 + $0x9e8] sm:$0xff] }
 0x33e   : > { %v4013_v6 = vpop.f32.mrf.mxu0  ;;  %5835 = vmatpush1.msra.mxu0 %v11585_v0  ;;  %6035 = vmatprep.subr.mxu1 %v15385_v7  ;;  %v3108_v61 = vld [vmem:[#allocation3 + $0xca] sm:$0xff]  ;;  %v11625_v0 = vld [vmem:[%s19343_s1 + $0xa48] sm:$0xff] }
 0x33f   : > { %v3801_v16 = vpop.f32.mrf.mxu1  ;;  %12243 = vmatmul.mubr.f32.gmra.mxu1 %v3102_v23  ;;  %5836 = vmatprep.subr.mxu0 %v15385_v7  ;;  %v3109_v23 = vld [vmem:[#allocation3 + $0xda] sm:$0xff] }
 0x340   : > { %v4016_v58 = vpop.f32.mrf.mxu0  ;;  %12245 = vmatprep.mubr.f32.mxu1 %v3103_v44  ;;  %v3802_v11 = vadd.f32 %v15096_v39, %v3801_v16  ;;  %6036 = vmatpush1.msra.mxu1 %v11629_v26  ;;  %v11615_v16 = vld [vmem:[%s19343_s1 + $0x9f8] sm:$0xff] }
 0x341   : > { %v15359_v13 = vadd.f32 %v4016_v58, %v3792_v52  ;;  %v3803_v37 = vpop.f32.mrf.mxu1  ;;  %5837 = vmatpush1.msra.mxu0 %v11584_v60  ;;  %6037 = vmatprep.subr.mxu1 %v15385_v7  ;;  %v11627_v44 = vld [vmem:[%s19343_s1 + $0xa58] sm:$0xff] }
 0x342   : > { %v4018_v22 = vpop.f32.mrf.mxu0  ;;  %6038 = vmatpush1.msra.mxu1 %v11628_v34  ;;  %5838 = vmatprep.subr.mxu0 %v15385_v7 }
 0x343   : > { %v3806_v32 = vpop.f32.mrf.mxu1  ;;  %12246 = vmatmul.mubr.f32.gmra.mxu1 %v3104_v5  ;;  %6039 = vmatprep.subr.mxu1 %v15385_v7  ;;  %v3110_v22 = vld [vmem:[#allocation3 + $0xe2] sm:$0xff] }
 0x344   : > { %v4021_v27 = vpop.f32.mrf.mxu0  ;;  %12248 = vmatprep.mubr.f32.mxu1 %v3105_v51  ;;  %v3807_v56 = vadd.f32 %v15096_v39, %v3806_v32  ;;  %5839 = vmatpush2.msra.mxu0 %v11615_v16  ;;  %v11626_v5 = vld [vmem:[%s19343_s1 + $0xa50] sm:$0xff]  ;;  %v3111_v51 = vld [vmem:[#allocation3 + $0xf2] sm:$0xff] }
 0x345   : > { %v15369_v36 = vadd.f32 %v4021_v27, %v3797_v15  ;;  %v3808_v59 = vpop.f32.mrf.mxu1  ;;  %6040 = vmatpush1.msra.mxu1 %v11627_v44  ;;  %5840 = vmatprep.subr.mxu0 %v15385_v7  ;;  %v11622_v16 = vld [vmem:[%s19343_s1 + $0xa30] sm:$0xff] }
 0x346   : > { %v4023_v47 = vpop.f32.mrf.mxu0  ;;  %6041 = vmatprep.subr.mxu1 %v15385_v7  ;;  %5841 = vmatpush2.msra.mxu0 %v11614_v30 }
 0x347   : > { %v3811_v2 = vpop.f32.mrf.mxu1  ;;  %12249 = vmatmul.mubr.f32.gmra.mxu1 %v3106_v20  ;;  %v3112_v20 = vld [vmem:[#allocation3 + $0xfa] sm:$0xff]  ;;  %5842 = vmatprep.subr.mxu0 %v15385_v7 }
 0x348   : > { %v4026_v48 = vpop.f32.mrf.mxu0  ;;  %12251 = vmatprep.mubr.f32.mxu1 %v3107_v31  ;;  %v3812_v15 = vadd.f32 %v15096_v39, %v3811_v2  ;;  %6042 = vmatpush1.msra.mxu1 %v11626_v5  ;;  %v3113_v31 = vld [vmem:[#allocation3 + $0x10a] sm:$0xff]  ;;  %v11621_v5 = vld [vmem:[%s19343_s1 + $0xa28] sm:$0xff] }
 0x349   : > { %v15383_v55 = vadd.f32 %v4026_v48, %v3802_v11  ;;  %v3813_v50 = vpop.f32.mrf.mxu1  ;;  %6043 = vmatprep.subr.mxu1 %v15385_v7  ;;  %5843 = vmatpush2.msra.mxu0 %v11613_v25  ;;  %v11624_v48 = vld [vmem:[%s19343_s1 + $0xa40] sm:$0xff] }
 0x34a   : > { %v4028_v63 = vpop.f32.mrf.mxu0  ;;  %6044 = vmatpush1.msra.mxu1 %v11625_v0  ;;  %5844 = vmatprep.subr.mxu0 %v15385_v7  ;;  %v11610_v0 = vld [vmem:[%s19343_s1 + $0x9d0] sm:$0xff] }
 0x34b   : > { %v3816_v6 = vpop.f32.mrf.mxu1  ;;  %12252 = vmatmul.mubr.f32.gmra.mxu1 %v3108_v61  ;;  %6045 = vmatprep.subr.mxu1 %v15385_v7  ;;  %v11623_v63 = vld [vmem:[%s19343_s1 + $0xa38] sm:$0xff]  ;;  %v11612_v61 = vld [vmem:[%s19343_s1 + $0x9e0] sm:$0xff] }
 0x34c   : > { %v4031_v52 = vpop.f32.mrf.mxu0  ;;  %12254 = vmatprep.mubr.f32.mxu1 %v3109_v23  ;;  %v3817_v11 = vadd.f32 %v15096_v39, %v3816_v6  ;;  %v3114_v6 = vld [vmem:[#allocation3 + $0x112] sm:$0xff]  ;;  %6046 = vmatpush1.msra.mxu1 %v11624_v48 }
 0x34d   : > { %v15403_v58 = vadd.f32 %v4031_v52, %v3807_v56  ;;  %v3818_v54 = vpop.f32.mrf.mxu1  ;;  %5845 = vmatpush2.msra.mxu0 %v11612_v61  ;;  %v3115_v52 = vld [vmem:[#allocation3 + $0x122] sm:$0xff]  ;;  %6047 = vmatprep.subr.mxu1 %v15385_v7  ;;  %v11609_v48 = vld [vmem:[%s19343_s1 + $0x9c8] sm:$0xff] }
 0x34e   : > { %v4033_v37 = vpop.f32.mrf.mxu0  ;;  %6048 = vmatpush1.msra.mxu1 %v11623_v63  ;;  %5846 = vmatprep.subr.mxu0 %v15385_v7 }
 0x34f   : > { %v3821_v32 = vpop.f32.mrf.mxu1  ;;  %12255 = vmatmul.mubr.f32.gmra.mxu1 %v3110_v22  ;;  %v11611_v37 = vld [vmem:[%s19343_s1 + $0x9d8] sm:$0xff]  ;;  %6049 = vmatprep.subr.mxu1 %v15385_v7 }
 0x350   : > { %v4036_v27 = vpop.f32.mrf.mxu0  ;;  %12257 = vmatprep.mubr.f32.mxu1 %v3111_v51  ;;  %6050 = vmatpush1.msra.mxu1 %v11622_v16  ;;  %v3117_v51 = vld [vmem:[#allocation3 + $0x13a] sm:$0xff] }
 0x351   : > { %v15416_v3 = vadd.f32 %v4036_v27, %v3812_v15  ;;  %v3823_v59 = vpop.f32.mrf.mxu1  ;;  %5847 = vmatpush2.msra.mxu0 %v11611_v37  ;;  %6051 = vmatprep.subr.mxu1 %v15385_v7  ;;  %v11620_v27 = vld [vmem:[%s19343_s1 + $0xa20] sm:$0xff] }
 0x352   : > { %v4038_v47 = vpop.f32.mrf.mxu0  ;;  %6052 = vmatpush1.msra.mxu1 %v11621_v5  ;;  %5848 = vmatprep.subr.mxu0 %v15385_v7  ;;  %v11616_v5 = vld [vmem:[%s19343_s1 + $0xa00] sm:$0xff] }
 0x353   : > { %v4116_v2 = vpop.f32.mrf.mxu1  ;;  %12258 = vmatmul.mubr.f32.gmra.mxu1 %v3112_v20  ;;  %6053 = vmatprep.subr.mxu1 %v15385_v7  ;;  %v11619_v20 = vld [vmem:[%s19343_s1 + $0xa18] sm:$0xff] }
 0x354   : > { %v4041_v26 = vpop.f32.mrf.mxu0  ;;  %v4117_v50 = vadd.f32 %v4116_v2, %v15106_v9  ;;  %12260 = vmatprep.mubr.f32.mxu1 %v3113_v31  ;;  %v3822_v9 = vadd.f32 %v15096_v39, %v3821_v32  ;;  %v3116_v32 = vld [vmem:[#allocation3 + $0x12a] sm:$0xff]  ;;  %6054 = vmatpush1.msra.mxu1 %v11620_v27  ;;  %v3119_v31 = vld [vmem:[#allocation3 + $0x152] sm:$0xff] }
 0x355   : > { %v15431_v60 = vadd.f32 %v4041_v26, %v3817_v11  ;;  %v4118_v34 = vpop.f32.mrf.mxu1  ;;  %5849 = vmatpush2.msra.mxu0 %v11610_v0  ;;  %6055 = vmatprep.subr.mxu1 %v15385_v7  ;;  %v11618_v26 = vld [vmem:[%s19343_s1 + $0xa10] sm:$0xff] }
 0x356   : > { %v4043_v56 = vpop.f32.mrf.mxu0  ;;  %6056 = vmatpush1.msra.mxu1 %v11619_v20  ;;  %5850 = vmatprep.subr.mxu0 %v15385_v7 }
 0x357   : > { %v4121_v23 = vpop.f32.mrf.mxu1  ;;  %12261 = vmatmul.mubr.f32.gmra.mxu1 %v3114_v6  ;;  %6057 = vmatprep.subr.mxu1 %v15385_v7  ;;  %v3120_v6 = vld [vmem:[#allocation3 + $0x15a] sm:$0xff] }
 0x358   : > { %v4046_v44 = vpop.f32.mrf.mxu0  ;;  %v4122_v54 = vadd.f32 %v4121_v23, %v15114_v46  ;;  %12263 = vmatprep.mubr.f32.mxu1 %v3115_v52  ;;  %5851 = vmatpush2.msra.mxu0 %v11609_v48  ;;  %v3121_v52 = vld [vmem:[#allocation3 + $0x16a] sm:$0xff]  ;;  %v3126_v48 = vld [vmem:[#allocation3 + $0x1a2] sm:$0xff] }
 0x359   : > { %v15450_v22 = vadd.f32 %v4046_v44, %v3822_v9  ;;  %v4123_v39 = vpop.f32.mrf.mxu1  ;;  %6058 = vmatpush1.msra.mxu1 %v11618_v26  ;;  %v11617_v9 = vld [vmem:[%s19343_s1 + $0xa08] sm:$0xff]  ;;  %5852 = vmatprep.subr.mxu0 %v15385_v7 }
 0x35a   : > { %v4048_v15 = vpop.f32.mrf.mxu0  ;;  %6059 = vmatprep.subr.mxu1 %v15385_v7 }
 0x35b   : > { %v4126_v46 = vpop.f32.mrf.mxu1  ;;  %12264 = vmatmul.mubr.f32.gmra.mxu1 %v3116_v32  ;;  %v3122_v32 = vld [vmem:[#allocation3 + $0x172] sm:$0xff] }
 0x35c   : > { %v4127_v30 = vadd.f32 %v4126_v46, %v15121_v10  ;;  %v4341_v59 = vpop.f32.mrf.mxu0  ;;  %12266 = vmatprep.mubr.f32.mxu1 %v3117_v51  ;;  %v3118_v10 = vld [vmem:[#allocation3 + $0x142] sm:$0xff]  ;;  %6060 = vmatpush1.msra.mxu1 %v11617_v9 }
 0x35d   : > { %v15465_v25 = vadd.f32 %v4341_v59, %v4117_v50  ;;  %v4128_v47 = vpop.f32.mrf.mxu1  ;;  %6061 = vmatprep.subr.mxu1 %v15385_v7  ;;  %v11647_v46 = vld [vmem:[%s19343_s1 + $0xaf8] sm:$0xff] }
 0x35e   : > { %v4343_v11 = vpop.f32.mrf.mxu0  ;;  %6062 = vmatpush1.msra.mxu1 %v11616_v5  ;;  %v3125_v47 = vld [vmem:[#allocation3 + $0x19a] sm:$0xff] }
 0x35f   : > { %v4131_v2 = vpop.f32.mrf.mxu1  ;;  %12267 = vmatmul.mubr.f32.gmra.mxu1 %v3118_v10  ;;  %6063 = vmatprep.subr.mxu1 %v15385_v7  ;;  %v11645_v11 = vld [vmem:[%s19343_s1 + $0xae8] sm:$0xff] }
 0x360   : > { %v4132_v50 = vadd.f32 %v4131_v2, %v15128_v38  ;;  %v4346_v34 = vpop.f32.mrf.mxu0  ;;  %12269 = vmatprep.mubr.f32.mxu1 %v3119_v31  ;;  %v11608_v38 = vld [vmem:[%s19343_s1 + $0x9c0] sm:$0xff]  ;;  %6064 = vmatpush2.msra.mxu1 %v11647_v46  ;;  %v11605_v10 = vld [vmem:[%s19343_s1 + $0x9a8] sm:$0xff] }
 0x361   : > { %v15480_v63 = vadd.f32 %v4346_v34, %v4122_v54  ;;  %v4133_v61 = vpop.f32.mrf.mxu1  ;;  %v11607_v54 = vld [vmem:[%s19343_s1 + $0x9b8] sm:$0xff]  ;;  %5853 = vmatpush2.msra.mxu0 %v11608_v38  ;;  %6065 = vmatprep.subr.mxu1 %v15385_v7 }
 0x362   : > { %v4348_v56 = vpop.f32.mrf.mxu0  ;;  %5854 = vmatprep.subr.mxu0 %v15385_v7  ;;  %v11603_v38 = vld [vmem:[%s19343_s1 + $0x998] sm:$0xff] }
 0x363   : > { %v4136_v23 = vpop.f32.mrf.mxu1  ;;  %12270 = vmatmul.mubr.f32.gmra.mxu1 %v3120_v6  ;;  %5855 = vmatpush2.msra.mxu0 %v11607_v54  ;;  %v11643_v56 = vld [vmem:[%s19343_s1 + $0xad8] sm:$0xff] }
 0x364   : > { %v4137_v16 = vadd.f32 %v4136_v23, %v15135_v8  ;;  %v4351_v44 = vpop.f32.mrf.mxu0  ;;  %12272 = vmatprep.mubr.f32.mxu1 %v3121_v52  ;;  %5856 = vmatprep.subr.mxu0 %v15385_v7 }
 0x365   : > { %v15496_v37 = vadd.f32 %v4351_v44, %v4127_v30  ;;  %v4138_v39 = vpop.f32.mrf.mxu1  ;;  %v11606_v30 = vld [vmem:[%s19343_s1 + $0x9b0] sm:$0xff] }
 0x366   : > { %v4353_v15 = vpop.f32.mrf.mxu0  ;;  %5857 = vmatpush2.msra.mxu0 %v11606_v30  ;;  %v11641_v39 = vld [vmem:[%s19343_s1 + $0xac8] sm:$0xff] }
 0x367   : > { %v4141_v8 = vpop.f32.mrf.mxu1  ;;  %12273 = vmatmul.mubr.f32.gmra.mxu1 %v3122_v32  ;;  %5858 = vmatprep.subr.mxu0 %v15385_v7  ;;  %v11601_v32 = vld [vmem:[%s19343_s1 + $0x988] sm:$0xff] }
 0x368   : > { %v4142_v51 = vadd.f32 %v4141_v8, %v15142_v41  ;;  %v4356_v27 = vpop.f32.mrf.mxu0  ;;  %12275 = vmatprep.mubr.f32.mxu1 %v15196_v18  ;;  %v11646_v41 = vld [vmem:[%s19343_s1 + $0xaf0] sm:$0xff]  ;;  %5859 = vmatpush2.msra.mxu0 %v11605_v10 }
 0x369   : > { %v15511_v59 = vadd.f32 %v4356_v27, %v4132_v50  ;;  %v4143_v0 = vpop.f32.mrf.mxu1  ;;  %6066 = vmatpush2.msra.mxu1 %v11646_v41  ;;  %5860 = vmatprep.subr.mxu0 %v15385_v7 }
 0x36a   : > { %v4358_v20 = vpop.f32.mrf.mxu0  ;;  %6067 = vmatprep.subr.mxu1 %v15385_v7  ;;  %v11639_v0 = vld [vmem:[%s19343_s1 + $0xab8] sm:$0xff] }
 0x36b   : > { %v4146_v18 = vpop.f32.mrf.mxu1  ;;  %12276 = vmatmul.mubr.f32.gmra.mxu1 %v15205_v28  ;;  %v11644_v28 = vld [vmem:[%s19343_s1 + $0xae0] sm:$0xff] }
 0x36c   : > { %v4147_v2 = vadd.f32 %v4146_v18, %v15149_v12  ;;  %v4361_v31 = vpop.f32.mrf.mxu0  ;;  %12278 = vmatprep.mubr.f32.mxu1 %v3125_v47  ;;  %6068 = vmatpush2.msra.mxu1 %v11645_v11  ;;  %v11604_v12 = vld [vmem:[%s19343_s1 + $0x9a0] sm:$0xff] }
 0x36d   : > { %v15527_v26 = vadd.f32 %v4361_v31, %v4137_v16  ;;  %v4148_v50 = vpop.f32.mrf.mxu1  ;;  %6069 = vmatprep.subr.mxu1 %v15385_v7  ;;  %5861 = vmatpush2.msra.mxu0 %v11604_v12  ;;  %v11642_v16 = vld [vmem:[%s19343_s1 + $0xad0] sm:$0xff]  ;;  %v4853_v47 = vld [vmem:[#allocation2 + $0x1] sm:$0xff] }
 0x36e   : > { %v4363_v34 = vpop.f32.mrf.mxu0  ;;  %6070 = vmatpush2.msra.mxu1 %v11644_v28  ;;  %5862 = vmatprep.subr.mxu0 %v15385_v7  ;;  %v4789_v18 = vld [vmem:[#allocation2] sm:$0xff]  ;;  %v11637_v50 = vld [vmem:[%s19343_s1 + $0xaa8] sm:$0xff] }
 0x36f   : > { %v4151_v61 = vpop.f32.mrf.mxu1  ;;  %12279 = vmatmul.mubr.f32.gmra.mxu1 %v3126_v48  ;;  %6071 = vmatprep.subr.mxu1 %v15385_v7  ;;  %v4854_v48 = vld [vmem:[#allocation2 + $0x9] sm:$0xff] }
 0x370   : > { %v4152_v6 = vadd.f32 %v4151_v61, %v15156_v35  ;;  %v4366_v9 = vpop.f32.mrf.mxu0  ;;  %6072 = vmatpush2.msra.mxu1 %v11643_v56  ;;  %v11602_v35 = vld [vmem:[%s19343_s1 + $0x990] sm:$0xff]  ;;  %5863 = vmatpush2.msra.mxu0 %v11603_v38  ;;  %v11636_v56 = vld [vmem:[%s19343_s1 + $0xaa0] sm:$0xff] }
 0x371   : > { %v15546_v23 = vadd.f32 %v4366_v9, %v4142_v51  ;;  %v4153_v52 = vpop.f32.mrf.mxu1  ;;  %6073 = vmatprep.subr.mxu1 %v15385_v7  ;;  %5864 = vmatprep.subr.mxu0 %v15385_v7  ;;  %v11640_v51 = vld [vmem:[%s19343_s1 + $0xac0] sm:$0xff] }
 0x372   : > { %v4368_v44 = vpop.f32.mrf.mxu0  ;;  %6074 = vmatpush2.msra.mxu1 %v11642_v16  ;;  %5865 = vmatpush2.msra.mxu0 %v11602_v35  ;;  %v11663_v16 = vld [vmem:[%s19343_s1 + $0xb78] sm:$0xff] }
 0x373   : > { %v4156_v54 = vpop.f32.mrf.mxu1  ;;  %6075 = vmatprep.subr.mxu1 %v15385_v7  ;;  %5866 = vmatprep.subr.mxu0 %v15385_v7 }
 0x374   : > { %v4157_v5 = vadd.f32 %v4156_v54, %v15166_v53  ;;  %v4371_v15 = vpop.f32.mrf.mxu0  ;;  %6076 = vmatpush2.msra.mxu1 %v11641_v39  ;;  %v11600_v53 = vld [vmem:[%s19343_s1 + $0x980] sm:$0xff]  ;;  %5867 = vmatpush2.msra.mxu0 %v11601_v32  ;;  %v11634_v54 = vld [vmem:[%s19343_s1 + $0xa90] sm:$0xff] }
 0x375   : > { %v15565_v8 = vadd.f32 %v4371_v15, %v4147_v2  ;;  %v4158_v46 = vpop.f32.mrf.mxu1  ;;  %6077 = vmatprep.subr.mxu1 %v15385_v7  ;;  %5868 = vmatprep.subr.mxu0 %v15385_v7  ;;  %v11638_v2 = vld [vmem:[%s19343_s1 + $0xab0] sm:$0xff] }
 0x376   : > { %v4373_v27 = vpop.f32.mrf.mxu0  ;;  %6078 = vmatpush2.msra.mxu1 %v11640_v51  ;;  %5869 = vmatpush2.msra.mxu0 %v11600_v53  ;;  %v11662_v46 = vld [vmem:[%s19343_s1 + $0xb70] sm:$0xff]  ;;  %v11632_v53 = vld [vmem:[%s19343_s1 + $0xa80] sm:$0xff] }
 0x377   : > { %v4161_v30 = vpop.f32.mrf.mxu1  ;;  %6079 = vmatprep.subr.mxu1 %v15385_v7  ;;  %5870 = vmatprep.mubr.f32.mxu0 %v4853_v47 }
 0x378   : > { %v4162_v41 = vadd.f32 %v4161_v30, %v15174_v40  ;;  %v4376_v20 = vpop.f32.mrf.mxu0  ;;  %6080 = vmatpush2.msra.mxu1 %v11639_v0  ;;  %5871 = vmatmul.mubr.f32.vlgmr.msra.gmra.mxu0 %v4789_v18 }
 0x379   : > { %v15581_v11 = vadd.f32 %v4376_v20, %v4152_v6  ;;  %v4163_v10 = vpop.f32.mrf.mxu1  ;;  %6081 = vmatprep.subr.mxu1 %v15385_v7  ;;  %6256 = vmatprep.subr.mxu0 %v15385_v7 }
 0x37a   : > { %v4378_v31 = vpop.f32.mrf.mxu0  ;;  %6082 = vmatpush2.msra.mxu1 %v11638_v2  ;;  %5875 = vmatprep.mubr.f32.mxu0 %v4854_v48 }
 0x37b   : > { %v4166_v40 = vpop.f32.mrf.mxu1  ;;  %6083 = vmatprep.subr.mxu1 %v15385_v7  ;;  %6257 = vmatpush1.msra.mxu0 %v11663_v16 }
 0x37c   : > { %v4167_v28 = vadd.f32 %v4166_v40, %v15188_v29  ;;  %v4381_v34 = vpop.f32.mrf.mxu0  ;;  %6084 = vmatpush2.msra.mxu1 %v11637_v50  ;;  %v11635_v29 = vld [vmem:[%s19343_s1 + $0xa98] sm:$0xff]  ;;  %5876 = vmatmul.mubr.f32.gmra.mxu0 %v15385_v7 }
 0x37d   : > { %v15593_v12 = vadd.f32 %v4381_v34, %v4157_v5  ;;  %v4168_v61 = vpop.f32.mrf.mxu1  ;;  %6085 = vmatprep.subr.mxu1 %v15385_v7  ;;  %6258 = vmatprep.subr.mxu0 %v15385_v7  ;;  %v11633_v5 = vld [vmem:[%s19343_s1 + $0xa88] sm:$0xff] }
 0x37e   : > { %v4383_v6 = vpop.f32.mrf.mxu0  ;;  %6086 = vmatpush2.msra.mxu1 %v11636_v56  ;;  %6259 = vmatpush1.msra.mxu0 %v11662_v46 }
 0x37f   : > { %v4171_v9 = vpop.f32.mrf.mxu1  ;;  %6087 = vmatprep.subr.mxu1 %v15385_v7  ;;  %6260 = vmatprep.subr.mxu0 %v15385_v7 }
 0x380   : > { %v4172_v38 = vadd.f32 %v4171_v9, %v15199_v33  ;;  %v4386_v52 = vpop.f32.mrf.mxu0  ;;  %6088 = vmatpush2.msra.mxu1 %v11635_v29 }
 0x381   : > { %v15608_v44 = vadd.f32 %v4386_v52, %v4162_v41  ;;  %v4173_v35 = vpop.f32.mrf.mxu1  ;;  %6089 = vmatprep.subr.mxu1 %v15385_v7  ;;  %v11661_v41 = vld [vmem:[%s19343_s1 + $0xb68] sm:$0xff] }
 0x382   : > { %v4388_v39 = vpop.f32.mrf.mxu0  ;;  %6090 = vmatpush2.msra.mxu1 %v11634_v54  ;;  %6261 = vmatpush1.msra.mxu0 %v11661_v41 }
 0x383   : > { %v4176_v33 = vpop.f32.mrf.mxu1  ;;  %6091 = vmatprep.subr.mxu1 %v15385_v7  ;;  %6262 = vmatprep.subr.mxu0 %v15385_v7 }
 0x384   : > { %v4177_v15 = vadd.f32 %v4176_v33, %v15208_v24  ;;  %v4391_v32 = vpop.f32.mrf.mxu0  ;;  %6092 = vmatpush2.msra.mxu1 %v11633_v5 }
 0x385   : > { %v15623_v51 = vadd.f32 %v4391_v32, %v4167_v28  ;;  %v4178_v27 = vpop.f32.mrf.mxu1  ;;  %6093 = vmatprep.subr.mxu1 %v15385_v7 }
 0x386   : > { %v4393_v30 = vpop.f32.mrf.mxu0  ;;  %6094 = vmatpush2.msra.mxu1 %v11632_v53 }
 0x387   : > { %v4181_v24 = vpop.f32.mrf.mxu1  ;;  %6481 = vmatprep.subr.mxu1 %v15385_v7 }
 0x388   : > { %v4182_v0 = vadd.f32 %v4181_v24, %v15215_v57  ;;  %v4396_v47 = vpop.f32.mrf.mxu0  ;;  %v11660_v57 = vld [vmem:[%s19343_s1 + $0xb60] sm:$0xff] }
 0x389   : > { %v15635_v20 = vadd.f32 %v4396_v47, %v4172_v38  ;;  %v4183_v18 = vpop.f32.mrf.mxu1  ;;  %6263 = vmatpush1.msra.mxu0 %v11660_v57 }
 0x38a   : > { %v4398_v10 = vpop.f32.mrf.mxu0  ;;  %6264 = vmatprep.subr.mxu0 %v15385_v7 }
 0x38b   : > { %v4186_v2 = vpop.f32.mrf.mxu1 }
 0x38c   : > { %v4187_v31 = vadd.f32 %v4186_v2, %v15225_v19  ;;  %v4401_v48 = vpop.f32.mrf.mxu0  ;;  %v11659_v19 = vld [vmem:[%s19343_s1 + $0xb58] sm:$0xff] }
 0x38d   : > { %v15643_v40 = vadd.f32 %v4401_v48, %v4177_v15  ;;  %v4188_v50 = vpop.f32.mrf.mxu1  ;;  %6265 = vmatpush1.msra.mxu0 %v11659_v19 }
 0x38e   : > { %v4403_v28 = vpop.f32.mrf.mxu0  ;;  %6266 = vmatprep.subr.mxu0 %v15385_v7 }
 0x38f   : > { %v4191_v34 = vpop.f32.mrf.mxu1 }
 0x390   : > { %v4192_v61 = vadd.f32 %v4191_v34, %v15236_v17  ;;  %v4406_v56 = vpop.f32.mrf.mxu0  ;;  %v11658_v17 = vld [vmem:[%s19343_s1 + $0xb50] sm:$0xff] }
 0x391   : > { %v15650_v6 = vadd.f32 %v4406_v56, %v4182_v0  ;;  %v4193_v9 = vpop.f32.mrf.mxu1  ;;  %6267 = vmatpush1.msra.mxu0 %v11658_v17 }
 0x392   : > { %v4408_v29 = vpop.f32.mrf.mxu0  ;;  %6268 = vmatprep.subr.mxu0 %v15385_v7 }
 0x393   : > { %v4196_v38 = vpop.f32.mrf.mxu1 }
 0x394   : > { %v4197_v52 = vadd.f32 %v4196_v38, %v15247_v1  ;;  %v4411_v16 = vpop.f32.mrf.mxu0  ;;  %v11657_v1 = vld [vmem:[%s19343_s1 + $0xb48] sm:$0xff] }
 0x395   : > { %v15657_v35 = vadd.f32 %v4411_v16, %v4187_v31  ;;  %v4198_v54 = vpop.f32.mrf.mxu1  ;;  %6269 = vmatpush1.msra.mxu0 %v11657_v1 }
 0x396   : > { %v4413_v39 = vpop.f32.mrf.mxu0  ;;  %6270 = vmatprep.subr.mxu0 %v15385_v7 }
 0x397   : > { %v4201_v33 = vpop.f32.mrf.mxu1 }
 0x398   : > { %v4202_v5 = vadd.f32 %v4201_v33, %v15261_v45  ;;  %v4416_v15 = vpop.f32.mrf.mxu0  ;;  %v11656_v45 = vld [vmem:[%s19343_s1 + $0xb40] sm:$0xff] }
 0x399   : > { %v15664_v32 = vadd.f32 %v4416_v15, %v4192_v61  ;;  %v4203_v46 = vpop.f32.mrf.mxu1  ;;  %6271 = vmatpush1.msra.mxu0 %v11656_v45 }
 0x39a   : > { %v4418_v27 = vpop.f32.mrf.mxu0  ;;  %6272 = vmatprep.subr.mxu0 %v15385_v7 }
 0x39b   : > { %v4206_v53 = vpop.f32.mrf.mxu1 }
 0x39c   : > { %v4207_v30 = vadd.f32 %v4206_v53, %v15279_v42  ;;  %v4421_v24 = vpop.f32.mrf.mxu0  ;;  %v11655_v42 = vld [vmem:[%s19343_s1 + $0xb38] sm:$0xff] }
 0x39d   : > { %v15671_v0 = vadd.f32 %v4421_v24, %v4197_v52  ;;  %v4208_v47 = vpop.f32.mrf.mxu1  ;;  %6273 = vmatpush1.msra.mxu0 %v11655_v42 }
 0x39e   : > { %v4423_v41 = vpop.f32.mrf.mxu0  ;;  %6274 = vmatprep.subr.mxu0 %v15385_v7 }
 0x39f   : > { %v4211_v18 = vpop.f32.mrf.mxu1 }
 0x3a0   : > { %v4212_v10 = vadd.f32 %v4211_v18, %v15293_v21  ;;  %v4426_v2 = vpop.f32.mrf.mxu0  ;;  %v11654_v21 = vld [vmem:[%s19343_s1 + $0xb30] sm:$0xff] }
 0x3a1   : > { %v15678_v31 = vadd.f32 %v4426_v2, %v4202_v5  ;;  %v4213_v48 = vpop.f32.mrf.mxu1  ;;  %6275 = vmatpush1.msra.mxu0 %v11654_v21 }
 0x3a2   : > { %v4428_v57 = vpop.f32.mrf.mxu0  ;;  %6276 = vmatprep.subr.mxu0 %v15385_v7  ;;  %v11649_v48 = vld [vmem:[%s19343_s1 + $0xb08] sm:$0xff] }
 0x3a3   : > { %v4216_v50 = vpop.f32.mrf.mxu1 }
 0x3a4   : > { %v4217_v28 = vadd.f32 %v4216_v50, %v15306_v4  ;;  %v4431_v34 = vpop.f32.mrf.mxu0  ;;  %v11653_v4 = vld [vmem:[%s19343_s1 + $0xb28] sm:$0xff] }
 0x3a5   : > { %v15685_v61 = vadd.f32 %v4431_v34, %v4207_v30  ;;  %v4218_v56 = vpop.f32.mrf.mxu1  ;;  %6277 = vmatpush1.msra.mxu0 %v11653_v4 }
 0x3a6   : > { %v4433_v19 = vpop.f32.mrf.mxu0  ;;  %6278 = vmatprep.subr.mxu0 %v15385_v7 }
 0x3a7   : > { %v4221_v9 = vpop.f32.mrf.mxu1 }
 0x3a8   : > { %v4222_v29 = vadd.f32 %v4221_v9, %v15317_v49  ;;  %v4436_v38 = vpop.f32.mrf.mxu0  ;;  %v11652_v49 = vld [vmem:[%s19343_s1 + $0xb20] sm:$0xff] }
 0x3a9   : > { %v15692_v52 = vadd.f32 %v4436_v38, %v4212_v10  ;;  %v4223_v16 = vpop.f32.mrf.mxu1  ;;  %6279 = vmatpush1.msra.mxu0 %v11652_v49 }
 0x3aa   : > { %v4438_v17 = vpop.f32.mrf.mxu0  ;;  %6280 = vmatprep.subr.mxu0 %v15385_v7  ;;  %v11678_v16 = vld [vmem:[%s19343_s1 + $0xbf0] sm:$0xff] }
 0x3ab   : > { %v4226_v54 = vpop.f32.mrf.mxu1 }
 0x3ac   : > { %v4227_v39 = vadd.f32 %v4226_v54, %v15328_v43  ;;  %v4441_v33 = vpop.f32.mrf.mxu0  ;;  %v11651_v43 = vld [vmem:[%s19343_s1 + $0xb18] sm:$0xff] }
 0x3ad   : > { %v15699_v5 = vadd.f32 %v4441_v33, %v4217_v28  ;;  %v4228_v15 = vpop.f32.mrf.mxu1  ;;  %6281 = vmatpush1.msra.mxu0 %v11651_v43  ;;  %v11648_v28 = vld [vmem:[%s19343_s1 + $0xb00] sm:$0xff] }
 0x3ae   : > { %v4443_v1 = vpop.f32.mrf.mxu0  ;;  %6282 = vmatprep.subr.mxu0 %v15385_v7  ;;  %v11676_v15 = vld [vmem:[%s19343_s1 + $0xbe0] sm:$0xff] }
 0x3af   : > { %v4231_v46 = vpop.f32.mrf.mxu1 }
 0x3b0   : > { %v4232_v27 = vadd.f32 %v4231_v46, %v15337_v62  ;;  %v4446_v53 = vpop.f32.mrf.mxu0  ;;  %v11650_v62 = vld [vmem:[%s19343_s1 + $0xb10] sm:$0xff] }
 0x3b1   : > { %v15706_v30 = vadd.f32 %v4446_v53, %v4222_v29  ;;  %v4233_v24 = vpop.f32.mrf.mxu1  ;;  %6283 = vmatpush1.msra.mxu0 %v11650_v62 }
 0x3b2   : > { %v4448_v45 = vpop.f32.mrf.mxu0  ;;  %6284 = vmatprep.subr.mxu0 %v15385_v7  ;;  %v11674_v24 = vld [vmem:[%s19343_s1 + $0xbd0] sm:$0xff] }
 0x3b3   : > { %v4236_v47 = vpop.f32.mrf.mxu1  ;;  %6285 = vmatpush1.msra.mxu0 %v11649_v48 }
 0x3b4   : > { %v4237_v41 = vadd.f32 %v4236_v47, %v15348_v14  ;;  %v4451_v18 = vpop.f32.mrf.mxu0  ;;  %6286 = vmatprep.subr.mxu0 %v15385_v7 }
 0x3b5   : > { %v15713_v10 = vadd.f32 %v4451_v18, %v4227_v39  ;;  %v4238_v2 = vpop.f32.mrf.mxu1  ;;  %6287 = vmatpush1.msra.mxu0 %v11648_v28  ;;  %v11677_v39 = vld [vmem:[%s19343_s1 + $0xbe8] sm:$0xff] }
 0x3b6   : > { %v4453_v42 = vpop.f32.mrf.mxu0  ;;  %6288 = vmatprep.subr.mxu0 %v15385_v7  ;;  %v11673_v18 = vld [vmem:[%s19343_s1 + $0xbc8] sm:$0xff] }
 0x3b7   : > { %v4241_v57 = vpop.f32.mrf.mxu1  ;;  %v11672_v42 = vld [vmem:[%s19343_s1 + $0xbc0] sm:$0xff] }
 0x3b8   : > { %v4242_v14 = vadd.f32 %v4241_v57, %v15359_v13  ;;  %v4456_v50 = vpop.f32.mrf.mxu0  ;;  %v11679_v13 = vld [vmem:[%s19343_s1 + $0xbf8] sm:$0xff] }
 0x3b9   : > { %v15724_v34 = vadd.f32 %v4456_v50, %v4232_v27  ;;  %v4243_v21 = vpop.f32.mrf.mxu1  ;;  %6289 = vmatpush2.msra.mxu0 %v11679_v13  ;;  %v11675_v27 = vld [vmem:[%s19343_s1 + $0xbd8] sm:$0xff] }
 0x3ba   : > { %v4458_v56 = vpop.f32.mrf.mxu0  ;;  %6290 = vmatprep.subr.mxu0 %v15385_v7  ;;  %v11671_v50 = vld [vmem:[%s19343_s1 + $0xbb8] sm:$0xff] }
 0x3bb   : > { %v4246_v19 = vpop.f32.mrf.mxu1  ;;  %6291 = vmatpush2.msra.mxu0 %v11678_v16  ;;  %v11670_v56 = vld [vmem:[%s19343_s1 + $0xbb0] sm:$0xff] }
 0x3bc   : > { %v4247_v9 = vadd.f32 %v4246_v19, %v15369_v36  ;;  %6292 = vmatprep.subr.mxu0 %v15385_v7 }
 0x3bd   : > { %v4248_v29 = vpop.f32.mrf.mxu1  ;;  %6293 = vmatpush2.msra.mxu0 %v11677_v39 }
 0x3be   : > { %6294 = vmatprep.subr.mxu0 %v15385_v7  ;;  %v11669_v29 = vld [vmem:[%s19343_s1 + $0xba8] sm:$0xff] }
 0x3bf   : > { %v4251_v38 = vpop.f32.mrf.mxu1  ;;  %6295 = vmatpush2.msra.mxu0 %v11676_v15  ;;  %v11666_v15 = vld [vmem:[%s19343_s1 + $0xb90] sm:$0xff] }
 0x3c0   : > { %v4252_v4 = vadd.f32 %v4251_v38, %v15383_v55  ;;  %6296 = vmatprep.subr.mxu0 %v15385_v7 }
 0x3c1   : > { %v4253_v17 = vpop.f32.mrf.mxu1  ;;  %6297 = vmatpush2.msra.mxu0 %v11675_v27  ;;  %v11665_v27 = vld [vmem:[%s19343_s1 + $0xb88] sm:$0xff] }
 0x3c2   : > { %6298 = vmatprep.subr.mxu0 %v15385_v7  ;;  %v11668_v17 = vld [vmem:[%s19343_s1 + $0xba0] sm:$0xff] }
 0x3c3   : > { %v4256_v36 = vpop.f32.mrf.mxu1  ;;  %6299 = vmatpush2.msra.mxu0 %v11674_v24 }
 0x3c4   : > { %v4257_v54 = vadd.f32 %v4256_v36, %v15403_v58  ;;  %6300 = vmatprep.subr.mxu0 %v15385_v7 }
 0x3c5   : > { %v4258_v33 = vpop.f32.mrf.mxu1  ;;  %6301 = vmatpush2.msra.mxu0 %v11673_v18 }
 0x3c6   : > { %6302 = vmatprep.subr.mxu0 %v15385_v7  ;;  %v11667_v33 = vld [vmem:[%s19343_s1 + $0xb98] sm:$0xff] }
 0x3c7   : > { %v4261_v55 = vpop.f32.mrf.mxu1  ;;  %6303 = vmatpush2.msra.mxu0 %v11672_v42 }
 0x3c8   : > { %v4262_v49 = vadd.f32 %v4261_v55, %v15416_v3  ;;  %6304 = vmatprep.subr.mxu0 %v15385_v7 }
 0x3c9   : > { %v4263_v1 = vpop.f32.mrf.mxu1  ;;  %6305 = vmatpush2.msra.mxu0 %v11671_v50 }
 0x3ca   : > { %6306 = vmatprep.subr.mxu0 %v15385_v7 }
 0x3cb   : > { %v4266_v58 = vpop.f32.mrf.mxu1  ;;  %6307 = vmatpush2.msra.mxu0 %v11670_v56 }
 0x3cc   : > { %v4267_v46 = vadd.f32 %v4266_v58, %v15431_v60  ;;  %6308 = vmatprep.subr.mxu0 %v15385_v7 }
 0x3cd   : > { %v4268_v53 = vpop.f32.mrf.mxu1  ;;  %6309 = vmatpush2.msra.mxu0 %v11669_v29  ;;  %v11695_v29 = vld [vmem:[%s19343_s1 + $0xc78] sm:$0xff] }
 0x3ce   : > { %6310 = vmatprep.subr.mxu0 %v15385_v7 }
 0x3cf   : > { %v4271_v3 = vpop.f32.mrf.mxu1  ;;  %6311 = vmatpush2.msra.mxu0 %v11668_v17  ;;  %v11694_v17 = vld [vmem:[%s19343_s1 + $0xc70] sm:$0xff] }
 0x3d0   : > { %v15753_v43 = vadd.f32 %v4271_v3, %v15450_v22  ;;  %6312 = vmatprep.subr.mxu0 %v15385_v7 }
 0x3d1   : > { %v4273_v45 = vpop.f32.mrf.mxu1  ;;  %6313 = vmatpush2.msra.mxu0 %v11667_v33 }
 0x3d2   : > { %6314 = vmatprep.subr.mxu0 %v15385_v7 }
 0x3d3   : > { %v4461_v60 = vpop.f32.mrf.mxu1  ;;  %6315 = vmatpush2.msra.mxu0 %v11666_v15 }
 0x3d4   : > { %v15759_v47 = vadd.f32 %v4461_v60, %v4237_v41  ;;  %6316 = vmatprep.subr.mxu0 %v15385_v7 }
 0x3d5   : > { %v4463_v62 = vpop.f32.mrf.mxu1  ;;  %6317 = vmatpush2.msra.mxu0 %v11665_v27 }
 0x3d6   : > { %6318 = vmatprep.subr.mxu0 %v15385_v7  ;;  %v15824_v7 = vld [vmem:[%s19343_s1 + $0xd78] sm:$0xff] }
 0x3d7   : > { %v4466_v22 = vpop.f32.mrf.mxu1 }
 0x3d8   : > { %v15765_v2 = vadd.f32 %v4466_v22, %v4242_v14 }
 0x3d9   : > { %v4468_v48 = vpop.f32.mrf.mxu1 }
 0x3db   : > { %v4471_v41 = vpop.f32.mrf.mxu1 }
 0x3dc   : > { %v15771_v57 = vadd.f32 %v4471_v41, %v4247_v9 }
 0x3dd   : > { %v4473_v28 = vpop.f32.mrf.mxu1 }
 0x3df   : > { %v4476_v14 = vpop.f32.mrf.mxu1 }
 0x3e0   : > { %v15777_v21 = vadd.f32 %v4476_v14, %v4252_v4 }
 0x3e1   : > { %v4478_v19 = vpop.f32.mrf.mxu1 }
 0x3e3   : > { %v4481_v9 = vpop.f32.mrf.mxu1 }
 0x3e4   : > { %v15783_v13 = vadd.f32 %v4481_v9, %v4257_v54 }
 0x3e5   : > { %v4483_v38 = vpop.f32.mrf.mxu1 }
 0x3e7   : > { %v4486_v4 = vpop.f32.mrf.mxu1 }
 0x3e8   : > { %v15789_v16 = vadd.f32 %v4486_v4, %v4262_v49 }
 0x3e9   : > { %v4488_v36 = vpop.f32.mrf.mxu1 }
 0x3eb   : > { %v4491_v54 = vpop.f32.mrf.mxu1 }
 0x3ec   : > { %v15795_v39 = vadd.f32 %v4491_v54, %v4267_v46 }
 0x3ed   : > { %v4493_v55 = vpop.f32.mrf.mxu1 }
 0x3ee   : > { %v15860_v55 = vld [vmem:[#allocation2 + $0x8] sm:$0xff] }
 0x3ef   : > { %v15801_v49 = vpop.f32.mrf.mxu1 }
 0x3f1   : > { %v4498_v1 = vpop.f32.mrf.mxu1 }
 0x3f3   : > { %v12235_v58 = vpop.f32.mrf.mxu1 }
 0x3f4   : > { %v4572_v46 = vadd.f32 %v12235_v58, %v15480_v63  ;;  %v11664_v63 = vld [vmem:[%s19343_s1 + $0xb80] sm:$0xff] }
 0x3f5   : > { %v4566_v53 = vpop.f32.mrf.mxu1  ;;  %6319 = vmatpush2.msra.mxu0 %v11664_v63 }
 0x3f6   : > { %v4726_v3 = vmax.f32 %v4572_v46, 0.0  ;;  %v4567_v24 = vadd.f32 %v4566_v53, %v15465_v25  ;;  %12281 = vmatprep.subr.mxu0 %v15824_v7 }
 0x3f7   : > { %v12238_v45 = vpop.f32.mrf.mxu1 }
 0x3f8   : > { %4758 = vst [vmem:[#allocation2 + $0x21] sm:$0xff] %v4726_v3  ;;  %v4725_v60 = vmax.f32 %v4567_v24, 0.0  ;;  %v15814_v18 = vadd.f32 %v12238_v45, %v15511_v59 }
 0x3f9   : > { %v4576_v62 = vpop.f32.mrf.mxu1 }
 0x3fa   : > { %4757 = vst [vmem:[#allocation2 + $0x19] sm:$0xff] %v4725_v60  ;;  %v4728_v22 = vmax.f32 %v15814_v18, 0.0  ;;  %v4577_v42 = vadd.f32 %v4576_v62, %v15496_v37  ;;  %5880 = vmatprep.mubr.f32.mxu0 %v4725_v60  ;;  %v11691_v62 = vld [vmem:[%s19343_s1 + $0xc58] sm:$0xff] }
 0x3fb   : > { %v12241_v25 = vpop.f32.mrf.mxu1 }
 0x3fc   : > { %4760 = vst [vmem:[#allocation2 + $0x39] sm:$0xff] %v4728_v22  ;;  %v4727_v59 = vmax.f32 %v4577_v42, 0.0  ;;  %v15829_v48 = vadd.f32 %v12241_v25, %v15546_v23  ;;  %v4917_v23 = vld [vmem:[#allocation2 + $0x2] sm:$0xff] }
 0x3fd   : > { %v4586_v41 = vpop.f32.mrf.mxu1 }
 0x3fe   : > { %4759 = vst [vmem:[#allocation2 + $0x31] sm:$0xff] %v4727_v59  ;;  %v4730_v37 = vmax.f32 %v15829_v48, 0.0  ;;  %v15834_v50 = vadd.f32 %v4586_v41, %v15527_v26 }
 0x3ff   : > { %v12244_v28 = vpop.f32.mrf.mxu1 }
 0x400   : > { %4762 = vst [vmem:[#allocation2 + $0x51] sm:$0xff] %v4730_v37  ;;  %v4729_v14 = vmax.f32 %v15834_v50, 0.0  ;;  %v15840_v56 = vadd.f32 %v12244_v28, %v15581_v11  ;;  %v11689_v50 = vld [vmem:[%s19343_s1 + $0xc48] sm:$0xff] }
 0x401   : > { %v4596_v19 = vpop.f32.mrf.mxu1  ;;  %v4981_v9 = vld [vmem:[#allocation2 + $0x18] sm:$0xff]  ;;  %v4982_v11 = vld [vmem:[#allocation2 + $0x20] sm:$0xff] }
 0x402   : > { %4761 = vst [vmem:[#allocation2 + $0x49] sm:$0xff] %v4729_v14  ;;  %v4732_v26 = vmax.f32 %v15840_v56, 0.0  ;;  %v15849_v38 = vadd.f32 %v4596_v19, %v15565_v8  ;;  %6095 = vmatprep.mubr.f32.mxu1 %v4981_v9  ;;  %5881 = vmatmul.mubr.f32.gmra.mxu0 %v4981_v9  ;;  %v4918_v8 = vld [vmem:[#allocation2 + $0xa] sm:$0xff] }
 0x403   : > { %v12247_v4 = vpop.f32.mrf.mxu1  ;;  %6096 = vmatmul.mubr.f32.vlgmr.msra.gmra.mxu1 %v4917_v23  ;;  %5885 = vmatprep.mubr.f32.mxu0 %v4726_v3  ;;  %v11692_v3 = vld [vmem:[%s19343_s1 + $0xc60] sm:$0xff] }
 0x404   : > { %4764 = vst [vmem:[#allocation2 + $0x69] sm:$0xff] %v4732_v26  ;;  %v4731_v36 = vmax.f32 %v15849_v38, 0.0  ;;  %v15858_v54 = vadd.f32 %v12247_v4, %v15608_v44  ;;  %6100 = vmatprep.mubr.f32.mxu1 %v4982_v11  ;;  %6482 = vmatpush1.msra.mxu1 %v11695_v29  ;;  %v11693_v44 = vld [vmem:[%s19343_s1 + $0xc68] sm:$0xff]  ;;  %v11686_v38 = vld [vmem:[%s19343_s1 + $0xc30] sm:$0xff] }
 0x405   : > { %v4606_v33 = vpop.f32.mrf.mxu1  ;;  %6483 = vmatprep.subr.mxu1 %v15860_v55  ;;  %v4983_v46 = vld [vmem:[#allocation2 + $0x30] sm:$0xff]  ;;  %v15894_v63 = vld [vmem:[#allocation2 + $0x38] sm:$0xff] }
 0x406   : > { %4763 = vst [vmem:[#allocation2 + $0x61] sm:$0xff] %v4731_v36  ;;  %v4734_v15 = vmax.f32 %v15858_v54, 0.0  ;;  %v15867_v1 = vadd.f32 %v4606_v33, %v15593_v12  ;;  %5886 = vmatmul.mubr.f32.gmra.mxu0 %v4982_v11  ;;  %6484 = vmatpush1.msra.mxu1 %v11694_v17  ;;  %v11688_v11 = vld [vmem:[%s19343_s1 + $0xc40] sm:$0xff] }
 0x407   : > { %v12250_v58 = vpop.f32.mrf.mxu1  ;;  %6101 = vmatmul.mubr.f32.gmra.mxu1 %v4918_v8  ;;  %5890 = vmatprep.mubr.f32.mxu0 %v4727_v59  ;;  %v15914_v59 = vld [vmem:[#allocation2 + $0x22] sm:$0xff]  ;;  %v15968_v33 = vld [vmem:[#allocation2 + $0x3a] sm:$0xff] }
 0x408   : > { %4766 = vst [vmem:[#allocation2 + $0x81] sm:$0xff] %v4734_v15  ;;  %v4733_v27 = vmax.f32 %v15867_v1, 0.0  ;;  %v15876_v53 = vadd.f32 %v12250_v58, %v15635_v20  ;;  %6105 = vmatprep.mubr.f32.mxu1 %v4983_v46  ;;  %6485 = vmatprep.subr.mxu1 %v15860_v55  ;;  %v15888_v20 = vld [vmem:[#allocation2 + $0x1a] sm:$0xff] }
 0x409   : > { %v4616_v12 = vpop.f32.mrf.mxu1  ;;  %6486 = vmatpush1.msra.mxu1 %v11693_v44  ;;  %v15922_v28 = vld [vmem:[#allocation2 + $0x48] sm:$0xff]  ;;  %v15948_v4 = vld [vmem:[#allocation2 + $0x50] sm:$0xff]  ;;  %v11683_v1 = vld [vmem:[%s19343_s1 + $0xc18] sm:$0xff] }
 0x40a   : > { %4765 = vst [vmem:[#allocation2 + $0x79] sm:$0xff] %v4733_v27  ;;  %v4736_v24 = vmax.f32 %v15876_v53, 0.0  ;;  %v15886_v45 = vadd.f32 %v4616_v12, %v15623_v51  ;;  %5891 = vmatmul.mubr.f32.gmra.mxu0 %v4983_v46  ;;  %6487 = vmatprep.subr.mxu1 %v15860_v55  ;;  %v4497_v53 = vadd.f32 %v15801_v49, %v15753_v43 }
 0x40b   : > { %v12253_v60 = vpop.f32.mrf.mxu1  ;;  %6106 = vmatmul.mubr.f32.gmra.mxu1 %v15888_v20  ;;  %5895 = vmatprep.mubr.f32.mxu0 %v4728_v22 }
 0x40c   : > { %4768 = vst [vmem:[#allocation2 + $0x99] sm:$0xff] %v4736_v24  ;;  %v4735_v51 = vmax.f32 %v15886_v45, 0.0  ;;  %v15903_v42 = vadd.f32 %v12253_v60, %v15650_v6  ;;  %6110 = vmatprep.mubr.f32.mxu1 %v15894_v63  ;;  %6488 = vmatpush1.msra.mxu1 %v11692_v3  ;;  %v11690_v6 = vld [vmem:[%s19343_s1 + $0xc50] sm:$0xff]  ;;  %v11680_v45 = vld [vmem:[%s19343_s1 + $0xc00] sm:$0xff] }
 0x40d   : > { %v4626_v25 = vpop.f32.mrf.mxu1  ;;  %6489 = vmatprep.subr.mxu1 %v15860_v55  ;;  %v15976_v58 = vld [vmem:[#allocation2 + $0x60] sm:$0xff] }
 0x40e   : > { %4767 = vst [vmem:[#allocation2 + $0x91] sm:$0xff] %v4735_v51  ;;  %v4738_v18 = vmax.f32 %v15903_v42, 0.0  ;;  %v15911_v22 = vadd.f32 %v4626_v25, %v15643_v40  ;;  %5896 = vmatmul.mubr.f32.gmra.mxu0 %v15894_v63  ;;  %6490 = vmatpush1.msra.mxu1 %v11691_v62  ;;  %v16002_v62 = vld [vmem:[#allocation2 + $0x68] sm:$0xff]  ;;  %v11707_v42 = vld [vmem:[%s19343_s1 + $0xcd8] sm:$0xff] }
 0x40f   : > { %v12256_v41 = vpop.f32.mrf.mxu1  ;;  %6111 = vmatmul.mubr.f32.gmra.mxu1 %v15914_v59  ;;  %5900 = vmatprep.mubr.f32.mxu0 %v4729_v14  ;;  %v11685_v25 = vld [vmem:[%s19343_s1 + $0xc28] sm:$0xff] }
 0x410   : > { %4770 = vst [vmem:[#allocation2 + $0xb1] sm:$0xff] %v4738_v18  ;;  %v4737_v40 = vmax.f32 %v15911_v22, 0.0  ;;  %v15928_v23 = vadd.f32 %v12256_v41, %v15664_v32  ;;  %6115 = vmatprep.mubr.f32.mxu1 %v15922_v28  ;;  %6491 = vmatprep.subr.mxu1 %v15860_v55  ;;  %v15942_v32 = vld [vmem:[#allocation2 + $0x32] sm:$0xff] }
 0x411   : > { %v4636_v19 = vpop.f32.mrf.mxu1  ;;  %6492 = vmatpush1.msra.mxu1 %v11690_v6 }
 0x412   : > { %4769 = vst [vmem:[#allocation2 + $0xa9] sm:$0xff] %v4737_v40  ;;  %v4740_v14 = vmax.f32 %v15928_v23, 0.0  ;;  %v15939_v9 = vadd.f32 %v4636_v19, %v15657_v35  ;;  %5901 = vmatmul.mubr.f32.gmra.mxu0 %v15922_v28  ;;  %6493 = vmatprep.subr.mxu1 %v15860_v55  ;;  %v16022_v19 = vld [vmem:[#allocation2 + $0x52] sm:$0xff]  ;;  %v11704_v23 = vld [vmem:[%s19343_s1 + $0xcc0] sm:$0xff] }
 0x413   : > { %v12259_v29 = vpop.f32.mrf.mxu1  ;;  %6116 = vmatmul.mubr.f32.gmra.mxu1 %v15942_v32  ;;  %5905 = vmatprep.mubr.f32.mxu0 %v4730_v37 }
 0x414   : > { %4772 = vst [vmem:[#allocation2 + $0xc9] sm:$0xff] %v4740_v14  ;;  %v4739_v35 = vmax.f32 %v15939_v9, 0.0  ;;  %v15957_v17 = vadd.f32 %v12259_v29, %v15678_v31  ;;  %6120 = vmatprep.mubr.f32.mxu1 %v15948_v4  ;;  %6494 = vmatpush1.msra.mxu1 %v11689_v50  ;;  %v11687_v31 = vld [vmem:[%s19343_s1 + $0xc38] sm:$0xff] }
 0x415   : > { %v4646_v8 = vpop.f32.mrf.mxu1  ;;  %6495 = vmatprep.subr.mxu1 %v15860_v55  ;;  %v16030_v29 = vld [vmem:[#allocation2 + $0x78] sm:$0xff] }
 0x416   : > { %4771 = vst [vmem:[#allocation2 + $0xc1] sm:$0xff] %v4739_v35  ;;  %v4742_v48 = vmax.f32 %v15957_v17, 0.0  ;;  %v15965_v37 = vadd.f32 %v4646_v8, %v15671_v0  ;;  %5906 = vmatmul.mubr.f32.gmra.mxu0 %v15948_v4  ;;  %6496 = vmatpush1.msra.mxu1 %v11688_v11  ;;  %v11701_v17 = vld [vmem:[%s19343_s1 + $0xca8] sm:$0xff] }
 0x417   : > { %v12262_v44 = vpop.f32.mrf.mxu1  ;;  %6121 = vmatmul.mubr.f32.gmra.mxu1 %v15968_v33  ;;  %5910 = vmatprep.mubr.f32.mxu0 %v4731_v36 }
 0x418   : > { %4774 = vst [vmem:[#allocation2 + $0xe1] sm:$0xff] %v4742_v48  ;;  %v4741_v0 = vmax.f32 %v15965_v37, 0.0  ;;  %v15982_v46 = vadd.f32 %v12262_v44, %v15692_v52  ;;  %6125 = vmatprep.mubr.f32.mxu1 %v15976_v58  ;;  %6497 = vmatprep.subr.mxu1 %v15860_v55  ;;  %v15996_v52 = vld [vmem:[#allocation2 + $0x4a] sm:$0xff] }
 0x419   : > { %v4656_v12 = vpop.f32.mrf.mxu1  ;;  %6498 = vmatpush1.msra.mxu1 %v11687_v31  ;;  %v16140_v43 = vld [vmem:[#allocation2 + $0xa8] sm:$0xff] }
 0x41a   : > { %4773 = vst [vmem:[#allocation2 + $0xd9] sm:$0xff] %v4741_v0  ;;  %v4744_v36 = vmax.f32 %v15982_v46, 0.0  ;;  %v15993_v3 = vadd.f32 %v4656_v12, %v15685_v61  ;;  %5911 = vmatmul.mubr.f32.gmra.mxu0 %v15976_v58  ;;  %6499 = vmatprep.subr.mxu1 %v15860_v55  ;;  %v16056_v12 = vld [vmem:[#allocation2 + $0x80] sm:$0xff]  ;;  %v11698_v46 = vld [vmem:[%s19343_s1 + $0xc90] sm:$0xff] }
 0x41b   : > { %v12265_v60 = vpop.f32.mrf.mxu1  ;;  %6126 = vmatmul.mubr.f32.gmra.mxu1 %v15996_v52  ;;  %5915 = vmatprep.mubr.f32.mxu0 %v4732_v26 }
 0x41c   : > { %4776 = vst [vmem:[#allocation2 + $0xf9] sm:$0xff] %v4744_v36  ;;  %v4743_v61 = vmax.f32 %v15993_v3, 0.0  ;;  %v16011_v6 = vadd.f32 %v12265_v60, %v15706_v30  ;;  %6130 = vmatprep.mubr.f32.mxu1 %v16002_v62  ;;  %6500 = vmatpush1.msra.mxu1 %v11686_v38  ;;  %v11684_v30 = vld [vmem:[%s19343_s1 + $0xc20] sm:$0xff]  ;;  %v11682_v38 = vld [vmem:[%s19343_s1 + $0xc10] sm:$0xff] }
 0x41d   : > { %v4666_v41 = vpop.f32.mrf.mxu1  ;;  %6501 = vmatprep.subr.mxu1 %v15860_v55  ;;  %v16190_v9 = vld [vmem:[#allocation2 + $0xc8] sm:$0xff] }
 0x41e   : > { %4775 = vst [vmem:[#allocation2 + $0xf1] sm:$0xff] %v4743_v61  ;;  %v4746_v56 = vmax.f32 %v16011_v6, 0.0  ;;  %v16019_v26 = vadd.f32 %v4666_v41, %v15699_v5  ;;  %5916 = vmatmul.mubr.f32.gmra.mxu0 %v16002_v62  ;;  %6502 = vmatpush1.msra.mxu1 %v11685_v25  ;;  %v16076_v41 = vld [vmem:[#allocation2 + $0x6a] sm:$0xff] }
 0x41f   : > { %v12268_v50 = vpop.f32.mrf.mxu1  ;;  %6131 = vmatmul.mubr.f32.gmra.mxu1 %v16022_v19  ;;  %5920 = vmatprep.mubr.f32.mxu0 %v4733_v27 }
 0x420   : > { %4778 = vst [vmem:[#allocation2 + $0x111] sm:$0xff] %v4746_v56  ;;  %v4745_v5 = vmax.f32 %v16019_v26, 0.0  ;;  %v16036_v11 = vadd.f32 %v12268_v50, %v15724_v34  ;;  %6135 = vmatprep.mubr.f32.mxu1 %v16030_v29  ;;  %6503 = vmatprep.subr.mxu1 %v15860_v55  ;;  %v16050_v34 = vld [vmem:[#allocation2 + $0x62] sm:$0xff]  ;;  %v16084_v50 = vld [vmem:[#allocation2 + $0x90] sm:$0xff] }
 0x421   : > { %v4676_v8 = vpop.f32.mrf.mxu1  ;;  %6504 = vmatpush1.msra.mxu1 %v11684_v30  ;;  %v16224_v37 = vld [vmem:[#allocation2 + $0xe0] sm:$0xff] }
 0x422   : > { %4777 = vst [vmem:[#allocation2 + $0x109] sm:$0xff] %v4745_v5  ;;  %v4748_v27 = vmax.f32 %v16036_v11, 0.0  ;;  %v16047_v31 = vadd.f32 %v4676_v8, %v15713_v10  ;;  %5921 = vmatmul.mubr.f32.gmra.mxu0 %v16030_v29  ;;  %6505 = vmatprep.subr.mxu1 %v15860_v55 }
 0x423   : > { %v12271_v44 = vpop.f32.mrf.mxu1  ;;  %6136 = vmatmul.mubr.f32.gmra.mxu1 %v16050_v34  ;;  %5925 = vmatprep.mubr.f32.mxu0 %v4734_v15 }
 0x424   : > { %4780 = vst [vmem:[#allocation2 + $0x129] sm:$0xff] %v4748_v27  ;;  %v4747_v10 = vmax.f32 %v16047_v31, 0.0  ;;  %v16065_v60 = vadd.f32 %v12271_v44, %v15765_v2  ;;  %6140 = vmatprep.mubr.f32.mxu1 %v16056_v12  ;;  %6506 = vmatpush1.msra.mxu1 %v11683_v1  ;;  %v11681_v2 = vld [vmem:[%s19343_s1 + $0xc08] sm:$0xff] }
 0x425   : > { %v4686_v25 = vpop.f32.mrf.mxu1  ;;  %6507 = vmatprep.subr.mxu1 %v15860_v55  ;;  %v16254_v3 = vld [vmem:[#allocation2 + $0xf8] sm:$0xff] }
 0x426   : > { %4779 = vst [vmem:[#allocation2 + $0x121] sm:$0xff] %v4747_v10  ;;  %v4750_v54 = vmax.f32 %v16065_v60, 0.0  ;;  %v16073_v15 = vadd.f32 %v4686_v25, %v15759_v47  ;;  %5926 = vmatmul.mubr.f32.gmra.mxu0 %v16056_v12  ;;  %6508 = vmatpush1.msra.mxu1 %v11682_v38  ;;  %v16110_v25 = vld [vmem:[#allocation2 + $0x98] sm:$0xff] }
 0x427   : > { %v12274_v30 = vpop.f32.mrf.mxu1  ;;  %6141 = vmatmul.mubr.f32.gmra.mxu1 %v16076_v41  ;;  %5930 = vmatprep.mubr.f32.mxu0 %v4735_v51  ;;  %v16311_v31 = vld [vmem:[#allocation2 + $0x112] sm:$0xff] }
 0x428   : > { %4782 = vst [vmem:[#allocation2 + $0x141] sm:$0xff] %v4750_v54  ;;  %v4749_v47 = vmax.f32 %v16073_v15, 0.0  ;;  %v16090_v8 = vadd.f32 %v12274_v30, %v15777_v21  ;;  %6145 = vmatprep.mubr.f32.mxu1 %v16084_v50  ;;  %6509 = vmatprep.subr.mxu1 %v15860_v55  ;;  %v16104_v21 = vld [vmem:[#allocation2 + $0x7a] sm:$0xff] }
 0x429   : > { %v4696_v1 = vpop.f32.mrf.mxu1  ;;  %6510 = vmatpush1.msra.mxu1 %v11681_v2  ;;  %v11711_v2 = vld [vmem:[%s19343_s1 + $0xcf8] sm:$0xff]  ;;  %v16284_v26 = vld [vmem:[#allocation2 + $0x110] sm:$0xff] }
 0x42a   : > { %4781 = vst [vmem:[#allocation2 + $0x139] sm:$0xff] %v4749_v47  ;;  %v19398_v51 = vmax.f32 %v16090_v8, 0.0  ;;  %v16101_v44 = vadd.f32 %v4696_v1, %v15771_v57  ;;  %5931 = vmatmul.mubr.f32.gmra.mxu0 %v16084_v50  ;;  %6511 = vmatprep.subr.mxu1 %v15860_v55 }
 0x42b   : > { %v12277_v38 = vpop.f32.mrf.mxu1  ;;  %6146 = vmatmul.mubr.f32.gmra.mxu1 %v16104_v21  ;;  %5935 = vmatprep.mubr.f32.mxu0 %v4736_v24  ;;  %v16329_v15 = vld [vmem:[#allocation2 + $0x12a] sm:$0xff] }
 0x42c   : > { %4784 = vst [vmem:[#allocation2 + $0x159] sm:$0xff] %v19398_v51  ;;  %v4751_v57 = vmax.f32 %v16101_v44, 0.0  ;;  %v16119_v30 = vadd.f32 %v12277_v38, %v15789_v16  ;;  %6150 = vmatprep.mubr.f32.mxu1 %v16110_v25  ;;  %6512 = vmatpush1.msra.mxu1 %v11680_v45  ;;  %v16132_v16 = vld [vmem:[#allocation2 + $0x82] sm:$0xff]  ;;  %v11710_v45 = vld [vmem:[%s19343_s1 + $0xcf0] sm:$0xff] }
 0x42d   : > { %v4706_v1 = vpop.f32.mrf.mxu1  ;;  %6513 = vmatprep.subr.mxu1 %v15860_v55  ;;  %v16297_v6 = vld [vmem:[#allocation2 + $0x120] sm:$0xff] }
 0x42e   : > { %4783 = vst [vmem:[#allocation2 + $0x151] sm:$0xff] %v4751_v57  ;;  %v19399_v24 = vmax.f32 %v16119_v30, 0.0  ;;  %v16129_v51 = vadd.f32 %v4706_v1, %v15783_v13  ;;  %5936 = vmatmul.mubr.f32.gmra.mxu0 %v16110_v25  ;;  %6514 = vmatpush2.msra.mxu1 %v11711_v2  ;;  %v11709_v1 = vld [vmem:[%s19343_s1 + $0xce8] sm:$0xff] }
 0x42f   : > { %v12280_v38 = vpop.f32.mrf.mxu1  ;;  %6151 = vmatmul.mubr.f32.gmra.mxu1 %v16132_v16  ;;  %5940 = vmatprep.mubr.f32.mxu0 %v4737_v40  ;;  %v16320_v11 = vld [vmem:[#allocation2 + $0x122] sm:$0xff] }
 0x430   : > { %4786 = vst [vmem:[#allocation2 + $0x171] sm:$0xff] %v19399_v24  ;;  %v4753_v13 = vmax.f32 %v16129_v51, 0.0  ;;  %v4722_v49 = vadd.f32 %v12280_v38, %v4497_v53  ;;  %6155 = vmatprep.mubr.f32.mxu1 %v16140_v43  ;;  %6515 = vmatprep.subr.mxu1 %v15860_v55  ;;  %v16154_v24 = vld [vmem:[#allocation2 + $0x92] sm:$0xff]  ;;  %v16347_v44 = vld [vmem:[#allocation2 + $0x142] sm:$0xff] }
 0x431   : > { %v4716_v2 = vpop.f32.mrf.mxu1  ;;  %6516 = vmatpush2.msra.mxu1 %v11710_v45  ;;  %v16160_v53 = vld [vmem:[#allocation2 + $0xb0] sm:$0xff]  ;;  %v11708_v45 = vld [vmem:[%s19343_s1 + $0xce0] sm:$0xff] }
 0x432   : > { %4785 = vst [vmem:[#allocation2 + $0x169] sm:$0xff] %v4753_v13  ;;  %v4756_v22 = vmax.f32 %v4722_v49, 0.0  ;;  %v4717_v40 = vadd.f32 %v4716_v2, %v15795_v39  ;;  %5941 = vmatmul.mubr.f32.gmra.mxu0 %v16140_v43  ;;  %6517 = vmatprep.subr.mxu1 %v15860_v55  ;;  %v16168_v39 = vld [vmem:[#allocation2 + $0x9a] sm:$0xff]  ;;  %v11706_v49 = vld [vmem:[%s19343_s1 + $0xcd0] sm:$0xff] }
 0x433   : > { %6156 = vmatmul.mubr.f32.gmra.mxu1 %v16154_v24  ;;  %5945 = vmatprep.mubr.f32.mxu0 %v4738_v18  ;;  %v16176_v18 = vld [vmem:[#allocation2 + $0xc0] sm:$0xff]  ;;  %v16184_v2 = vld [vmem:[#allocation2 + $0xaa] sm:$0xff] }
 0x434   : > { %4788 = vst [vmem:[#allocation2 + $0x189] sm:$0xff] %v4756_v22  ;;  %v4755_v38 = vmax.f32 %v4717_v40, 0.0  ;;  %6160 = vmatprep.mubr.f32.mxu1 %v16160_v53  ;;  %6518 = vmatpush2.msra.mxu1 %v11709_v1  ;;  %v16200_v40 = vld [vmem:[#allocation2 + $0xb2] sm:$0xff]  ;;  %v16338_v60 = vld [vmem:[#allocation2 + $0x13a] sm:$0xff] }
 0x435   : > { %6519 = vmatprep.subr.mxu1 %v15860_v55  ;;  %v16365_v51 = vld [vmem:[#allocation2 + $0x15a] sm:$0xff] }
 0x436   : > { %4787 = vst [vmem:[#allocation2 + $0x181] sm:$0xff] %v4755_v38  ;;  %5946 = vmatmul.mubr.f32.gmra.mxu0 %v16160_v53  ;;  %6520 = vmatpush2.msra.mxu1 %v11708_v45  ;;  %v11703_v38 = vld [vmem:[%s19343_s1 + $0xcb8] sm:$0xff] }
 0x437   : > { %6161 = vmatmul.mubr.f32.gmra.mxu1 %v16168_v39  ;;  %5950 = vmatprep.mubr.f32.mxu0 %v4739_v35  ;;  %v11705_v35 = vld [vmem:[%s19343_s1 + $0xcc8] sm:$0xff] }
 0x438   : > { %6165 = vmatprep.mubr.f32.mxu1 %v16176_v18  ;;  %6521 = vmatprep.subr.mxu1 %v15860_v55  ;;  %v16195_v1 = vpop.f32.mrf.mxu0 }
 0x439   : > { %6522 = vmatpush2.msra.mxu1 %v11707_v42 }
 0x43a   : > { %5951 = vmatmul.mubr.f32.gmra.mxu0 %v16176_v18  ;;  %6523 = vmatprep.subr.mxu1 %v15860_v55  ;;  %v5874_v22 = vpop.f32.mrf.mxu0 }
 0x43b   : > { %6166 = vmatmul.mubr.f32.gmra.mxu1 %v16184_v2  ;;  %5955 = vmatprep.mubr.f32.mxu0 %v4740_v14  ;;  %v16208_v14 = vld [vmem:[#allocation2 + $0xd8] sm:$0xff]  ;;  %v11700_v22 = vld [vmem:[%s19343_s1 + $0xca0] sm:$0xff] }
 0x43c   : > { %6170 = vmatprep.mubr.f32.mxu1 %v16190_v9  ;;  %6524 = vmatpush2.msra.mxu1 %v11706_v49  ;;  %v16210_v45 = vpop.f32.mrf.mxu0  ;;  %v16218_v49 = vld [vmem:[#allocation2 + $0xc2] sm:$0xff] }
 0x43d   : > { %6525 = vmatprep.subr.mxu1 %v15860_v55 }
 0x43e   : > { %5956 = vmatmul.mubr.f32.gmra.mxu0 %v16190_v9  ;;  %6526 = vmatpush2.msra.mxu1 %v11705_v35  ;;  %v5879_v42 = vpop.f32.mrf.mxu0  ;;  %v16232_v35 = vld [vmem:[#allocation2 + $0xca] sm:$0xff] }
 0x43f   : > { %6171 = vmatmul.mubr.f32.gmra.mxu1 %v16200_v40  ;;  %5960 = vmatprep.mubr.f32.mxu0 %v4741_v0  ;;  %v11702_v0 = vld [vmem:[%s19343_s1 + $0xcb0] sm:$0xff]  ;;  %v11697_v42 = vld [vmem:[%s19343_s1 + $0xc88] sm:$0xff] }
 0x440   : > { %6175 = vmatprep.mubr.f32.mxu1 %v16208_v14  ;;  %6527 = vmatprep.subr.mxu1 %v15860_v55 }
 0x441   : > { %6528 = vmatpush2.msra.mxu1 %v11704_v23  ;;  %v16248_v23 = vld [vmem:[#allocation2 + $0xda] sm:$0xff] }
 0x442   : > { %5961 = vmatmul.mubr.f32.gmra.mxu0 %v16208_v14  ;;  %6529 = vmatprep.subr.mxu1 %v15860_v55 }
 0x443   : > { %6176 = vmatmul.mubr.f32.gmra.mxu1 %v16218_v49  ;;  %5965 = vmatprep.mubr.f32.mxu0 %v4742_v48  ;;  %v16240_v48 = vld [vmem:[#allocation2 + $0xf0] sm:$0xff] }
 0x444   : > { %6180 = vmatprep.mubr.f32.mxu1 %v16224_v37  ;;  %6530 = vmatpush2.msra.mxu1 %v11703_v38  ;;  %v16262_v38 = vld [vmem:[#allocation2 + $0xe2] sm:$0xff] }
 0x445   : > { %6531 = vmatprep.subr.mxu1 %v15860_v55 }
 0x446   : > { %5966 = vmatmul.mubr.f32.gmra.mxu0 %v16224_v37  ;;  %6532 = vmatpush2.msra.mxu1 %v11702_v0  ;;  %v16278_v0 = vld [vmem:[#allocation2 + $0xf2] sm:$0xff] }
 0x447   : > { %6181 = vmatmul.mubr.f32.gmra.mxu1 %v16232_v35  ;;  %5970 = vmatprep.mubr.f32.mxu0 %v4743_v61  ;;  %v11699_v61 = vld [vmem:[%s19343_s1 + $0xc98] sm:$0xff] }
 0x448   : > { %6185 = vmatprep.mubr.f32.mxu1 %v16240_v48  ;;  %6533 = vmatprep.subr.mxu1 %v15860_v55 }
 0x449   : > { %6534 = vmatpush2.msra.mxu1 %v11701_v17  ;;  %v16292_v17 = vld [vmem:[#allocation2 + $0xfa] sm:$0xff] }
 0x44a   : > { %5971 = vmatmul.mubr.f32.gmra.mxu0 %v16240_v48  ;;  %6535 = vmatprep.subr.mxu1 %v15860_v55 }
 0x44b   : > { %6186 = vmatmul.mubr.f32.gmra.mxu1 %v16248_v23  ;;  %5975 = vmatprep.mubr.f32.mxu0 %v4744_v36  ;;  %v16270_v36 = vld [vmem:[#allocation2 + $0x108] sm:$0xff] }
 0x44c   : > { %6190 = vmatprep.mubr.f32.mxu1 %v16254_v3  ;;  %6536 = vmatpush2.msra.mxu1 %v11700_v22  ;;  %v16307_v22 = vld [vmem:[#allocation2 + $0x128] sm:$0xff] }
 0x44d   : > { %6537 = vmatprep.subr.mxu1 %v15860_v55 }
 0x44e   : > { %5976 = vmatmul.mubr.f32.gmra.mxu0 %v16254_v3  ;;  %6538 = vmatpush2.msra.mxu1 %v11699_v61  ;;  %v16343_v61 = vld [vmem:[#allocation2 + $0x158] sm:$0xff] }
 0x44f   : > { %6191 = vmatmul.mubr.f32.gmra.mxu1 %v16262_v38  ;;  %5980 = vmatprep.mubr.f32.mxu0 %v4745_v5  ;;  %v11696_v5 = vld [vmem:[%s19343_s1 + $0xc80] sm:$0xff] }
 0x450   : > { %6195 = vmatprep.mubr.f32.mxu1 %v16270_v36  ;;  %6539 = vmatprep.subr.mxu1 %v15860_v55 }
 0x451   : > { %6540 = vmatpush2.msra.mxu1 %v11698_v46  ;;  %v19499_v46 = vmax.f32 %v16119_v30, 0.0  ;;  %v11726_v30 = vld [vmem:[%s19343_s1 + $0xd70] sm:$0xff] }
 0x452   : > { %5981 = vmatmul.mubr.f32.gmra.mxu0 %v16270_v36  ;;  %6541 = vmatprep.subr.mxu1 %v15860_v55 }
 0x453   : > { %6196 = vmatmul.mubr.f32.gmra.mxu1 %v16278_v0  ;;  %5985 = vmatprep.mubr.f32.mxu0 %v4746_v56  ;;  %v16302_v56 = vld [vmem:[#allocation2 + $0x10a] sm:$0xff] }
 0x454   : > { %6200 = vmatprep.mubr.f32.mxu1 %v16284_v26  ;;  %6542 = vmatpush2.msra.mxu1 %v11697_v42  ;;  %v16361_v42 = vld [vmem:[#allocation2 + $0x170] sm:$0xff] }
 0x455   : > { %6543 = vmatprep.subr.mxu1 %v15860_v55  ;;  %19500 = vst [vmem:[#allocation15_spill] sm:$0xff] %v16361_v42 }
 0x456   : > { %5986 = vmatmul.mubr.f32.gmra.mxu0 %v16284_v26  ;;  %6544 = vmatpush2.msra.mxu1 %v11696_v5  ;;  %v5045_v5 = vld [vmem:[#allocation2 + $0x19] sm:$0xff] }
 0x457   : > { %6201 = vmatmul.mubr.f32.gmra.mxu1 %v16292_v17  ;;  %5990 = vmatprep.mubr.f32.mxu0 %v4747_v10  ;;  %v16316_v10 = vld [vmem:[#allocation2 + $0x138] sm:$0xff] }
 0x458   : > { %6205 = vmatprep.mubr.f32.mxu1 %v16297_v6  ;;  %8012 = vmatprep.subr.mxu1 %v15860_v55 }
 0x45a   : > { %5991 = vmatmul.mubr.f32.gmra.mxu0 %v16297_v6 }
 0x45b   : > { %6206 = vmatmul.mubr.f32.gmra.mxu1 %v16302_v56  ;;  %5995 = vmatprep.mubr.f32.mxu0 %v4748_v27  ;;  %v16325_v27 = vld [vmem:[#allocation2 + $0x140] sm:$0xff] }
 0x45c   : > { %6210 = vmatprep.mubr.f32.mxu1 %v16307_v22 }
 0x45e   : > { %5996 = vmatmul.mubr.f32.gmra.mxu0 %v16307_v22 }
 0x45f   : > { %6211 = vmatmul.mubr.f32.gmra.mxu1 %v16311_v31  ;;  %6000 = vmatprep.mubr.f32.mxu0 %v4749_v47  ;;  %v16334_v47 = vld [vmem:[#allocation2 + $0x150] sm:$0xff] }
 0x460   : > { %6215 = vmatprep.mubr.f32.mxu1 %v16316_v10 }
 0x462   : > { %6001 = vmatmul.mubr.f32.gmra.mxu0 %v16316_v10 }
 0x463   : > { %6216 = vmatmul.mubr.f32.gmra.mxu1 %v16320_v11  ;;  %6005 = vmatprep.mubr.f32.mxu0 %v4750_v54  ;;  %v19498_v54 = vmax.f32 %v16090_v8, 0.0  ;;  %v16356_v8 = vld [vmem:[#allocation2 + $0x152] sm:$0xff] }
 0x464   : > { %6220 = vmatprep.mubr.f32.mxu1 %v16325_v27 }
 0x466   : > { %6006 = vmatmul.mubr.f32.gmra.mxu0 %v16325_v27 }
 0x467   : > { %6221 = vmatmul.mubr.f32.gmra.mxu1 %v16329_v15  ;;  %6010 = vmatprep.mubr.f32.mxu0 %v4751_v57  ;;  %v16352_v57 = vld [vmem:[#allocation2 + $0x168] sm:$0xff] }
 0x468   : > { %6225 = vmatprep.mubr.f32.mxu1 %v16334_v47 }
 0x46a   : > { %6011 = vmatmul.mubr.f32.gmra.mxu0 %v16334_v47 }
 0x46b   : > { %6226 = vmatmul.mubr.f32.gmra.mxu1 %v16338_v60  ;;  %6015 = vmatprep.mubr.f32.mxu0 %v19498_v54  ;;  %v16372_v54 = vld [vmem:[#allocation2 + $0x16a] sm:$0xff] }
 0x46c   : > { %6230 = vmatprep.mubr.f32.mxu1 %v16343_v61 }
 0x46e   : > { %6016 = vmatmul.mubr.f32.gmra.mxu0 %v16343_v61 }
 0x46f   : > { %6231 = vmatmul.mubr.f32.gmra.mxu1 %v16347_v44  ;;  %6020 = vmatprep.mubr.f32.mxu0 %v4753_v13  ;;  %v16368_v13 = vld [vmem:[#allocation2 + $0x180] sm:$0xff] }
 0x470   : > { %6235 = vmatprep.mubr.f32.mxu1 %v16352_v57  ;;  %19501 = vst [vmem:[#allocation5_spill] sm:$0xff] %v16368_v13 }
 0x472   : > { %6021 = vmatmul.mubr.f32.gmra.mxu0 %v16352_v57 }
 0x473   : > { %6236 = vmatmul.mubr.f32.gmra.mxu1 %v16356_v8  ;;  %6025 = vmatprep.mubr.f32.mxu0 %v19499_v46  ;;  %v16378_v46 = vld [vmem:[#allocation2 + $0x188] sm:$0xff] }
 0x474   : > { %6240 = vmatprep.mubr.f32.mxu1 %v16361_v42 }
 0x476   : > { %6026 = vmatmul.mubr.f32.gmra.mxu0 %v16361_v42  ;;  %v5237_v42 = vld [vmem:[#allocation2 + $0x31] sm:$0xff] }
 0x477   : > { %6241 = vmatmul.mubr.f32.gmra.mxu1 %v16365_v51  ;;  %6320 = vmatprep.mubr.f32.mxu0 %v15888_v20  ;;  %v5046_v20 = vld [vmem:[#allocation2 + $0x21] sm:$0xff] }
 0x478   : > { %6245 = vmatprep.mubr.f32.mxu1 %v16368_v13  ;;  %v16383_v13 = vld [vmem:[#allocation2 + $0x172] sm:$0xff] }
 0x47a   : > { %6321 = vmatmul.mubr.f32.vlgmr.msra.gmra.mxu0 %v5045_v5  ;;  %v11725_v5 = vld [vmem:[%s19343_s1 + $0xd68] sm:$0xff] }
 0x47b   : > { %6246 = vmatmul.mubr.f32.gmra.mxu1 %v16372_v54  ;;  %6325 = vmatprep.mubr.f32.mxu0 %v15914_v59  ;;  %v5173_v59 = vld [vmem:[#allocation2 + $0x30] sm:$0xff] }
 0x47c   : > { %6250 = vmatprep.mubr.f32.mxu1 %v16378_v46  ;;  %12282 = vmatpush3.msra.mxu0 %v15824_v7  ;;  %v11724_v7 = vld [vmem:[%s19343_s1 + $0xd60] sm:$0xff] }
 0x47d   : > { %12283 = vmatprep.subr.mxu0 %v11726_v30 }
 0x47e   : > { %6326 = vmatmul.mubr.f32.gmra.mxu0 %v5046_v20  ;;  %v5238_v20 = vld [vmem:[#allocation2 + $0x39] sm:$0xff] }
 0x47f   : > { %6251 = vmatmul.mubr.f32.gmra.mxu1 %v16383_v13  ;;  %6330 = vmatprep.mubr.f32.mxu0 %v15942_v32  ;;  %v11723_v32 = vld [vmem:[%s19343_s1 + $0xd58] sm:$0xff] }
 0x480   : > { %6545 = vmatprep.mubr.f32.mxu1 %v5237_v42  ;;  %12284 = vmatpush3.msra.mxu0 %v11726_v30  ;;  %v5240_v30 = vld [vmem:[#allocation2 + $0x51] sm:$0xff] }
 0x481   : > { %12285 = vmatprep.subr.mxu0 %v11725_v5 }
 0x482   : > { %6331 = vmatmul.mubr.f32.gmra.mxu0 %v5237_v42  ;;  %v5239_v42 = vld [vmem:[#allocation2 + $0x49] sm:$0xff] }
 0x483   : > { %6546 = vmatmul.mubr.f32.vlgmr.msra.gmra.mxu1 %v5173_v59  ;;  %6335 = vmatprep.mubr.f32.mxu0 %v15968_v33  ;;  %v11722_v33 = vld [vmem:[%s19343_s1 + $0xd50] sm:$0xff] }
 0x484   : > { %6550 = vmatprep.mubr.f32.mxu1 %v5238_v20  ;;  %12286 = vmatpush3.msra.mxu0 %v11725_v5 }
 0x485   : > { %12287 = vmatprep.subr.mxu0 %v11724_v7 }
 0x486   : > { %6336 = vmatmul.mubr.f32.gmra.mxu0 %v5238_v20 }
 0x487   : > { %6551 = vmatmul.mubr.f32.gmra.mxu1 %v15894_v63  ;;  %6340 = vmatprep.mubr.f32.mxu0 %v15996_v52  ;;  %v11721_v63 = vld [vmem:[%s19343_s1 + $0xd48] sm:$0xff] }
 0x488   : > { %6555 = vmatprep.mubr.f32.mxu1 %v5239_v42  ;;  %12288 = vmatpush3.msra.mxu0 %v11724_v7  ;;  %v5241_v52 = vld [vmem:[#allocation2 + $0x61] sm:$0xff] }
 0x489   : > { %12289 = vmatprep.subr.mxu0 %v11723_v32  ;;  %v16477_v7 = vld [vmem:[#allocation2 + $0x8] sm:$0xff] }
 0x48a   : > { %6341 = vmatmul.mubr.f32.gmra.mxu0 %v5239_v42 }
 0x48b   : > { %6556 = vmatmul.mubr.f32.gmra.mxu1 %v15922_v28  ;;  %6345 = vmatprep.mubr.f32.mxu0 %v16022_v19  ;;  %v11720_v28 = vld [vmem:[%s19343_s1 + $0xd40] sm:$0xff]  ;;  %v5242_v19 = vld [vmem:[#allocation2 + $0x69] sm:$0xff] }
 0x48c   : > { %6560 = vmatprep.mubr.f32.mxu1 %v5240_v30  ;;  %12290 = vmatpush3.msra.mxu0 %v11723_v32 }
 0x48d   : > { %12291 = vmatprep.subr.mxu0 %v11722_v33 }
 0x48e   : > { %6346 = vmatmul.mubr.f32.gmra.mxu0 %v5240_v30 }
 0x48f   : > { %6561 = vmatmul.mubr.f32.gmra.mxu1 %v15948_v4  ;;  %6350 = vmatprep.mubr.f32.mxu0 %v16050_v34  ;;  %v11719_v4 = vld [vmem:[%s19343_s1 + $0xd38] sm:$0xff] }
 0x490   : > { %6565 = vmatprep.mubr.f32.mxu1 %v5241_v52  ;;  %12292 = vmatpush3.msra.mxu0 %v11722_v33  ;;  %v5243_v34 = vld [vmem:[#allocation2 + $0x79] sm:$0xff] }
 0x491   : > { %12293 = vmatprep.subr.mxu0 %v11721_v63 }
 0x492   : > { %6351 = vmatmul.mubr.f32.gmra.mxu0 %v5241_v52 }
 0x493   : > { %6566 = vmatmul.mubr.f32.gmra.mxu1 %v15976_v58  ;;  %6355 = vmatprep.mubr.f32.mxu0 %v16076_v41  ;;  %v11718_v58 = vld [vmem:[%s19343_s1 + $0xd30] sm:$0xff]  ;;  %v5244_v41 = vld [vmem:[#allocation2 + $0x81] sm:$0xff] }
 0x494   : > { %6570 = vmatprep.mubr.f32.mxu1 %v5242_v19  ;;  %12294 = vmatpush3.msra.mxu0 %v11721_v63 }
 0x495   : > { %12295 = vmatprep.subr.mxu0 %v11720_v28 }
 0x496   : > { %6356 = vmatmul.mubr.f32.gmra.mxu0 %v5242_v19 }
 0x497   : > { %6571 = vmatmul.mubr.f32.gmra.mxu1 %v16002_v62  ;;  %6360 = vmatprep.mubr.f32.mxu0 %v16104_v21  ;;  %v11717_v62 = vld [vmem:[%s19343_s1 + $0xd28] sm:$0xff]  ;;  %v5245_v21 = vld [vmem:[#allocation2 + $0x91] sm:$0xff] }
 0x498   : > { %6575 = vmatprep.mubr.f32.mxu1 %v5243_v34  ;;  %12296 = vmatpush3.msra.mxu0 %v11720_v28  ;;  %v11743_v28 = vld [vmem:[%s19343_s1 + $0xde8] sm:$0xff] }
 0x499   : > { %12297 = vmatprep.subr.mxu0 %v11719_v4 }
 0x49a   : > { %6361 = vmatmul.mubr.f32.gmra.mxu0 %v5243_v34 }
 0x49b   : > { %6576 = vmatmul.mubr.f32.gmra.mxu1 %v16030_v29  ;;  %6365 = vmatprep.mubr.f32.mxu0 %v16132_v16  ;;  %v11716_v29 = vld [vmem:[%s19343_s1 + $0xd20] sm:$0xff] }
 0x49c   : > { %6580 = vmatprep.mubr.f32.mxu1 %v5244_v41  ;;  %12298 = vmatpush3.msra.mxu0 %v11719_v4  ;;  %v5246_v16 = vld [vmem:[#allocation2 + $0x99] sm:$0xff] }
 0x49d   : > { %12299 = vmatprep.subr.mxu0 %v11718_v58 }
 0x49e   : > { %6366 = vmatmul.mubr.f32.gmra.mxu0 %v5244_v41 }
 0x49f   : > { %6581 = vmatmul.mubr.f32.gmra.mxu1 %v16056_v12  ;;  %6370 = vmatprep.mubr.f32.mxu0 %v16154_v24  ;;  %v11715_v12 = vld [vmem:[%s19343_s1 + $0xd18] sm:$0xff]  ;;  %v5247_v24 = vld [vmem:[#allocation2 + $0xa9] sm:$0xff] }
 0x4a0   : > { %6585 = vmatprep.mubr.f32.mxu1 %v5245_v21  ;;  %12300 = vmatpush3.msra.mxu0 %v11718_v58 }
 0x4a1   : > { %12301 = vmatprep.subr.mxu0 %v11717_v62 }
 0x4a2   : > { %6371 = vmatmul.mubr.f32.gmra.mxu0 %v5245_v21 }
 0x4a3   : > { %6586 = vmatmul.mubr.f32.gmra.mxu1 %v16084_v50  ;;  %6375 = vmatprep.mubr.f32.mxu0 %v16168_v39  ;;  %v11714_v50 = vld [vmem:[%s19343_s1 + $0xd10] sm:$0xff] }
 0x4a4   : > { %6590 = vmatprep.mubr.f32.mxu1 %v5246_v16  ;;  %12302 = vmatpush3.msra.mxu0 %v11717_v62  ;;  %v5248_v39 = vld [vmem:[#allocation2 + $0xb1] sm:$0xff]  ;;  %v11742_v62 = vld [vmem:[%s19343_s1 + $0xde0] sm:$0xff] }
 0x4a5   : > { %12303 = vmatprep.subr.mxu0 %v11716_v29 }
 0x4a6   : > { %6376 = vmatmul.mubr.f32.gmra.mxu0 %v5246_v16 }
 0x4a7   : > { %6591 = vmatmul.mubr.f32.gmra.mxu1 %v16110_v25  ;;  %6380 = vmatprep.mubr.f32.mxu0 %v16184_v2  ;;  %v11713_v25 = vld [vmem:[%s19343_s1 + $0xd08] sm:$0xff] }
 0x4a8   : > { %6595 = vmatprep.mubr.f32.mxu1 %v5247_v24  ;;  %12304 = vmatpush3.msra.mxu0 %v11716_v29  ;;  %v5249_v2 = vld [vmem:[#allocation2 + $0xc1] sm:$0xff] }
 0x4a9   : > { %12305 = vmatprep.subr.mxu0 %v11715_v12 }
 0x4aa   : > { %6381 = vmatmul.mubr.f32.gmra.mxu0 %v5247_v24 }
 0x4ab   : > { %6596 = vmatmul.mubr.f32.gmra.mxu1 %v16140_v43  ;;  %6385 = vmatprep.mubr.f32.mxu0 %v16200_v40  ;;  %v11712_v43 = vld [vmem:[%s19343_s1 + $0xd00] sm:$0xff]  ;;  %v5250_v40 = vld [vmem:[#allocation2 + $0xc9] sm:$0xff] }
 0x4ac   : > { %6600 = vmatprep.mubr.f32.mxu1 %v5248_v39  ;;  %12306 = vmatpush3.msra.mxu0 %v11715_v12 }
 0x4ad   : > { %12307 = vmatprep.subr.mxu0 %v11714_v50 }
 0x4ae   : > { %6386 = vmatmul.mubr.f32.gmra.mxu0 %v5248_v39 }
 0x4af   : > { %6601 = vmatmul.mubr.f32.gmra.mxu1 %v16160_v53  ;;  %6390 = vmatprep.mubr.f32.mxu0 %v16218_v49  ;;  %v5251_v53 = vld [vmem:[#allocation2 + $0xd9] sm:$0xff]  ;;  %v16462_v49 = vld [vmem:[%s19344_s2 + $0x2] ss:$0 sm:$0xff] }
 0x4b0   : > { %6605 = vmatprep.mubr.f32.mxu1 %v5249_v2  ;;  %12308 = vmatpush3.msra.mxu0 %v11714_v50  ;;  %v11741_v50 = vld [vmem:[%s19343_s1 + $0xdd8] sm:$0xff] }
 0x4b1   : > { %12309 = vmatprep.subr.mxu0 %v11713_v25 }
 0x4b2   : > { %6391 = vmatmul.mubr.f32.gmra.mxu0 %v5249_v2 }
 0x4b3   : > { %6606 = vmatmul.mubr.f32.gmra.mxu1 %v16176_v18  ;;  %6395 = vmatprep.mubr.f32.mxu0 %v16232_v35  ;;  %v5252_v18 = vld [vmem:[#allocation2 + $0xe1] sm:$0xff] }
 0x4b4   : > { %6610 = vmatprep.mubr.f32.mxu1 %v5250_v40  ;;  %12310 = vmatpush3.msra.mxu0 %v11713_v25 }
 0x4b5   : > { %12311 = vmatprep.subr.mxu0 %v11712_v43 }
 0x4b6   : > { %6396 = vmatmul.mubr.f32.gmra.mxu0 %v5250_v40 }
 0x4b7   : > { %6611 = vmatmul.mubr.f32.gmra.mxu1 %v16190_v9  ;;  %6400 = vmatprep.mubr.f32.mxu0 %v16248_v23  ;;  %v5253_v9 = vld [vmem:[#allocation2 + $0xf1] sm:$0xff]  ;;  %v5254_v23 = vld [vmem:[#allocation2 + $0xf9] sm:$0xff] }
 0x4b8   : > { %6615 = vmatprep.mubr.f32.mxu1 %v5251_v53  ;;  %12312 = vmatpush3.msra.mxu0 %v11712_v43 }
 0x4b9   : > { %8237 = vmatprep.subr.mxu0 %v15860_v55  ;;  %v5873_v55 = vadd.f32 %v16462_v49, %v16195_v1  ;;  %v5878_v1 = vadd.f32 %v16462_v49, %v16210_v45  ;;  %v11744_v45 = vld [vmem:[%s19343_s1 + $0xdf0] sm:$0xff] }
 0x4ba   : > { %6401 = vmatmul.mubr.f32.gmra.mxu0 %v5251_v53  ;;  %v11740_v53 = vld [vmem:[%s19343_s1 + $0xdd0] sm:$0xff] }
 0x4bb   : > { %6616 = vmatmul.mubr.f32.gmra.mxu1 %v16208_v14  ;;  %6405 = vmatprep.mubr.f32.mxu0 %v16262_v38 }
 0x4bc   : > { %6620 = vmatprep.mubr.f32.mxu1 %v5252_v18 }
 0x4be   : > { %6406 = vmatmul.mubr.f32.gmra.mxu0 %v5252_v18 }
 0x4bf   : > { %6621 = vmatmul.mubr.f32.gmra.mxu1 %v16224_v37  ;;  %6410 = vmatprep.mubr.f32.mxu0 %v16278_v0  ;;  %v11745_v37 = vld [vmem:[%s19343_s1 + $0xdf8] sm:$0xff] }
 0x4c0   : > { %6625 = vmatprep.mubr.f32.mxu1 %v5253_v9  ;;  %8013 = vmatpush1.msra.mxu1 %v11745_v37 }
 0x4c1   : > { %8014 = vmatprep.subr.mxu1 %v16477_v7 }
 0x4c2   : > { %v5882_v14 = vpop.f32.mrf.mxu0  ;;  %6411 = vmatmul.mubr.f32.gmra.mxu0 %v5253_v9  ;;  %8015 = vmatpush1.msra.mxu1 %v11744_v45 }
 0x4c3   : > { %v6097_v35 = vpop.f32.mrf.mxu1  ;;  %6626 = vmatmul.mubr.f32.gmra.mxu1 %v16240_v48  ;;  %6415 = vmatprep.mubr.f32.mxu0 %v16292_v17  ;;  %v5255_v17 = vld [vmem:[#allocation2 + $0x109] sm:$0xff]  ;;  %v5883_v33 = vadd.f32 %v16462_v49, %v5882_v14 }
 0x4c4   : > { %v16470_v38 = vadd.f32 %v6097_v35, %v5873_v55  ;;  %6630 = vmatprep.mubr.f32.mxu1 %v5254_v23  ;;  %v5884_v5 = vpop.f32.mrf.mxu0  ;;  %8016 = vmatprep.subr.mxu1 %v16477_v7 }
 0x4c5   : > { %v6099_v0 = vpop.f32.mrf.mxu1  ;;  %8017 = vmatpush1.msra.mxu1 %v11743_v28 }
 0x4c6   : > { %v5887_v59 = vpop.f32.mrf.mxu0  ;;  %6416 = vmatmul.mubr.f32.gmra.mxu0 %v5254_v23  ;;  %8018 = vmatprep.subr.mxu1 %v16477_v7  ;;  %v11739_v23 = vld [vmem:[%s19343_s1 + $0xdc8] sm:$0xff] }
 0x4c7   : > { %v6102_v48 = vpop.f32.mrf.mxu1  ;;  %6631 = vmatmul.mubr.f32.gmra.mxu1 %v16254_v3  ;;  %6420 = vmatprep.mubr.f32.mxu0 %v16302_v56  ;;  %v5256_v56 = vld [vmem:[#allocation2 + $0x111] sm:$0xff]  ;;  %v5888_v4 = vadd.f32 %v16462_v49, %v5887_v59 }
 0x4c8   : > { %v16482_v20 = vadd.f32 %v6102_v48, %v5878_v1  ;;  %6635 = vmatprep.mubr.f32.mxu1 %v5255_v17  ;;  %v5889_v32 = vpop.f32.mrf.mxu0  ;;  %8019 = vmatpush1.msra.mxu1 %v11742_v62  ;;  %v11738_v48 = vld [vmem:[%s19343_s1 + $0xdc0] sm:$0xff] }
 0x4c9   : > { %v6104_v42 = vpop.f32.mrf.mxu1  ;;  %8020 = vmatprep.subr.mxu1 %v16477_v7 }
 0x4ca   : > { %v5892_v30 = vpop.f32.mrf.mxu0  ;;  %6421 = vmatmul.mubr.f32.gmra.mxu0 %v5255_v17  ;;  %8021 = vmatpush1.msra.mxu1 %v11741_v50 }
 0x4cb   : > { %v6107_v3 = vpop.f32.mrf.mxu1  ;;  %6636 = vmatmul.mubr.f32.gmra.mxu1 %v16270_v36  ;;  %6425 = vmatprep.mubr.f32.mxu0 %v16311_v31  ;;  %v5257_v31 = vld [vmem:[#allocation2 + $0x121] sm:$0xff]  ;;  %v5893_v29 = vadd.f32 %v16462_v49, %v5892_v30  ;;  %v11737_v30 = vld [vmem:[%s19343_s1 + $0xdb8] sm:$0xff] }
 0x4cc   : > { %v16491_v63 = vadd.f32 %v6107_v3, %v5883_v33  ;;  %6640 = vmatprep.mubr.f32.mxu1 %v5256_v56  ;;  %v5894_v52 = vpop.f32.mrf.mxu0  ;;  %8022 = vmatprep.subr.mxu1 %v16477_v7 }
 0x4cd   : > { %v6109_v19 = vpop.f32.mrf.mxu1  ;;  %8023 = vmatpush1.msra.mxu1 %v11740_v53 }
 0x4ce   : > { %v5897_v34 = vpop.f32.mrf.mxu0  ;;  %6426 = vmatmul.mubr.f32.gmra.mxu0 %v5256_v56  ;;  %8024 = vmatprep.subr.mxu1 %v16477_v7 }
 0x4cf   : > { %v6112_v36 = vpop.f32.mrf.mxu1  ;;  %6641 = vmatmul.mubr.f32.gmra.mxu1 %v16284_v26  ;;  %6430 = vmatprep.mubr.f32.mxu0 %v16320_v11  ;;  %v5258_v11 = vld [vmem:[#allocation2 + $0x129] sm:$0xff]  ;;  %v5898_v25 = vadd.f32 %v16462_v49, %v5897_v34 }
 0x4d0   : > { %v16500_v58 = vadd.f32 %v6112_v36, %v5888_v4  ;;  %6645 = vmatprep.mubr.f32.mxu1 %v5257_v31  ;;  %v5899_v41 = vpop.f32.mrf.mxu0  ;;  %8025 = vmatpush1.msra.mxu1 %v11739_v23  ;;  %v11736_v4 = vld [vmem:[%s19343_s1 + $0xdb0] sm:$0xff]  ;;  %v5267_v23 = vld [vmem:[#allocation2 + $0x199] sm:$0xff] }
 0x4d1   : > { %v6114_v21 = vpop.f32.mrf.mxu1  ;;  %8026 = vmatprep.subr.mxu1 %v16477_v7 }
 0x4d2   : > { %v5902_v16 = vpop.f32.mrf.mxu0  ;;  %6431 = vmatmul.mubr.f32.gmra.mxu0 %v5257_v31  ;;  %8027 = vmatpush1.msra.mxu1 %v11738_v48  ;;  %v11735_v21 = vld [vmem:[%s19343_s1 + $0xda8] sm:$0xff]  ;;  %v5203_v48 = vld [vmem:[#allocation2 + $0x198] sm:$0xff] }
 0x4d3   : > { %v6117_v26 = vpop.f32.mrf.mxu1  ;;  %6646 = vmatmul.mubr.f32.gmra.mxu1 %v16297_v6  ;;  %6435 = vmatprep.mubr.f32.mxu0 %v16329_v15  ;;  %v5259_v15 = vld [vmem:[#allocation2 + $0x139] sm:$0xff]  ;;  %v5903_v9 = vadd.f32 %v16462_v49, %v5902_v16 }
 0x4d4   : > { %v16509_v12 = vadd.f32 %v6117_v26, %v5893_v29  ;;  %6650 = vmatprep.mubr.f32.mxu1 %v5258_v11  ;;  %v5904_v24 = vpop.f32.mrf.mxu0  ;;  %8028 = vmatprep.subr.mxu1 %v16477_v7 }
 0x4d5   : > { %v6119_v39 = vpop.f32.mrf.mxu1  ;;  %8029 = vmatpush1.msra.mxu1 %v11737_v30  ;;  %v5265_v24 = vld [vmem:[#allocation2 + $0x181] sm:$0xff]  ;;  %v5303_v30 = vld [vmem:[#allocation2 + $0x4a] sm:$0xff] }
 0x4d6   : > { %v5907_v2 = vpop.f32.mrf.mxu0  ;;  %6436 = vmatmul.mubr.f32.gmra.mxu0 %v5258_v11  ;;  %8030 = vmatprep.subr.mxu1 %v16477_v7  ;;  %v16569_v11 = vld [vmem:[#allocation2 + $0x182] sm:$0xff] }
 0x4d7   : > { %v6122_v6 = vpop.f32.mrf.mxu1  ;;  %6651 = vmatmul.mubr.f32.gmra.mxu1 %v16307_v22  ;;  %6440 = vmatprep.mubr.f32.mxu0 %v16338_v60  ;;  %v5260_v60 = vld [vmem:[#allocation2 + $0x141] sm:$0xff]  ;;  %v5908_v37 = vadd.f32 %v16462_v49, %v5907_v2 }
 0x4d8   : > { %v16518_v43 = vadd.f32 %v6122_v6, %v5898_v25  ;;  %6655 = vmatprep.mubr.f32.mxu1 %v5259_v15  ;;  %v5909_v40 = vpop.f32.mrf.mxu0  ;;  %8031 = vmatpush1.msra.mxu1 %v11736_v4  ;;  %v11734_v25 = vld [vmem:[%s19343_s1 + $0xda0] sm:$0xff] }
 0x4d9   : > { %v6124_v18 = vpop.f32.mrf.mxu1  ;;  %8032 = vmatprep.subr.mxu1 %v16477_v7  ;;  %v16580_v40 = vld [vmem:[#allocation2 + $0x18a] sm:$0xff] }
 0x4da   : > { %v5912_v55 = vpop.f32.mrf.mxu0  ;;  %6441 = vmatmul.mubr.f32.gmra.mxu0 %v5259_v15  ;;  %8033 = vmatpush1.msra.mxu1 %v11735_v21  ;;  %v19503_v18 = vld [vmem:[#allocation5_spill] sm:$0xff]  ;;  %v5306_v21 = vld [vmem:[#allocation2 + $0x6a] sm:$0xff] }
 0x4db   : > { %v6127_v22 = vpop.f32.mrf.mxu1  ;;  %6656 = vmatmul.mubr.f32.gmra.mxu1 %v16316_v10  ;;  %6445 = vmatprep.mubr.f32.mxu0 %v16347_v44  ;;  %v5261_v44 = vld [vmem:[#allocation2 + $0x151] sm:$0xff]  ;;  %v5913_v32 = vadd.f32 %v16462_v49, %v5912_v55 }
 0x4dc   : > { %v16527_v14 = vadd.f32 %v6127_v22, %v5903_v9  ;;  %6660 = vmatprep.mubr.f32.mxu1 %v5260_v60  ;;  %v5914_v35 = vpop.f32.mrf.mxu0  ;;  %8034 = vmatprep.subr.mxu1 %v16477_v7  ;;  %v5266_v9 = vld [vmem:[#allocation2 + $0x189] sm:$0xff] }
 0x4dd   : > { %v6129_v5 = vpop.f32.mrf.mxu1  ;;  %8035 = vmatpush1.msra.mxu1 %v11734_v25 }
 0x4de   : > { %v5917_v0 = vpop.f32.mrf.mxu0  ;;  %6446 = vmatmul.mubr.f32.gmra.mxu0 %v5260_v60  ;;  %8036 = vmatprep.subr.mxu1 %v16477_v7  ;;  %v11733_v60 = vld [vmem:[%s19343_s1 + $0xd98] sm:$0xff] }
 0x4df   : > { %v6132_v10 = vpop.f32.mrf.mxu1  ;;  %6661 = vmatmul.mubr.f32.gmra.mxu1 %v16325_v27  ;;  %6450 = vmatprep.mubr.f32.mxu0 %v16356_v8  ;;  %v5262_v8 = vld [vmem:[#allocation2 + $0x159] sm:$0xff]  ;;  %v5918_v56 = vadd.f32 %v16462_v49, %v5917_v0 }
 0x4e0   : > { %v16536_v1 = vadd.f32 %v6132_v10, %v5908_v37  ;;  %6665 = vmatprep.mubr.f32.mxu1 %v5261_v44  ;;  %v5919_v59 = vpop.f32.mrf.mxu0  ;;  %8037 = vmatpush1.msra.mxu1 %v11733_v60  ;;  %v5301_v0 = vld [vmem:[#allocation2 + $0x32] sm:$0xff] }
 0x4e1   : > { %v6134_v17 = vpop.f32.mrf.mxu1  ;;  %8038 = vmatprep.subr.mxu1 %v16477_v7  ;;  %v11760_v60 = vld [vmem:[%s19343_s1 + $0xe70] sm:$0xff] }
 0x4e2   : > { %v5922_v45 = vpop.f32.mrf.mxu0  ;;  %6451 = vmatmul.mubr.f32.gmra.mxu0 %v5261_v44  ;;  %v11732_v17 = vld [vmem:[%s19343_s1 + $0xd90] sm:$0xff] }
 0x4e3   : > { %v6137_v27 = vpop.f32.mrf.mxu1  ;;  %6666 = vmatmul.mubr.f32.gmra.mxu1 %v16334_v47  ;;  %6455 = vmatprep.mubr.f32.mxu0 %v16365_v51  ;;  %v5263_v51 = vld [vmem:[#allocation2 + $0x169] sm:$0xff]  ;;  %v5923_v36 = vadd.f32 %v16462_v49, %v5922_v45  ;;  %v5302_v45 = vld [vmem:[#allocation2 + $0x3a] sm:$0xff] }
 0x4e4   : > { %v16545_v42 = vadd.f32 %v6137_v27, %v5913_v32  ;;  %6670 = vmatprep.mubr.f32.mxu1 %v5262_v8  ;;  %v5924_v33 = vpop.f32.mrf.mxu0  ;;  %v5268_v27 = vld [vmem:[#allocation2 + $0x1a1] sm:$0xff]  ;;  %8039 = vmatpush1.msra.mxu1 %v11732_v17 }
 0x4e5   : > { %v6139_v3 = vpop.f32.mrf.mxu1  ;;  %8040 = vmatprep.subr.mxu1 %v16477_v7 }
 0x4e6   : > { %v5927_v52 = vpop.f32.mrf.mxu0  ;;  %6456 = vmatmul.mubr.f32.gmra.mxu0 %v5262_v8 }
 0x4e7   : > { %v6142_v47 = vpop.f32.mrf.mxu1  ;;  %6671 = vmatmul.mubr.f32.gmra.mxu1 %v16343_v61  ;;  %6460 = vmatprep.mubr.f32.mxu0 %v16372_v54  ;;  %v5264_v54 = vld [vmem:[#allocation2 + $0x171] sm:$0xff]  ;;  %v5928_v16 = vadd.f32 %v16462_v49, %v5927_v52  ;;  %v11731_v52 = vld [vmem:[%s19343_s1 + $0xd88] sm:$0xff] }
 0x4e8   : > { %v16554_v28 = vadd.f32 %v6142_v47, %v5918_v56  ;;  %6675 = vmatprep.mubr.f32.mxu1 %v5263_v51  ;;  %v5929_v19 = vpop.f32.mrf.mxu0  ;;  %8041 = vmatpush1.msra.mxu1 %v11731_v52  ;;  %v11775_v52 = vld [vmem:[%s19343_s1 + $0xee8] sm:$0xff] }
 0x4e9   : > { %v6144_v34 = vpop.f32.mrf.mxu1  ;;  %8042 = vmatprep.subr.mxu1 %v16477_v7 }
 0x4ea   : > { %v5932_v31 = vpop.f32.mrf.mxu0  ;;  %6461 = vmatmul.mubr.f32.gmra.mxu0 %v5263_v51  ;;  %v5304_v51 = vld [vmem:[#allocation2 + $0x52] sm:$0xff]  ;;  %v5305_v34 = vld [vmem:[#allocation2 + $0x62] sm:$0xff] }
 0x4eb   : > { %v6147_v61 = vpop.f32.mrf.mxu1  ;;  %6676 = vmatmul.mubr.f32.gmra.mxu1 %v16352_v57  ;;  %6465 = vmatprep.mubr.f32.mxu0 %v16383_v13  ;;  %v19502_v13 = vld [vmem:[#allocation15_spill] sm:$0xff]  ;;  %v5933_v6 = vadd.f32 %v16462_v49, %v5932_v31 }
 0x4ec   : > { %v16563_v41 = vadd.f32 %v6147_v61, %v5923_v36  ;;  %6680 = vmatprep.mubr.f32.mxu1 %v5264_v54  ;;  %v5934_v62 = vpop.f32.mrf.mxu0 }
 0x4ed   : > { %v6149_v29 = vpop.f32.mrf.mxu1 }
 0x4ee   : > { %v5937_v26 = vpop.f32.mrf.mxu0  ;;  %6466 = vmatmul.mubr.f32.gmra.mxu0 %v5264_v54  ;;  %v11730_v54 = vld [vmem:[%s19343_s1 + $0xd80] sm:$0xff] }
 0x4ef   : > { %v6152_v57 = vpop.f32.mrf.mxu1  ;;  %6681 = vmatmul.mubr.f32.gmra.mxu1 %v19502_v13  ;;  %6470 = vmatprep.mubr.f32.mxu0 %v16569_v11  ;;  %v5938_v5 = vadd.f32 %v16462_v49, %v5937_v26  ;;  %v5307_v26 = vld [vmem:[#allocation2 + $0x7a] sm:$0xff] }
 0x4f0   : > { %v16574_v50 = vadd.f32 %v6152_v57, %v5928_v16  ;;  %6685 = vmatprep.mubr.f32.mxu1 %v5265_v24  ;;  %v5939_v39 = vpop.f32.mrf.mxu0  ;;  %8043 = vmatpush1.msra.mxu1 %v11730_v54 }
 0x4f1   : > { %v6154_v2 = vpop.f32.mrf.mxu1  ;;  %8044 = vmatprep.subr.mxu1 %v16477_v7  ;;  %v11761_v39 = vld [vmem:[%s19343_s1 + $0xe78] sm:$0xff] }
 0x4f2   : > { %v5942_v15 = vpop.f32.mrf.mxu0  ;;  %6471 = vmatmul.mubr.f32.gmra.mxu0 %v5265_v24  ;;  %v5308_v2 = vld [vmem:[#allocation2 + $0x82] sm:$0xff]  ;;  %8045 = vmatpush2.msra.mxu1 %v11761_v39 }
 0x4f3   : > { %v6157_v53 = vpop.f32.mrf.mxu1  ;;  %6686 = vmatmul.mubr.f32.gmra.mxu1 %v19503_v18  ;;  %6475 = vmatprep.mubr.f32.mxu0 %v16580_v40  ;;  %v5943_v8 = vadd.f32 %v16462_v49, %v5942_v15  ;;  %v5316_v39 = vld [vmem:[#allocation2 + $0xe2] sm:$0xff] }
 0x4f4   : > { %v16585_v55 = vadd.f32 %v6157_v53, %v5933_v6  ;;  %6690 = vmatprep.mubr.f32.mxu1 %v5266_v9  ;;  %v5944_v22 = vpop.f32.mrf.mxu0  ;;  %v5309_v53 = vld [vmem:[#allocation2 + $0x92] sm:$0xff]  ;;  %8046 = vmatprep.subr.mxu1 %v16477_v7 }
 0x4f5   : > { %v6159_v35 = vpop.f32.mrf.mxu1  ;;  %8047 = vmatpush2.msra.mxu1 %v11760_v60 }
 0x4f6   : > { %v5947_v37 = vpop.f32.mrf.mxu0  ;;  %6476 = vmatmul.mubr.f32.gmra.mxu0 %v5266_v9  ;;  %8048 = vmatprep.subr.mxu1 %v16477_v7 }
 0x4f7   : > { %v6162_v10 = vpop.f32.mrf.mxu1  ;;  %6691 = vmatmul.mubr.f32.gmra.mxu1 %v16378_v46  ;;  %12313 = vmatprep.mubr.f32.mxu0 %v5301_v0  ;;  %v5948_v19 = vadd.f32 %v16462_v49, %v5947_v37  ;;  %v5311_v0 = vld [vmem:[#allocation2 + $0xaa] sm:$0xff] }
 0x4f8   : > { %v16593_v44 = vadd.f32 %v6162_v10, %v5938_v5  ;;  %v5949_v59 = vpop.f32.mrf.mxu0  ;;  %6695 = vmatprep.mubr.f32.mxu1 %v5267_v23  ;;  %v5310_v23 = vld [vmem:[#allocation2 + $0x9a] sm:$0xff] }
 0x4f9   : > { %v6164_v32 = vpop.f32.mrf.mxu1  ;;  %v11777_v59 = vld [vmem:[%s19343_s1 + $0xef8] sm:$0xff] }
 0x4fa   : > { %v5952_v33 = vpop.f32.mrf.mxu0  ;;  %12314 = vmatmul.mubr.f32.vlgmr.msra.gmra.mxu0 %v5302_v45  ;;  %v11759_v32 = vld [vmem:[%s19343_s1 + $0xe68] sm:$0xff] }
 0x4fb   : > { %v6167_v46 = vpop.f32.mrf.mxu1  ;;  %6696 = vmatmul.mubr.f32.gmra.mxu1 %v5203_v48  ;;  %12316 = vmatprep.mubr.f32.mxu0 %v5303_v30  ;;  %v5953_v29 = vadd.f32 %v16462_v49, %v5952_v33 }
 0x4fc   : > { %v16600_v3 = vadd.f32 %v6167_v46, %v5943_v8  ;;  %v5954_v56 = vpop.f32.mrf.mxu0  ;;  %6700 = vmatprep.mubr.f32.mxu1 %v5268_v27  ;;  %8238 = vmatpush1.msra.mxu0 %v11777_v59  ;;  %v5312_v27 = vld [vmem:[#allocation2 + $0xb2] sm:$0xff]  ;;  %v5313_v46 = vld [vmem:[#allocation2 + $0xc2] sm:$0xff]  ;;  %v5319_v59 = vld [vmem:[#allocation2 + $0x10a] sm:$0xff] }
 0x4fd   : > { %v6169_v47 = vpop.f32.mrf.mxu1  ;;  %8049 = vmatpush2.msra.mxu1 %v11759_v32  ;;  %8239 = vmatprep.subr.mxu0 %v16477_v7  ;;  %v11776_v8 = vld [vmem:[%s19343_s1 + $0xef0] sm:$0xff]  ;;  %v11769_v32 = vld [vmem:[%s19343_s1 + $0xeb8] sm:$0xff] }
 0x4fe   : > { %v5957_v4 = vpop.f32.mrf.mxu0  ;;  %12317 = vmatmul.mubr.f32.gmra.mxu0 %v5304_v51  ;;  %8050 = vmatprep.subr.mxu1 %v16477_v7 }
 0x4ff   : > { %v6172_v36 = vpop.f32.mrf.mxu1  ;;  %6701 = vmatmul.mubr.f32.gmra.mxu1 %v16477_v7  ;;  %12319 = vmatprep.mubr.f32.mxu0 %v5305_v34  ;;  %v5958_v6 = vadd.f32 %v16462_v49, %v5957_v4  ;;  %v5314_v34 = vld [vmem:[#allocation2 + $0xca] sm:$0xff] }
 0x500   : > { %v16608_v31 = vadd.f32 %v6172_v36, %v5948_v19  ;;  %v5959_v61 = vpop.f32.mrf.mxu0  ;;  %8240 = vmatpush1.msra.mxu0 %v11776_v8  ;;  %v11758_v19 = vld [vmem:[%s19343_s1 + $0xe60] sm:$0xff]  ;;  %v11755_v8 = vld [vmem:[%s19343_s1 + $0xe48] sm:$0xff] }
 0x501   : > { %v6174_v62 = vpop.f32.mrf.mxu1  ;;  %8241 = vmatprep.subr.mxu0 %v16477_v7  ;;  %8051 = vmatpush2.msra.mxu1 %v11758_v19  ;;  %v11774_v36 = vld [vmem:[%s19343_s1 + $0xee0] sm:$0xff] }
 0x502   : > { %v5962_v16 = vpop.f32.mrf.mxu0  ;;  %12320 = vmatmul.mubr.f32.gmra.mxu0 %v5306_v21  ;;  %v5315_v62 = vld [vmem:[#allocation2 + $0xda] sm:$0xff]  ;;  %8052 = vmatprep.subr.mxu1 %v16477_v7 }
 0x503   : > { %v6177_v57 = vpop.f32.mrf.mxu1  ;;  %12322 = vmatprep.mubr.f32.mxu0 %v5307_v26  ;;  %v5963_v5 = vadd.f32 %v16462_v49, %v5962_v16  ;;  %8242 = vmatpush1.msra.mxu0 %v11775_v52 }
 0x504   : > { %v16615_v13 = vadd.f32 %v6177_v57, %v5953_v29  ;;  %v5964_v24 = vpop.f32.mrf.mxu0  ;;  %8243 = vmatprep.subr.mxu0 %v16477_v7  ;;  %v11773_v29 = vld [vmem:[%s19343_s1 + $0xed8] sm:$0xff] }
 0x505   : > { %v6179_v25 = vpop.f32.mrf.mxu1  ;;  %8244 = vmatpush1.msra.mxu0 %v11774_v36  ;;  %v11757_v57 = vld [vmem:[%s19343_s1 + $0xe58] sm:$0xff] }
 0x506   : > { %v5967_v15 = vpop.f32.mrf.mxu0  ;;  %12323 = vmatmul.mubr.f32.gmra.mxu0 %v5308_v2  ;;  %8245 = vmatprep.subr.mxu0 %v16477_v7  ;;  %v11772_v25 = vld [vmem:[%s19343_s1 + $0xed0] sm:$0xff] }
 0x507   : > { %v6182_v18 = vpop.f32.mrf.mxu1  ;;  %12325 = vmatprep.mubr.f32.mxu0 %v5309_v53  ;;  %v5968_v33 = vadd.f32 %v16462_v49, %v5967_v15  ;;  %8053 = vmatpush2.msra.mxu1 %v11757_v57  ;;  %v5317_v15 = vld [vmem:[#allocation2 + $0xf2] sm:$0xff]  ;;  %v5323_v57 = vld [vmem:[#allocation2 + $0x13a] sm:$0xff] }
 0x508   : > { %v16622_v9 = vadd.f32 %v6182_v18, %v5958_v6  ;;  %v5969_v22 = vpop.f32.mrf.mxu0  ;;  %8246 = vmatpush1.msra.mxu0 %v11773_v29  ;;  %v11771_v18 = vld [vmem:[%s19343_s1 + $0xec8] sm:$0xff]  ;;  %8054 = vmatprep.subr.mxu1 %v16477_v7 }
 0x509   : > { %v6184_v35 = vpop.f32.mrf.mxu1  ;;  %8247 = vmatprep.subr.mxu0 %v16477_v7 }
 0x50a   : > { %v5972_v37 = vpop.f32.mrf.mxu0  ;;  %12326 = vmatmul.mubr.f32.gmra.mxu0 %v5310_v23  ;;  %v11756_v35 = vld [vmem:[%s19343_s1 + $0xe50] sm:$0xff] }
 0x50b   : > { %v6187_v10 = vpop.f32.mrf.mxu1  ;;  %12328 = vmatprep.mubr.f32.mxu0 %v5311_v0  ;;  %v5973_v61 = vadd.f32 %v16462_v49, %v5972_v37  ;;  %8248 = vmatpush1.msra.mxu0 %v11772_v25  ;;  %v11770_v37 = vld [vmem:[%s19343_s1 + $0xec0] sm:$0xff] }
 0x50c   : > { %v16632_v48 = vadd.f32 %v6187_v10, %v5963_v5  ;;  %v5974_v17 = vpop.f32.mrf.mxu0  ;;  %8249 = vmatprep.subr.mxu0 %v16477_v7  ;;  %v5318_v5 = vld [vmem:[#allocation2 + $0xfa] sm:$0xff]  ;;  %8055 = vmatpush2.msra.mxu1 %v11756_v35 }
 0x50d   : > { %v6189_v45 = vpop.f32.mrf.mxu1  ;;  %8250 = vmatpush1.msra.mxu0 %v11771_v18  ;;  %8056 = vmatprep.subr.mxu1 %v16477_v7  ;;  %v11764_v18 = vld [vmem:[%s19343_s1 + $0xe90] sm:$0xff] }
 0x50e   : > { %v5977_v30 = vpop.f32.mrf.mxu0  ;;  %12329 = vmatmul.mubr.f32.gmra.mxu0 %v5312_v27  ;;  %8251 = vmatprep.subr.mxu0 %v16477_v7 }
 0x50f   : > { %v6192_v56 = vpop.f32.mrf.mxu1  ;;  %12331 = vmatprep.mubr.f32.mxu0 %v5313_v46  ;;  %v5978_v2 = vadd.f32 %v16462_v49, %v5977_v30  ;;  %8252 = vmatpush1.msra.mxu0 %v11770_v37  ;;  %v5320_v30 = vld [vmem:[#allocation2 + $0x112] sm:$0xff]  ;;  %v11763_v37 = vld [vmem:[%s19343_s1 + $0xe88] sm:$0xff] }
 0x510   : > { %v16646_v47 = vadd.f32 %v6192_v56, %v5968_v33  ;;  %v5979_v51 = vpop.f32.mrf.mxu0  ;;  %8253 = vmatprep.subr.mxu0 %v16477_v7  ;;  %8057 = vmatpush2.msra.mxu1 %v11755_v8  ;;  %v11768_v46 = vld [vmem:[%s19343_s1 + $0xeb0] sm:$0xff] }
 0x511   : > { %v6194_v4 = vpop.f32.mrf.mxu1  ;;  %8254 = vmatpush1.msra.mxu0 %v11769_v32  ;;  %v5321_v51 = vld [vmem:[#allocation2 + $0x122] sm:$0xff]  ;;  %8058 = vmatprep.subr.mxu1 %v16477_v7  ;;  %v5326_v32 = vld [vmem:[#allocation2 + $0x15a] sm:$0xff] }
 0x512   : > { %v5982_v54 = vpop.f32.mrf.mxu0  ;;  %12332 = vmatmul.mubr.f32.gmra.mxu0 %v5314_v34  ;;  %8255 = vmatprep.subr.mxu0 %v16477_v7  ;;  %v11767_v4 = vld [vmem:[%s19343_s1 + $0xea8] sm:$0xff] }
 0x513   : > { %v6197_v21 = vpop.f32.mrf.mxu1  ;;  %12334 = vmatprep.mubr.f32.mxu0 %v5315_v62  ;;  %v5983_v0 = vadd.f32 %v16462_v49, %v5982_v54  ;;  %8256 = vmatpush1.msra.mxu0 %v11768_v46  ;;  %v5322_v62 = vld [vmem:[#allocation2 + $0x12a] sm:$0xff] }
 0x514   : > { %v16660_v16 = vadd.f32 %v6197_v21, %v5973_v61  ;;  %v5984_v26 = vpop.f32.mrf.mxu0  ;;  %8257 = vmatprep.subr.mxu0 %v16477_v7  ;;  %v11754_v61 = vld [vmem:[%s19343_s1 + $0xe40] sm:$0xff] }
 0x515   : > { %v6199_v24 = vpop.f32.mrf.mxu1  ;;  %8059 = vmatpush2.msra.mxu1 %v11754_v61  ;;  %8258 = vmatpush1.msra.mxu0 %v11767_v4  ;;  %v11766_v21 = vld [vmem:[%s19343_s1 + $0xea0] sm:$0xff]  ;;  %v11792_v61 = vld [vmem:[%s19343_s1 + $0xf70] sm:$0xff] }
 0x516   : > { %v5987_v6 = vpop.f32.mrf.mxu0  ;;  %12335 = vmatmul.mubr.f32.gmra.mxu0 %v5316_v39  ;;  %8259 = vmatprep.subr.mxu0 %v16477_v7  ;;  %v11765_v39 = vld [vmem:[%s19343_s1 + $0xe98] sm:$0xff] }
 0x517   : > { %v6202_v53 = vpop.f32.mrf.mxu1  ;;  %12337 = vmatprep.mubr.f32.mxu0 %v5317_v15  ;;  %v5988_v56 = vadd.f32 %v16462_v49, %v5987_v6  ;;  %8260 = vmatpush1.msra.mxu0 %v11766_v21  ;;  %v11753_v6 = vld [vmem:[%s19343_s1 + $0xe38] sm:$0xff] }
 0x518   : > { %v16675_v22 = vadd.f32 %v6202_v53, %v5978_v2  ;;  %v5989_v60 = vpop.f32.mrf.mxu0  ;;  %8060 = vmatprep.subr.mxu1 %v16477_v7  ;;  %8261 = vmatprep.subr.mxu0 %v16477_v7  ;;  %v5324_v53 = vld [vmem:[#allocation2 + $0x142] sm:$0xff] }
 0x519   : > { %v6204_v23 = vpop.f32.mrf.mxu1  ;;  %8061 = vmatpush2.msra.mxu1 %v11753_v6  ;;  %8262 = vmatpush1.msra.mxu0 %v11765_v39  ;;  %v11750_v39 = vld [vmem:[%s19343_s1 + $0xe20] sm:$0xff] }
 0x51a   : > { %v5992_v10 = vpop.f32.mrf.mxu0  ;;  %12338 = vmatmul.mubr.f32.gmra.mxu0 %v5318_v5  ;;  %v5325_v23 = vld [vmem:[#allocation2 + $0x152] sm:$0xff]  ;;  %8263 = vmatprep.subr.mxu0 %v16477_v7 }
 0x51b   : > { %v6207_v17 = vpop.f32.mrf.mxu1  ;;  %12340 = vmatprep.mubr.f32.mxu0 %v5319_v59  ;;  %v5993_v29 = vadd.f32 %v16462_v49, %v5992_v10  ;;  %8264 = vmatpush1.msra.mxu0 %v11764_v18  ;;  %v11752_v59 = vld [vmem:[%s19343_s1 + $0xe30] sm:$0xff]  ;;  %v5332_v18 = vld [vmem:[#allocation2 + $0x1a2] sm:$0xff] }
 0x51c   : > { %v16690_v45 = vadd.f32 %v6207_v17, %v5983_v0  ;;  %v5994_v27 = vpop.f32.mrf.mxu0  ;;  %8062 = vmatprep.subr.mxu1 %v16477_v7  ;;  %8265 = vmatprep.subr.mxu0 %v16477_v7 }
 0x51d   : > { %v6209_v33 = vpop.f32.mrf.mxu1  ;;  %8063 = vmatpush2.msra.mxu1 %v11752_v59  ;;  %8266 = vmatpush1.msra.mxu0 %v11763_v37  ;;  %v11762_v27 = vld [vmem:[%s19343_s1 + $0xe80] sm:$0xff]  ;;  %v11788_v37 = vld [vmem:[%s19343_s1 + $0xf50] sm:$0xff] }
 0x51e   : > { %v5997_v52 = vpop.f32.mrf.mxu0  ;;  %12341 = vmatmul.mubr.f32.gmra.mxu0 %v5320_v30  ;;  %v5327_v30 = vld [vmem:[#allocation2 + $0x16a] sm:$0xff]  ;;  %8267 = vmatprep.subr.mxu0 %v16477_v7 }
 0x51f   : > { %v6212_v19 = vpop.f32.mrf.mxu1  ;;  %12343 = vmatprep.mubr.f32.mxu0 %v5321_v51  ;;  %v5998_v60 = vadd.f32 %v16462_v49, %v5997_v52  ;;  %8268 = vmatpush1.msra.mxu0 %v11762_v27  ;;  %v11787_v27 = vld [vmem:[%s19343_s1 + $0xf48] sm:$0xff] }
 0x520   : > { %v16705_v34 = vadd.f32 %v6212_v19, %v5988_v56  ;;  %v5999_v36 = vpop.f32.mrf.mxu0  ;;  %v11793_v56 = vld [vmem:[%s19343_s1 + $0xf78] sm:$0xff]  ;;  %8064 = vmatprep.subr.mxu1 %v16477_v7  ;;  %8269 = vmatprep.subr.mxu0 %v16477_v7  ;;  %v11751_v19 = vld [vmem:[%s19343_s1 + $0xe28] sm:$0xff] }
 0x521   : > { %v6214_v54 = vpop.f32.mrf.mxu1  ;;  %v5328_v36 = vld [vmem:[#allocation2 + $0x172] sm:$0xff]  ;;  %8065 = vmatpush2.msra.mxu1 %v11751_v19  ;;  %8270 = vmatpush2.msra.mxu0 %v11793_v56  ;;  %v11747_v56 = vld [vmem:[%s19343_s1 + $0xe08] sm:$0xff] }
 0x522   : > { %v6002_v26 = vpop.f32.mrf.mxu0  ;;  %12344 = vmatmul.mubr.f32.gmra.mxu0 %v5322_v62  ;;  %8271 = vmatprep.subr.mxu0 %v16477_v7 }
 0x523   : > { %v6217_v24 = vpop.f32.mrf.mxu1  ;;  %12346 = vmatprep.mubr.f32.mxu0 %v5323_v57  ;;  %v6003_v8 = vadd.f32 %v16462_v49, %v6002_v26  ;;  %8272 = vmatpush2.msra.mxu0 %v11792_v61  ;;  %v11785_v61 = vld [vmem:[%s19343_s1 + $0xf38] sm:$0xff] }
 0x524   : > { %v16720_v25 = vadd.f32 %v6217_v24, %v5993_v29  ;;  %v6004_v2 = vpop.f32.mrf.mxu0  ;;  %v11791_v29 = vld [vmem:[%s19343_s1 + $0xf68] sm:$0xff]  ;;  %v5331_v24 = vld [vmem:[#allocation2 + $0x19a] sm:$0xff]  ;;  %8066 = vmatprep.subr.mxu1 %v16477_v7  ;;  %8273 = vmatprep.subr.mxu0 %v16477_v7 }
 0x525   : > { %v6219_v15 = vpop.f32.mrf.mxu1  ;;  %8067 = vmatpush2.msra.mxu1 %v11750_v39  ;;  %8274 = vmatpush2.msra.mxu0 %v11791_v29 }
 0x526   : > { %v6007_v35 = vpop.f32.mrf.mxu0  ;;  %12347 = vmatmul.mubr.f32.gmra.mxu0 %v5324_v53  ;;  %8275 = vmatprep.subr.mxu0 %v16477_v7 }
 0x527   : > { %v6222_v5 = vpop.f32.mrf.mxu1  ;;  %12349 = vmatprep.mubr.f32.mxu0 %v5325_v23  ;;  %v6008_v54 = vadd.f32 %v16462_v49, %v6007_v35  ;;  %8068 = vmatprep.subr.mxu1 %v16477_v7 }
 0x528   : > { %v16735_v0 = vadd.f32 %v6222_v5, %v5998_v60  ;;  %v6009_v10 = vpop.f32.mrf.mxu0  ;;  %v11789_v60 = vld [vmem:[%s19343_s1 + $0xf58] sm:$0xff] }
 0x529   : > { %v6224_v17 = vpop.f32.mrf.mxu1 }
 0x52a   : > { %v6012_v33 = vpop.f32.mrf.mxu0  ;;  %12350 = vmatmul.mubr.f32.gmra.mxu0 %v5326_v32  ;;  %v11748_v32 = vld [vmem:[%s19343_s1 + $0xe10] sm:$0xff] }
 0x52b   : > { %v6227_v46 = vpop.f32.mrf.mxu1  ;;  %12352 = vmatprep.mubr.f32.mxu0 %v5327_v30  ;;  %v6013_v6 = vadd.f32 %v16462_v49, %v6012_v33 }
 0x52c   : > { %v16750_v52 = vadd.f32 %v6227_v46, %v6003_v8  ;;  %v6014_v51 = vpop.f32.mrf.mxu0  ;;  %v11786_v46 = vld [vmem:[%s19343_s1 + $0xf40] sm:$0xff] }
 0x52d   : > { %v6229_v4 = vpop.f32.mrf.mxu1 }
 0x52e   : > { %v6017_v62 = vpop.f32.mrf.mxu0  ;;  %12353 = vmatmul.mubr.f32.gmra.mxu0 %v5328_v36 }
 0x52f   : > { %v6232_v21 = vpop.f32.mrf.mxu1  ;;  %12355 = vmatprep.mubr.f32.mxu0 %v16569_v11  ;;  %v11790_v11 = vld [vmem:[%s19343_s1 + $0xf60] sm:$0xff]  ;;  %v6018_v10 = vadd.f32 %v16462_v49, %v6017_v62  ;;  %v7059_v62 = vld [vmem:[#allocation3 + $0x1] sm:$0xff] }
 0x530   : > { %v16766_v26 = vadd.f32 %v6232_v21, %v6008_v54  ;;  %v6019_v57 = vpop.f32.mrf.mxu0  ;;  %8276 = vmatpush2.msra.mxu0 %v11790_v11  ;;  %v11746_v54 = vld [vmem:[%s19343_s1 + $0xe00] sm:$0xff]  ;;  %8076 = vmatprep.mubr.f32.mxu1 %v7059_v62 }
 0x531   : > { %v6234_v2 = vpop.f32.mrf.mxu1  ;;  %8277 = vmatprep.subr.mxu0 %v16477_v7  ;;  %v6995_v57 = vld [vmem:[#allocation3] sm:$0xff] }
 0x532   : > { %v6022_v15 = vpop.f32.mrf.mxu0  ;;  %12356 = vmatmul.mubr.f32.gmra.mxu0 %v16580_v40  ;;  %v11749_v40 = vld [vmem:[%s19343_s1 + $0xe18] sm:$0xff] }
 0x533   : > { %v6237_v53 = vpop.f32.mrf.mxu1  ;;  %12358 = vmatprep.mubr.f32.mxu0 %v5331_v24  ;;  %8069 = vmatpush2.msra.mxu1 %v11749_v40  ;;  %v6023_v51 = vadd.f32 %v16462_v49, %v6022_v15  ;;  %v11784_v24 = vld [vmem:[%s19343_s1 + $0xf30] sm:$0xff]  ;;  %v11783_v15 = vld [vmem:[%s19343_s1 + $0xf28] sm:$0xff] }
 0x534   : > { %v16782_v35 = vadd.f32 %v6237_v53, %v6013_v6  ;;  %v6024_v23 = vpop.f32.mrf.mxu0  ;;  %8278 = vmatpush2.msra.mxu0 %v11789_v60  ;;  %8070 = vmatprep.subr.mxu1 %v16477_v7  ;;  %v7060_v53 = vld [vmem:[#allocation3 + $0x9] sm:$0xff] }
 0x535   : > { %v6239_v5 = vpop.f32.mrf.mxu1  ;;  %8279 = vmatprep.subr.mxu0 %v16477_v7  ;;  %8071 = vmatpush2.msra.mxu1 %v11748_v32  ;;  %v11780_v32 = vld [vmem:[%s19343_s1 + $0xf10] sm:$0xff] }
 0x536   : > { %v6027_v59 = vpop.f32.mrf.mxu0  ;;  %12359 = vmatmul.mubr.f32.gmra.mxu0 %v5332_v18  ;;  %8072 = vmatprep.subr.mxu1 %v16477_v7 }
 0x537   : > { %v6242_v17 = vpop.f32.mrf.mxu1  ;;  %8280 = vmatpush2.msra.mxu0 %v11788_v37  ;;  %8073 = vmatpush2.msra.mxu1 %v11747_v56  ;;  %v6028_v39 = vadd.f32 %v16462_v49, %v6027_v59  ;;  %v11781_v37 = vld [vmem:[%s19343_s1 + $0xf18] sm:$0xff] }
 0x538   : > { %v16801_v8 = vadd.f32 %v6242_v17, %v6018_v10  ;;  %v6029_v33 = vpop.f32.mrf.mxu0  ;;  %8281 = vmatprep.subr.mxu0 %v16477_v7  ;;  %8074 = vmatprep.subr.mxu1 %v16477_v7 }
 0x539   : > { %v6244_v30 = vpop.f32.mrf.mxu1  ;;  %8282 = vmatpush2.msra.mxu0 %v11787_v27  ;;  %8075 = vmatpush2.msra.mxu1 %v11746_v54  ;;  %v16852_v33 = vld [vmem:[#allocation2 + $0x8] sm:$0xff]  ;;  %v11808_v54 = vld [vmem:[%s19343_s1 + $0xff0] sm:$0xff] }
 0x53a   : > { %v6322_v19 = vpop.f32.mrf.mxu0  ;;  %8283 = vmatprep.subr.mxu0 %v16477_v7  ;;  %8077 = vmatmul.mubr.f32.vlgmr.msra.gmra.mxu1 %v6995_v57 }
 0x53b   : > { %v6247_v4 = vpop.f32.mrf.mxu1  ;;  %v6323_v36 = vadd.f32 %v6322_v19, %v16470_v38  ;;  %8284 = vmatpush2.msra.mxu0 %v11786_v46  ;;  %8462 = vmatprep.subr.mxu1 %v16477_v7  ;;  %v11809_v46 = vld [vmem:[%s19343_s1 + $0xff8] sm:$0xff] }
 0x53c   : > { %v16821_v21 = vadd.f32 %v6247_v4, %v6023_v51  ;;  %v6324_v29 = vpop.f32.mrf.mxu0  ;;  %8285 = vmatprep.subr.mxu0 %v16477_v7  ;;  %8081 = vmatprep.mubr.f32.mxu1 %v7060_v53 }
 0x53d   : > { %v6249_v38 = vpop.f32.mrf.mxu1  ;;  %8286 = vmatpush2.msra.mxu0 %v11785_v61  ;;  %8463 = vmatpush1.msra.mxu1 %v11809_v46 }
 0x53e   : > { %v6327_v2 = vpop.f32.mrf.mxu0  ;;  %8287 = vmatprep.subr.mxu0 %v16477_v7  ;;  %8082 = vmatmul.mubr.f32.gmra.mxu1 %v16477_v7 }
 0x53f   : > { %v6252_v11 = vpop.f32.mrf.mxu1  ;;  %v6328_v6 = vadd.f32 %v6327_v2, %v16482_v20  ;;  %8288 = vmatpush2.msra.mxu0 %v11784_v24  ;;  %v11782_v20 = vld [vmem:[%s19343_s1 + $0xf20] sm:$0xff]  ;;  %8464 = vmatprep.subr.mxu1 %v16852_v33 }
 0x540   : > { %v16834_v18 = vadd.f32 %v6252_v11, %v6028_v39  ;;  %v6329_v60 = vpop.f32.mrf.mxu0  ;;  %8289 = vmatprep.subr.mxu0 %v16477_v7  ;;  %8465 = vmatpush1.msra.mxu1 %v11808_v54 }
 0x541   : > { %v6254_v49 = vpop.f32.mrf.mxu1  ;;  %8290 = vmatpush2.msra.mxu0 %v11783_v15  ;;  %8466 = vmatprep.subr.mxu1 %v16852_v33 }
 0x542   : > { %v6332_v23 = vpop.f32.mrf.mxu0  ;;  %8291 = vmatprep.subr.mxu0 %v16477_v7 }
 0x543   : > { %v6333_v40 = vadd.f32 %v6332_v23, %v16491_v63  ;;  %v6547_v5 = vpop.f32.mrf.mxu1  ;;  %8292 = vmatpush2.msra.mxu0 %v11782_v20 }
 0x544   : > { %v16846_v10 = vadd.f32 %v6547_v5, %v6323_v36  ;;  %v6334_v59 = vpop.f32.mrf.mxu0  ;;  %8293 = vmatprep.subr.mxu0 %v16477_v7  ;;  %v11779_v7 = vld [vmem:[%s19343_s1 + $0xf08] sm:$0xff] }
 0x545   : > { %v6549_v17 = vpop.f32.mrf.mxu1  ;;  %8294 = vmatpush2.msra.mxu0 %v11781_v37 }
 0x546   : > { %v6337_v27 = vpop.f32.mrf.mxu0  ;;  %8295 = vmatprep.subr.mxu0 %v16852_v33 }
 0x547   : > { %v6338_v63 = vadd.f32 %v6337_v27, %v16500_v58  ;;  %v6552_v30 = vpop.f32.mrf.mxu1  ;;  %8296 = vmatpush2.msra.mxu0 %v11780_v32  ;;  %v11778_v58 = vld [vmem:[%s19343_s1 + $0xf00] sm:$0xff] }
 0x548   : > { %v16862_v56 = vadd.f32 %v6552_v30, %v6328_v6  ;;  %v6339_v51 = vpop.f32.mrf.mxu0  ;;  %8297 = vmatprep.subr.mxu0 %v16852_v33 }
 0x549   : > { %v6554_v19 = vpop.f32.mrf.mxu1  ;;  %8298 = vmatpush2.msra.mxu0 %v11779_v7 }
 0x54a   : > { %v6342_v4 = vpop.f32.mrf.mxu0  ;;  %8299 = vmatprep.subr.mxu0 %v16852_v33 }
 0x54b   : > { %v6343_v36 = vadd.f32 %v6342_v4, %v16509_v12  ;;  %v6557_v61 = vpop.f32.mrf.mxu1  ;;  %8300 = vmatpush2.msra.mxu0 %v11778_v58  ;;  %v11807_v12 = vld [vmem:[%s19343_s1 + $0xfe8] sm:$0xff] }
 0x54c   : > { %v16874_v62 = vadd.f32 %v6557_v61, %v6333_v40  ;;  %v6344_v29 = vpop.f32.mrf.mxu0  ;;  %8687 = vmatprep.subr.mxu0 %v16852_v33  ;;  %8467 = vmatpush1.msra.mxu1 %v11807_v12 }
 0x54d   : > { %v6559_v57 = vpop.f32.mrf.mxu1  ;;  %8468 = vmatprep.subr.mxu1 %v16852_v33 }
 0x54e   : > { %v6347_v38 = vpop.f32.mrf.mxu0 }
 0x54f   : > { %v6348_v24 = vadd.f32 %v6347_v38, %v16518_v43  ;;  %v6562_v39 = vpop.f32.mrf.mxu1  ;;  %v11806_v43 = vld [vmem:[%s19343_s1 + $0xfe0] sm:$0xff] }
 0x550   : > { %v16882_v2 = vadd.f32 %v6562_v39, %v6338_v63  ;;  %v6349_v11 = vpop.f32.mrf.mxu0  ;;  %8469 = vmatpush1.msra.mxu1 %v11806_v43 }
 0x551   : > { %v6564_v6 = vpop.f32.mrf.mxu1  ;;  %8470 = vmatprep.subr.mxu1 %v16852_v33 }
 0x552   : > { %v6352_v15 = vpop.f32.mrf.mxu0 }
 0x553   : > { %v6353_v53 = vadd.f32 %v6352_v15, %v16527_v14  ;;  %v6567_v60 = vpop.f32.mrf.mxu1  ;;  %v11805_v14 = vld [vmem:[%s19343_s1 + $0xfd8] sm:$0xff] }
 0x554   : > { %v16889_v49 = vadd.f32 %v6567_v60, %v6343_v36  ;;  %v6354_v20 = vpop.f32.mrf.mxu0  ;;  %8471 = vmatpush1.msra.mxu1 %v11805_v14 }
 0x555   : > { %v6569_v23 = vpop.f32.mrf.mxu1  ;;  %8472 = vmatprep.subr.mxu1 %v16852_v33 }
 0x556   : > { %v6357_v40 = vpop.f32.mrf.mxu0 }
 0x557   : > { %v6358_v5 = vadd.f32 %v6357_v40, %v16536_v1  ;;  %v6572_v37 = vpop.f32.mrf.mxu1  ;;  %v11804_v1 = vld [vmem:[%s19343_s1 + $0xfd0] sm:$0xff] }
 0x558   : > { %v16896_v59 = vadd.f32 %v6572_v37, %v6348_v24  ;;  %v6359_v17 = vpop.f32.mrf.mxu0  ;;  %8473 = vmatpush1.msra.mxu1 %v11804_v1 }
 0x559   : > { %v6574_v32 = vpop.f32.mrf.mxu1  ;;  %8474 = vmatprep.subr.mxu1 %v16852_v33 }
 0x55a   : > { %v6362_v27 = vpop.f32.mrf.mxu0 }
 0x55b   : > { %v6363_v63 = vadd.f32 %v6362_v27, %v16545_v42  ;;  %v6577_v30 = vpop.f32.mrf.mxu1  ;;  %v11803_v42 = vld [vmem:[%s19343_s1 + $0xfc8] sm:$0xff] }
 0x55c   : > { %v16903_v46 = vadd.f32 %v6577_v30, %v6353_v53  ;;  %v6364_v7 = vpop.f32.mrf.mxu0  ;;  %8475 = vmatpush1.msra.mxu1 %v11803_v42 }
 0x55d   : > { %v6579_v51 = vpop.f32.mrf.mxu1  ;;  %8476 = vmatprep.subr.mxu1 %v16852_v33 }
 0x55e   : > { %v6367_v19 = vpop.f32.mrf.mxu0 }
 0x55f   : > { %v6368_v58 = vadd.f32 %v6367_v19, %v16554_v28  ;;  %v6582_v4 = vpop.f32.mrf.mxu1  ;;  %v11802_v28 = vld [vmem:[%s19343_s1 + $0xfc0] sm:$0xff] }
 0x560   : > { %v16910_v36 = vadd.f32 %v6582_v4, %v6358_v5  ;;  %v6369_v61 = vpop.f32.mrf.mxu0  ;;  %8477 = vmatpush1.msra.mxu1 %v11802_v28 }
 0x561   : > { %v6584_v54 = vpop.f32.mrf.mxu1  ;;  %8478 = vmatprep.subr.mxu1 %v16852_v33 }
 0x562   : > { %v6372_v29 = vpop.f32.mrf.mxu0 }
 0x563   : > { %v6373_v57 = vadd.f32 %v6372_v29, %v16563_v41  ;;  %v6587_v38 = vpop.f32.mrf.mxu1  ;;  %v11801_v41 = vld [vmem:[%s19343_s1 + $0xfb8] sm:$0xff] }
 0x564   : > { %v16917_v24 = vadd.f32 %v6587_v38, %v6363_v63  ;;  %v6374_v39 = vpop.f32.mrf.mxu0  ;;  %8479 = vmatpush1.msra.mxu1 %v11801_v41 }
 0x565   : > { %v6589_v12 = vpop.f32.mrf.mxu1  ;;  %8480 = vmatprep.subr.mxu1 %v16852_v33 }
 0x566   : > { %v6377_v11 = vpop.f32.mrf.mxu0 }
 0x567   : > { %v6378_v6 = vadd.f32 %v6377_v11, %v16574_v50  ;;  %v6592_v15 = vpop.f32.mrf.mxu1  ;;  %v11800_v50 = vld [vmem:[%s19343_s1 + $0xfb0] sm:$0xff] }
 0x568   : > { %v16924_v53 = vadd.f32 %v6592_v15, %v6368_v58  ;;  %v6379_v60 = vpop.f32.mrf.mxu0  ;;  %8481 = vmatpush1.msra.mxu1 %v11800_v50 }
 0x569   : > { %v6594_v43 = vpop.f32.mrf.mxu1  ;;  %8482 = vmatprep.subr.mxu1 %v16852_v33  ;;  %v11795_v60 = vld [vmem:[%s19343_s1 + $0xf88] sm:$0xff] }
 0x56a   : > { %v6382_v20 = vpop.f32.mrf.mxu0 }
 0x56b   : > { %v6383_v23 = vadd.f32 %v6382_v20, %v16585_v55  ;;  %v6597_v40 = vpop.f32.mrf.mxu1  ;;  %v11799_v55 = vld [vmem:[%s19343_s1 + $0xfa8] sm:$0xff] }
 0x56c   : > { %v16931_v5 = vadd.f32 %v6597_v40, %v6373_v57  ;;  %v6384_v37 = vpop.f32.mrf.mxu0  ;;  %8483 = vmatpush1.msra.mxu1 %v11799_v55 }
 0x56d   : > { %v6599_v14 = vpop.f32.mrf.mxu1  ;;  %8484 = vmatprep.subr.mxu1 %v16852_v33 }
 0x56e   : > { %v6387_v17 = vpop.f32.mrf.mxu0 }
 0x56f   : > { %v6388_v32 = vadd.f32 %v6387_v17, %v16593_v44  ;;  %v6602_v27 = vpop.f32.mrf.mxu1  ;;  %v11798_v44 = vld [vmem:[%s19343_s1 + $0xfa0] sm:$0xff] }
 0x570   : > { %v16938_v63 = vadd.f32 %v6602_v27, %v6378_v6  ;;  %v6389_v30 = vpop.f32.mrf.mxu0  ;;  %8485 = vmatpush1.msra.mxu1 %v11798_v44 }
 0x571   : > { %v6604_v1 = vpop.f32.mrf.mxu1  ;;  %8486 = vmatprep.subr.mxu1 %v16852_v33 }
 0x572   : > { %v6392_v7 = vpop.f32.mrf.mxu0 }
 0x573   : > { %v6393_v51 = vadd.f32 %v6392_v7, %v16600_v3  ;;  %v6607_v19 = vpop.f32.mrf.mxu1  ;;  %v11797_v3 = vld [vmem:[%s19343_s1 + $0xf98] sm:$0xff] }
 0x574   : > { %v16945_v58 = vadd.f32 %v6607_v19, %v6383_v23  ;;  %v6394_v4 = vpop.f32.mrf.mxu0  ;;  %8487 = vmatpush1.msra.mxu1 %v11797_v3  ;;  %v11794_v23 = vld [vmem:[%s19343_s1 + $0xf80] sm:$0xff] }
 0x575   : > { %v6609_v42 = vpop.f32.mrf.mxu1  ;;  %8488 = vmatprep.subr.mxu1 %v16852_v33 }
 0x576   : > { %v6397_v61 = vpop.f32.mrf.mxu0 }
 0x577   : > { %v6398_v54 = vadd.f32 %v6397_v61, %v16608_v31  ;;  %v6612_v29 = vpop.f32.mrf.mxu1  ;;  %v11796_v31 = vld [vmem:[%s19343_s1 + $0xf90] sm:$0xff] }
 0x578   : > { %v16952_v57 = vadd.f32 %v6612_v29, %v6388_v32  ;;  %v6399_v38 = vpop.f32.mrf.mxu0  ;;  %8489 = vmatpush1.msra.mxu1 %v11796_v31 }
 0x579   : > { %v6614_v28 = vpop.f32.mrf.mxu1  ;;  %8490 = vmatprep.subr.mxu1 %v16852_v33 }
 0x57a   : > { %v6402_v39 = vpop.f32.mrf.mxu0  ;;  %8491 = vmatpush1.msra.mxu1 %v11795_v60 }
 0x57b   : > { %v6403_v12 = vadd.f32 %v6402_v39, %v16615_v13  ;;  %v6617_v11 = vpop.f32.mrf.mxu1  ;;  %8492 = vmatprep.subr.mxu1 %v16852_v33 }
 0x57c   : > { %v16959_v6 = vadd.f32 %v6617_v11, %v6393_v51  ;;  %v6404_v15 = vpop.f32.mrf.mxu0  ;;  %8493 = vmatpush1.msra.mxu1 %v11794_v23 }
 0x57d   : > { %v6619_v41 = vpop.f32.mrf.mxu1  ;;  %8494 = vmatprep.subr.mxu1 %v16852_v33 }
 0x57e   : > { %v6407_v43 = vpop.f32.mrf.mxu0 }
 0x57f   : > { %v6408_v13 = vadd.f32 %v6407_v43, %v16622_v9  ;;  %v6622_v20 = vpop.f32.mrf.mxu1  ;;  %v11825_v9 = vld [vmem:[%s19343_s1 + $0x1078] sm:$0xff] }
 0x580   : > { %v16970_v40 = vadd.f32 %v6622_v20, %v6398_v54  ;;  %v6409_v50 = vpop.f32.mrf.mxu0  ;;  %8495 = vmatpush2.msra.mxu1 %v11825_v9 }
 0x581   : > { %v6624_v37 = vpop.f32.mrf.mxu1  ;;  %8496 = vmatprep.subr.mxu1 %v16852_v33 }
 0x582   : > { %v6412_v14 = vpop.f32.mrf.mxu0 }
 0x583   : > { %v6413_v17 = vadd.f32 %v6412_v14, %v16632_v48  ;;  %v6627_v32 = vpop.f32.mrf.mxu1  ;;  %v11824_v48 = vld [vmem:[%s19343_s1 + $0x1070] sm:$0xff] }
 0x584   : > { %v16977_v27 = vadd.f32 %v6627_v32, %v6403_v12  ;;  %v6414_v55 = vpop.f32.mrf.mxu0  ;;  %8497 = vmatpush2.msra.mxu1 %v11824_v48 }
 0x585   : > { %v6629_v30 = vpop.f32.mrf.mxu1  ;;  %8498 = vmatprep.subr.mxu1 %v16852_v33 }
 0x586   : > { %v6417_v1 = vpop.f32.mrf.mxu0 }
 0x587   : > { %v6418_v7 = vadd.f32 %v6417_v1, %v16646_v47  ;;  %v6632_v51 = vpop.f32.mrf.mxu1  ;;  %v11823_v47 = vld [vmem:[%s19343_s1 + $0x1068] sm:$0xff] }
 0x588   : > { %v16984_v19 = vadd.f32 %v6632_v51, %v6408_v13  ;;  %v6419_v44 = vpop.f32.mrf.mxu0  ;;  %8499 = vmatpush2.msra.mxu1 %v11823_v47 }
 0x589   : > { %v6634_v4 = vpop.f32.mrf.mxu1  ;;  %8500 = vmatprep.subr.mxu1 %v16852_v33 }
 0x58a   : > { %v6422_v42 = vpop.f32.mrf.mxu0 }
 0x58b   : > { %v6423_v61 = vadd.f32 %v6422_v42, %v16660_v16  ;;  %v6637_v54 = vpop.f32.mrf.mxu1  ;;  %v11822_v16 = vld [vmem:[%s19343_s1 + $0x1060] sm:$0xff] }
 0x58c   : > { %v16991_v29 = vadd.f32 %v6637_v54, %v6413_v17  ;;  %v6424_v3 = vpop.f32.mrf.mxu0  ;;  %8501 = vmatpush2.msra.mxu1 %v11822_v16 }
 0x58d   : > { %v6639_v38 = vpop.f32.mrf.mxu1  ;;  %8502 = vmatprep.subr.mxu1 %v16852_v33 }
 0x58e   : > { %v6427_v28 = vpop.f32.mrf.mxu0 }
 0x58f   : > { %v6428_v39 = vadd.f32 %v6427_v28, %v16675_v22  ;;  %v6642_v12 = vpop.f32.mrf.mxu1  ;;  %v11821_v22 = vld [vmem:[%s19343_s1 + $0x1058] sm:$0xff] }
 0x590   : > { %v16998_v11 = vadd.f32 %v6642_v12, %v6418_v7  ;;  %v6429_v31 = vpop.f32.mrf.mxu0  ;;  %8503 = vmatpush2.msra.mxu1 %v11821_v22 }
 0x591   : > { %v6644_v15 = vpop.f32.mrf.mxu1  ;;  %8504 = vmatprep.subr.mxu1 %v16852_v33 }
 0x592   : > { %v6432_v41 = vpop.f32.mrf.mxu0 }
 0x593   : > { %v6433_v60 = vadd.f32 %v6432_v41, %v16690_v45  ;;  %v6647_v43 = vpop.f32.mrf.mxu1  ;;  %v11820_v45 = vld [vmem:[%s19343_s1 + $0x1050] sm:$0xff] }
 0x594   : > { %v17005_v13 = vadd.f32 %v6647_v43, %v6423_v61  ;;  %v6434_v20 = vpop.f32.mrf.mxu0  ;;  %8505 = vmatpush2.msra.mxu1 %v11820_v45 }
 0x595   : > { %v6649_v23 = vpop.f32.mrf.mxu1  ;;  %8506 = vmatprep.subr.mxu1 %v16852_v33 }
 0x596   : > { %v6437_v50 = vpop.f32.mrf.mxu0 }
 0x597   : > { %v6438_v37 = vadd.f32 %v6437_v50, %v16705_v34  ;;  %v6652_v14 = vpop.f32.mrf.mxu1  ;;  %v11819_v34 = vld [vmem:[%s19343_s1 + $0x1048] sm:$0xff] }
 0x598   : > { %v17012_v17 = vadd.f32 %v6652_v14, %v6428_v39  ;;  %v6439_v32 = vpop.f32.mrf.mxu0  ;;  %8507 = vmatpush2.msra.mxu1 %v11819_v34 }
 0x599   : > { %v6654_v9 = vpop.f32.mrf.mxu1  ;;  %8508 = vmatprep.subr.mxu1 %v16852_v33 }
 0x59a   : > { %v6442_v55 = vpop.f32.mrf.mxu0 }
 0x59b   : > { %v6443_v30 = vadd.f32 %v6442_v55, %v16720_v25  ;;  %v6657_v1 = vpop.f32.mrf.mxu1  ;;  %v11818_v25 = vld [vmem:[%s19343_s1 + $0x1040] sm:$0xff] }
 0x59c   : > { %v17019_v7 = vadd.f32 %v6657_v1, %v6433_v60  ;;  %v6444_v51 = vpop.f32.mrf.mxu0  ;;  %8509 = vmatpush2.msra.mxu1 %v11818_v25 }
 0x59d   : > { %v6659_v48 = vpop.f32.mrf.mxu1  ;;  %8510 = vmatprep.subr.mxu1 %v16852_v33 }
 0x59e   : > { %v6447_v44 = vpop.f32.mrf.mxu0 }
 0x59f   : > { %v6448_v4 = vadd.f32 %v6447_v44, %v16735_v0  ;;  %v6662_v42 = vpop.f32.mrf.mxu1  ;;  %v11817_v0 = vld [vmem:[%s19343_s1 + $0x1038] sm:$0xff] }
 0x5a0   : > { %v17026_v61 = vadd.f32 %v6662_v42, %v6438_v37  ;;  %v6449_v54 = vpop.f32.mrf.mxu0  ;;  %8511 = vmatpush2.msra.mxu1 %v11817_v0  ;;  %v11811_v0 = vld [vmem:[%s19343_s1 + $0x1008] sm:$0xff] }
 0x5a1   : > { %v6664_v47 = vpop.f32.mrf.mxu1  ;;  %8512 = vmatprep.subr.mxu1 %v16852_v33 }
 0x5a2   : > { %v6452_v3 = vpop.f32.mrf.mxu0 }
 0x5a3   : > { %v6453_v38 = vadd.f32 %v6452_v3, %v16750_v52  ;;  %v6667_v28 = vpop.f32.mrf.mxu1  ;;  %v11816_v52 = vld [vmem:[%s19343_s1 + $0x1030] sm:$0xff] }
 0x5a4   : > { %v17033_v39 = vadd.f32 %v6667_v28, %v6443_v30  ;;  %v6454_v12 = vpop.f32.mrf.mxu0  ;;  %8513 = vmatpush2.msra.mxu1 %v11816_v52 }
 0x5a5   : > { %v6669_v16 = vpop.f32.mrf.mxu1  ;;  %8514 = vmatprep.subr.mxu1 %v16852_v33 }
 0x5a6   : > { %v6457_v31 = vpop.f32.mrf.mxu0 }
 0x5a7   : > { %v17037_v15 = vadd.f32 %v6457_v31, %v16766_v26  ;;  %v6672_v41 = vpop.f32.mrf.mxu1  ;;  %v11815_v26 = vld [vmem:[%s19343_s1 + $0x1028] sm:$0xff] }
 0x5a8   : > { %v17042_v60 = vadd.f32 %v6672_v41, %v6448_v4  ;;  %v6459_v43 = vpop.f32.mrf.mxu0  ;;  %8515 = vmatpush2.msra.mxu1 %v11815_v26 }
 0x5a9   : > { %v6674_v22 = vpop.f32.mrf.mxu1  ;;  %8516 = vmatprep.subr.mxu1 %v16852_v33 }
 0x5aa   : > { %v6462_v20 = vpop.f32.mrf.mxu0 }
 0x5ab   : > { %v17046_v23 = vadd.f32 %v6462_v20, %v16782_v35  ;;  %v6677_v50 = vpop.f32.mrf.mxu1  ;;  %v11814_v35 = vld [vmem:[%s19343_s1 + $0x1020] sm:$0xff] }
 0x5ac   : > { %v17051_v37 = vadd.f32 %v6677_v50, %v6453_v38  ;;  %v6464_v14 = vpop.f32.mrf.mxu0  ;;  %8517 = vmatpush2.msra.mxu1 %v11814_v35 }
 0x5ad   : > { %v6679_v45 = vpop.f32.mrf.mxu1  ;;  %8518 = vmatprep.subr.mxu1 %v16852_v33 }
 0x5ae   : > { %v6467_v32 = vpop.f32.mrf.mxu0 }
 0x5af   : > { %v17055_v9 = vadd.f32 %v6467_v32, %v16801_v8  ;;  %v17057_v55 = vpop.f32.mrf.mxu1  ;;  %v11813_v8 = vld [vmem:[%s19343_s1 + $0x1018] sm:$0xff] }
 0x5b0   : > { %v6469_v30 = vpop.f32.mrf.mxu0  ;;  %8519 = vmatpush2.msra.mxu1 %v11813_v8  ;;  %v17101_v32 = vld [vmem:[%s19343_s1 + $0x11f8] sm:$0xff] }
 0x5b1   : > { %v6684_v1 = vpop.f32.mrf.mxu1  ;;  %8520 = vmatprep.subr.mxu1 %v16852_v33 }
 0x5b2   : > { %v6472_v34 = vpop.f32.mrf.mxu0 }
 0x5b3   : > { %v17064_v51 = vadd.f32 %v6472_v34, %v16821_v21  ;;  %v17066_v48 = vpop.f32.mrf.mxu1  ;;  %v11812_v21 = vld [vmem:[%s19343_s1 + $0x1010] sm:$0xff] }
 0x5b4   : > { %v6474_v44 = vpop.f32.mrf.mxu0  ;;  %8521 = vmatpush2.msra.mxu1 %v11812_v21 }
 0x5b5   : > { %v6689_v4 = vpop.f32.mrf.mxu1  ;;  %8522 = vmatprep.subr.mxu1 %v16852_v33 }
 0x5b6   : > { %v17072_v42 = vpop.f32.mrf.mxu0  ;;  %8523 = vmatpush2.msra.mxu1 %v11811_v0 }
 0x5b7   : > { %v17074_v25 = vpop.f32.mrf.mxu1  ;;  %8524 = vmatprep.subr.mxu1 %v16852_v33 }
 0x5b8   : > { %v6479_v54 = vpop.f32.mrf.mxu0 }
 0x5b9   : > { %v6694_v47 = vpop.f32.mrf.mxu1  ;;  %v11841_v54 = vld [vmem:[%s19343_s1 + $0x10f8] sm:$0xff] }
 0x5ba   : > { %v12315_v3 = vpop.f32.mrf.mxu0 }
 0x5bb   : > { %v17080_v38 = vpop.f32.mrf.mxu1  ;;  %v6778_v28 = vadd.f32 %v12315_v3, %v16862_v56  ;;  %v11810_v56 = vld [vmem:[%s19343_s1 + $0x1000] sm:$0xff] }
 0x5bc   : > { %v6772_v12 = vpop.f32.mrf.mxu0  ;;  %8525 = vmatpush2.msra.mxu1 %v11810_v56 }
 0x5bd   : > { %v6932_v16 = vmax.f32 %v6778_v28, 0.0  ;;  %v6699_v31 = vpop.f32.mrf.mxu1  ;;  %v6773_v41 = vadd.f32 %v6772_v12, %v16846_v10  ;;  %12361 = vmatprep.subr.mxu1 %v17101_v32  ;;  %v11840_v28 = vld [vmem:[%s19343_s1 + $0x10f0] sm:$0xff] }
 0x5be   : > { %v12318_v52 = vpop.f32.mrf.mxu0 }
 0x5bf   : > { %6964 = vst [vmem:[#allocation3 + $0x21] sm:$0xff] %v6932_v16  ;;  %v6931_v43 = vmax.f32 %v6773_v41, 0.0  ;;  %v17088_v22 = vpop.f32.mrf.mxu1  ;;  %v17091_v20 = vadd.f32 %v12318_v52, %v16882_v2 }
 0x5c0   : > { %v6782_v50 = vpop.f32.mrf.mxu0 }
 0x5c1   : > { %6963 = vst [vmem:[#allocation3 + $0x19] sm:$0xff] %v6931_v43  ;;  %v6934_v26 = vmax.f32 %v17091_v20, 0.0  ;;  %v6783_v10 = vadd.f32 %v6782_v50, %v16874_v62  ;;  %8086 = vmatprep.mubr.f32.mxu1 %v6931_v43  ;;  %v6704_v14 = vpop.f32.mrf.mxu1 }
 0x5c2   : > { %v12321_v45 = vpop.f32.mrf.mxu0 }
 0x5c3   : > { %6966 = vst [vmem:[#allocation3 + $0x39] sm:$0xff] %v6934_v26  ;;  %v6933_v2 = vmax.f32 %v6783_v10, 0.0  ;;  %v17106_v35 = vadd.f32 %v12321_v45, %v16896_v59  ;;  %v7123_v59 = vld [vmem:[#allocation3 + $0x2] sm:$0xff]  ;;  %v11838_v10 = vld [vmem:[%s19343_s1 + $0x10e0] sm:$0xff] }
 0x5c4   : > { %v6792_v30 = vpop.f32.mrf.mxu0 }
 0x5c5   : > { %6965 = vst [vmem:[#allocation3 + $0x31] sm:$0xff] %v6933_v2  ;;  %v6936_v62 = vmax.f32 %v17106_v35, 0.0  ;;  %v17111_v1 = vadd.f32 %v6792_v30, %v16889_v49 }
 0x5c6   : > { %v12324_v34 = vpop.f32.mrf.mxu0 }
 0x5c7   : > { %6968 = vst [vmem:[#allocation3 + $0x51] sm:$0xff] %v6936_v62  ;;  %v6935_v8 = vmax.f32 %v17111_v1, 0.0  ;;  %v17117_v44 = vadd.f32 %v12324_v34, %v16910_v36  ;;  %v11837_v34 = vld [vmem:[%s19343_s1 + $0x10d8] sm:$0xff]  ;;  %v11835_v1 = vld [vmem:[%s19343_s1 + $0x10c8] sm:$0xff] }
 0x5c8   : > { %v6802_v4 = vpop.f32.mrf.mxu0  ;;  %v7187_v21 = vld [vmem:[#allocation3 + $0x18] sm:$0xff]  ;;  %v7188_v36 = vld [vmem:[#allocation3 + $0x20] sm:$0xff] }
 0x5c9   : > { %6967 = vst [vmem:[#allocation3 + $0x49] sm:$0xff] %v6935_v8  ;;  %v6938_v49 = vmax.f32 %v17117_v44, 0.0  ;;  %v17126_v47 = vadd.f32 %v6802_v4, %v16903_v46  ;;  %8301 = vmatprep.mubr.f32.mxu0 %v7187_v21  ;;  %8087 = vmatmul.mubr.f32.gmra.mxu1 %v7187_v21  ;;  %v7124_v46 = vld [vmem:[#allocation3 + $0xa] sm:$0xff]  ;;  %v17189_v21 = vld [vmem:[#allocation3 + $0x22] sm:$0xff] }
 0x5ca   : > { %v12327_v3 = vpop.f32.mrf.mxu0  ;;  %8302 = vmatmul.mubr.f32.vlgmr.msra.gmra.mxu0 %v7123_v59  ;;  %8091 = vmatprep.mubr.f32.mxu1 %v6932_v16 }
 0x5cb   : > { %6970 = vst [vmem:[#allocation3 + $0x69] sm:$0xff] %v6938_v49  ;;  %v6937_v0 = vmax.f32 %v17126_v47, 0.0  ;;  %v17135_v12 = vadd.f32 %v12327_v3, %v16924_v53  ;;  %8306 = vmatprep.mubr.f32.mxu0 %v7188_v36  ;;  %8688 = vmatpush1.msra.mxu0 %v11841_v54  ;;  %v11839_v53 = vld [vmem:[%s19343_s1 + $0x10e8] sm:$0xff]  ;;  %v11832_v47 = vld [vmem:[%s19343_s1 + $0x10b0] sm:$0xff] }
 0x5cc   : > { %v6812_v31 = vpop.f32.mrf.mxu0  ;;  %8689 = vmatprep.subr.mxu0 %v16852_v33  ;;  %v7189_v43 = vld [vmem:[#allocation3 + $0x30] sm:$0xff]  ;;  %v17169_v30 = vld [vmem:[#allocation3 + $0x38] sm:$0xff] }
 0x5cd   : > { %6969 = vst [vmem:[#allocation3 + $0x61] sm:$0xff] %v6937_v0  ;;  %v6940_v16 = vmax.f32 %v17135_v12, 0.0  ;;  %v17142_v41 = vadd.f32 %v6812_v31, %v16917_v24  ;;  %8092 = vmatmul.mubr.f32.gmra.mxu1 %v7188_v36  ;;  %8690 = vmatpush1.msra.mxu0 %v11840_v28  ;;  %v6683_v12 = vadd.f32 %v17057_v55, %v17037_v15 }
 0x5ce   : > { %v12330_v52 = vpop.f32.mrf.mxu0  ;;  %8307 = vmatmul.mubr.f32.gmra.mxu0 %v7124_v46  ;;  %8096 = vmatprep.mubr.f32.mxu1 %v6933_v2 }
 0x5cf   : > { %6972 = vst [vmem:[#allocation3 + $0x81] sm:$0xff] %v6940_v16  ;;  %v6939_v56 = vmax.f32 %v17142_v41, 0.0  ;;  %v17151_v50 = vadd.f32 %v12330_v52, %v16938_v63  ;;  %8311 = vmatprep.mubr.f32.mxu0 %v7189_v43  ;;  %8691 = vmatprep.subr.mxu0 %v16852_v33  ;;  %v17163_v63 = vld [vmem:[#allocation3 + $0x1a] sm:$0xff]  ;;  %v11834_v52 = vld [vmem:[%s19343_s1 + $0x10c0] sm:$0xff]  ;;  %v11829_v41 = vld [vmem:[%s19343_s1 + $0x1098] sm:$0xff] }
 0x5d0   : > { %v6822_v24 = vpop.f32.mrf.mxu0  ;;  %8692 = vmatpush1.msra.mxu0 %v11839_v53  ;;  %v17197_v3 = vld [vmem:[#allocation3 + $0x48] sm:$0xff]  ;;  %v17223_v53 = vld [vmem:[#allocation3 + $0x50] sm:$0xff] }
 0x5d1   : > { %6971 = vst [vmem:[#allocation3 + $0x79] sm:$0xff] %v6939_v56  ;;  %v6942_v14 = vmax.f32 %v17151_v50, 0.0  ;;  %v17161_v45 = vadd.f32 %v6822_v24, %v16931_v5  ;;  %8097 = vmatmul.mubr.f32.gmra.mxu1 %v7189_v43  ;;  %8693 = vmatprep.subr.mxu0 %v16852_v33 }
 0x5d2   : > { %v12333_v2 = vpop.f32.mrf.mxu0  ;;  %8312 = vmatmul.mubr.f32.gmra.mxu0 %v17163_v63  ;;  %8101 = vmatprep.mubr.f32.mxu1 %v6934_v26 }
 0x5d3   : > { %6974 = vst [vmem:[#allocation3 + $0x99] sm:$0xff] %v6942_v14  ;;  %v6941_v5 = vmax.f32 %v17161_v45, 0.0  ;;  %v17178_v59 = vadd.f32 %v12333_v2, %v16952_v57  ;;  %8316 = vmatprep.mubr.f32.mxu0 %v17169_v30  ;;  %8694 = vmatpush1.msra.mxu0 %v11838_v10  ;;  %v11836_v57 = vld [vmem:[%s19343_s1 + $0x10d0] sm:$0xff]  ;;  %v11826_v45 = vld [vmem:[%s19343_s1 + $0x1080] sm:$0xff] }
 0x5d4   : > { %v6832_v4 = vpop.f32.mrf.mxu0  ;;  %8695 = vmatprep.subr.mxu0 %v16852_v33  ;;  %v17243_v10 = vld [vmem:[#allocation3 + $0x3a] sm:$0xff] }
 0x5d5   : > { %6973 = vst [vmem:[#allocation3 + $0x91] sm:$0xff] %v6941_v5  ;;  %v6944_v20 = vmax.f32 %v17178_v59, 0.0  ;;  %v17186_v26 = vadd.f32 %v6832_v4, %v16945_v58  ;;  %8102 = vmatmul.mubr.f32.gmra.mxu1 %v17169_v30  ;;  %8696 = vmatpush1.msra.mxu0 %v11837_v34  ;;  %v17251_v34 = vld [vmem:[#allocation3 + $0x60] sm:$0xff]  ;;  %v11853_v59 = vld [vmem:[%s19343_s1 + $0x1158] sm:$0xff] }
 0x5d6   : > { %v12336_v54 = vpop.f32.mrf.mxu0  ;;  %8317 = vmatmul.mubr.f32.gmra.mxu0 %v17189_v21  ;;  %8106 = vmatprep.mubr.f32.mxu1 %v6935_v8 }
 0x5d7   : > { %6976 = vst [vmem:[#allocation3 + $0xb1] sm:$0xff] %v6944_v20  ;;  %v6943_v58 = vmax.f32 %v17186_v26, 0.0  ;;  %v17203_v36 = vadd.f32 %v12336_v54, %v16970_v40  ;;  %8321 = vmatprep.mubr.f32.mxu0 %v17197_v3  ;;  %8697 = vmatprep.subr.mxu0 %v16852_v33  ;;  %v17217_v40 = vld [vmem:[#allocation3 + $0x32] sm:$0xff] }
 0x5d8   : > { %v6842_v28 = vpop.f32.mrf.mxu0  ;;  %8698 = vmatpush1.msra.mxu0 %v11836_v57  ;;  %v11855_v26 = vld [vmem:[%s19343_s1 + $0x1168] sm:$0xff] }
 0x5d9   : > { %6975 = vst [vmem:[#allocation3 + $0xa9] sm:$0xff] %v6943_v58  ;;  %v6946_v8 = vmax.f32 %v17203_v36, 0.0  ;;  %v17214_v46 = vadd.f32 %v6842_v28, %v16959_v6  ;;  %8107 = vmatmul.mubr.f32.gmra.mxu1 %v17197_v3  ;;  %8699 = vmatprep.subr.mxu0 %v16852_v33  ;;  %v11850_v36 = vld [vmem:[%s19343_s1 + $0x1140] sm:$0xff] }
 0x5da   : > { %v12339_v31 = vpop.f32.mrf.mxu0  ;;  %8322 = vmatmul.mubr.f32.gmra.mxu0 %v17217_v40  ;;  %8111 = vmatprep.mubr.f32.mxu1 %v6936_v62 }
 0x5db   : > { %6978 = vst [vmem:[#allocation3 + $0xc9] sm:$0xff] %v6946_v8  ;;  %v6945_v6 = vmax.f32 %v17214_v46, 0.0  ;;  %v17232_v43 = vadd.f32 %v12339_v31, %v16984_v19  ;;  %8326 = vmatprep.mubr.f32.mxu0 %v17223_v53  ;;  %8700 = vmatpush1.msra.mxu0 %v11835_v1  ;;  %v11833_v19 = vld [vmem:[%s19343_s1 + $0x10b8] sm:$0xff]  ;;  %v11831_v31 = vld [vmem:[%s19343_s1 + $0x10a8] sm:$0xff] }
 0x5dc   : > { %v6852_v24 = vpop.f32.mrf.mxu0  ;;  %8701 = vmatprep.subr.mxu0 %v16852_v33  ;;  %v17277_v1 = vld [vmem:[#allocation3 + $0x68] sm:$0xff]  ;;  %v17361_v15 = vld [vmem:[#allocation3 + $0x90] sm:$0xff] }
 0x5dd   : > { %6977 = vst [vmem:[#allocation3 + $0xc1] sm:$0xff] %v6945_v6  ;;  %v6948_v35 = vmax.f32 %v17232_v43, 0.0  ;;  %v17240_v62 = vadd.f32 %v6852_v24, %v16977_v27  ;;  %8112 = vmatmul.mubr.f32.gmra.mxu1 %v17223_v53  ;;  %8702 = vmatpush1.msra.mxu0 %v11834_v52  ;;  %v11847_v43 = vld [vmem:[%s19343_s1 + $0x1128] sm:$0xff] }
 0x5de   : > { %v12342_v2 = vpop.f32.mrf.mxu0  ;;  %8327 = vmatmul.mubr.f32.gmra.mxu0 %v17243_v10  ;;  %8116 = vmatprep.mubr.f32.mxu1 %v6937_v0 }
 0x5df   : > { %6980 = vst [vmem:[#allocation3 + $0xe1] sm:$0xff] %v6948_v35  ;;  %v6947_v27 = vmax.f32 %v17240_v62, 0.0  ;;  %v17257_v4 = vadd.f32 %v12342_v2, %v16998_v11  ;;  %8331 = vmatprep.mubr.f32.mxu0 %v17251_v34  ;;  %8703 = vmatprep.subr.mxu0 %v16852_v33  ;;  %v17271_v11 = vld [vmem:[#allocation3 + $0x4a] sm:$0xff] }
 0x5e0   : > { %v6862_v57 = vpop.f32.mrf.mxu0  ;;  %8704 = vmatpush1.msra.mxu0 %v11833_v19  ;;  %v17297_v19 = vld [vmem:[#allocation3 + $0x52] sm:$0xff] }
 0x5e1   : > { %6979 = vst [vmem:[#allocation3 + $0xd9] sm:$0xff] %v6947_v27  ;;  %v6950_v0 = vmax.f32 %v17257_v4, 0.0  ;;  %v17268_v54 = vadd.f32 %v6862_v57, %v16991_v29  ;;  %8117 = vmatmul.mubr.f32.gmra.mxu1 %v17251_v34  ;;  %8705 = vmatprep.subr.mxu0 %v16852_v33  ;;  %v17305_v57 = vld [vmem:[#allocation3 + $0x78] sm:$0xff]  ;;  %v11844_v4 = vld [vmem:[%s19343_s1 + $0x1110] sm:$0xff] }
 0x5e2   : > { %v12345_v28 = vpop.f32.mrf.mxu0  ;;  %8332 = vmatmul.mubr.f32.gmra.mxu0 %v17271_v11  ;;  %8121 = vmatprep.mubr.f32.mxu1 %v6938_v49 }
 0x5e3   : > { %6982 = vst [vmem:[#allocation3 + $0xf9] sm:$0xff] %v6950_v0  ;;  %v6949_v29 = vmax.f32 %v17268_v54, 0.0  ;;  %v17286_v52 = vadd.f32 %v12345_v28, %v17012_v17  ;;  %8336 = vmatprep.mubr.f32.mxu0 %v17277_v1  ;;  %8706 = vmatpush1.msra.mxu0 %v11832_v47  ;;  %v11830_v17 = vld [vmem:[%s19343_s1 + $0x10a0] sm:$0xff] }
 0x5e4   : > { %v6872_v24 = vpop.f32.mrf.mxu0  ;;  %8707 = vmatprep.subr.mxu0 %v16852_v33 }
 0x5e5   : > { %6981 = vst [vmem:[#allocation3 + $0xf1] sm:$0xff] %v6949_v29  ;;  %v19402_v44 = vmax.f32 %v17286_v52, 0.0  ;;  %v17294_v49 = vadd.f32 %v6872_v24, %v17005_v13  ;;  %8122 = vmatmul.mubr.f32.gmra.mxu1 %v17277_v1  ;;  %8708 = vmatpush1.msra.mxu0 %v11831_v31 }
 0x5e6   : > { %v12348_v2 = vpop.f32.mrf.mxu0  ;;  %8337 = vmatmul.mubr.f32.gmra.mxu0 %v17297_v19  ;;  %8126 = vmatprep.mubr.f32.mxu1 %v6939_v56 }
 0x5e7   : > { %6984 = vst [vmem:[#allocation3 + $0x111] sm:$0xff] %v19402_v44  ;;  %v6951_v13 = vmax.f32 %v17294_v49, 0.0  ;;  %v17311_v47 = vadd.f32 %v12348_v2, %v17026_v61  ;;  %8341 = vmatprep.mubr.f32.mxu0 %v17305_v57  ;;  %8709 = vmatprep.subr.mxu0 %v16852_v33  ;;  %v17325_v61 = vld [vmem:[#allocation3 + $0x62] sm:$0xff]  ;;  %v19504_v49 = vmax.f32 %v17286_v52, 0.0 }
 0x5e8   : > { %v6882_v28 = vpop.f32.mrf.mxu0  ;;  %8710 = vmatpush1.msra.mxu0 %v11830_v17  ;;  %v17331_v17 = vld [vmem:[#allocation3 + $0x80] sm:$0xff] }
 0x5e9   : > { %6983 = vst [vmem:[#allocation3 + $0x109] sm:$0xff] %v6951_v13  ;;  %v19403_v56 = vmax.f32 %v17311_v47, 0.0  ;;  %v17322_v31 = vadd.f32 %v6882_v28, %v17019_v7  ;;  %8127 = vmatmul.mubr.f32.gmra.mxu1 %v17305_v57  ;;  %8711 = vmatprep.subr.mxu0 %v16852_v33  ;;  %v11828_v2 = vld [vmem:[%s19343_s1 + $0x1090] sm:$0xff] }
 0x5ea   : > { %v12351_v24 = vpop.f32.mrf.mxu0  ;;  %8342 = vmatmul.mubr.f32.gmra.mxu0 %v17325_v61  ;;  %8131 = vmatprep.mubr.f32.mxu1 %v6940_v16  ;;  %v17506_v62 = vld [vmem:[#allocation3 + $0xe0] sm:$0xff] }
 0x5eb   : > { %6986 = vst [vmem:[#allocation3 + $0x129] sm:$0xff] %v19403_v56  ;;  %v6953_v7 = vmax.f32 %v17322_v31, 0.0  ;;  %v17340_v28 = vadd.f32 %v12351_v24, %v17042_v60  ;;  %8346 = vmatprep.mubr.f32.mxu0 %v17331_v17  ;;  %8712 = vmatpush1.msra.mxu0 %v11829_v41  ;;  %v17353_v60 = vld [vmem:[#allocation3 + $0x6a] sm:$0xff]  ;;  %v11827_v41 = vld [vmem:[%s19343_s1 + $0x1088] sm:$0xff] }
 0x5ec   : > { %v6892_v44 = vpop.f32.mrf.mxu0  ;;  %8713 = vmatprep.subr.mxu0 %v16852_v33  ;;  %v17536_v54 = vld [vmem:[#allocation3 + $0xf8] sm:$0xff] }
 0x5ed   : > { %6985 = vst [vmem:[#allocation3 + $0x121] sm:$0xff] %v6953_v7  ;;  %v19404_v16 = vmax.f32 %v17340_v28, 0.0  ;;  %v17350_v56 = vadd.f32 %v6892_v44, %v17033_v39  ;;  %8132 = vmatmul.mubr.f32.gmra.mxu1 %v17331_v17  ;;  %8714 = vmatpush1.msra.mxu0 %v11828_v2 }
 0x5ee   : > { %v12354_v24 = vpop.f32.mrf.mxu0  ;;  %8347 = vmatmul.mubr.f32.gmra.mxu0 %v17353_v60  ;;  %8136 = vmatprep.mubr.f32.mxu1 %v6941_v5  ;;  %v6693_v5 = vadd.f32 %v17074_v25, %v17055_v9  ;;  %v17388_v9 = vld [vmem:[#allocation3 + $0x98] sm:$0xff]  ;;  %v11857_v25 = vld [vmem:[%s19343_s1 + $0x1178] sm:$0xff] }
 0x5ef   : > { %6988 = vst [vmem:[#allocation3 + $0x141] sm:$0xff] %v19404_v16  ;;  %v6955_v39 = vmax.f32 %v17350_v56, 0.0  ;;  %v17366_v55 = vadd.f32 %v12354_v24, %v6683_v12  ;;  %8351 = vmatprep.mubr.f32.mxu0 %v17361_v15  ;;  %8715 = vmatprep.subr.mxu0 %v16852_v33  ;;  %v17382_v24 = vld [vmem:[#allocation3 + $0x7a] sm:$0xff]  ;;  %v17593_v31 = vld [vmem:[#allocation3 + $0x112] sm:$0xff] }
 0x5f0   : > { %v6902_v44 = vpop.f32.mrf.mxu0  ;;  %8716 = vmatpush1.msra.mxu0 %v11827_v41 }
 0x5f1   : > { %6987 = vst [vmem:[#allocation3 + $0x139] sm:$0xff] %v6955_v39  ;;  %v6958_v2 = vmax.f32 %v17366_v55, 0.0  ;;  %v17379_v12 = vadd.f32 %v6902_v44, %v17051_v37  ;;  %8137 = vmatmul.mubr.f32.gmra.mxu1 %v17361_v15  ;;  %8717 = vmatprep.subr.mxu0 %v16852_v33  ;;  %v6688_v37 = vadd.f32 %v17066_v48, %v17046_v23 }
 0x5f2   : > { %v12357_v41 = vpop.f32.mrf.mxu0  ;;  %8352 = vmatmul.mubr.f32.gmra.mxu0 %v17382_v24  ;;  %8141 = vmatprep.mubr.f32.mxu1 %v6942_v14  ;;  %v6478_v44 = vadd.f32 %v17072_v42, %v16834_v18  ;;  %v17403_v14 = vld [vmem:[#allocation2 + $0x8] sm:$0xff]  ;;  %v17413_v42 = vld [vmem:[#allocation3 + $0x82] sm:$0xff]  ;;  %v17611_v56 = vld [vmem:[#allocation3 + $0x12a] sm:$0xff] }
 0x5f3   : > { %6990 = vst [vmem:[#allocation3 + $0x159] sm:$0xff] %v6958_v2  ;;  %v6957_v33 = vmax.f32 %v17379_v12, 0.0  ;;  %v17400_v16 = vadd.f32 %v12357_v41, %v6693_v5  ;;  %8356 = vmatprep.mubr.f32.mxu0 %v17388_v9  ;;  %8718 = vmatpush1.msra.mxu0 %v11826_v45  ;;  %v11856_v45 = vld [vmem:[%s19343_s1 + $0x1170] sm:$0xff]  ;;  %v6698_v41 = vadd.f32 %v17080_v38, %v17064_v51 }
 0x5f4   : > { %v6912_v50 = vpop.f32.mrf.mxu0  ;;  %8719 = vmatprep.subr.mxu0 %v17403_v14  ;;  %v6703_v23 = vadd.f32 %v17088_v22, %v6478_v44  ;;  %v17421_v22 = vld [vmem:[#allocation3 + $0xa8] sm:$0xff]  ;;  %v17579_v52 = vld [vmem:[#allocation3 + $0x120] sm:$0xff] }
 0x5f5   : > { %6989 = vst [vmem:[#allocation3 + $0x151] sm:$0xff] %v6957_v33  ;;  %v6960_v18 = vmax.f32 %v17400_v16, 0.0  ;;  %v17410_v48 = vadd.f32 %v6912_v50, %v6688_v37  ;;  %8142 = vmatmul.mubr.f32.gmra.mxu1 %v17388_v9  ;;  %8720 = vmatpush2.msra.mxu0 %v11857_v25  ;;  %v17442_v50 = vld [vmem:[#allocation3 + $0xb0] sm:$0xff]  ;;  %v11872_v16 = vld [vmem:[%s19343_s1 + $0x11f0] sm:$0xff] }
 0x5f6   : > { %v12360_v5 = vpop.f32.mrf.mxu0  ;;  %8357 = vmatmul.mubr.f32.gmra.mxu0 %v17413_v42  ;;  %8146 = vmatprep.mubr.f32.mxu1 %v6943_v58  ;;  %v17436_v58 = vld [vmem:[#allocation3 + $0x92] sm:$0xff]  ;;  %v17629_v12 = vld [vmem:[#allocation3 + $0x142] sm:$0xff] }
 0x5f7   : > { %6992 = vst [vmem:[#allocation3 + $0x171] sm:$0xff] %v6960_v18  ;;  %v6959_v25 = vmax.f32 %v17410_v48, 0.0  ;;  %v6928_v37 = vadd.f32 %v12360_v5, %v6703_v23  ;;  %8361 = vmatprep.mubr.f32.mxu0 %v17421_v22  ;;  %8721 = vmatprep.subr.mxu0 %v17403_v14  ;;  %v11854_v23 = vld [vmem:[%s19343_s1 + $0x1160] sm:$0xff]  ;;  %v17450_v5 = vld [vmem:[#allocation3 + $0x9a] sm:$0xff] }
 0x5f8   : > { %v6922_v44 = vpop.f32.mrf.mxu0  ;;  %8722 = vmatpush2.msra.mxu0 %v11856_v45 }
 0x5f9   : > { %6991 = vst [vmem:[#allocation3 + $0x169] sm:$0xff] %v6959_v25  ;;  %v6962_v51 = vmax.f32 %v6928_v37, 0.0  ;;  %v6923_v38 = vadd.f32 %v6922_v44, %v6698_v41  ;;  %8147 = vmatmul.mubr.f32.gmra.mxu1 %v17421_v22  ;;  %8723 = vmatprep.subr.mxu0 %v17403_v14  ;;  %v11852_v37 = vld [vmem:[%s19343_s1 + $0x1150] sm:$0xff]  ;;  %v17468_v44 = vld [vmem:[#allocation3 + $0xaa] sm:$0xff] }
 0x5fa   : > { %8362 = vmatmul.mubr.f32.gmra.mxu0 %v17436_v58  ;;  %8151 = vmatprep.mubr.f32.mxu1 %v6944_v20  ;;  %v17458_v20 = vld [vmem:[#allocation3 + $0xc0] sm:$0xff]  ;;  %v17462_v41 = vpop.f32.mrf.mxu1 }
 0x5fb   : > { %6994 = vst [vmem:[#allocation3 + $0x189] sm:$0xff] %v6962_v51  ;;  %v6961_v45 = vmax.f32 %v6923_v38, 0.0  ;;  %8366 = vmatprep.mubr.f32.mxu0 %v17442_v50  ;;  %8724 = vmatpush2.msra.mxu0 %v11855_v26  ;;  %v11851_v26 = vld [vmem:[%s19343_s1 + $0x1148] sm:$0xff] }
 0x5fc   : > { %8725 = vmatprep.subr.mxu0 %v17403_v14  ;;  %v8080_v46 = vpop.f32.mrf.mxu1  ;;  %v17484_v38 = vld [vmem:[#allocation3 + $0xb2] sm:$0xff]  ;;  %v17647_v48 = vld [vmem:[#allocation3 + $0x15a] sm:$0xff] }
 0x5fd   : > { %6993 = vst [vmem:[#allocation3 + $0x181] sm:$0xff] %v6961_v45  ;;  %8152 = vmatmul.mubr.f32.gmra.mxu1 %v17442_v50  ;;  %8726 = vmatpush2.msra.mxu0 %v11854_v23  ;;  %v17492_v23 = vld [vmem:[#allocation3 + $0xd8] sm:$0xff]  ;;  %v11849_v45 = vld [vmem:[%s19343_s1 + $0x1138] sm:$0xff]  ;;  %v11846_v46 = vld [vmem:[%s19343_s1 + $0x1120] sm:$0xff] }
 0x5fe   : > { %8367 = vmatmul.mubr.f32.gmra.mxu0 %v17450_v5  ;;  %8156 = vmatprep.mubr.f32.mxu1 %v6945_v6  ;;  %v17474_v6 = vld [vmem:[#allocation3 + $0xc8] sm:$0xff]  ;;  %v17480_v51 = vpop.f32.mrf.mxu1  ;;  %v17638_v55 = vld [vmem:[#allocation3 + $0x152] sm:$0xff] }
 0x5ff   : > { %8371 = vmatprep.mubr.f32.mxu0 %v17458_v20  ;;  %8727 = vmatprep.subr.mxu0 %v17403_v14 }
 0x600   : > { %8728 = vmatpush2.msra.mxu0 %v11853_v59  ;;  %v17500_v59 = vld [vmem:[#allocation3 + $0xc2] sm:$0xff] }
 0x601   : > { %8157 = vmatmul.mubr.f32.gmra.mxu1 %v17458_v20  ;;  %8729 = vmatprep.subr.mxu0 %v17403_v14 }
 0x602   : > { %8372 = vmatmul.mubr.f32.gmra.mxu0 %v17468_v44  ;;  %8161 = vmatprep.mubr.f32.mxu1 %v6946_v8  ;;  %v8085_v8 = vpop.f32.mrf.mxu1 }
 0x603   : > { %8376 = vmatprep.mubr.f32.mxu0 %v17474_v6  ;;  %8730 = vmatpush2.msra.mxu0 %v11852_v37  ;;  %v17514_v37 = vld [vmem:[#allocation3 + $0xca] sm:$0xff]  ;;  %v11843_v8 = vld [vmem:[%s19343_s1 + $0x1108] sm:$0xff] }
 0x604   : > { %8731 = vmatprep.subr.mxu0 %v17403_v14 }
 0x605   : > { %8162 = vmatmul.mubr.f32.gmra.mxu1 %v17474_v6  ;;  %8732 = vmatpush2.msra.mxu0 %v11851_v26  ;;  %v17530_v26 = vld [vmem:[#allocation3 + $0xda] sm:$0xff] }
 0x606   : > { %8377 = vmatmul.mubr.f32.gmra.mxu0 %v17484_v38  ;;  %8166 = vmatprep.mubr.f32.mxu1 %v6947_v27  ;;  %v11848_v27 = vld [vmem:[%s19343_s1 + $0x1130] sm:$0xff] }
 0x607   : > { %8381 = vmatprep.mubr.f32.mxu0 %v17492_v23  ;;  %8733 = vmatprep.subr.mxu0 %v17403_v14 }
 0x608   : > { %8734 = vmatpush2.msra.mxu0 %v11850_v36  ;;  %v17544_v36 = vld [vmem:[#allocation3 + $0xe2] sm:$0xff] }
 0x609   : > { %8167 = vmatmul.mubr.f32.gmra.mxu1 %v17492_v23  ;;  %8735 = vmatprep.subr.mxu0 %v17403_v14 }
 0x60a   : > { %8382 = vmatmul.mubr.f32.gmra.mxu0 %v17500_v59  ;;  %8171 = vmatprep.mubr.f32.mxu1 %v6948_v35  ;;  %v17522_v35 = vld [vmem:[#allocation3 + $0xf0] sm:$0xff] }
 0x60b   : > { %8386 = vmatprep.mubr.f32.mxu0 %v17506_v62  ;;  %8736 = vmatpush2.msra.mxu0 %v11849_v45  ;;  %v17560_v45 = vld [vmem:[#allocation3 + $0xf2] sm:$0xff] }
 0x60c   : > { %8737 = vmatprep.subr.mxu0 %v17403_v14 }
 0x60d   : > { %8172 = vmatmul.mubr.f32.gmra.mxu1 %v17506_v62  ;;  %8738 = vmatpush2.msra.mxu0 %v11848_v27  ;;  %v11842_v27 = vld [vmem:[%s19343_s1 + $0x1100] sm:$0xff] }
 0x60e   : > { %8387 = vmatmul.mubr.f32.gmra.mxu0 %v17514_v37  ;;  %8176 = vmatprep.mubr.f32.mxu1 %v6949_v29  ;;  %v11845_v29 = vld [vmem:[%s19343_s1 + $0x1118] sm:$0xff] }
 0x60f   : > { %8391 = vmatprep.mubr.f32.mxu0 %v17522_v35  ;;  %8739 = vmatprep.subr.mxu0 %v17403_v14 }
 0x610   : > { %8740 = vmatpush2.msra.mxu0 %v11847_v43  ;;  %v17574_v43 = vld [vmem:[#allocation3 + $0xfa] sm:$0xff] }
 0x611   : > { %8177 = vmatmul.mubr.f32.gmra.mxu1 %v17522_v35  ;;  %8741 = vmatprep.subr.mxu0 %v17403_v14 }
 0x612   : > { %8392 = vmatmul.mubr.f32.gmra.mxu0 %v17530_v26  ;;  %8181 = vmatprep.mubr.f32.mxu1 %v6950_v0  ;;  %v17552_v0 = vld [vmem:[#allocation3 + $0x108] sm:$0xff] }
 0x613   : > { %8396 = vmatprep.mubr.f32.mxu0 %v17536_v54  ;;  %8742 = vmatpush2.msra.mxu0 %v11846_v46  ;;  %v17584_v46 = vld [vmem:[#allocation3 + $0x10a] sm:$0xff] }
 0x614   : > { %8743 = vmatprep.subr.mxu0 %v17403_v14 }
 0x615   : > { %8182 = vmatmul.mubr.f32.gmra.mxu1 %v17536_v54  ;;  %8744 = vmatpush2.msra.mxu0 %v11845_v29  ;;  %v19505_v29 = vmax.f32 %v17311_v47, 0.0  ;;  %v17602_v47 = vld [vmem:[#allocation3 + $0x122] sm:$0xff] }
 0x616   : > { %8397 = vmatmul.mubr.f32.gmra.mxu0 %v17544_v36  ;;  %8186 = vmatprep.mubr.f32.mxu1 %v6951_v13  ;;  %v17566_v13 = vld [vmem:[#allocation3 + $0x110] sm:$0xff] }
 0x617   : > { %8401 = vmatprep.mubr.f32.mxu0 %v17552_v0  ;;  %8745 = vmatprep.subr.mxu0 %v17403_v14 }
 0x618   : > { %8746 = vmatpush2.msra.mxu0 %v11844_v4  ;;  %v17589_v4 = vld [vmem:[#allocation3 + $0x128] sm:$0xff] }
 0x619   : > { %8187 = vmatmul.mubr.f32.gmra.mxu1 %v17552_v0  ;;  %8747 = vmatprep.subr.mxu0 %v17403_v14 }
 0x61a   : > { %8402 = vmatmul.mubr.f32.gmra.mxu0 %v17560_v45  ;;  %8191 = vmatprep.mubr.f32.mxu1 %v19504_v49  ;;  %v17607_v49 = vld [vmem:[#allocation3 + $0x140] sm:$0xff] }
 0x61b   : > { %8406 = vmatprep.mubr.f32.mxu0 %v17566_v13  ;;  %8748 = vmatpush2.msra.mxu0 %v11843_v8  ;;  %v19506_v8 = vmax.f32 %v17340_v28, 0.0  ;;  %v17620_v28 = vld [vmem:[#allocation3 + $0x13a] sm:$0xff] }
 0x61c   : > { %8749 = vmatprep.subr.mxu0 %v17403_v14 }
 0x61d   : > { %8192 = vmatmul.mubr.f32.gmra.mxu1 %v17566_v13  ;;  %8750 = vmatpush2.msra.mxu0 %v11842_v27  ;;  %v17625_v27 = vld [vmem:[#allocation3 + $0x158] sm:$0xff] }
 0x61e   : > { %8407 = vmatmul.mubr.f32.gmra.mxu0 %v17574_v43  ;;  %8196 = vmatprep.mubr.f32.mxu1 %v6953_v7  ;;  %v17598_v7 = vld [vmem:[#allocation3 + $0x138] sm:$0xff] }
 0x61f   : > { %8411 = vmatprep.mubr.f32.mxu0 %v17579_v52  ;;  %10216 = vmatprep.subr.mxu0 %v17403_v14 }
 0x621   : > { %8197 = vmatmul.mubr.f32.gmra.mxu1 %v17579_v52 }
 0x622   : > { %8412 = vmatmul.mubr.f32.gmra.mxu0 %v17584_v46  ;;  %8201 = vmatprep.mubr.f32.mxu1 %v19505_v29  ;;  %v7251_v29 = vld [vmem:[#allocation3 + $0x19] sm:$0xff] }
 0x623   : > { %8416 = vmatprep.mubr.f32.mxu0 %v17589_v4 }
 0x625   : > { %8202 = vmatmul.mubr.f32.gmra.mxu1 %v17589_v4 }
 0x626   : > { %8417 = vmatmul.mubr.f32.gmra.mxu0 %v17593_v31  ;;  %8206 = vmatprep.mubr.f32.mxu1 %v6955_v39  ;;  %v17616_v39 = vld [vmem:[#allocation3 + $0x150] sm:$0xff] }
 0x627   : > { %8421 = vmatprep.mubr.f32.mxu0 %v17598_v7 }
 0x629   : > { %8207 = vmatmul.mubr.f32.gmra.mxu1 %v17598_v7 }
 0x62a   : > { %8422 = vmatmul.mubr.f32.gmra.mxu0 %v17602_v47  ;;  %8211 = vmatprep.mubr.f32.mxu1 %v19506_v8  ;;  %v17654_v8 = vld [vmem:[#allocation3 + $0x16a] sm:$0xff] }
 0x62b   : > { %8426 = vmatprep.mubr.f32.mxu0 %v17607_v49 }
 0x62d   : > { %8212 = vmatmul.mubr.f32.gmra.mxu1 %v17607_v49 }
 0x62e   : > { %8427 = vmatmul.mubr.f32.gmra.mxu0 %v17611_v56  ;;  %8216 = vmatprep.mubr.f32.mxu1 %v6957_v33  ;;  %v17634_v33 = vld [vmem:[#allocation3 + $0x168] sm:$0xff] }
 0x62f   : > { %8431 = vmatprep.mubr.f32.mxu0 %v17616_v39 }
 0x631   : > { %8217 = vmatmul.mubr.f32.gmra.mxu1 %v17616_v39 }
 0x632   : > { %8432 = vmatmul.mubr.f32.gmra.mxu0 %v17620_v28  ;;  %8221 = vmatprep.mubr.f32.mxu1 %v6958_v2  ;;  %v17643_v2 = vld [vmem:[#allocation3 + $0x170] sm:$0xff] }
 0x633   : > { %8436 = vmatprep.mubr.f32.mxu0 %v17625_v27  ;;  %19507 = vst [vmem:[#allocation17_spill] sm:$0xff] %v17643_v2 }
 0x635   : > { %8222 = vmatmul.mubr.f32.gmra.mxu1 %v17625_v27 }
 0x636   : > { %8437 = vmatmul.mubr.f32.gmra.mxu0 %v17629_v12  ;;  %8226 = vmatprep.mubr.f32.mxu1 %v6959_v25  ;;  %v17650_v25 = vld [vmem:[#allocation3 + $0x180] sm:$0xff] }
 0x637   : > { %8441 = vmatprep.mubr.f32.mxu0 %v17634_v33  ;;  %19508 = vst [vmem:[#allocation6_spill] sm:$0xff] %v17650_v25 }
 0x639   : > { %8227 = vmatmul.mubr.f32.gmra.mxu1 %v17634_v33 }
 0x63a   : > { %8442 = vmatmul.mubr.f32.gmra.mxu0 %v17638_v55  ;;  %8231 = vmatprep.mubr.f32.mxu1 %v6960_v18  ;;  %v17660_v18 = vld [vmem:[#allocation3 + $0x188] sm:$0xff] }
 0x63b   : > { %8446 = vmatprep.mubr.f32.mxu0 %v17643_v2 }
 0x63d   : > { %8232 = vmatmul.mubr.f32.gmra.mxu1 %v17643_v2  ;;  %v7443_v2 = vld [vmem:[#allocation3 + $0x31] sm:$0xff] }
 0x63e   : > { %8447 = vmatmul.mubr.f32.gmra.mxu0 %v17647_v48  ;;  %8526 = vmatprep.mubr.f32.mxu1 %v17163_v63  ;;  %v7252_v63 = vld [vmem:[#allocation3 + $0x21] sm:$0xff] }
 0x63f   : > { %8451 = vmatprep.mubr.f32.mxu0 %v17650_v25  ;;  %v17665_v25 = vld [vmem:[#allocation3 + $0x172] sm:$0xff] }
 0x641   : > { %8527 = vmatmul.mubr.f32.vlgmr.msra.gmra.mxu1 %v7251_v29  ;;  %v11871_v29 = vld [vmem:[%s19343_s1 + $0x11e8] sm:$0xff] }
 0x642   : > { %8452 = vmatmul.mubr.f32.gmra.mxu0 %v17654_v8  ;;  %8531 = vmatprep.mubr.f32.mxu1 %v17189_v21  ;;  %v7379_v21 = vld [vmem:[#allocation3 + $0x30] sm:$0xff] }
 0x643   : > { %8456 = vmatprep.mubr.f32.mxu0 %v17660_v18  ;;  %12362 = vmatpush3.msra.mxu1 %v17101_v32  ;;  %v11870_v32 = vld [vmem:[%s19343_s1 + $0x11e0] sm:$0xff] }
 0x644   : > { %12363 = vmatprep.subr.mxu1 %v11872_v16 }
 0x645   : > { %8532 = vmatmul.mubr.f32.gmra.mxu1 %v7252_v63  ;;  %v7444_v63 = vld [vmem:[#allocation3 + $0x39] sm:$0xff] }
 0x646   : > { %8457 = vmatmul.mubr.f32.gmra.mxu0 %v17665_v25  ;;  %8536 = vmatprep.mubr.f32.mxu1 %v17217_v40  ;;  %v11869_v40 = vld [vmem:[%s19343_s1 + $0x11d8] sm:$0xff] }
 0x647   : > { %8751 = vmatprep.mubr.f32.mxu0 %v7443_v2  ;;  %12364 = vmatpush3.msra.mxu1 %v11872_v16  ;;  %v7446_v16 = vld [vmem:[#allocation3 + $0x51] sm:$0xff] }
 0x648   : > { %12365 = vmatprep.subr.mxu1 %v11871_v29 }
 0x649   : > { %8537 = vmatmul.mubr.f32.gmra.mxu1 %v7443_v2  ;;  %v7445_v2 = vld [vmem:[#allocation3 + $0x49] sm:$0xff] }
 0x64a   : > { %8752 = vmatmul.mubr.f32.vlgmr.msra.gmra.mxu0 %v7379_v21  ;;  %8541 = vmatprep.mubr.f32.mxu1 %v17243_v10  ;;  %v11868_v10 = vld [vmem:[%s19343_s1 + $0x11d0] sm:$0xff] }
 0x64b   : > { %8756 = vmatprep.mubr.f32.mxu0 %v7444_v63  ;;  %12366 = vmatpush3.msra.mxu1 %v11871_v29 }
 0x64c   : > { %12367 = vmatprep.subr.mxu1 %v11870_v32 }
 0x64d   : > { %8542 = vmatmul.mubr.f32.gmra.mxu1 %v7444_v63 }
 0x64e   : > { %8757 = vmatmul.mubr.f32.gmra.mxu0 %v17169_v30  ;;  %8546 = vmatprep.mubr.f32.mxu1 %v17271_v11  ;;  %v11867_v30 = vld [vmem:[%s19343_s1 + $0x11c8] sm:$0xff]  ;;  %v7447_v11 = vld [vmem:[#allocation3 + $0x61] sm:$0xff] }
 0x64f   : > { %8761 = vmatprep.mubr.f32.mxu0 %v7445_v2  ;;  %12368 = vmatpush3.msra.mxu1 %v11870_v32 }
 0x650   : > { %12369 = vmatprep.subr.mxu1 %v11869_v40 }
 0x651   : > { %8547 = vmatmul.mubr.f32.gmra.mxu1 %v7445_v2  ;;  %v10079_v2 = vld [vmem:[%s19345_s3 + $0x70] sm:$0xff] }
 0x652   : > { %8762 = vmatmul.mubr.f32.gmra.mxu0 %v17197_v3  ;;  %8551 = vmatprep.mubr.f32.mxu1 %v17297_v19  ;;  %v11866_v3 = vld [vmem:[%s19343_s1 + $0x11c0] sm:$0xff] }
 0x653   : > { %8766 = vmatprep.mubr.f32.mxu0 %v7446_v16  ;;  %12370 = vmatpush3.msra.mxu1 %v11869_v40  ;;  %v7448_v19 = vld [vmem:[#allocation3 + $0x69] sm:$0xff] }
 0x654   : > { %12371 = vmatprep.subr.mxu1 %v11868_v10 }
 0x655   : > { %8552 = vmatmul.mubr.f32.gmra.mxu1 %v7446_v16 }
 0x656   : > { %8767 = vmatmul.mubr.f32.gmra.mxu0 %v17223_v53  ;;  %8556 = vmatprep.mubr.f32.mxu1 %v17325_v61  ;;  %v11865_v53 = vld [vmem:[%s19343_s1 + $0x11b8] sm:$0xff]  ;;  %v7449_v61 = vld [vmem:[#allocation3 + $0x79] sm:$0xff] }
 0x657   : > { %8771 = vmatprep.mubr.f32.mxu0 %v7447_v11  ;;  %12372 = vmatpush3.msra.mxu1 %v11868_v10 }
 0x658   : > { %12373 = vmatprep.subr.mxu1 %v11867_v30 }
 0x659   : > { %8557 = vmatmul.mubr.f32.gmra.mxu1 %v7447_v11 }
 0x65a   : > { %8772 = vmatmul.mubr.f32.gmra.mxu0 %v17251_v34  ;;  %8561 = vmatprep.mubr.f32.mxu1 %v17353_v60  ;;  %v11864_v34 = vld [vmem:[%s19343_s1 + $0x11b0] sm:$0xff] }
 0x65b   : > { %8776 = vmatprep.mubr.f32.mxu0 %v7448_v19  ;;  %12374 = vmatpush3.msra.mxu1 %v11867_v30  ;;  %v7450_v60 = vld [vmem:[#allocation3 + $0x81] sm:$0xff] }
 0x65c   : > { %12375 = vmatprep.subr.mxu1 %v11866_v3 }
 0x65d   : > { %8562 = vmatmul.mubr.f32.gmra.mxu1 %v7448_v19 }
 0x65e   : > { %8777 = vmatmul.mubr.f32.gmra.mxu0 %v17277_v1  ;;  %8566 = vmatprep.mubr.f32.mxu1 %v17382_v24  ;;  %v11863_v1 = vld [vmem:[%s19343_s1 + $0x11a8] sm:$0xff] }
 0x65f   : > { %8781 = vmatprep.mubr.f32.mxu0 %v7449_v61  ;;  %12376 = vmatpush3.msra.mxu1 %v11866_v3  ;;  %v7451_v24 = vld [vmem:[#allocation3 + $0x91] sm:$0xff] }
 0x660   : > { %12377 = vmatprep.subr.mxu1 %v11865_v53  ;;  %v10078_v3 = vld [vmem:[%s19345_s3 + $0x68] sm:$0xff] }
 0x661   : > { %8567 = vmatmul.mubr.f32.gmra.mxu1 %v7449_v61 }
 0x662   : > { %8782 = vmatmul.mubr.f32.gmra.mxu0 %v17305_v57  ;;  %8571 = vmatprep.mubr.f32.mxu1 %v17413_v42  ;;  %v11862_v57 = vld [vmem:[%s19343_s1 + $0x11a0] sm:$0xff]  ;;  %v7452_v42 = vld [vmem:[#allocation3 + $0x99] sm:$0xff] }
 0x663   : > { %8786 = vmatprep.mubr.f32.mxu0 %v7450_v60  ;;  %12378 = vmatpush3.msra.mxu1 %v11865_v53 }
 0x664   : > { %12379 = vmatprep.subr.mxu1 %v11864_v34 }
 0x665   : > { %8572 = vmatmul.mubr.f32.gmra.mxu1 %v7450_v60 }
 0x666   : > { %8787 = vmatmul.mubr.f32.gmra.mxu0 %v17331_v17  ;;  %8576 = vmatprep.mubr.f32.mxu1 %v17436_v58  ;;  %v11861_v17 = vld [vmem:[%s19343_s1 + $0x1198] sm:$0xff] }
 0x667   : > { %8791 = vmatprep.mubr.f32.mxu0 %v7451_v24  ;;  %12380 = vmatpush3.msra.mxu1 %v11864_v34  ;;  %v7453_v58 = vld [vmem:[#allocation3 + $0xa9] sm:$0xff] }
 0x668   : > { %12381 = vmatprep.subr.mxu1 %v11863_v1 }
 0x669   : > { %8577 = vmatmul.mubr.f32.gmra.mxu1 %v7451_v24 }
 0x66a   : > { %8792 = vmatmul.mubr.f32.gmra.mxu0 %v17361_v15  ;;  %8581 = vmatprep.mubr.f32.mxu1 %v17450_v5  ;;  %v11860_v15 = vld [vmem:[%s19343_s1 + $0x1190] sm:$0xff]  ;;  %v7454_v5 = vld [vmem:[#allocation3 + $0xb1] sm:$0xff] }
 0x66b   : > { %8796 = vmatprep.mubr.f32.mxu0 %v7452_v42  ;;  %12382 = vmatpush3.msra.mxu1 %v11863_v1  ;;  %v10077_v1 = vld [vmem:[%s19345_s3 + $0x60] sm:$0xff] }
 0x66c   : > { %12383 = vmatprep.subr.mxu1 %v11862_v57 }
 0x66d   : > { %8582 = vmatmul.mubr.f32.gmra.mxu1 %v7452_v42 }
 0x66e   : > { %8797 = vmatmul.mubr.f32.gmra.mxu0 %v17388_v9  ;;  %8586 = vmatprep.mubr.f32.mxu1 %v17468_v44  ;;  %v11859_v9 = vld [vmem:[%s19343_s1 + $0x1188] sm:$0xff]  ;;  %v7455_v44 = vld [vmem:[#allocation3 + $0xc1] sm:$0xff] }
 0x66f   : > { %8801 = vmatprep.mubr.f32.mxu0 %v7453_v58  ;;  %12384 = vmatpush3.msra.mxu1 %v11862_v57 }
 0x670   : > { %12385 = vmatprep.subr.mxu1 %v11861_v17 }
 0x671   : > { %8587 = vmatmul.mubr.f32.gmra.mxu1 %v7453_v58 }
 0x672   : > { %8802 = vmatmul.mubr.f32.gmra.mxu0 %v17421_v22  ;;  %8591 = vmatprep.mubr.f32.mxu1 %v17484_v38  ;;  %v11858_v22 = vld [vmem:[%s19343_s1 + $0x1180] sm:$0xff] }
 0x673   : > { %8806 = vmatprep.mubr.f32.mxu0 %v7454_v5  ;;  %12386 = vmatpush3.msra.mxu1 %v11861_v17  ;;  %v7456_v38 = vld [vmem:[#allocation3 + $0xc9] sm:$0xff] }
 0x674   : > { %12387 = vmatprep.subr.mxu1 %v11860_v15 }
 0x675   : > { %8592 = vmatmul.mubr.f32.gmra.mxu1 %v7454_v5 }
 0x676   : > { %8807 = vmatmul.mubr.f32.gmra.mxu0 %v17442_v50  ;;  %8596 = vmatprep.mubr.f32.mxu1 %v17500_v59  ;;  %v7457_v50 = vld [vmem:[#allocation3 + $0xd9] sm:$0xff]  ;;  %v17744_v59 = vld [vmem:[%s19344_s2 + $0x3] ss:$0 sm:$0xff] }
 0x677   : > { %8811 = vmatprep.mubr.f32.mxu0 %v7455_v44  ;;  %12388 = vmatpush3.msra.mxu1 %v11860_v15  ;;  %v10076_v15 = vld [vmem:[%s19345_s3 + $0x58] sm:$0xff] }
 0x678   : > { %12389 = vmatprep.subr.mxu1 %v11859_v9 }
 0x679   : > { %8597 = vmatmul.mubr.f32.gmra.mxu1 %v7455_v44 }
 0x67a   : > { %8812 = vmatmul.mubr.f32.gmra.mxu0 %v17458_v20  ;;  %8601 = vmatprep.mubr.f32.mxu1 %v17514_v37  ;;  %v7458_v20 = vld [vmem:[#allocation3 + $0xe1] sm:$0xff]  ;;  %v8079_v37 = vadd.f32 %v17744_v59, %v17462_v41  ;;  %v8084_v41 = vadd.f32 %v17744_v59, %v17480_v51 }
 0x67b   : > { %8816 = vmatprep.mubr.f32.mxu0 %v7456_v38  ;;  %12390 = vmatpush3.msra.mxu1 %v11859_v9 }
 0x67c   : > { %12391 = vmatprep.subr.mxu1 %v11858_v22 }
 0x67d   : > { %8602 = vmatmul.mubr.f32.gmra.mxu1 %v7456_v38 }
 0x67e   : > { %8817 = vmatmul.mubr.f32.gmra.mxu0 %v17474_v6  ;;  %8606 = vmatprep.mubr.f32.mxu1 %v17530_v26  ;;  %v7459_v6 = vld [vmem:[#allocation3 + $0xf1] sm:$0xff] }
 0x67f   : > { %8821 = vmatprep.mubr.f32.mxu0 %v7457_v50  ;;  %12392 = vmatpush3.msra.mxu1 %v11858_v22 }
 0x680   : > { %10441 = vmatprep.subr.mxu1 %v17403_v14 }
 0x681   : > { %8607 = vmatmul.mubr.f32.gmra.mxu1 %v7457_v50  ;;  %v10075_v50 = vld [vmem:[%s19345_s3 + $0x50] sm:$0xff] }
 0x682   : > { %8822 = vmatmul.mubr.f32.gmra.mxu0 %v17492_v23  ;;  %8611 = vmatprep.mubr.f32.mxu1 %v17544_v36  ;;  %v7460_v36 = vld [vmem:[#allocation3 + $0xf9] sm:$0xff] }
 0x683   : > { %8826 = vmatprep.mubr.f32.mxu0 %v7458_v20 }
 0x685   : > { %8612 = vmatmul.mubr.f32.gmra.mxu1 %v7458_v20 }
 0x686   : > { %8827 = vmatmul.mubr.f32.gmra.mxu0 %v17506_v62  ;;  %8616 = vmatprep.mubr.f32.mxu1 %v17560_v45  ;;  %v10080_v62 = vld [vmem:[%s19345_s3 + $0x78] sm:$0xff] }
 0x687   : > { %8831 = vmatprep.mubr.f32.mxu0 %v7459_v6  ;;  %10217 = vmatpush1.msra.mxu0 %v10080_v62 }
 0x688   : > { %10218 = vmatprep.subr.mxu0 %v17403_v14 }
 0x689   : > { %v8088_v23 = vpop.f32.mrf.mxu1  ;;  %8617 = vmatmul.mubr.f32.gmra.mxu1 %v7459_v6  ;;  %10219 = vmatpush1.msra.mxu0 %v10079_v2 }
 0x68a   : > { %v8303_v26 = vpop.f32.mrf.mxu0  ;;  %8832 = vmatmul.mubr.f32.gmra.mxu0 %v17522_v35  ;;  %8621 = vmatprep.mubr.f32.mxu1 %v17574_v43  ;;  %v7461_v43 = vld [vmem:[#allocation3 + $0x109] sm:$0xff]  ;;  %v8089_v51 = vadd.f32 %v17744_v59, %v8088_v23 }
 0x68b   : > { %v17752_v29 = vadd.f32 %v8303_v26, %v8079_v37  ;;  %8836 = vmatprep.mubr.f32.mxu0 %v7460_v36  ;;  %v8090_v21 = vpop.f32.mrf.mxu1  ;;  %10220 = vmatprep.subr.mxu0 %v17403_v14 }
 0x68c   : > { %v8305_v45 = vpop.f32.mrf.mxu0  ;;  %10221 = vmatpush1.msra.mxu0 %v10078_v3 }
 0x68d   : > { %v8093_v32 = vpop.f32.mrf.mxu1  ;;  %8622 = vmatmul.mubr.f32.gmra.mxu1 %v7460_v36  ;;  %10222 = vmatprep.subr.mxu0 %v17403_v14  ;;  %v10074_v36 = vld [vmem:[%s19345_s3 + $0x48] sm:$0xff] }
 0x68e   : > { %v8308_v35 = vpop.f32.mrf.mxu0  ;;  %8837 = vmatmul.mubr.f32.gmra.mxu0 %v17536_v54  ;;  %8626 = vmatprep.mubr.f32.mxu1 %v17584_v46  ;;  %v7462_v46 = vld [vmem:[#allocation3 + $0x111] sm:$0xff]  ;;  %v8094_v53 = vadd.f32 %v17744_v59, %v8093_v32 }
 0x68f   : > { %v17762_v63 = vadd.f32 %v8308_v35, %v8084_v41  ;;  %8841 = vmatprep.mubr.f32.mxu0 %v7461_v43  ;;  %v8095_v40 = vpop.f32.mrf.mxu1  ;;  %10223 = vmatpush1.msra.mxu0 %v10077_v1  ;;  %v10073_v35 = vld [vmem:[%s19345_s3 + $0x40] sm:$0xff] }
 0x690   : > { %v8310_v10 = vpop.f32.mrf.mxu0  ;;  %10224 = vmatprep.subr.mxu0 %v17403_v14 }
 0x691   : > { %v8098_v16 = vpop.f32.mrf.mxu1  ;;  %8627 = vmatmul.mubr.f32.gmra.mxu1 %v7461_v43  ;;  %10225 = vmatpush1.msra.mxu0 %v10076_v15 }
 0x692   : > { %v8313_v54 = vpop.f32.mrf.mxu0  ;;  %8842 = vmatmul.mubr.f32.gmra.mxu0 %v17552_v0  ;;  %8631 = vmatprep.mubr.f32.mxu1 %v17593_v31  ;;  %v7463_v31 = vld [vmem:[#allocation3 + $0x121] sm:$0xff]  ;;  %v8099_v57 = vadd.f32 %v17744_v59, %v8098_v16 }
 0x693   : > { %v17771_v30 = vadd.f32 %v8313_v54, %v8089_v51  ;;  %8846 = vmatprep.mubr.f32.mxu0 %v7462_v46  ;;  %v8100_v11 = vpop.f32.mrf.mxu1  ;;  %10226 = vmatprep.subr.mxu0 %v17403_v14  ;;  %v10072_v16 = vld [vmem:[%s19345_s3 + $0x38] sm:$0xff] }
 0x694   : > { %v8315_v19 = vpop.f32.mrf.mxu0  ;;  %10227 = vmatpush1.msra.mxu0 %v10075_v50 }
 0x695   : > { %v8103_v61 = vpop.f32.mrf.mxu1  ;;  %8632 = vmatmul.mubr.f32.gmra.mxu1 %v7462_v46  ;;  %10228 = vmatprep.subr.mxu0 %v17403_v14 }
 0x696   : > { %v8318_v0 = vpop.f32.mrf.mxu0  ;;  %8847 = vmatmul.mubr.f32.gmra.mxu0 %v17566_v13  ;;  %8636 = vmatprep.mubr.f32.mxu1 %v17602_v47  ;;  %v7464_v47 = vld [vmem:[#allocation3 + $0x129] sm:$0xff]  ;;  %v8104_v9 = vadd.f32 %v17744_v59, %v8103_v61 }
 0x697   : > { %v17780_v34 = vadd.f32 %v8318_v0, %v8094_v53  ;;  %8851 = vmatprep.mubr.f32.mxu0 %v7463_v31  ;;  %v8105_v60 = vpop.f32.mrf.mxu1  ;;  %10229 = vmatpush1.msra.mxu0 %v10074_v36  ;;  %v10071_v53 = vld [vmem:[%s19345_s3 + $0x30] sm:$0xff] }
 0x698   : > { %v8320_v24 = vpop.f32.mrf.mxu0  ;;  %10230 = vmatprep.subr.mxu0 %v17403_v14  ;;  %v7473_v36 = vld [vmem:[#allocation3 + $0x199] sm:$0xff] }
 0x699   : > { %v8108_v42 = vpop.f32.mrf.mxu1  ;;  %8637 = vmatmul.mubr.f32.gmra.mxu1 %v7463_v31  ;;  %10231 = vmatpush1.msra.mxu0 %v10073_v35  ;;  %v10070_v24 = vld [vmem:[%s19345_s3 + $0x28] sm:$0xff] }
 0x69a   : > { %v8323_v13 = vpop.f32.mrf.mxu0  ;;  %8852 = vmatmul.mubr.f32.gmra.mxu0 %v17579_v52  ;;  %8641 = vmatprep.mubr.f32.mxu1 %v17611_v56  ;;  %v7465_v56 = vld [vmem:[#allocation3 + $0x139] sm:$0xff]  ;;  %v8109_v6 = vadd.f32 %v17744_v59, %v8108_v42 }
 0x69b   : > { %v17789_v17 = vadd.f32 %v8323_v13, %v8099_v57  ;;  %8856 = vmatprep.mubr.f32.mxu0 %v7464_v47  ;;  %v8110_v58 = vpop.f32.mrf.mxu1  ;;  %10232 = vmatprep.subr.mxu0 %v17403_v14  ;;  %v7409_v35 = vld [vmem:[#allocation3 + $0x198] sm:$0xff] }
 0x69c   : > { %v8325_v5 = vpop.f32.mrf.mxu0  ;;  %10233 = vmatpush1.msra.mxu0 %v10072_v16  ;;  %v7471_v58 = vld [vmem:[#allocation3 + $0x181] sm:$0xff]  ;;  %v7509_v16 = vld [vmem:[#allocation3 + $0x4a] sm:$0xff] }
 0x69d   : > { %v8113_v44 = vpop.f32.mrf.mxu1  ;;  %8642 = vmatmul.mubr.f32.gmra.mxu1 %v7464_v47  ;;  %10234 = vmatprep.subr.mxu0 %v17403_v14  ;;  %v17849_v47 = vld [vmem:[#allocation3 + $0x182] sm:$0xff] }
 0x69e   : > { %v8328_v52 = vpop.f32.mrf.mxu0  ;;  %8857 = vmatmul.mubr.f32.gmra.mxu0 %v17589_v4  ;;  %8646 = vmatprep.mubr.f32.mxu1 %v17620_v28  ;;  %v7466_v28 = vld [vmem:[#allocation3 + $0x141] sm:$0xff]  ;;  %v8114_v62 = vadd.f32 %v17744_v59, %v8113_v44 }
 0x69f   : > { %v17798_v22 = vadd.f32 %v8328_v52, %v8104_v9  ;;  %8861 = vmatprep.mubr.f32.mxu0 %v7465_v56  ;;  %v8115_v38 = vpop.f32.mrf.mxu1  ;;  %10235 = vmatpush1.msra.mxu0 %v10071_v53  ;;  %v10069_v9 = vld [vmem:[%s19345_s3 + $0x20] sm:$0xff] }
 0x6a0   : > { %v8330_v20 = vpop.f32.mrf.mxu0  ;;  %10236 = vmatprep.subr.mxu0 %v17403_v14  ;;  %v17860_v38 = vld [vmem:[#allocation3 + $0x18a] sm:$0xff] }
 0x6a1   : > { %v8118_v37 = vpop.f32.mrf.mxu1  ;;  %8647 = vmatmul.mubr.f32.gmra.mxu1 %v7465_v56  ;;  %10237 = vmatpush1.msra.mxu0 %v10070_v24  ;;  %v19510_v20 = vld [vmem:[#allocation6_spill] sm:$0xff]  ;;  %v7512_v24 = vld [vmem:[#allocation3 + $0x6a] sm:$0xff] }
 0x6a2   : > { %v8333_v4 = vpop.f32.mrf.mxu0  ;;  %8862 = vmatmul.mubr.f32.gmra.mxu0 %v17598_v7  ;;  %8651 = vmatprep.mubr.f32.mxu1 %v17629_v12  ;;  %v7467_v12 = vld [vmem:[#allocation3 + $0x151] sm:$0xff]  ;;  %v8119_v40 = vadd.f32 %v17744_v59, %v8118_v37 }
 0x6a3   : > { %v17807_v23 = vadd.f32 %v8333_v4, %v8109_v6  ;;  %8866 = vmatprep.mubr.f32.mxu0 %v7466_v28  ;;  %v8120_v26 = vpop.f32.mrf.mxu1  ;;  %10238 = vmatprep.subr.mxu0 %v17403_v14  ;;  %v7472_v6 = vld [vmem:[#allocation3 + $0x189] sm:$0xff] }
 0x6a4   : > { %v8335_v21 = vpop.f32.mrf.mxu0  ;;  %10239 = vmatpush1.msra.mxu0 %v10069_v9 }
 0x6a5   : > { %v8123_v45 = vpop.f32.mrf.mxu1  ;;  %8652 = vmatmul.mubr.f32.gmra.mxu1 %v7466_v28  ;;  %10240 = vmatprep.subr.mxu0 %v17403_v14  ;;  %v10068_v28 = vld [vmem:[%s19345_s3 + $0x18] sm:$0xff] }
 0x6a6   : > { %v8338_v7 = vpop.f32.mrf.mxu0  ;;  %8867 = vmatmul.mubr.f32.gmra.mxu0 %v17607_v49  ;;  %8656 = vmatprep.mubr.f32.mxu1 %v17638_v55  ;;  %v7468_v55 = vld [vmem:[#allocation3 + $0x159] sm:$0xff]  ;;  %v8124_v46 = vadd.f32 %v17744_v59, %v8123_v45 }
 0x6a7   : > { %v17816_v41 = vadd.f32 %v8338_v7, %v8114_v62  ;;  %8871 = vmatprep.mubr.f32.mxu0 %v7467_v12  ;;  %v8125_v32 = vpop.f32.mrf.mxu1  ;;  %10241 = vmatpush1.msra.mxu0 %v10068_v28  ;;  %v7507_v62 = vld [vmem:[#allocation3 + $0x32] sm:$0xff]  ;;  %v10095_v28 = vld [vmem:[%s19345_s3 + $0xf0] sm:$0xff] }
 0x6a8   : > { %v8340_v43 = vpop.f32.mrf.mxu0  ;;  %v17871_v45 = vld [vmem:[#allocation2 + $0x8] sm:$0xff] }
 0x6a9   : > { %v8128_v2 = vpop.f32.mrf.mxu1  ;;  %8657 = vmatmul.mubr.f32.gmra.mxu1 %v7467_v12  ;;  %10242 = vmatprep.subr.mxu0 %v17871_v45  ;;  %v10067_v43 = vld [vmem:[%s19345_s3 + $0x10] sm:$0xff] }
 0x6aa   : > { %v8343_v49 = vpop.f32.mrf.mxu0  ;;  %8872 = vmatmul.mubr.f32.gmra.mxu0 %v17616_v39  ;;  %8661 = vmatprep.mubr.f32.mxu1 %v17647_v48  ;;  %v7469_v48 = vld [vmem:[#allocation3 + $0x169] sm:$0xff]  ;;  %v8129_v0 = vadd.f32 %v17744_v59, %v8128_v2  ;;  %v7508_v2 = vld [vmem:[#allocation3 + $0x3a] sm:$0xff] }
 0x6ab   : > { %v17825_v10 = vadd.f32 %v8343_v49, %v8119_v40  ;;  %8876 = vmatprep.mubr.f32.mxu0 %v7468_v55  ;;  %v8130_v51 = vpop.f32.mrf.mxu1  ;;  %v7474_v49 = vld [vmem:[#allocation3 + $0x1a1] sm:$0xff]  ;;  %10243 = vmatpush1.msra.mxu0 %v10067_v43 }
 0x6ac   : > { %v8345_v54 = vpop.f32.mrf.mxu0  ;;  %10244 = vmatprep.subr.mxu0 %v17871_v45 }
 0x6ad   : > { %v8133_v11 = vpop.f32.mrf.mxu1  ;;  %8662 = vmatmul.mubr.f32.gmra.mxu1 %v7468_v55 }
 0x6ae   : > { %v8348_v39 = vpop.f32.mrf.mxu0  ;;  %8877 = vmatmul.mubr.f32.gmra.mxu0 %v17625_v27  ;;  %8666 = vmatprep.mubr.f32.mxu1 %v17654_v8  ;;  %v7470_v8 = vld [vmem:[#allocation3 + $0x171] sm:$0xff]  ;;  %v8134_v42 = vadd.f32 %v17744_v59, %v8133_v11 }
 0x6af   : > { %v17834_v3 = vadd.f32 %v8348_v39, %v8124_v46  ;;  %8881 = vmatprep.mubr.f32.mxu0 %v7469_v48  ;;  %v8135_v19 = vpop.f32.mrf.mxu1  ;;  %v10066_v11 = vld [vmem:[%s19345_s3 + $0x8] sm:$0xff] }
 0x6b0   : > { %v8350_v61 = vpop.f32.mrf.mxu0  ;;  %10245 = vmatpush1.msra.mxu0 %v10066_v11  ;;  %v10110_v11 = vld [vmem:[%s19345_s3 + $0x168] sm:$0xff] }
 0x6b1   : > { %v8138_v31 = vpop.f32.mrf.mxu1  ;;  %8667 = vmatmul.mubr.f32.gmra.mxu1 %v7469_v48  ;;  %v7510_v48 = vld [vmem:[#allocation3 + $0x52] sm:$0xff]  ;;  %v7511_v61 = vld [vmem:[#allocation3 + $0x62] sm:$0xff]  ;;  %10246 = vmatprep.subr.mxu0 %v17871_v45 }
 0x6b2   : > { %v8353_v27 = vpop.f32.mrf.mxu0  ;;  %8882 = vmatmul.mubr.f32.gmra.mxu0 %v17634_v33  ;;  %8671 = vmatprep.mubr.f32.mxu1 %v17665_v25  ;;  %v19509_v25 = vld [vmem:[#allocation17_spill] sm:$0xff]  ;;  %v8139_v52 = vadd.f32 %v17744_v59, %v8138_v31 }
 0x6b3   : > { %v17843_v60 = vadd.f32 %v8353_v27, %v8129_v0  ;;  %8886 = vmatprep.mubr.f32.mxu0 %v7470_v8  ;;  %v8140_v1 = vpop.f32.mrf.mxu1 }
 0x6b4   : > { %v8355_v57 = vpop.f32.mrf.mxu0 }
 0x6b5   : > { %v8143_v13 = vpop.f32.mrf.mxu1  ;;  %8672 = vmatmul.mubr.f32.gmra.mxu1 %v7470_v8  ;;  %v10065_v8 = vld [vmem:[%s19345_s3] sm:$0xff] }
 0x6b6   : > { %v8358_v33 = vpop.f32.mrf.mxu0  ;;  %8887 = vmatmul.mubr.f32.gmra.mxu0 %v19509_v25  ;;  %8676 = vmatprep.mubr.f32.mxu1 %v17849_v47  ;;  %v8144_v21 = vadd.f32 %v17744_v59, %v8143_v13  ;;  %v7513_v13 = vld [vmem:[#allocation3 + $0x7a] sm:$0xff] }
 0x6b7   : > { %v17854_v15 = vadd.f32 %v8358_v33, %v8134_v42  ;;  %8891 = vmatprep.mubr.f32.mxu0 %v7471_v58  ;;  %v8145_v5 = vpop.f32.mrf.mxu1  ;;  %10247 = vmatpush1.msra.mxu0 %v10065_v8 }
 0x6b8   : > { %v8360_v44 = vpop.f32.mrf.mxu0  ;;  %10248 = vmatprep.subr.mxu0 %v17871_v45  ;;  %v10096_v5 = vld [vmem:[%s19345_s3 + $0xf8] sm:$0xff] }
 0x6b9   : > { %v8148_v56 = vpop.f32.mrf.mxu1  ;;  %8677 = vmatmul.mubr.f32.gmra.mxu1 %v7471_v58  ;;  %v7514_v44 = vld [vmem:[#allocation3 + $0x82] sm:$0xff]  ;;  %10249 = vmatpush2.msra.mxu0 %v10096_v5 }
 0x6ba   : > { %v8363_v50 = vpop.f32.mrf.mxu0  ;;  %8892 = vmatmul.mubr.f32.gmra.mxu0 %v19510_v20  ;;  %8681 = vmatprep.mubr.f32.mxu1 %v17860_v38  ;;  %v8149_v55 = vadd.f32 %v17744_v59, %v8148_v56  ;;  %v7522_v5 = vld [vmem:[#allocation3 + $0xe2] sm:$0xff] }
 0x6bb   : > { %v17865_v37 = vadd.f32 %v8363_v50, %v8139_v52  ;;  %8896 = vmatprep.mubr.f32.mxu0 %v7472_v6  ;;  %v8150_v4 = vpop.f32.mrf.mxu1  ;;  %v7515_v50 = vld [vmem:[#allocation3 + $0x92] sm:$0xff]  ;;  %10250 = vmatprep.subr.mxu0 %v17871_v45 }
 0x6bc   : > { %v8365_v26 = vpop.f32.mrf.mxu0  ;;  %10251 = vmatpush2.msra.mxu0 %v10095_v28 }
 0x6bd   : > { %v8153_v14 = vpop.f32.mrf.mxu1  ;;  %8682 = vmatmul.mubr.f32.gmra.mxu1 %v7472_v6  ;;  %10252 = vmatprep.subr.mxu0 %v17871_v45 }
 0x6be   : > { %v8368_v7 = vpop.f32.mrf.mxu0  ;;  %8897 = vmatmul.mubr.f32.gmra.mxu0 %v17660_v18  ;;  %12393 = vmatprep.mubr.f32.mxu1 %v7507_v62  ;;  %v8154_v19 = vadd.f32 %v17744_v59, %v8153_v14  ;;  %v7517_v62 = vld [vmem:[#allocation3 + $0xaa] sm:$0xff] }
 0x6bf   : > { %v17875_v12 = vadd.f32 %v8368_v7, %v8144_v21  ;;  %v8155_v32 = vpop.f32.mrf.mxu1  ;;  %8901 = vmatprep.mubr.f32.mxu0 %v7473_v36  ;;  %v7516_v36 = vld [vmem:[#allocation3 + $0x9a] sm:$0xff] }
 0x6c0   : > { %v8370_v40 = vpop.f32.mrf.mxu0  ;;  %v10112_v32 = vld [vmem:[%s19345_s3 + $0x178] sm:$0xff] }
 0x6c1   : > { %v8158_v51 = vpop.f32.mrf.mxu1  ;;  %12394 = vmatmul.mubr.f32.vlgmr.msra.gmra.mxu1 %v7508_v2  ;;  %v10094_v40 = vld [vmem:[%s19345_s3 + $0xe8] sm:$0xff] }
 0x6c2   : > { %v8373_v18 = vpop.f32.mrf.mxu0  ;;  %8902 = vmatmul.mubr.f32.gmra.mxu0 %v7409_v35  ;;  %12396 = vmatprep.mubr.f32.mxu1 %v7509_v16  ;;  %v8159_v57 = vadd.f32 %v17744_v59, %v8158_v51 }
 0x6c3   : > { %v17882_v54 = vadd.f32 %v8373_v18, %v8149_v55  ;;  %v8160_v46 = vpop.f32.mrf.mxu1  ;;  %8906 = vmatprep.mubr.f32.mxu0 %v7474_v49  ;;  %10442 = vmatpush1.msra.mxu1 %v10112_v32  ;;  %v7518_v49 = vld [vmem:[#allocation3 + $0xb2] sm:$0xff]  ;;  %v10111_v55 = vld [vmem:[%s19345_s3 + $0x170] sm:$0xff]  ;;  %v7525_v32 = vld [vmem:[#allocation3 + $0x10a] sm:$0xff] }
 0x6c4   : > { %v8375_v39 = vpop.f32.mrf.mxu0  ;;  %10253 = vmatpush2.msra.mxu0 %v10094_v40  ;;  %10443 = vmatprep.subr.mxu1 %v17871_v45  ;;  %v7519_v18 = vld [vmem:[#allocation3 + $0xc2] sm:$0xff] }
 0x6c5   : > { %v8163_v53 = vpop.f32.mrf.mxu1  ;;  %12397 = vmatmul.mubr.f32.gmra.mxu1 %v7510_v48  ;;  %10254 = vmatprep.subr.mxu0 %v17871_v45  ;;  %v10104_v40 = vld [vmem:[%s19345_s3 + $0x138] sm:$0xff] }
 0x6c6   : > { %v8378_v0 = vpop.f32.mrf.mxu0  ;;  %8907 = vmatmul.mubr.f32.gmra.mxu0 %v17871_v45  ;;  %12399 = vmatprep.mubr.f32.mxu1 %v7511_v61  ;;  %v8164_v52 = vadd.f32 %v17744_v59, %v8163_v53  ;;  %v7520_v61 = vld [vmem:[#allocation3 + $0xca] sm:$0xff] }
 0x6c7   : > { %v17890_v31 = vadd.f32 %v8378_v0, %v8154_v19  ;;  %v8165_v27 = vpop.f32.mrf.mxu1  ;;  %10444 = vmatpush1.msra.mxu1 %v10111_v55  ;;  %v10093_v19 = vld [vmem:[%s19345_s3 + $0xe0] sm:$0xff]  ;;  %v10090_v55 = vld [vmem:[%s19345_s3 + $0xc8] sm:$0xff] }
 0x6c8   : > { %v8380_v1 = vpop.f32.mrf.mxu0  ;;  %10445 = vmatprep.subr.mxu1 %v17871_v45  ;;  %10255 = vmatpush2.msra.mxu0 %v10093_v19  ;;  %v10109_v0 = vld [vmem:[%s19345_s3 + $0x160] sm:$0xff] }
 0x6c9   : > { %v8168_v42 = vpop.f32.mrf.mxu1  ;;  %12400 = vmatmul.mubr.f32.gmra.mxu1 %v7512_v24  ;;  %v7521_v1 = vld [vmem:[#allocation3 + $0xda] sm:$0xff]  ;;  %10256 = vmatprep.subr.mxu0 %v17871_v45 }
 0x6ca   : > { %v8383_v33 = vpop.f32.mrf.mxu0  ;;  %12402 = vmatprep.mubr.f32.mxu1 %v7513_v13  ;;  %v8169_v21 = vadd.f32 %v17744_v59, %v8168_v42  ;;  %10446 = vmatpush1.msra.mxu1 %v10110_v11 }
 0x6cb   : > { %v17897_v25 = vadd.f32 %v8383_v33, %v8159_v57  ;;  %v8170_v58 = vpop.f32.mrf.mxu1  ;;  %10447 = vmatprep.subr.mxu1 %v17871_v45  ;;  %v10108_v57 = vld [vmem:[%s19345_s3 + $0x158] sm:$0xff] }
 0x6cc   : > { %v8385_v9 = vpop.f32.mrf.mxu0  ;;  %10448 = vmatpush1.msra.mxu1 %v10109_v0  ;;  %v10092_v33 = vld [vmem:[%s19345_s3 + $0xd8] sm:$0xff] }
 0x6cd   : > { %v8173_v56 = vpop.f32.mrf.mxu1  ;;  %12403 = vmatmul.mubr.f32.gmra.mxu1 %v7514_v44  ;;  %10449 = vmatprep.subr.mxu1 %v17871_v45  ;;  %v10107_v9 = vld [vmem:[%s19345_s3 + $0x150] sm:$0xff] }
 0x6ce   : > { %v8388_v20 = vpop.f32.mrf.mxu0  ;;  %12405 = vmatprep.mubr.f32.mxu1 %v7515_v50  ;;  %v8174_v51 = vadd.f32 %v17744_v59, %v8173_v56  ;;  %10257 = vmatpush2.msra.mxu0 %v10092_v33  ;;  %v7523_v56 = vld [vmem:[#allocation3 + $0xf2] sm:$0xff]  ;;  %v7529_v33 = vld [vmem:[#allocation3 + $0x13a] sm:$0xff] }
 0x6cf   : > { %v17904_v6 = vadd.f32 %v8388_v20, %v8164_v52  ;;  %v8175_v4 = vpop.f32.mrf.mxu1  ;;  %10450 = vmatpush1.msra.mxu1 %v10108_v57  ;;  %v10106_v20 = vld [vmem:[%s19345_s3 + $0x148] sm:$0xff]  ;;  %10258 = vmatprep.subr.mxu0 %v17871_v45 }
 0x6d0   : > { %v8390_v26 = vpop.f32.mrf.mxu0  ;;  %10451 = vmatprep.subr.mxu1 %v17871_v45 }
 0x6d1   : > { %v8178_v14 = vpop.f32.mrf.mxu1  ;;  %12406 = vmatmul.mubr.f32.gmra.mxu1 %v7516_v36  ;;  %v10091_v26 = vld [vmem:[%s19345_s3 + $0xd0] sm:$0xff] }
 0x6d2   : > { %v8393_v7 = vpop.f32.mrf.mxu0  ;;  %12408 = vmatprep.mubr.f32.mxu1 %v7517_v62  ;;  %v8179_v27 = vadd.f32 %v17744_v59, %v8178_v14  ;;  %10452 = vmatpush1.msra.mxu1 %v10107_v9  ;;  %v10105_v14 = vld [vmem:[%s19345_s3 + $0x140] sm:$0xff] }
 0x6d3   : > { %v17914_v35 = vadd.f32 %v8393_v7, %v8169_v21  ;;  %v8180_v43 = vpop.f32.mrf.mxu1  ;;  %10453 = vmatprep.subr.mxu1 %v17871_v45  ;;  %v7524_v21 = vld [vmem:[#allocation3 + $0xfa] sm:$0xff]  ;;  %10259 = vmatpush2.msra.mxu0 %v10091_v26 }
 0x6d4   : > { %v8395_v2 = vpop.f32.mrf.mxu0  ;;  %10454 = vmatpush1.msra.mxu1 %v10106_v20  ;;  %10260 = vmatprep.subr.mxu0 %v17871_v45  ;;  %v10099_v20 = vld [vmem:[%s19345_s3 + $0x110] sm:$0xff] }
 0x6d5   : > { %v8183_v16 = vpop.f32.mrf.mxu1  ;;  %12409 = vmatmul.mubr.f32.gmra.mxu1 %v7518_v49  ;;  %10455 = vmatprep.subr.mxu1 %v17871_v45 }
 0x6d6   : > { %v8398_v46 = vpop.f32.mrf.mxu0  ;;  %12411 = vmatprep.mubr.f32.mxu1 %v7519_v18  ;;  %v8184_v44 = vadd.f32 %v17744_v59, %v8183_v16  ;;  %10456 = vmatpush1.msra.mxu1 %v10105_v14  ;;  %v7526_v16 = vld [vmem:[#allocation3 + $0x112] sm:$0xff]  ;;  %v10103_v18 = vld [vmem:[%s19345_s3 + $0x130] sm:$0xff] }
 0x6d7   : > { %v17928_v39 = vadd.f32 %v8398_v46, %v8174_v51  ;;  %v8185_v48 = vpop.f32.mrf.mxu1  ;;  %10457 = vmatprep.subr.mxu1 %v17871_v45  ;;  %10261 = vmatpush2.msra.mxu0 %v10090_v55  ;;  %v10098_v14 = vld [vmem:[%s19345_s3 + $0x108] sm:$0xff] }
 0x6d8   : > { %v8400_v53 = vpop.f32.mrf.mxu0  ;;  %10458 = vmatpush1.msra.mxu1 %v10104_v40  ;;  %v7527_v48 = vld [vmem:[#allocation3 + $0x122] sm:$0xff]  ;;  %10262 = vmatprep.subr.mxu0 %v17871_v45  ;;  %v7532_v40 = vld [vmem:[#allocation3 + $0x15a] sm:$0xff] }
 0x6d9   : > { %v8188_v8 = vpop.f32.mrf.mxu1  ;;  %12412 = vmatmul.mubr.f32.gmra.mxu1 %v7520_v61  ;;  %10459 = vmatprep.subr.mxu1 %v17871_v45  ;;  %v10102_v53 = vld [vmem:[%s19345_s3 + $0x128] sm:$0xff] }
 0x6da   : > { %v8403_v24 = vpop.f32.mrf.mxu0  ;;  %12414 = vmatprep.mubr.f32.mxu1 %v7521_v1  ;;  %v8189_v62 = vadd.f32 %v17744_v59, %v8188_v8  ;;  %10460 = vmatpush1.msra.mxu1 %v10103_v18  ;;  %v7528_v1 = vld [vmem:[#allocation3 + $0x12a] sm:$0xff] }
 0x6db   : > { %v17942_v42 = vadd.f32 %v8403_v24, %v8179_v27  ;;  %v8190_v13 = vpop.f32.mrf.mxu1  ;;  %10461 = vmatprep.subr.mxu1 %v17871_v45  ;;  %v10089_v27 = vld [vmem:[%s19345_s3 + $0xc0] sm:$0xff] }
 0x6dc   : > { %v8405_v58 = vpop.f32.mrf.mxu0  ;;  %10263 = vmatpush2.msra.mxu0 %v10089_v27  ;;  %10462 = vmatpush1.msra.mxu1 %v10102_v53  ;;  %v10101_v24 = vld [vmem:[%s19345_s3 + $0x120] sm:$0xff]  ;;  %v10127_v27 = vld [vmem:[%s19345_s3 + $0x1f0] sm:$0xff] }
 0x6dd   : > { %v8193_v52 = vpop.f32.mrf.mxu1  ;;  %12415 = vmatmul.mubr.f32.gmra.mxu1 %v7522_v5  ;;  %10463 = vmatprep.subr.mxu1 %v17871_v45  ;;  %v10100_v5 = vld [vmem:[%s19345_s3 + $0x118] sm:$0xff] }
 0x6de   : > { %v8408_v50 = vpop.f32.mrf.mxu0  ;;  %12417 = vmatprep.mubr.f32.mxu1 %v7523_v56  ;;  %v8194_v46 = vadd.f32 %v17744_v59, %v8193_v52  ;;  %10464 = vmatpush1.msra.mxu1 %v10101_v24  ;;  %v10088_v52 = vld [vmem:[%s19345_s3 + $0xb8] sm:$0xff] }
 0x6df   : > { %v17957_v4 = vadd.f32 %v8408_v50, %v8184_v44  ;;  %v8195_v28 = vpop.f32.mrf.mxu1  ;;  %10264 = vmatprep.subr.mxu0 %v17871_v45  ;;  %10465 = vmatprep.subr.mxu1 %v17871_v45  ;;  %v7530_v50 = vld [vmem:[#allocation3 + $0x142] sm:$0xff] }
 0x6e0   : > { %v8410_v36 = vpop.f32.mrf.mxu0  ;;  %10265 = vmatpush2.msra.mxu0 %v10088_v52  ;;  %10466 = vmatpush1.msra.mxu1 %v10100_v5  ;;  %v10085_v5 = vld [vmem:[%s19345_s3 + $0xa0] sm:$0xff] }
 0x6e1   : > { %v8198_v7 = vpop.f32.mrf.mxu1  ;;  %12418 = vmatmul.mubr.f32.gmra.mxu1 %v7524_v21  ;;  %v7531_v36 = vld [vmem:[#allocation3 + $0x152] sm:$0xff]  ;;  %10467 = vmatprep.subr.mxu1 %v17871_v45 }
 0x6e2   : > { %v8413_v43 = vpop.f32.mrf.mxu0  ;;  %12420 = vmatprep.mubr.f32.mxu1 %v7525_v32  ;;  %v8199_v57 = vadd.f32 %v17744_v59, %v8198_v7  ;;  %10468 = vmatpush1.msra.mxu1 %v10099_v20  ;;  %v10087_v32 = vld [vmem:[%s19345_s3 + $0xb0] sm:$0xff] }
 0x6e3   : > { %v17972_v2 = vadd.f32 %v8413_v43, %v8189_v62  ;;  %v8200_v49 = vpop.f32.mrf.mxu1  ;;  %10266 = vmatprep.subr.mxu0 %v17871_v45  ;;  %10469 = vmatprep.subr.mxu1 %v17871_v45  ;;  %v7538_v20 = vld [vmem:[#allocation3 + $0x1a2] sm:$0xff] }
 0x6e4   : > { %v8415_v51 = vpop.f32.mrf.mxu0  ;;  %10267 = vmatpush2.msra.mxu0 %v10087_v32  ;;  %10470 = vmatpush1.msra.mxu1 %v10098_v14  ;;  %v10097_v49 = vld [vmem:[%s19345_s3 + $0x100] sm:$0xff]  ;;  %v10123_v14 = vld [vmem:[%s19345_s3 + $0x1d0] sm:$0xff] }
 0x6e5   : > { %v8203_v11 = vpop.f32.mrf.mxu1  ;;  %12421 = vmatmul.mubr.f32.gmra.mxu1 %v7526_v16  ;;  %v7533_v16 = vld [vmem:[#allocation3 + $0x16a] sm:$0xff]  ;;  %10471 = vmatprep.subr.mxu1 %v17871_v45 }
 0x6e6   : > { %v8418_v19 = vpop.f32.mrf.mxu0  ;;  %12423 = vmatprep.mubr.f32.mxu1 %v7527_v48  ;;  %v8204_v28 = vadd.f32 %v17744_v59, %v8203_v11  ;;  %10472 = vmatpush1.msra.mxu1 %v10097_v49  ;;  %v10122_v49 = vld [vmem:[%s19345_s3 + $0x1c8] sm:$0xff] }
 0x6e7   : > { %v17987_v61 = vadd.f32 %v8418_v19, %v8194_v46  ;;  %v8205_v0 = vpop.f32.mrf.mxu1  ;;  %v10128_v46 = vld [vmem:[%s19345_s3 + $0x1f8] sm:$0xff]  ;;  %10268 = vmatprep.subr.mxu0 %v17871_v45  ;;  %10473 = vmatprep.subr.mxu1 %v17871_v45  ;;  %v10086_v19 = vld [vmem:[%s19345_s3 + $0xa8] sm:$0xff] }
 0x6e8   : > { %v8420_v8 = vpop.f32.mrf.mxu0  ;;  %v7534_v0 = vld [vmem:[#allocation3 + $0x172] sm:$0xff]  ;;  %10269 = vmatpush2.msra.mxu0 %v10086_v19  ;;  %10474 = vmatpush2.msra.mxu1 %v10128_v46 }
 0x6e9   : > { %v8208_v13 = vpop.f32.mrf.mxu1  ;;  %12424 = vmatmul.mubr.f32.gmra.mxu1 %v7528_v1  ;;  %10475 = vmatprep.subr.mxu1 %v17871_v45  ;;  %v10082_v46 = vld [vmem:[%s19345_s3 + $0x88] sm:$0xff] }
 0x6ea   : > { %v8423_v58 = vpop.f32.mrf.mxu0  ;;  %12426 = vmatprep.mubr.f32.mxu1 %v7529_v33  ;;  %v8209_v55 = vadd.f32 %v17744_v59, %v8208_v13  ;;  %10476 = vmatpush2.msra.mxu1 %v10127_v27  ;;  %v10120_v27 = vld [vmem:[%s19345_s3 + $0x1b8] sm:$0xff] }
 0x6eb   : > { %v18002_v9 = vadd.f32 %v8423_v58, %v8199_v57  ;;  %v8210_v44 = vpop.f32.mrf.mxu1  ;;  %v10126_v57 = vld [vmem:[%s19345_s3 + $0x1e8] sm:$0xff]  ;;  %10270 = vmatprep.subr.mxu0 %v17871_v45  ;;  %10477 = vmatprep.subr.mxu1 %v17871_v45 }
 0x6ec   : > { %v8425_v56 = vpop.f32.mrf.mxu0  ;;  %v7537_v58 = vld [vmem:[#allocation3 + $0x19a] sm:$0xff]  ;;  %10271 = vmatpush2.msra.mxu0 %v10085_v5  ;;  %10478 = vmatpush2.msra.mxu1 %v10126_v57 }
 0x6ed   : > { %v8213_v26 = vpop.f32.mrf.mxu1  ;;  %12427 = vmatmul.mubr.f32.gmra.mxu1 %v7530_v50  ;;  %10479 = vmatprep.subr.mxu1 %v17871_v45 }
 0x6ee   : > { %v8428_v21 = vpop.f32.mrf.mxu0  ;;  %12429 = vmatprep.mubr.f32.mxu1 %v7531_v36  ;;  %v8214_v8 = vadd.f32 %v17744_v59, %v8213_v26  ;;  %10272 = vmatprep.subr.mxu0 %v17871_v45 }
 0x6ef   : > { %v18017_v62 = vadd.f32 %v8428_v21, %v8204_v28  ;;  %v8215_v7 = vpop.f32.mrf.mxu1  ;;  %v10124_v28 = vld [vmem:[%s19345_s3 + $0x1d8] sm:$0xff] }
 0x6f0   : > { %v8430_v43 = vpop.f32.mrf.mxu0 }
 0x6f1   : > { %v8218_v51 = vpop.f32.mrf.mxu1  ;;  %12430 = vmatmul.mubr.f32.gmra.mxu1 %v7532_v40  ;;  %v10083_v40 = vld [vmem:[%s19345_s3 + $0x90] sm:$0xff] }
 0x6f2   : > { %v8433_v18 = vpop.f32.mrf.mxu0  ;;  %12432 = vmatprep.mubr.f32.mxu1 %v7533_v16  ;;  %v8219_v52 = vadd.f32 %v17744_v59, %v8218_v51 }
 0x6f3   : > { %v18032_v11 = vadd.f32 %v8433_v18, %v8209_v55  ;;  %v8220_v48 = vpop.f32.mrf.mxu1  ;;  %v10121_v18 = vld [vmem:[%s19345_s3 + $0x1c0] sm:$0xff] }
 0x6f4   : > { %v8435_v53 = vpop.f32.mrf.mxu0 }
 0x6f5   : > { %v8223_v1 = vpop.f32.mrf.mxu1  ;;  %12433 = vmatmul.mubr.f32.gmra.mxu1 %v7534_v0 }
 0x6f6   : > { %v8438_v24 = vpop.f32.mrf.mxu0  ;;  %12435 = vmatprep.mubr.f32.mxu1 %v17849_v47  ;;  %v10125_v47 = vld [vmem:[%s19345_s3 + $0x1e0] sm:$0xff]  ;;  %v8224_v7 = vadd.f32 %v17744_v59, %v8223_v1 }
 0x6f7   : > { %v18048_v13 = vadd.f32 %v8438_v24, %v8214_v8  ;;  %v8225_v33 = vpop.f32.mrf.mxu1  ;;  %10480 = vmatpush2.msra.mxu1 %v10125_v47  ;;  %v10081_v8 = vld [vmem:[%s19345_s3 + $0x80] sm:$0xff] }
 0x6f8   : > { %v8440_v44 = vpop.f32.mrf.mxu0  ;;  %10481 = vmatprep.subr.mxu1 %v17871_v45  ;;  %v9265_v1 = vld [vmem:[#allocation2 + $0x1] sm:$0xff] }
 0x6f9   : > { %v8228_v56 = vpop.f32.mrf.mxu1  ;;  %12436 = vmatmul.mubr.f32.gmra.mxu1 %v17860_v38  ;;  %v10084_v38 = vld [vmem:[%s19345_s3 + $0x98] sm:$0xff]  ;;  %v9201_v33 = vld [vmem:[#allocation2] sm:$0xff]  ;;  %10280 = vmatprep.mubr.f32.mxu0 %v9265_v1 }
 0x6fa   : > { %v8443_v50 = vpop.f32.mrf.mxu0  ;;  %12438 = vmatprep.mubr.f32.mxu1 %v7537_v58  ;;  %10273 = vmatpush2.msra.mxu0 %v10084_v38  ;;  %v8229_v48 = vadd.f32 %v17744_v59, %v8228_v56  ;;  %v10119_v58 = vld [vmem:[%s19345_s3 + $0x1b0] sm:$0xff]  ;;  %v10118_v56 = vld [vmem:[%s19345_s3 + $0x1a8] sm:$0xff] }
 0x6fb   : > { %v18064_v26 = vadd.f32 %v8443_v50, %v8219_v52  ;;  %v8230_v36 = vpop.f32.mrf.mxu1  ;;  %10482 = vmatpush2.msra.mxu1 %v10124_v28  ;;  %10274 = vmatprep.subr.mxu0 %v17871_v45  ;;  %v9266_v50 = vld [vmem:[#allocation2 + $0x9] sm:$0xff] }
 0x6fc   : > { %v8445_v21 = vpop.f32.mrf.mxu0  ;;  %10483 = vmatprep.subr.mxu1 %v17871_v45  ;;  %10275 = vmatpush2.msra.mxu0 %v10083_v40  ;;  %v10115_v40 = vld [vmem:[%s19345_s3 + $0x190] sm:$0xff] }
 0x6fd   : > { %v8233_v32 = vpop.f32.mrf.mxu1  ;;  %12439 = vmatmul.mubr.f32.gmra.mxu1 %v7538_v20  ;;  %10276 = vmatprep.subr.mxu0 %v17871_v45 }
 0x6fe   : > { %v8448_v43 = vpop.f32.mrf.mxu0  ;;  %10484 = vmatpush2.msra.mxu1 %v10123_v14  ;;  %10277 = vmatpush2.msra.mxu0 %v10082_v46  ;;  %v8234_v5 = vadd.f32 %v17744_v59, %v8233_v32  ;;  %v10116_v14 = vld [vmem:[%s19345_s3 + $0x198] sm:$0xff] }
 0x6ff   : > { %v18083_v55 = vadd.f32 %v8448_v43, %v8224_v7  ;;  %v8235_v51 = vpop.f32.mrf.mxu1  ;;  %10485 = vmatprep.subr.mxu1 %v17871_v45  ;;  %10278 = vmatprep.subr.mxu0 %v17871_v45 }
 0x700   : > { %v8450_v16 = vpop.f32.mrf.mxu0  ;;  %10486 = vmatpush2.msra.mxu1 %v10122_v49  ;;  %10279 = vmatpush2.msra.mxu0 %v10081_v8  ;;  %v10143_v8 = vld [vmem:[%s19345_s3 + $0x270] sm:$0xff] }
 0x701   : > { %v8528_v19 = vpop.f32.mrf.mxu1  ;;  %10487 = vmatprep.subr.mxu1 %v17871_v45  ;;  %10281 = vmatmul.mubr.f32.vlgmr.msra.gmra.mxu0 %v9201_v33  ;;  %v10144_v16 = vld [vmem:[%s19345_s3 + $0x278] sm:$0xff] }
 0x702   : > { %v8453_v53 = vpop.f32.mrf.mxu0  ;;  %v8529_v0 = vadd.f32 %v8528_v19, %v17752_v29  ;;  %10488 = vmatpush2.msra.mxu1 %v10121_v18  ;;  %10666 = vmatprep.subr.mxu0 %v17871_v45  ;;  %v10114_v18 = vld [vmem:[%s19345_s3 + $0x188] sm:$0xff] }
 0x703   : > { %v18103_v24 = vadd.f32 %v8453_v53, %v8229_v48  ;;  %v8530_v57 = vpop.f32.mrf.mxu1  ;;  %10489 = vmatprep.subr.mxu1 %v17871_v45  ;;  %10285 = vmatprep.mubr.f32.mxu0 %v9266_v50 }
 0x704   : > { %v8455_v29 = vpop.f32.mrf.mxu0  ;;  %10490 = vmatpush2.msra.mxu1 %v10120_v27  ;;  %10667 = vmatpush1.msra.mxu0 %v10144_v16 }
 0x705   : > { %v8533_v44 = vpop.f32.mrf.mxu1  ;;  %10491 = vmatprep.subr.mxu1 %v17871_v45  ;;  %10286 = vmatmul.mubr.f32.gmra.mxu0 %v17871_v45 }
 0x706   : > { %v8458_v47 = vpop.f32.mrf.mxu0  ;;  %v8534_v52 = vadd.f32 %v8533_v44, %v17762_v63  ;;  %10492 = vmatpush2.msra.mxu1 %v10119_v58  ;;  %v10117_v63 = vld [vmem:[%s19345_s3 + $0x1a0] sm:$0xff]  ;;  %10668 = vmatprep.subr.mxu0 %v17871_v45 }
 0x707   : > { %v18116_v20 = vadd.f32 %v8458_v47, %v8234_v5  ;;  %v8535_v28 = vpop.f32.mrf.mxu1  ;;  %10493 = vmatprep.subr.mxu1 %v17871_v45  ;;  %10669 = vmatpush1.msra.mxu0 %v10143_v8 }
 0x708   : > { %v8460_v59 = vpop.f32.mrf.mxu0  ;;  %10494 = vmatpush2.msra.mxu1 %v10118_v56  ;;  %10670 = vmatprep.subr.mxu0 %v17871_v45 }
 0x709   : > { %v8538_v36 = vpop.f32.mrf.mxu1  ;;  %10495 = vmatprep.subr.mxu1 %v17871_v45 }
 0x70a   : > { %v8539_v38 = vadd.f32 %v8538_v36, %v17771_v30  ;;  %v8753_v21 = vpop.f32.mrf.mxu0  ;;  %10496 = vmatpush2.msra.mxu1 %v10117_v63 }
 0x70b   : > { %v18128_v7 = vadd.f32 %v8753_v21, %v8529_v0  ;;  %v8540_v32 = vpop.f32.mrf.mxu1  ;;  %10497 = vmatprep.subr.mxu1 %v17871_v45 }
 0x70c   : > { %v8755_v43 = vpop.f32.mrf.mxu0  ;;  %10498 = vmatpush2.msra.mxu1 %v10116_v14 }
 0x70d   : > { %v8543_v49 = vpop.f32.mrf.mxu1  ;;  %10499 = vmatprep.subr.mxu1 %v17871_v45 }
 0x70e   : > { %v8544_v30 = vadd.f32 %v8543_v49, %v17780_v34  ;;  %v8758_v51 = vpop.f32.mrf.mxu0  ;;  %10500 = vmatpush2.msra.mxu1 %v10115_v40  ;;  %v10113_v34 = vld [vmem:[%s19345_s3 + $0x180] sm:$0xff] }
 0x70f   : > { %v18142_v46 = vadd.f32 %v8758_v51, %v8534_v52  ;;  %v8545_v48 = vpop.f32.mrf.mxu1  ;;  %10501 = vmatprep.subr.mxu1 %v17871_v45 }
 0x710   : > { %v8760_v19 = vpop.f32.mrf.mxu0  ;;  %10502 = vmatpush2.msra.mxu1 %v10114_v18 }
 0x711   : > { %v8548_v53 = vpop.f32.mrf.mxu1  ;;  %10503 = vmatprep.subr.mxu1 %v17871_v45 }
 0x712   : > { %v8549_v0 = vadd.f32 %v8548_v53, %v17789_v17  ;;  %v8763_v27 = vpop.f32.mrf.mxu0  ;;  %10504 = vmatpush2.msra.mxu1 %v10113_v34  ;;  %v10142_v17 = vld [vmem:[%s19345_s3 + $0x268] sm:$0xff] }
 0x713   : > { %v18154_v1 = vadd.f32 %v8763_v27, %v8539_v38  ;;  %v8550_v57 = vpop.f32.mrf.mxu1  ;;  %10891 = vmatprep.subr.mxu1 %v17871_v45  ;;  %10671 = vmatpush1.msra.mxu0 %v10142_v17 }
 0x714   : > { %v8765_v33 = vpop.f32.mrf.mxu0  ;;  %10672 = vmatprep.subr.mxu0 %v17871_v45 }
 0x715   : > { %v8553_v29 = vpop.f32.mrf.mxu1 }
 0x716   : > { %v8554_v58 = vadd.f32 %v8553_v29, %v17798_v22  ;;  %v8768_v5 = vpop.f32.mrf.mxu0  ;;  %v10141_v22 = vld [vmem:[%s19345_s3 + $0x260] sm:$0xff] }
 0x717   : > { %v18162_v44 = vadd.f32 %v8768_v5, %v8544_v30  ;;  %v8555_v47 = vpop.f32.mrf.mxu1  ;;  %10673 = vmatpush1.msra.mxu0 %v10141_v22 }
 0x718   : > { %v8770_v52 = vpop.f32.mrf.mxu0  ;;  %10674 = vmatprep.subr.mxu0 %v17871_v45 }
 0x719   : > { %v8558_v56 = vpop.f32.mrf.mxu1 }
 0x71a   : > { %v8559_v50 = vadd.f32 %v8558_v56, %v17807_v23  ;;  %v8773_v28 = vpop.f32.mrf.mxu0  ;;  %v10140_v23 = vld [vmem:[%s19345_s3 + $0x258] sm:$0xff] }
 0x71b   : > { %v18169_v59 = vadd.f32 %v8773_v28, %v8549_v0  ;;  %v8560_v63 = vpop.f32.mrf.mxu1  ;;  %10675 = vmatpush1.msra.mxu0 %v10140_v23 }
 0x71c   : > { %v8775_v36 = vpop.f32.mrf.mxu0  ;;  %10676 = vmatprep.subr.mxu0 %v17871_v45 }
 0x71d   : > { %v8563_v38 = vpop.f32.mrf.mxu1 }
 0x71e   : > { %v8564_v21 = vadd.f32 %v8563_v38, %v17816_v41  ;;  %v8778_v14 = vpop.f32.mrf.mxu0  ;;  %v10139_v41 = vld [vmem:[%s19345_s3 + $0x250] sm:$0xff] }
 0x71f   : > { %v18176_v32 = vadd.f32 %v8778_v14, %v8554_v58  ;;  %v8565_v43 = vpop.f32.mrf.mxu1  ;;  %10677 = vmatpush1.msra.mxu0 %v10139_v41 }
 0x720   : > { %v8780_v40 = vpop.f32.mrf.mxu0  ;;  %10678 = vmatprep.subr.mxu0 %v17871_v45 }
 0x721   : > { %v8568_v49 = vpop.f32.mrf.mxu1 }
 0x722   : > { %v8569_v30 = vadd.f32 %v8568_v49, %v17825_v10  ;;  %v8783_v51 = vpop.f32.mrf.mxu0  ;;  %v10138_v10 = vld [vmem:[%s19345_s3 + $0x248] sm:$0xff] }
 0x723   : > { %v18183_v16 = vadd.f32 %v8783_v51, %v8559_v50  ;;  %v8570_v18 = vpop.f32.mrf.mxu1  ;;  %10679 = vmatpush1.msra.mxu0 %v10138_v10 }
 0x724   : > { %v8785_v48 = vpop.f32.mrf.mxu0  ;;  %10680 = vmatprep.subr.mxu0 %v17871_v45 }
 0x725   : > { %v8573_v19 = vpop.f32.mrf.mxu1 }
 0x726   : > { %v8574_v34 = vadd.f32 %v8573_v19, %v17834_v3  ;;  %v8788_v53 = vpop.f32.mrf.mxu0  ;;  %v10137_v3 = vld [vmem:[%s19345_s3 + $0x240] sm:$0xff] }
 0x727   : > { %v18190_v0 = vadd.f32 %v8788_v53, %v8564_v21  ;;  %v8575_v27 = vpop.f32.mrf.mxu1  ;;  %10681 = vmatpush1.msra.mxu0 %v10137_v3 }
 0x728   : > { %v8790_v8 = vpop.f32.mrf.mxu0  ;;  %10682 = vmatprep.subr.mxu0 %v17871_v45 }
 0x729   : > { %v8578_v57 = vpop.f32.mrf.mxu1 }
 0x72a   : > { %v8579_v33 = vadd.f32 %v8578_v57, %v17843_v60  ;;  %v8793_v29 = vpop.f32.mrf.mxu0  ;;  %v10136_v60 = vld [vmem:[%s19345_s3 + $0x238] sm:$0xff] }
 0x72b   : > { %v18197_v58 = vadd.f32 %v8793_v29, %v8569_v30  ;;  %v8580_v5 = vpop.f32.mrf.mxu1  ;;  %10683 = vmatpush1.msra.mxu0 %v10136_v60 }
 0x72c   : > { %v8795_v17 = vpop.f32.mrf.mxu0  ;;  %10684 = vmatprep.subr.mxu0 %v17871_v45 }
 0x72d   : > { %v8583_v47 = vpop.f32.mrf.mxu1 }
 0x72e   : > { %v8584_v52 = vadd.f32 %v8583_v47, %v17854_v15  ;;  %v8798_v56 = vpop.f32.mrf.mxu0  ;;  %v10135_v15 = vld [vmem:[%s19345_s3 + $0x230] sm:$0xff] }
 0x72f   : > { %v18204_v50 = vadd.f32 %v8798_v56, %v8574_v34  ;;  %v8585_v28 = vpop.f32.mrf.mxu1  ;;  %10685 = vmatpush1.msra.mxu0 %v10135_v15 }
 0x730   : > { %v8800_v22 = vpop.f32.mrf.mxu0  ;;  %10686 = vmatprep.subr.mxu0 %v17871_v45  ;;  %v10130_v28 = vld [vmem:[%s19345_s3 + $0x208] sm:$0xff] }
 0x731   : > { %v8588_v63 = vpop.f32.mrf.mxu1 }
 0x732   : > { %v8589_v36 = vadd.f32 %v8588_v63, %v17865_v37  ;;  %v8803_v38 = vpop.f32.mrf.mxu0  ;;  %v10134_v37 = vld [vmem:[%s19345_s3 + $0x228] sm:$0xff] }
 0x733   : > { %v18211_v21 = vadd.f32 %v8803_v38, %v8579_v33  ;;  %v8590_v14 = vpop.f32.mrf.mxu1  ;;  %10687 = vmatpush1.msra.mxu0 %v10134_v37 }
 0x734   : > { %v8805_v23 = vpop.f32.mrf.mxu0  ;;  %10688 = vmatprep.subr.mxu0 %v17871_v45 }
 0x735   : > { %v8593_v43 = vpop.f32.mrf.mxu1 }
 0x736   : > { %v8594_v40 = vadd.f32 %v8593_v43, %v17875_v12  ;;  %v8808_v49 = vpop.f32.mrf.mxu0  ;;  %v10133_v12 = vld [vmem:[%s19345_s3 + $0x220] sm:$0xff] }
 0x737   : > { %v18218_v30 = vadd.f32 %v8808_v49, %v8584_v52  ;;  %v8595_v51 = vpop.f32.mrf.mxu1  ;;  %10689 = vmatpush1.msra.mxu0 %v10133_v12 }
 0x738   : > { %v8810_v41 = vpop.f32.mrf.mxu0  ;;  %10690 = vmatprep.subr.mxu0 %v17871_v45 }
 0x739   : > { %v8598_v18 = vpop.f32.mrf.mxu1 }
 0x73a   : > { %v8599_v48 = vadd.f32 %v8598_v18, %v17882_v54  ;;  %v8813_v19 = vpop.f32.mrf.mxu0  ;;  %v10132_v54 = vld [vmem:[%s19345_s3 + $0x218] sm:$0xff] }
 0x73b   : > { %v18225_v34 = vadd.f32 %v8813_v19, %v8589_v36  ;;  %v8600_v53 = vpop.f32.mrf.mxu1  ;;  %10691 = vmatpush1.msra.mxu0 %v10132_v54  ;;  %v10129_v36 = vld [vmem:[%s19345_s3 + $0x200] sm:$0xff] }
 0x73c   : > { %v8815_v10 = vpop.f32.mrf.mxu0  ;;  %10692 = vmatprep.subr.mxu0 %v17871_v45 }
 0x73d   : > { %v8603_v27 = vpop.f32.mrf.mxu1 }
 0x73e   : > { %v8604_v8 = vadd.f32 %v8603_v27, %v17890_v31  ;;  %v8818_v57 = vpop.f32.mrf.mxu0  ;;  %v10131_v31 = vld [vmem:[%s19345_s3 + $0x210] sm:$0xff] }
 0x73f   : > { %v18232_v33 = vadd.f32 %v8818_v57, %v8594_v40  ;;  %v8605_v29 = vpop.f32.mrf.mxu1  ;;  %10693 = vmatpush1.msra.mxu0 %v10131_v31 }
 0x740   : > { %v8820_v3 = vpop.f32.mrf.mxu0  ;;  %10694 = vmatprep.subr.mxu0 %v17871_v45 }
 0x741   : > { %v8608_v5 = vpop.f32.mrf.mxu1  ;;  %10695 = vmatpush1.msra.mxu0 %v10130_v28  ;;  %v18273_v3 = vld [vmem:[#allocation2 + $0x8] sm:$0xff] }
 0x742   : > { %v8609_v17 = vadd.f32 %v8608_v5, %v17897_v25  ;;  %v8823_v47 = vpop.f32.mrf.mxu0  ;;  %10696 = vmatprep.subr.mxu0 %v17871_v45 }
 0x743   : > { %v18239_v52 = vadd.f32 %v8823_v47, %v8599_v48  ;;  %v8610_v56 = vpop.f32.mrf.mxu1  ;;  %10697 = vmatpush1.msra.mxu0 %v10129_v36 }
 0x744   : > { %v8825_v60 = vpop.f32.mrf.mxu0  ;;  %10698 = vmatprep.subr.mxu0 %v17871_v45 }
 0x745   : > { %v8613_v22 = vpop.f32.mrf.mxu1 }
 0x746   : > { %v8614_v25 = vadd.f32 %v8613_v22, %v17904_v6  ;;  %v8828_v63 = vpop.f32.mrf.mxu0  ;;  %v10160_v6 = vld [vmem:[%s19345_s3 + $0x2f8] sm:$0xff] }
 0x747   : > { %v18250_v38 = vadd.f32 %v8828_v63, %v8604_v8  ;;  %v8615_v15 = vpop.f32.mrf.mxu1  ;;  %10699 = vmatpush2.msra.mxu0 %v10160_v6 }
 0x748   : > { %v8830_v14 = vpop.f32.mrf.mxu0  ;;  %10700 = vmatprep.subr.mxu0 %v17871_v45 }
 0x749   : > { %v8618_v23 = vpop.f32.mrf.mxu1 }
 0x74a   : > { %v8619_v43 = vadd.f32 %v8618_v23, %v17914_v35  ;;  %v8833_v40 = vpop.f32.mrf.mxu0  ;;  %v10159_v35 = vld [vmem:[%s19345_s3 + $0x2f0] sm:$0xff] }
 0x74b   : > { %v18257_v49 = vadd.f32 %v8833_v40, %v8609_v17  ;;  %v8620_v37 = vpop.f32.mrf.mxu1  ;;  %10701 = vmatpush2.msra.mxu0 %v10159_v35 }
 0x74c   : > { %v8835_v51 = vpop.f32.mrf.mxu0  ;;  %10702 = vmatprep.subr.mxu0 %v17871_v45 }
 0x74d   : > { %v8623_v41 = vpop.f32.mrf.mxu1 }
 0x74e   : > { %v8624_v18 = vadd.f32 %v8623_v41, %v17928_v39  ;;  %v8838_v48 = vpop.f32.mrf.mxu0  ;;  %v10158_v39 = vld [vmem:[%s19345_s3 + $0x2e8] sm:$0xff] }
 0x74f   : > { %v18264_v19 = vadd.f32 %v8838_v48, %v8614_v25  ;;  %v8625_v12 = vpop.f32.mrf.mxu1  ;;  %10703 = vmatpush2.msra.mxu0 %v10158_v39 }
 0x750   : > { %v8840_v53 = vpop.f32.mrf.mxu0  ;;  %10704 = vmatprep.subr.mxu0 %v18273_v3 }
 0x751   : > { %v8628_v10 = vpop.f32.mrf.mxu1 }
 0x752   : > { %v8629_v27 = vadd.f32 %v8628_v10, %v17942_v42  ;;  %v8843_v8 = vpop.f32.mrf.mxu0  ;;  %v10157_v42 = vld [vmem:[%s19345_s3 + $0x2e0] sm:$0xff] }
 0x753   : > { %v18271_v57 = vadd.f32 %v8843_v8, %v8619_v43  ;;  %v8630_v54 = vpop.f32.mrf.mxu1  ;;  %10705 = vmatpush2.msra.mxu0 %v10157_v42 }
 0x754   : > { %v8845_v29 = vpop.f32.mrf.mxu0  ;;  %10706 = vmatprep.subr.mxu0 %v18273_v3 }
 0x755   : > { %v8633_v5 = vpop.f32.mrf.mxu1 }
 0x756   : > { %v8634_v45 = vadd.f32 %v8633_v5, %v17957_v4  ;;  %v8848_v17 = vpop.f32.mrf.mxu0  ;;  %v10156_v4 = vld [vmem:[%s19345_s3 + $0x2d8] sm:$0xff] }
 0x757   : > { %v18280_v47 = vadd.f32 %v8848_v17, %v8624_v18  ;;  %v8635_v31 = vpop.f32.mrf.mxu1  ;;  %10707 = vmatpush2.msra.mxu0 %v10156_v4 }
 0x758   : > { %v8850_v56 = vpop.f32.mrf.mxu0  ;;  %10708 = vmatprep.subr.mxu0 %v18273_v3 }
 0x759   : > { %v8638_v60 = vpop.f32.mrf.mxu1 }
 0x75a   : > { %v8639_v28 = vadd.f32 %v8638_v60, %v17972_v2  ;;  %v8853_v22 = vpop.f32.mrf.mxu0  ;;  %v10155_v2 = vld [vmem:[%s19345_s3 + $0x2d0] sm:$0xff] }
 0x75b   : > { %v18287_v25 = vadd.f32 %v8853_v22, %v8629_v27  ;;  %v8640_v63 = vpop.f32.mrf.mxu1  ;;  %10709 = vmatpush2.msra.mxu0 %v10155_v2 }
 0x75c   : > { %v8855_v36 = vpop.f32.mrf.mxu0  ;;  %10710 = vmatprep.subr.mxu0 %v18273_v3 }
 0x75d   : > { %v8643_v15 = vpop.f32.mrf.mxu1 }
 0x75e   : > { %v8644_v14 = vadd.f32 %v8643_v15, %v17987_v61  ;;  %v8858_v23 = vpop.f32.mrf.mxu0  ;;  %v10154_v61 = vld [vmem:[%s19345_s3 + $0x2c8] sm:$0xff] }
 0x75f   : > { %v18294_v43 = vadd.f32 %v8858_v23, %v8634_v45  ;;  %v8645_v40 = vpop.f32.mrf.mxu1  ;;  %10711 = vmatpush2.msra.mxu0 %v10154_v61 }
 0x760   : > { %v8860_v6 = vpop.f32.mrf.mxu0  ;;  %10712 = vmatprep.subr.mxu0 %v18273_v3 }
 0x761   : > { %v8648_v37 = vpop.f32.mrf.mxu1 }
 0x762   : > { %v8649_v51 = vadd.f32 %v8648_v37, %v18002_v9  ;;  %v8863_v41 = vpop.f32.mrf.mxu0  ;;  %v10153_v9 = vld [vmem:[%s19345_s3 + $0x2c0] sm:$0xff] }
 0x763   : > { %v18301_v18 = vadd.f32 %v8863_v41, %v8639_v28  ;;  %v8650_v48 = vpop.f32.mrf.mxu1  ;;  %10713 = vmatpush2.msra.mxu0 %v10153_v9 }
 0x764   : > { %v8865_v35 = vpop.f32.mrf.mxu0  ;;  %10714 = vmatprep.subr.mxu0 %v18273_v3 }
 0x765   : > { %v8653_v12 = vpop.f32.mrf.mxu1 }
 0x766   : > { %v8654_v53 = vadd.f32 %v8653_v12, %v18017_v62  ;;  %v8868_v10 = vpop.f32.mrf.mxu0  ;;  %v10152_v62 = vld [vmem:[%s19345_s3 + $0x2b8] sm:$0xff] }
 0x767   : > { %v18308_v27 = vadd.f32 %v8868_v10, %v8644_v14  ;;  %v8655_v8 = vpop.f32.mrf.mxu1  ;;  %10715 = vmatpush2.msra.mxu0 %v10152_v62  ;;  %v10146_v62 = vld [vmem:[%s19345_s3 + $0x288] sm:$0xff] }
 0x768   : > { %v8870_v39 = vpop.f32.mrf.mxu0  ;;  %10716 = vmatprep.subr.mxu0 %v18273_v3 }
 0x769   : > { %v8658_v54 = vpop.f32.mrf.mxu1 }
 0x76a   : > { %v8659_v29 = vadd.f32 %v8658_v54, %v18032_v11  ;;  %v8873_v5 = vpop.f32.mrf.mxu0  ;;  %v10151_v11 = vld [vmem:[%s19345_s3 + $0x2b0] sm:$0xff] }
 0x76b   : > { %v18315_v45 = vadd.f32 %v8873_v5, %v8649_v51  ;;  %v8660_v17 = vpop.f32.mrf.mxu1  ;;  %10717 = vmatpush2.msra.mxu0 %v10151_v11 }
 0x76c   : > { %v8875_v42 = vpop.f32.mrf.mxu0  ;;  %10718 = vmatprep.subr.mxu0 %v18273_v3 }
 0x76d   : > { %v8663_v31 = vpop.f32.mrf.mxu1 }
 0x76e   : > { %v18319_v56 = vadd.f32 %v8663_v31, %v18048_v13  ;;  %v8878_v60 = vpop.f32.mrf.mxu0  ;;  %v10150_v13 = vld [vmem:[%s19345_s3 + $0x2a8] sm:$0xff] }
 0x76f   : > { %v18324_v28 = vadd.f32 %v8878_v60, %v8654_v53  ;;  %v8665_v22 = vpop.f32.mrf.mxu1  ;;  %10719 = vmatpush2.msra.mxu0 %v10150_v13 }
 0x770   : > { %v8880_v4 = vpop.f32.mrf.mxu0  ;;  %10720 = vmatprep.subr.mxu0 %v18273_v3 }
 0x771   : > { %v8668_v63 = vpop.f32.mrf.mxu1 }
 0x772   : > { %v18328_v36 = vadd.f32 %v8668_v63, %v18064_v26  ;;  %v8883_v15 = vpop.f32.mrf.mxu0  ;;  %v10149_v26 = vld [vmem:[%s19345_s3 + $0x2a0] sm:$0xff] }
 0x773   : > { %v18333_v14 = vadd.f32 %v8883_v15, %v8659_v29  ;;  %v8670_v23 = vpop.f32.mrf.mxu1  ;;  %10721 = vmatpush2.msra.mxu0 %v10149_v26 }
 0x774   : > { %v8885_v2 = vpop.f32.mrf.mxu0  ;;  %10722 = vmatprep.subr.mxu0 %v18273_v3 }
 0x775   : > { %v8673_v40 = vpop.f32.mrf.mxu1 }
 0x776   : > { %v18337_v6 = vadd.f32 %v8673_v40, %v18083_v55  ;;  %v18339_v37 = vpop.f32.mrf.mxu0  ;;  %v10148_v55 = vld [vmem:[%s19345_s3 + $0x298] sm:$0xff] }
 0x777   : > { %v8675_v51 = vpop.f32.mrf.mxu1  ;;  %10723 = vmatpush2.msra.mxu0 %v10148_v55  ;;  %v18383_v40 = vld [vmem:[%s19345_s3 + $0x478] sm:$0xff] }
 0x778   : > { %v8890_v41 = vpop.f32.mrf.mxu0  ;;  %10724 = vmatprep.subr.mxu0 %v18273_v3 }
 0x779   : > { %v8678_v61 = vpop.f32.mrf.mxu1 }
 0x77a   : > { %v18346_v48 = vadd.f32 %v8678_v61, %v18103_v24  ;;  %v18348_v35 = vpop.f32.mrf.mxu0  ;;  %v10147_v24 = vld [vmem:[%s19345_s3 + $0x290] sm:$0xff] }
 0x77b   : > { %v8680_v12 = vpop.f32.mrf.mxu1  ;;  %10725 = vmatpush2.msra.mxu0 %v10147_v24 }
 0x77c   : > { %v8895_v53 = vpop.f32.mrf.mxu0  ;;  %10726 = vmatprep.subr.mxu0 %v18273_v3 }
 0x77d   : > { %v18354_v10 = vpop.f32.mrf.mxu1  ;;  %10727 = vmatpush2.msra.mxu0 %v10146_v62 }
 0x77e   : > { %v18356_v9 = vpop.f32.mrf.mxu0  ;;  %10728 = vmatprep.subr.mxu0 %v18273_v3 }
 0x77f   : > { %v8685_v8 = vpop.f32.mrf.mxu1 }
 0x780   : > { %v8900_v39 = vpop.f32.mrf.mxu0  ;;  %v10176_v8 = vld [vmem:[%s19345_s3 + $0x378] sm:$0xff] }
 0x781   : > { %v12395_v54 = vpop.f32.mrf.mxu1 }
 0x782   : > { %v18362_v29 = vpop.f32.mrf.mxu0  ;;  %v8984_v5 = vadd.f32 %v12395_v54, %v18142_v46  ;;  %v10145_v46 = vld [vmem:[%s19345_s3 + $0x280] sm:$0xff] }
 0x783   : > { %v8978_v17 = vpop.f32.mrf.mxu1  ;;  %10729 = vmatpush2.msra.mxu0 %v10145_v46 }
 0x784   : > { %v9138_v42 = vmax.f32 %v8984_v5, 0.0  ;;  %v8905_v31 = vpop.f32.mrf.mxu0  ;;  %v8979_v60 = vadd.f32 %v8978_v17, %v18128_v7  ;;  %12441 = vmatprep.subr.mxu0 %v18383_v40  ;;  %v10175_v5 = vld [vmem:[%s19345_s3 + $0x370] sm:$0xff] }
 0x785   : > { %v12398_v11 = vpop.f32.mrf.mxu1 }
 0x786   : > { %9170 = vst [vmem:[#allocation2 + $0x21] sm:$0xff] %v9138_v42  ;;  %v9137_v22 = vmax.f32 %v8979_v60, 0.0  ;;  %v18370_v4 = vpop.f32.mrf.mxu0  ;;  %v18373_v63 = vadd.f32 %v12398_v11, %v18162_v44 }
 0x787   : > { %v8988_v15 = vpop.f32.mrf.mxu1 }
 0x788   : > { %9169 = vst [vmem:[#allocation2 + $0x19] sm:$0xff] %v9137_v22  ;;  %v9140_v13 = vmax.f32 %v18373_v63, 0.0  ;;  %v8989_v7 = vadd.f32 %v8988_v15, %v18154_v1  ;;  %10290 = vmatprep.mubr.f32.mxu0 %v9137_v22  ;;  %v8910_v23 = vpop.f32.mrf.mxu0 }
 0x789   : > { %v12401_v2 = vpop.f32.mrf.mxu1 }
 0x78a   : > { %9172 = vst [vmem:[#allocation2 + $0x39] sm:$0xff] %v9140_v13  ;;  %v9139_v44 = vmax.f32 %v8989_v7, 0.0  ;;  %v18388_v26 = vadd.f32 %v12401_v2, %v18176_v32  ;;  %v9329_v32 = vld [vmem:[#allocation2 + $0x2] sm:$0xff] }
 0x78b   : > { %v8998_v51 = vpop.f32.mrf.mxu1  ;;  %v10173_v7 = vld [vmem:[%s19345_s3 + $0x360] sm:$0xff] }
 0x78c   : > { %9171 = vst [vmem:[#allocation2 + $0x31] sm:$0xff] %v9139_v44  ;;  %v9142_v1 = vmax.f32 %v18388_v26, 0.0  ;;  %v18393_v41 = vadd.f32 %v8998_v51, %v18169_v59 }
 0x78d   : > { %v12404_v61 = vpop.f32.mrf.mxu1 }
 0x78e   : > { %9174 = vst [vmem:[#allocation2 + $0x51] sm:$0xff] %v9142_v1  ;;  %v9141_v55 = vmax.f32 %v18393_v41, 0.0  ;;  %v18399_v12 = vadd.f32 %v12404_v61, %v18190_v0  ;;  %v10172_v61 = vld [vmem:[%s19345_s3 + $0x358] sm:$0xff]  ;;  %v10170_v41 = vld [vmem:[%s19345_s3 + $0x348] sm:$0xff] }
 0x78f   : > { %v9008_v53 = vpop.f32.mrf.mxu1  ;;  %v9393_v24 = vld [vmem:[#allocation2 + $0x18] sm:$0xff]  ;;  %v9394_v0 = vld [vmem:[#allocation2 + $0x20] sm:$0xff] }
 0x790   : > { %9173 = vst [vmem:[#allocation2 + $0x49] sm:$0xff] %v9141_v55  ;;  %v9144_v59 = vmax.f32 %v18399_v12, 0.0  ;;  %v18408_v39 = vadd.f32 %v9008_v53, %v18183_v16  ;;  %10505 = vmatprep.mubr.f32.mxu1 %v9393_v24  ;;  %10291 = vmatmul.mubr.f32.gmra.mxu0 %v9393_v24  ;;  %v9330_v16 = vld [vmem:[#allocation2 + $0xa] sm:$0xff]  ;;  %v18471_v24 = vld [vmem:[#allocation2 + $0x22] sm:$0xff] }
 0x791   : > { %v12407_v54 = vpop.f32.mrf.mxu1  ;;  %10506 = vmatmul.mubr.f32.vlgmr.msra.gmra.mxu1 %v9329_v32  ;;  %10295 = vmatprep.mubr.f32.mxu0 %v9138_v42 }
 0x792   : > { %9176 = vst [vmem:[#allocation2 + $0x69] sm:$0xff] %v9144_v59  ;;  %v9143_v62 = vmax.f32 %v18408_v39, 0.0  ;;  %v18417_v17 = vadd.f32 %v12407_v54, %v18204_v50  ;;  %10510 = vmatprep.mubr.f32.mxu1 %v9394_v0  ;;  %10892 = vmatpush1.msra.mxu1 %v10176_v8  ;;  %v10174_v50 = vld [vmem:[%s19345_s3 + $0x368] sm:$0xff]  ;;  %v10167_v39 = vld [vmem:[%s19345_s3 + $0x330] sm:$0xff] }
 0x793   : > { %v9018_v31 = vpop.f32.mrf.mxu1  ;;  %10893 = vmatprep.subr.mxu1 %v18273_v3  ;;  %v9395_v22 = vld [vmem:[#allocation2 + $0x30] sm:$0xff]  ;;  %v18451_v51 = vld [vmem:[#allocation2 + $0x38] sm:$0xff] }
 0x794   : > { %9175 = vst [vmem:[#allocation2 + $0x61] sm:$0xff] %v9143_v62  ;;  %v9146_v42 = vmax.f32 %v18417_v17, 0.0  ;;  %v18424_v60 = vadd.f32 %v9018_v31, %v18197_v58  ;;  %10296 = vmatmul.mubr.f32.gmra.mxu0 %v9394_v0  ;;  %10894 = vmatpush1.msra.mxu1 %v10175_v5  ;;  %v8889_v17 = vadd.f32 %v18339_v37, %v18319_v56 }
 0x795   : > { %v12410_v11 = vpop.f32.mrf.mxu1  ;;  %10511 = vmatmul.mubr.f32.gmra.mxu1 %v9330_v16  ;;  %10300 = vmatprep.mubr.f32.mxu0 %v9139_v44 }
 0x796   : > { %9178 = vst [vmem:[#allocation2 + $0x81] sm:$0xff] %v9146_v42  ;;  %v9145_v46 = vmax.f32 %v18424_v60, 0.0  ;;  %v18433_v15 = vadd.f32 %v12410_v11, %v18218_v30  ;;  %10515 = vmatprep.mubr.f32.mxu1 %v9395_v22  ;;  %10895 = vmatprep.subr.mxu1 %v18273_v3  ;;  %v18445_v30 = vld [vmem:[#allocation2 + $0x1a] sm:$0xff] }
 0x797   : > { %v9028_v58 = vpop.f32.mrf.mxu1  ;;  %10896 = vmatpush1.msra.mxu1 %v10174_v50  ;;  %v18479_v54 = vld [vmem:[#allocation2 + $0x48] sm:$0xff]  ;;  %v18505_v50 = vld [vmem:[#allocation2 + $0x50] sm:$0xff]  ;;  %v10169_v11 = vld [vmem:[%s19345_s3 + $0x340] sm:$0xff] }
 0x798   : > { %9177 = vst [vmem:[#allocation2 + $0x79] sm:$0xff] %v9145_v46  ;;  %v9148_v23 = vmax.f32 %v18433_v15, 0.0  ;;  %v18443_v2 = vadd.f32 %v9028_v58, %v18211_v21  ;;  %10301 = vmatmul.mubr.f32.gmra.mxu0 %v9395_v22  ;;  %10897 = vmatprep.subr.mxu1 %v18273_v3  ;;  %v10164_v60 = vld [vmem:[%s19345_s3 + $0x318] sm:$0xff] }
 0x799   : > { %v12413_v44 = vpop.f32.mrf.mxu1  ;;  %10516 = vmatmul.mubr.f32.gmra.mxu1 %v18445_v30  ;;  %10305 = vmatprep.mubr.f32.mxu0 %v9140_v13 }
 0x79a   : > { %9180 = vst [vmem:[#allocation2 + $0x99] sm:$0xff] %v9148_v23  ;;  %v9147_v21 = vmax.f32 %v18443_v2, 0.0  ;;  %v18460_v32 = vadd.f32 %v12413_v44, %v18232_v33  ;;  %10520 = vmatprep.mubr.f32.mxu1 %v18451_v51  ;;  %10898 = vmatpush1.msra.mxu1 %v10173_v7  ;;  %v10171_v33 = vld [vmem:[%s19345_s3 + $0x350] sm:$0xff]  ;;  %v18525_v7 = vld [vmem:[#allocation2 + $0x3a] sm:$0xff] }
 0x79b   : > { %v9038_v53 = vpop.f32.mrf.mxu1  ;;  %10899 = vmatprep.subr.mxu1 %v18273_v3  ;;  %v10161_v2 = vld [vmem:[%s19345_s3 + $0x300] sm:$0xff] }
 0x79c   : > { %9179 = vst [vmem:[#allocation2 + $0x91] sm:$0xff] %v9147_v21  ;;  %v9150_v63 = vmax.f32 %v18460_v32, 0.0  ;;  %v18468_v13 = vadd.f32 %v9038_v53, %v18225_v34  ;;  %10306 = vmatmul.mubr.f32.gmra.mxu0 %v18451_v51  ;;  %10900 = vmatpush1.msra.mxu1 %v10172_v61  ;;  %v18533_v61 = vld [vmem:[#allocation2 + $0x60] sm:$0xff]  ;;  %v10188_v32 = vld [vmem:[%s19345_s3 + $0x3d8] sm:$0xff] }
 0x79d   : > { %v12416_v8 = vpop.f32.mrf.mxu1  ;;  %10521 = vmatmul.mubr.f32.gmra.mxu1 %v18471_v24  ;;  %10310 = vmatprep.mubr.f32.mxu0 %v9141_v55 }
 0x79e   : > { %9182 = vst [vmem:[#allocation2 + $0xb1] sm:$0xff] %v9150_v63  ;;  %v9149_v34 = vmax.f32 %v18468_v13, 0.0  ;;  %v18485_v0 = vadd.f32 %v12416_v8, %v18250_v38  ;;  %10525 = vmatprep.mubr.f32.mxu1 %v18479_v54  ;;  %10901 = vmatprep.subr.mxu1 %v18273_v3  ;;  %v18499_v38 = vld [vmem:[#allocation2 + $0x32] sm:$0xff]  ;;  %v10190_v13 = vld [vmem:[%s19345_s3 + $0x3e8] sm:$0xff] }
 0x79f   : > { %v9048_v5 = vpop.f32.mrf.mxu1  ;;  %10902 = vmatpush1.msra.mxu1 %v10171_v33 }
 0x7a0   : > { %9181 = vst [vmem:[#allocation2 + $0xa9] sm:$0xff] %v9149_v34  ;;  %v9152_v55 = vmax.f32 %v18485_v0, 0.0  ;;  %v18496_v16 = vadd.f32 %v9048_v5, %v18239_v52  ;;  %10311 = vmatmul.mubr.f32.gmra.mxu0 %v18479_v54  ;;  %10903 = vmatprep.subr.mxu1 %v18273_v3  ;;  %v10185_v0 = vld [vmem:[%s19345_s3 + $0x3c0] sm:$0xff] }
 0x7a1   : > { %v12419_v31 = vpop.f32.mrf.mxu1  ;;  %10526 = vmatmul.mubr.f32.gmra.mxu1 %v18499_v38  ;;  %10315 = vmatprep.mubr.f32.mxu0 %v9142_v1 }
 0x7a2   : > { %9184 = vst [vmem:[#allocation2 + $0xc9] sm:$0xff] %v9152_v55  ;;  %v9151_v52 = vmax.f32 %v18496_v16, 0.0  ;;  %v18514_v22 = vadd.f32 %v12419_v31, %v18264_v19  ;;  %10530 = vmatprep.mubr.f32.mxu1 %v18505_v50  ;;  %10904 = vmatpush1.msra.mxu1 %v10170_v41  ;;  %v10168_v19 = vld [vmem:[%s19345_s3 + $0x338] sm:$0xff]  ;;  %v18559_v41 = vld [vmem:[#allocation2 + $0x68] sm:$0xff] }
 0x7a3   : > { %v9058_v58 = vpop.f32.mrf.mxu1  ;;  %10905 = vmatprep.subr.mxu1 %v18273_v3  ;;  %v10166_v31 = vld [vmem:[%s19345_s3 + $0x328] sm:$0xff]  ;;  %v18643_v56 = vld [vmem:[#allocation2 + $0x90] sm:$0xff] }
 0x7a4   : > { %9183 = vst [vmem:[#allocation2 + $0xc1] sm:$0xff] %v9151_v52  ;;  %v9154_v26 = vmax.f32 %v18514_v22, 0.0  ;;  %v18522_v1 = vadd.f32 %v9058_v58, %v18257_v49  ;;  %10316 = vmatmul.mubr.f32.gmra.mxu0 %v18505_v50  ;;  %10906 = vmatpush1.msra.mxu1 %v10169_v11  ;;  %v10182_v22 = vld [vmem:[%s19345_s3 + $0x3a8] sm:$0xff] }
 0x7a5   : > { %v12422_v44 = vpop.f32.mrf.mxu1  ;;  %10531 = vmatmul.mubr.f32.gmra.mxu1 %v18525_v7  ;;  %10320 = vmatprep.mubr.f32.mxu0 %v9143_v62 }
 0x7a6   : > { %9186 = vst [vmem:[#allocation2 + $0xe1] sm:$0xff] %v9154_v26  ;;  %v9153_v49 = vmax.f32 %v18522_v1, 0.0  ;;  %v18539_v53 = vadd.f32 %v12422_v44, %v18280_v47  ;;  %10535 = vmatprep.mubr.f32.mxu1 %v18533_v61  ;;  %10907 = vmatprep.subr.mxu1 %v18273_v3  ;;  %v18553_v47 = vld [vmem:[#allocation2 + $0x4a] sm:$0xff] }
 0x7a7   : > { %v9068_v33 = vpop.f32.mrf.mxu1  ;;  %10908 = vmatpush1.msra.mxu1 %v10168_v19  ;;  %v18579_v19 = vld [vmem:[#allocation2 + $0x52] sm:$0xff] }
 0x7a8   : > { %9185 = vst [vmem:[#allocation2 + $0xd9] sm:$0xff] %v9153_v49  ;;  %v9156_v62 = vmax.f32 %v18539_v53, 0.0  ;;  %v18550_v8 = vadd.f32 %v9068_v33, %v18271_v57  ;;  %10321 = vmatmul.mubr.f32.gmra.mxu0 %v18533_v61  ;;  %10909 = vmatprep.subr.mxu1 %v18273_v3  ;;  %v18587_v33 = vld [vmem:[#allocation2 + $0x78] sm:$0xff]  ;;  %v10179_v53 = vld [vmem:[%s19345_s3 + $0x390] sm:$0xff] }
 0x7a9   : > { %v12425_v5 = vpop.f32.mrf.mxu1  ;;  %10536 = vmatmul.mubr.f32.gmra.mxu1 %v18553_v47  ;;  %10325 = vmatprep.mubr.f32.mxu0 %v9144_v59 }
 0x7aa   : > { %9188 = vst [vmem:[#allocation2 + $0xf9] sm:$0xff] %v9156_v62  ;;  %v9155_v57 = vmax.f32 %v18550_v8, 0.0  ;;  %v18568_v11 = vadd.f32 %v12425_v5, %v18294_v43  ;;  %10540 = vmatprep.mubr.f32.mxu1 %v18559_v41  ;;  %10910 = vmatpush1.msra.mxu1 %v10167_v39  ;;  %v10165_v43 = vld [vmem:[%s19345_s3 + $0x320] sm:$0xff] }
 0x7ab   : > { %v9078_v58 = vpop.f32.mrf.mxu1  ;;  %10911 = vmatprep.subr.mxu1 %v18273_v3 }
 0x7ac   : > { %9187 = vst [vmem:[#allocation2 + $0xf1] sm:$0xff] %v9155_v57  ;;  %v19407_v12 = vmax.f32 %v18568_v11, 0.0  ;;  %v18576_v59 = vadd.f32 %v9078_v58, %v18287_v25  ;;  %10326 = vmatmul.mubr.f32.gmra.mxu0 %v18559_v41  ;;  %10912 = vmatpush1.msra.mxu1 %v10166_v31 }
 0x7ad   : > { %v12428_v44 = vpop.f32.mrf.mxu1  ;;  %10541 = vmatmul.mubr.f32.gmra.mxu1 %v18579_v19  ;;  %10330 = vmatprep.mubr.f32.mxu0 %v9145_v46 }
 0x7ae   : > { %9190 = vst [vmem:[#allocation2 + $0x111] sm:$0xff] %v19407_v12  ;;  %v9157_v25 = vmax.f32 %v18576_v59, 0.0  ;;  %v18593_v39 = vadd.f32 %v12428_v44, %v18308_v27  ;;  %10545 = vmatprep.mubr.f32.mxu1 %v18587_v33  ;;  %10913 = vmatprep.subr.mxu1 %v18273_v3  ;;  %v18607_v27 = vld [vmem:[#allocation2 + $0x62] sm:$0xff]  ;;  %v10163_v44 = vld [vmem:[%s19345_s3 + $0x310] sm:$0xff]  ;;  %v19511_v59 = vmax.f32 %v18568_v11, 0.0 }
 0x7af   : > { %v9088_v5 = vpop.f32.mrf.mxu1  ;;  %10914 = vmatpush1.msra.mxu1 %v10165_v43  ;;  %v18613_v43 = vld [vmem:[#allocation2 + $0x80] sm:$0xff] }
 0x7b0   : > { %9189 = vst [vmem:[#allocation2 + $0x109] sm:$0xff] %v9157_v25  ;;  %v19408_v46 = vmax.f32 %v18593_v39, 0.0  ;;  %v18604_v31 = vadd.f32 %v9088_v5, %v18301_v18  ;;  %10331 = vmatmul.mubr.f32.gmra.mxu0 %v18587_v33  ;;  %10915 = vmatprep.subr.mxu1 %v18273_v3  ;;  %v18786_v1 = vld [vmem:[#allocation2 + $0xe0] sm:$0xff] }
 0x7b1   : > { %v12431_v58 = vpop.f32.mrf.mxu1  ;;  %10546 = vmatmul.mubr.f32.gmra.mxu1 %v18607_v27  ;;  %10335 = vmatprep.mubr.f32.mxu0 %v9146_v42 }
 0x7b2   : > { %9192 = vst [vmem:[#allocation2 + $0x129] sm:$0xff] %v19408_v46  ;;  %v9159_v18 = vmax.f32 %v18604_v31, 0.0  ;;  %v18622_v5 = vadd.f32 %v12431_v58, %v18324_v28  ;;  %10550 = vmatprep.mubr.f32.mxu1 %v18613_v43  ;;  %10916 = vmatpush1.msra.mxu1 %v10164_v60  ;;  %v18635_v28 = vld [vmem:[#allocation2 + $0x6a] sm:$0xff] }
 0x7b3   : > { %v9098_v12 = vpop.f32.mrf.mxu1  ;;  %10917 = vmatprep.subr.mxu1 %v18273_v3  ;;  %v10162_v60 = vld [vmem:[%s19345_s3 + $0x308] sm:$0xff]  ;;  %v18816_v8 = vld [vmem:[#allocation2 + $0xf8] sm:$0xff] }
 0x7b4   : > { %9191 = vst [vmem:[#allocation2 + $0x121] sm:$0xff] %v9159_v18  ;;  %v19409_v42 = vmax.f32 %v18622_v5, 0.0  ;;  %v18632_v46 = vadd.f32 %v9098_v12, %v18315_v45  ;;  %10336 = vmatmul.mubr.f32.gmra.mxu0 %v18613_v43  ;;  %10918 = vmatpush1.msra.mxu1 %v10163_v44 }
 0x7b5   : > { %v12434_v58 = vpop.f32.mrf.mxu1  ;;  %10551 = vmatmul.mubr.f32.gmra.mxu1 %v18635_v28  ;;  %10340 = vmatprep.mubr.f32.mxu0 %v9147_v21  ;;  %v8899_v21 = vadd.f32 %v18356_v9, %v18337_v6  ;;  %v18670_v6 = vld [vmem:[#allocation2 + $0x98] sm:$0xff] }
 0x7b6   : > { %9194 = vst [vmem:[#allocation2 + $0x141] sm:$0xff] %v19409_v42  ;;  %v19410_v45 = vmax.f32 %v18632_v46, 0.0  ;;  %v18648_v37 = vadd.f32 %v12434_v58, %v8889_v17  ;;  %10555 = vmatprep.mubr.f32.mxu1 %v18643_v56  ;;  %10919 = vmatprep.subr.mxu1 %v18273_v3  ;;  %v18664_v58 = vld [vmem:[#allocation2 + $0x7a] sm:$0xff]  ;;  %v18872_v31 = vld [vmem:[#allocation2 + $0x112] sm:$0xff] }
 0x7b7   : > { %v9108_v12 = vpop.f32.mrf.mxu1  ;;  %10920 = vmatpush1.msra.mxu1 %v10162_v60  ;;  %v10192_v9 = vld [vmem:[%s19345_s3 + $0x3f8] sm:$0xff] }
 0x7b8   : > { %9193 = vst [vmem:[#allocation2 + $0x139] sm:$0xff] %v19410_v45  ;;  %v9164_v44 = vmax.f32 %v18648_v37, 0.0  ;;  %v18661_v17 = vadd.f32 %v9108_v12, %v18333_v14  ;;  %10341 = vmatmul.mubr.f32.gmra.mxu0 %v18643_v56  ;;  %10921 = vmatprep.subr.mxu1 %v18273_v3  ;;  %v8894_v14 = vadd.f32 %v18348_v35, %v18328_v36  ;;  %v18693_v35 = vld [vmem:[#allocation2 + $0x82] sm:$0xff] }
 0x7b9   : > { %v12437_v60 = vpop.f32.mrf.mxu1  ;;  %10556 = vmatmul.mubr.f32.gmra.mxu1 %v18664_v58  ;;  %10345 = vmatprep.mubr.f32.mxu0 %v9148_v23  ;;  %v8684_v12 = vadd.f32 %v18354_v10, %v18116_v20  ;;  %v10191_v10 = vld [vmem:[%s19345_s3 + $0x3f0] sm:$0xff] }
 0x7ba   : > { %9196 = vst [vmem:[#allocation2 + $0x159] sm:$0xff] %v9164_v44  ;;  %v9163_v42 = vmax.f32 %v18661_v17, 0.0  ;;  %v18682_v45 = vadd.f32 %v12437_v60, %v8899_v21  ;;  %10560 = vmatprep.mubr.f32.mxu1 %v18670_v6  ;;  %10922 = vmatpush1.msra.mxu1 %v10161_v2  ;;  %v8904_v21 = vadd.f32 %v18362_v29, %v18346_v48 }
 0x7bb   : > { %v9118_v15 = vpop.f32.mrf.mxu1  ;;  %10923 = vmatprep.subr.mxu1 %v18273_v3  ;;  %v8909_v23 = vadd.f32 %v18370_v4, %v8684_v12  ;;  %v18701_v4 = vld [vmem:[#allocation2 + $0xa8] sm:$0xff]  ;;  %v18722_v12 = vld [vmem:[#allocation2 + $0xb0] sm:$0xff]  ;;  %v18859_v11 = vld [vmem:[#allocation2 + $0x120] sm:$0xff] }
 0x7bc   : > { %9195 = vst [vmem:[#allocation2 + $0x151] sm:$0xff] %v9163_v42  ;;  %v9166_v20 = vmax.f32 %v18682_v45, 0.0  ;;  %v18690_v36 = vadd.f32 %v9118_v15, %v8894_v14  ;;  %10346 = vmatmul.mubr.f32.gmra.mxu0 %v18670_v6  ;;  %10924 = vmatpush2.msra.mxu1 %v10192_v9  ;;  %v10189_v15 = vld [vmem:[%s19345_s3 + $0x3e0] sm:$0xff]  ;;  %v10207_v45 = vld [vmem:[%s19345_s3 + $0x470] sm:$0xff] }
 0x7bd   : > { %v12440_v2 = vpop.f32.mrf.mxu1  ;;  %10561 = vmatmul.mubr.f32.gmra.mxu1 %v18693_v35  ;;  %10350 = vmatprep.mubr.f32.mxu0 %v9149_v34  ;;  %v18716_v34 = vld [vmem:[#allocation2 + $0x92] sm:$0xff] }
 0x7be   : > { %9198 = vst [vmem:[#allocation2 + $0x171] sm:$0xff] %v9166_v20  ;;  %v9165_v60 = vmax.f32 %v18690_v36, 0.0  ;;  %v9134_v9 = vadd.f32 %v12440_v2, %v8909_v23  ;;  %10565 = vmatprep.mubr.f32.mxu1 %v18701_v4  ;;  %10925 = vmatprep.subr.mxu1 %v18273_v3 }
 0x7bf   : > { %v9128_v14 = vpop.f32.mrf.mxu1  ;;  %10926 = vmatpush2.msra.mxu1 %v10191_v10  ;;  %v18730_v10 = vld [vmem:[#allocation2 + $0x9a] sm:$0xff] }
 0x7c0   : > { %9197 = vst [vmem:[#allocation2 + $0x169] sm:$0xff] %v9165_v60  ;;  %v9168_v48 = vmax.f32 %v9134_v9, 0.0  ;;  %v9129_v29 = vadd.f32 %v9128_v14, %v8904_v21  ;;  %10351 = vmatmul.mubr.f32.gmra.mxu0 %v18701_v4  ;;  %10927 = vmatprep.subr.mxu1 %v18273_v3  ;;  %v10187_v21 = vld [vmem:[%s19345_s3 + $0x3d0] sm:$0xff]  ;;  %v10186_v14 = vld [vmem:[%s19345_s3 + $0x3c8] sm:$0xff] }
 0x7c1   : > { %10566 = vmatmul.mubr.f32.gmra.mxu1 %v18716_v34  ;;  %10355 = vmatprep.mubr.f32.mxu0 %v9150_v63  ;;  %v18738_v63 = vld [vmem:[#allocation2 + $0xc0] sm:$0xff]  ;;  %v18742_v2 = vpop.f32.mrf.mxu0  ;;  %v18748_v9 = vld [vmem:[#allocation2 + $0xaa] sm:$0xff] }
 0x7c2   : > { %9200 = vst [vmem:[#allocation2 + $0x189] sm:$0xff] %v9168_v48  ;;  %v9167_v23 = vmax.f32 %v9129_v29, 0.0  ;;  %10570 = vmatprep.mubr.f32.mxu1 %v18722_v12  ;;  %10928 = vmatpush2.msra.mxu1 %v10190_v13  ;;  %v18764_v48 = vld [vmem:[#allocation2 + $0xb2] sm:$0xff]  ;;  %v18926_v36 = vld [vmem:[#allocation2 + $0x15a] sm:$0xff] }
 0x7c3   : > { %10929 = vmatprep.subr.mxu1 %v18273_v3  ;;  %v10284_v16 = vpop.f32.mrf.mxu0  ;;  %v18772_v29 = vld [vmem:[#allocation2 + $0xd8] sm:$0xff] }
 0x7c4   : > { %9199 = vst [vmem:[#allocation2 + $0x181] sm:$0xff] %v9167_v23  ;;  %10356 = vmatmul.mubr.f32.gmra.mxu0 %v18722_v12  ;;  %10930 = vmatpush2.msra.mxu1 %v10189_v15  ;;  %v10184_v15 = vld [vmem:[%s19345_s3 + $0x3b8] sm:$0xff]  ;;  %v18780_v23 = vld [vmem:[#allocation2 + $0xc2] sm:$0xff] }
 0x7c5   : > { %10571 = vmatmul.mubr.f32.gmra.mxu1 %v18730_v10  ;;  %10360 = vmatprep.mubr.f32.mxu0 %v9151_v52  ;;  %v18754_v52 = vld [vmem:[#allocation2 + $0xc8] sm:$0xff]  ;;  %v18760_v13 = vpop.f32.mrf.mxu0  ;;  %v18810_v16 = vld [vmem:[#allocation2 + $0xda] sm:$0xff]  ;;  %v18917_v37 = vld [vmem:[#allocation2 + $0x152] sm:$0xff] }
 0x7c6   : > { %10575 = vmatprep.mubr.f32.mxu1 %v18738_v63  ;;  %10931 = vmatprep.subr.mxu1 %v18273_v3 }
 0x7c7   : > { %10932 = vmatpush2.msra.mxu1 %v10188_v32  ;;  %v18794_v32 = vld [vmem:[#allocation2 + $0xca] sm:$0xff] }
 0x7c8   : > { %10361 = vmatmul.mubr.f32.gmra.mxu0 %v18738_v63  ;;  %10933 = vmatprep.subr.mxu1 %v18273_v3  ;;  %v18913_v17 = vld [vmem:[#allocation2 + $0x168] sm:$0xff] }
 0x7c9   : > { %10576 = vmatmul.mubr.f32.gmra.mxu1 %v18748_v9  ;;  %10365 = vmatprep.mubr.f32.mxu0 %v9152_v55  ;;  %v10289_v55 = vpop.f32.mrf.mxu0 }
 0x7ca   : > { %10580 = vmatprep.mubr.f32.mxu1 %v18754_v52  ;;  %10934 = vmatpush2.msra.mxu1 %v10187_v21  ;;  %v10181_v21 = vld [vmem:[%s19345_s3 + $0x3a0] sm:$0xff]  ;;  %v18840_v55 = vld [vmem:[#allocation2 + $0xf2] sm:$0xff] }
 0x7cb   : > { %10935 = vmatprep.subr.mxu1 %v18273_v3 }
 0x7cc   : > { %10366 = vmatmul.mubr.f32.gmra.mxu0 %v18754_v52  ;;  %10936 = vmatpush2.msra.mxu1 %v10186_v14  ;;  %v18824_v14 = vld [vmem:[#allocation2 + $0xe2] sm:$0xff] }
 0x7cd   : > { %10581 = vmatmul.mubr.f32.gmra.mxu1 %v18764_v48  ;;  %10370 = vmatprep.mubr.f32.mxu0 %v9153_v49  ;;  %v10183_v49 = vld [vmem:[%s19345_s3 + $0x3b0] sm:$0xff] }
 0x7ce   : > { %10585 = vmatprep.mubr.f32.mxu1 %v18772_v29  ;;  %10937 = vmatprep.subr.mxu1 %v18273_v3 }
 0x7cf   : > { %10938 = vmatpush2.msra.mxu1 %v10185_v0  ;;  %v10178_v0 = vld [vmem:[%s19345_s3 + $0x388] sm:$0xff] }
 0x7d0   : > { %10371 = vmatmul.mubr.f32.gmra.mxu0 %v18772_v29  ;;  %10939 = vmatprep.subr.mxu1 %v18273_v3 }
 0x7d1   : > { %10586 = vmatmul.mubr.f32.gmra.mxu1 %v18780_v23  ;;  %10375 = vmatprep.mubr.f32.mxu0 %v9154_v26  ;;  %v18802_v26 = vld [vmem:[#allocation2 + $0xf0] sm:$0xff] }
 0x7d2   : > { %10590 = vmatprep.mubr.f32.mxu1 %v18786_v1  ;;  %10940 = vmatpush2.msra.mxu1 %v10184_v15  ;;  %v10177_v15 = vld [vmem:[%s19345_s3 + $0x380] sm:$0xff] }
 0x7d3   : > { %10941 = vmatprep.subr.mxu1 %v18273_v3 }
 0x7d4   : > { %10376 = vmatmul.mubr.f32.gmra.mxu0 %v18786_v1  ;;  %10942 = vmatpush2.msra.mxu1 %v10183_v49  ;;  %v18854_v49 = vld [vmem:[#allocation2 + $0xfa] sm:$0xff] }
 0x7d5   : > { %10591 = vmatmul.mubr.f32.gmra.mxu1 %v18794_v32  ;;  %10380 = vmatprep.mubr.f32.mxu0 %v9155_v57  ;;  %v10180_v57 = vld [vmem:[%s19345_s3 + $0x398] sm:$0xff] }
 0x7d6   : > { %10595 = vmatprep.mubr.f32.mxu1 %v18802_v26  ;;  %10943 = vmatprep.subr.mxu1 %v18273_v3 }
 0x7d7   : > { %10944 = vmatpush2.msra.mxu1 %v10182_v22  ;;  %v18863_v22 = vld [vmem:[#allocation2 + $0x10a] sm:$0xff] }
 0x7d8   : > { %10381 = vmatmul.mubr.f32.gmra.mxu0 %v18802_v26  ;;  %10945 = vmatprep.subr.mxu1 %v18273_v3 }
 0x7d9   : > { %10596 = vmatmul.mubr.f32.gmra.mxu1 %v18810_v16  ;;  %10385 = vmatprep.mubr.f32.mxu0 %v9156_v62  ;;  %v18832_v62 = vld [vmem:[#allocation2 + $0x108] sm:$0xff] }
 0x7da   : > { %10600 = vmatprep.mubr.f32.mxu1 %v18816_v8  ;;  %10946 = vmatpush2.msra.mxu1 %v10181_v21  ;;  %v18868_v21 = vld [vmem:[#allocation2 + $0x128] sm:$0xff] }
 0x7db   : > { %10947 = vmatprep.subr.mxu1 %v18273_v3 }
 0x7dc   : > { %10386 = vmatmul.mubr.f32.gmra.mxu0 %v18816_v8  ;;  %10948 = vmatpush2.msra.mxu1 %v10180_v57  ;;  %v18877_v57 = vld [vmem:[#allocation2 + $0x138] sm:$0xff] }
 0x7dd   : > { %10601 = vmatmul.mubr.f32.gmra.mxu1 %v18824_v14  ;;  %10390 = vmatprep.mubr.f32.mxu0 %v9157_v25  ;;  %v18846_v25 = vld [vmem:[#allocation2 + $0x110] sm:$0xff] }
 0x7de   : > { %10605 = vmatprep.mubr.f32.mxu1 %v18832_v62  ;;  %10949 = vmatprep.subr.mxu1 %v18273_v3 }
 0x7df   : > { %10950 = vmatpush2.msra.mxu1 %v10179_v53  ;;  %v19514_v53 = vmax.f32 %v18622_v5, 0.0  ;;  %v18899_v5 = vld [vmem:[#allocation2 + $0x13a] sm:$0xff] }
 0x7e0   : > { %10391 = vmatmul.mubr.f32.gmra.mxu0 %v18832_v62  ;;  %10951 = vmatprep.subr.mxu1 %v18273_v3 }
 0x7e1   : > { %10606 = vmatmul.mubr.f32.gmra.mxu1 %v18840_v55  ;;  %10395 = vmatprep.mubr.f32.mxu0 %v19511_v59  ;;  %v18895_v59 = vld [vmem:[#allocation2 + $0x150] sm:$0xff] }
 0x7e2   : > { %10610 = vmatprep.mubr.f32.mxu1 %v18846_v25  ;;  %10952 = vmatpush2.msra.mxu1 %v10178_v0  ;;  %v18886_v0 = vld [vmem:[#allocation2 + $0x140] sm:$0xff] }
 0x7e3   : > { %10953 = vmatprep.subr.mxu1 %v18273_v3  ;;  %v19512_v3 = vmax.f32 %v18593_v39, 0.0  ;;  %v18881_v39 = vld [vmem:[#allocation2 + $0x122] sm:$0xff] }
 0x7e4   : > { %10396 = vmatmul.mubr.f32.gmra.mxu0 %v18846_v25  ;;  %10954 = vmatpush2.msra.mxu1 %v10177_v15  ;;  %v18904_v15 = vld [vmem:[#allocation2 + $0x158] sm:$0xff] }
 0x7e5   : > { %10611 = vmatmul.mubr.f32.gmra.mxu1 %v18854_v49  ;;  %10400 = vmatprep.mubr.f32.mxu0 %v9159_v18  ;;  %v19513_v18 = vmax.f32 %v18632_v46, 0.0  ;;  %v18890_v46 = vld [vmem:[#allocation2 + $0x12a] sm:$0xff] }
 0x7e6   : > { %10615 = vmatprep.mubr.f32.mxu1 %v18859_v11 }
 0x7e8   : > { %10401 = vmatmul.mubr.f32.gmra.mxu0 %v18859_v11 }
 0x7e9   : > { %10616 = vmatmul.mubr.f32.gmra.mxu1 %v18863_v22  ;;  %10405 = vmatprep.mubr.f32.mxu0 %v19512_v3  ;;  %v9457_v3 = vld [vmem:[#allocation2 + $0x19] sm:$0xff] }
 0x7ea   : > { %10620 = vmatprep.mubr.f32.mxu1 %v18868_v21 }
 0x7ec   : > { %10406 = vmatmul.mubr.f32.gmra.mxu0 %v18868_v21 }
 0x7ed   : > { %10621 = vmatmul.mubr.f32.gmra.mxu1 %v18872_v31  ;;  %10410 = vmatprep.mubr.f32.mxu0 %v19513_v18  ;;  %v18933_v18 = vld [vmem:[#allocation2 + $0x16a] sm:$0xff] }
 0x7ee   : > { %10625 = vmatprep.mubr.f32.mxu1 %v18877_v57 }
 0x7f0   : > { %10411 = vmatmul.mubr.f32.gmra.mxu0 %v18877_v57 }
 0x7f1   : > { %10626 = vmatmul.mubr.f32.gmra.mxu1 %v18881_v39  ;;  %10415 = vmatprep.mubr.f32.mxu0 %v19514_v53  ;;  %v18944_v53 = vld [vmem:[#allocation2 + $0x172] sm:$0xff] }
 0x7f2   : > { %10630 = vmatprep.mubr.f32.mxu1 %v18886_v0 }
 0x7f4   : > { %10416 = vmatmul.mubr.f32.gmra.mxu0 %v18886_v0 }
 0x7f5   : > { %10631 = vmatmul.mubr.f32.gmra.mxu1 %v18890_v46  ;;  %10420 = vmatprep.mubr.f32.mxu0 %v9163_v42  ;;  %v18908_v42 = vld [vmem:[#allocation2 + $0x142] sm:$0xff] }
 0x7f6   : > { %10635 = vmatprep.mubr.f32.mxu1 %v18895_v59 }
 0x7f8   : > { %10421 = vmatmul.mubr.f32.gmra.mxu0 %v18895_v59 }
 0x7f9   : > { %10636 = vmatmul.mubr.f32.gmra.mxu1 %v18899_v5  ;;  %10425 = vmatprep.mubr.f32.mxu0 %v9164_v44  ;;  %v18922_v44 = vld [vmem:[#allocation2 + $0x170] sm:$0xff] }
 0x7fa   : > { %10640 = vmatprep.mubr.f32.mxu1 %v18904_v15 }
 0x7fc   : > { %10426 = vmatmul.mubr.f32.gmra.mxu0 %v18904_v15 }
 0x7fd   : > { %10641 = vmatmul.mubr.f32.gmra.mxu1 %v18908_v42  ;;  %10430 = vmatprep.mubr.f32.mxu0 %v9165_v60  ;;  %v18929_v60 = vld [vmem:[#allocation2 + $0x180] sm:$0xff] }
 0x7fe   : > { %10645 = vmatprep.mubr.f32.mxu1 %v18913_v17  ;;  %19515 = vst [vmem:[#allocation10_spill] sm:$0xff] %v18929_v60 }
 0x800   : > { %10431 = vmatmul.mubr.f32.gmra.mxu0 %v18913_v17 }
 0x801   : > { %10646 = vmatmul.mubr.f32.gmra.mxu1 %v18917_v37  ;;  %10435 = vmatprep.mubr.f32.mxu0 %v9166_v20  ;;  %v18939_v20 = vld [vmem:[#allocation2 + $0x188] sm:$0xff] }
 0x802   : > { %10650 = vmatprep.mubr.f32.mxu1 %v18922_v44 }
 0x804   : > { %10436 = vmatmul.mubr.f32.gmra.mxu0 %v18922_v44 }
 0x805   : > { %10651 = vmatmul.mubr.f32.gmra.mxu1 %v18926_v36  ;;  %10730 = vmatprep.mubr.f32.mxu0 %v18445_v30  ;;  %v9458_v30 = vld [vmem:[#allocation2 + $0x21] sm:$0xff] }
 0x806   : > { %10655 = vmatprep.mubr.f32.mxu1 %v18929_v60  ;;  %v9649_v60 = vld [vmem:[#allocation2 + $0x31] sm:$0xff] }
 0x808   : > { %10731 = vmatmul.mubr.f32.vlgmr.msra.gmra.mxu0 %v9457_v3  ;;  %v10206_v3 = vld [vmem:[%s19345_s3 + $0x468] sm:$0xff] }
 0x809   : > { %10656 = vmatmul.mubr.f32.gmra.mxu1 %v18933_v18  ;;  %10735 = vmatprep.mubr.f32.mxu0 %v18471_v24  ;;  %v9585_v24 = vld [vmem:[#allocation2 + $0x30] sm:$0xff] }
 0x80a   : > { %10660 = vmatprep.mubr.f32.mxu1 %v18939_v20  ;;  %12442 = vmatpush3.msra.mxu0 %v18383_v40  ;;  %v10205_v40 = vld [vmem:[%s19345_s3 + $0x460] sm:$0xff] }
 0x80b   : > { %12443 = vmatprep.subr.mxu0 %v10207_v45 }
 0x80c   : > { %10736 = vmatmul.mubr.f32.gmra.mxu0 %v9458_v30  ;;  %v9650_v30 = vld [vmem:[#allocation2 + $0x39] sm:$0xff] }
 0x80d   : > { %10661 = vmatmul.mubr.f32.gmra.mxu1 %v18944_v53  ;;  %10740 = vmatprep.mubr.f32.mxu0 %v18499_v38  ;;  %v10204_v38 = vld [vmem:[%s19345_s3 + $0x458] sm:$0xff] }
 0x80e   : > { %10955 = vmatprep.mubr.f32.mxu1 %v9649_v60  ;;  %12444 = vmatpush3.msra.mxu0 %v10207_v45  ;;  %v9652_v45 = vld [vmem:[#allocation2 + $0x51] sm:$0xff] }
 0x80f   : > { %12445 = vmatprep.subr.mxu0 %v10206_v3 }
 0x810   : > { %10741 = vmatmul.mubr.f32.gmra.mxu0 %v9649_v60  ;;  %v9651_v60 = vld [vmem:[#allocation2 + $0x49] sm:$0xff] }
 0x811   : > { %10956 = vmatmul.mubr.f32.vlgmr.msra.gmra.mxu1 %v9585_v24  ;;  %10745 = vmatprep.mubr.f32.mxu0 %v18525_v7  ;;  %v10203_v7 = vld [vmem:[%s19345_s3 + $0x450] sm:$0xff] }
 0x812   : > { %10960 = vmatprep.mubr.f32.mxu1 %v9650_v30  ;;  %12446 = vmatpush3.msra.mxu0 %v10206_v3 }
 0x813   : > { %12447 = vmatprep.subr.mxu0 %v10205_v40 }
 0x814   : > { %10746 = vmatmul.mubr.f32.gmra.mxu0 %v9650_v30 }
 0x815   : > { %10961 = vmatmul.mubr.f32.gmra.mxu1 %v18451_v51  ;;  %10750 = vmatprep.mubr.f32.mxu0 %v18553_v47  ;;  %v10202_v51 = vld [vmem:[%s19345_s3 + $0x448] sm:$0xff] }
 0x816   : > { %10965 = vmatprep.mubr.f32.mxu1 %v9651_v60  ;;  %12448 = vmatpush3.msra.mxu0 %v10205_v40  ;;  %v9653_v47 = vld [vmem:[#allocation2 + $0x61] sm:$0xff] }
 0x817   : > { %12449 = vmatprep.subr.mxu0 %v10204_v38 }
 0x818   : > { %10751 = vmatmul.mubr.f32.gmra.mxu0 %v9651_v60 }
 0x819   : > { %10966 = vmatmul.mubr.f32.gmra.mxu1 %v18479_v54  ;;  %10755 = vmatprep.mubr.f32.mxu0 %v18579_v19  ;;  %v10201_v54 = vld [vmem:[%s19345_s3 + $0x440] sm:$0xff]  ;;  %v9654_v19 = vld [vmem:[#allocation2 + $0x69] sm:$0xff] }
 0x81a   : > { %10970 = vmatprep.mubr.f32.mxu1 %v9652_v45  ;;  %12450 = vmatpush3.msra.mxu0 %v10204_v38 }
 0x81b   : > { %12451 = vmatprep.subr.mxu0 %v10203_v7 }
 0x81c   : > { %10756 = vmatmul.mubr.f32.gmra.mxu0 %v9652_v45 }
 0x81d   : > { %10971 = vmatmul.mubr.f32.gmra.mxu1 %v18505_v50  ;;  %10760 = vmatprep.mubr.f32.mxu0 %v18607_v27  ;;  %v10200_v50 = vld [vmem:[%s19345_s3 + $0x438] sm:$0xff] }
 0x81e   : > { %10975 = vmatprep.mubr.f32.mxu1 %v9653_v47  ;;  %12452 = vmatpush3.msra.mxu0 %v10203_v7  ;;  %v9655_v27 = vld [vmem:[#allocation2 + $0x79] sm:$0xff] }
 0x81f   : > { %12453 = vmatprep.subr.mxu0 %v10202_v51 }
 0x820   : > { %10761 = vmatmul.mubr.f32.gmra.mxu0 %v9653_v47 }
 0x821   : > { %10976 = vmatmul.mubr.f32.gmra.mxu1 %v18533_v61  ;;  %10765 = vmatprep.mubr.f32.mxu0 %v18635_v28  ;;  %v10199_v61 = vld [vmem:[%s19345_s3 + $0x430] sm:$0xff]  ;;  %v9656_v28 = vld [vmem:[#allocation2 + $0x81] sm:$0xff] }
 0x822   : > { %10980 = vmatprep.mubr.f32.mxu1 %v9654_v19  ;;  %12454 = vmatpush3.msra.mxu0 %v10202_v51 }
 0x823   : > { %12455 = vmatprep.subr.mxu0 %v10201_v54 }
 0x824   : > { %10766 = vmatmul.mubr.f32.gmra.mxu0 %v9654_v19 }
 0x825   : > { %10981 = vmatmul.mubr.f32.gmra.mxu1 %v18559_v41  ;;  %10770 = vmatprep.mubr.f32.mxu0 %v18664_v58  ;;  %v10198_v41 = vld [vmem:[%s19345_s3 + $0x428] sm:$0xff]  ;;  %v9657_v58 = vld [vmem:[#allocation2 + $0x91] sm:$0xff] }
 0x826   : > { %10985 = vmatprep.mubr.f32.mxu1 %v9655_v27  ;;  %12456 = vmatpush3.msra.mxu0 %v10201_v54 }
 0x827   : > { %12457 = vmatprep.subr.mxu0 %v10200_v50 }
 0x828   : > { %10771 = vmatmul.mubr.f32.gmra.mxu0 %v9655_v27 }
 0x829   : > { %10986 = vmatmul.mubr.f32.gmra.mxu1 %v18587_v33  ;;  %10775 = vmatprep.mubr.f32.mxu0 %v18693_v35  ;;  %v10197_v33 = vld [vmem:[%s19345_s3 + $0x420] sm:$0xff] }
 0x82a   : > { %10990 = vmatprep.mubr.f32.mxu1 %v9656_v28  ;;  %12458 = vmatpush3.msra.mxu0 %v10200_v50  ;;  %v9658_v35 = vld [vmem:[#allocation2 + $0x99] sm:$0xff]  ;;  %v9669_v50 = vld [vmem:[#allocation2 + $0x121] sm:$0xff] }
 0x82b   : > { %12459 = vmatprep.subr.mxu0 %v10199_v61 }
 0x82c   : > { %10776 = vmatmul.mubr.f32.gmra.mxu0 %v9656_v28 }
 0x82d   : > { %10991 = vmatmul.mubr.f32.gmra.mxu1 %v18613_v43  ;;  %10780 = vmatprep.mubr.f32.mxu0 %v18716_v34  ;;  %v10196_v43 = vld [vmem:[%s19345_s3 + $0x418] sm:$0xff]  ;;  %v9659_v34 = vld [vmem:[#allocation2 + $0xa9] sm:$0xff] }
 0x82e   : > { %10995 = vmatprep.mubr.f32.mxu1 %v9657_v58  ;;  %12460 = vmatpush3.msra.mxu0 %v10199_v61 }
 0x82f   : > { %12461 = vmatprep.subr.mxu0 %v10198_v41 }
 0x830   : > { %10781 = vmatmul.mubr.f32.gmra.mxu0 %v9657_v58  ;;  %v9670_v58 = vld [vmem:[#allocation2 + $0x129] sm:$0xff] }
 0x831   : > { %10996 = vmatmul.mubr.f32.gmra.mxu1 %v18643_v56  ;;  %10785 = vmatprep.mubr.f32.mxu0 %v18730_v10  ;;  %v10195_v56 = vld [vmem:[%s19345_s3 + $0x410] sm:$0xff] }
 0x832   : > { %11000 = vmatprep.mubr.f32.mxu1 %v9658_v35  ;;  %12462 = vmatpush3.msra.mxu0 %v10198_v41  ;;  %v9660_v10 = vld [vmem:[#allocation2 + $0xb1] sm:$0xff] }
 0x833   : > { %12463 = vmatprep.subr.mxu0 %v10197_v33 }
 0x834   : > { %10786 = vmatmul.mubr.f32.gmra.mxu0 %v9658_v35 }
 0x835   : > { %11001 = vmatmul.mubr.f32.gmra.mxu1 %v18670_v6  ;;  %10790 = vmatprep.mubr.f32.mxu0 %v18748_v9  ;;  %v10194_v6 = vld [vmem:[%s19345_s3 + $0x408] sm:$0xff] }
 0x836   : > { %11005 = vmatprep.mubr.f32.mxu1 %v9659_v34  ;;  %12464 = vmatpush3.msra.mxu0 %v10197_v33  ;;  %v9661_v9 = vld [vmem:[#allocation2 + $0xc1] sm:$0xff] }
 0x837   : > { %12465 = vmatprep.subr.mxu0 %v10196_v43 }
 0x838   : > { %10791 = vmatmul.mubr.f32.gmra.mxu0 %v9659_v34 }
 0x839   : > { %11006 = vmatmul.mubr.f32.gmra.mxu1 %v18701_v4  ;;  %10795 = vmatprep.mubr.f32.mxu0 %v18764_v48  ;;  %v10193_v4 = vld [vmem:[%s19345_s3 + $0x400] sm:$0xff]  ;;  %v9662_v48 = vld [vmem:[#allocation2 + $0xc9] sm:$0xff] }
 0x83a   : > { %11010 = vmatprep.mubr.f32.mxu1 %v9660_v10  ;;  %12466 = vmatpush3.msra.mxu0 %v10196_v43 }
 0x83b   : > { %12467 = vmatprep.subr.mxu0 %v10195_v56 }
 0x83c   : > { %10796 = vmatmul.mubr.f32.gmra.mxu0 %v9660_v10 }
 0x83d   : > { %11011 = vmatmul.mubr.f32.gmra.mxu1 %v18722_v12  ;;  %10800 = vmatprep.mubr.f32.mxu0 %v18780_v23  ;;  %v9663_v12 = vld [vmem:[#allocation2 + $0xd9] sm:$0xff] }
 0x83e   : > { %11015 = vmatprep.mubr.f32.mxu1 %v9661_v9  ;;  %12468 = vmatpush3.msra.mxu0 %v10195_v56  ;;  %v19022_v23 = vld [vmem:[%s19346_s4] ss:$0 sm:$0xff] }
 0x83f   : > { %12469 = vmatprep.subr.mxu0 %v10194_v6  ;;  %v9671_v56 = vld [vmem:[#allocation2 + $0x139] sm:$0xff] }
 0x840   : > { %10801 = vmatmul.mubr.f32.gmra.mxu0 %v9661_v9 }
 0x841   : > { %11016 = vmatmul.mubr.f32.gmra.mxu1 %v18738_v63  ;;  %10805 = vmatprep.mubr.f32.mxu0 %v18794_v32  ;;  %v9664_v63 = vld [vmem:[#allocation2 + $0xe1] sm:$0xff]  ;;  %v10283_v32 = vadd.f32 %v19022_v23, %v18742_v2  ;;  %v9667_v2 = vld [vmem:[#allocation2 + $0x109] sm:$0xff] }
 0x842   : > { %11020 = vmatprep.mubr.f32.mxu1 %v9662_v48  ;;  %12470 = vmatpush3.msra.mxu0 %v10194_v6 }
 0x843   : > { %12471 = vmatprep.subr.mxu0 %v10193_v4 }
 0x844   : > { %10806 = vmatmul.mubr.f32.gmra.mxu0 %v9662_v48  ;;  %v9672_v48 = vld [vmem:[#allocation2 + $0x141] sm:$0xff] }
 0x845   : > { %11021 = vmatmul.mubr.f32.gmra.mxu1 %v18754_v52  ;;  %10810 = vmatprep.mubr.f32.mxu0 %v18810_v16  ;;  %v9665_v52 = vld [vmem:[#allocation2 + $0xf1] sm:$0xff] }
 0x846   : > { %11025 = vmatprep.mubr.f32.mxu1 %v9663_v12  ;;  %12472 = vmatpush3.msra.mxu0 %v10193_v4 }
 0x848   : > { %10811 = vmatmul.mubr.f32.gmra.mxu0 %v9663_v12 }
 0x849   : > { %11026 = vmatmul.mubr.f32.gmra.mxu1 %v18772_v29  ;;  %10815 = vmatprep.mubr.f32.mxu0 %v18824_v14  ;;  %v9666_v14 = vld [vmem:[#allocation2 + $0xf9] sm:$0xff] }
 0x84a   : > { %11030 = vmatprep.mubr.f32.mxu1 %v9664_v63 }
 0x84c   : > { %10816 = vmatmul.mubr.f32.gmra.mxu0 %v9664_v63 }
 0x84d   : > { %11031 = vmatmul.mubr.f32.gmra.mxu1 %v18786_v1  ;;  %10820 = vmatprep.mubr.f32.mxu0 %v18840_v55  ;;  %v10288_v55 = vadd.f32 %v19022_v23, %v18760_v13  ;;  %v9668_v13 = vld [vmem:[#allocation2 + $0x111] sm:$0xff] }
 0x84e   : > { %11035 = vmatprep.mubr.f32.mxu1 %v9665_v52 }
 0x850   : > { %v10292_v29 = vpop.f32.mrf.mxu0  ;;  %10821 = vmatmul.mubr.f32.gmra.mxu0 %v9665_v52 }
 0x851   : > { %v10507_v16 = vpop.f32.mrf.mxu1  ;;  %11036 = vmatmul.mubr.f32.gmra.mxu1 %v18802_v26  ;;  %10825 = vmatprep.mubr.f32.mxu0 %v18854_v49  ;;  %v10293_v60 = vadd.f32 %v19022_v23, %v10292_v29  ;;  %v9673_v29 = vld [vmem:[#allocation2 + $0x151] sm:$0xff] }
 0x852   : > { %v19030_v3 = vadd.f32 %v10507_v16, %v10283_v32  ;;  %11040 = vmatprep.mubr.f32.mxu1 %v9666_v14  ;;  %v10294_v24 = vpop.f32.mrf.mxu0 }
 0x853   : > { %v10509_v1 = vpop.f32.mrf.mxu1 }
 0x854   : > { %v10297_v40 = vpop.f32.mrf.mxu0  ;;  %10826 = vmatmul.mubr.f32.gmra.mxu0 %v9666_v14 }
 0x855   : > { %v10512_v30 = vpop.f32.mrf.mxu1  ;;  %11041 = vmatmul.mubr.f32.gmra.mxu1 %v18816_v8  ;;  %10830 = vmatprep.mubr.f32.mxu0 %v18863_v22  ;;  %v10298_v47 = vadd.f32 %v19022_v23, %v10297_v40 }
 0x856   : > { %v19036_v26 = vadd.f32 %v10512_v30, %v10288_v55  ;;  %11045 = vmatprep.mubr.f32.mxu1 %v9667_v2  ;;  %v10299_v49 = vpop.f32.mrf.mxu0  ;;  %v9674_v55 = vld [vmem:[#allocation2 + $0x159] sm:$0xff] }
 0x857   : > { %v10514_v38 = vpop.f32.mrf.mxu1 }
 0x858   : > { %v10302_v7 = vpop.f32.mrf.mxu0  ;;  %10831 = vmatmul.mubr.f32.gmra.mxu0 %v9667_v2  ;;  %v9675_v38 = vld [vmem:[#allocation2 + $0x169] sm:$0xff] }
 0x859   : > { %v10517_v45 = vpop.f32.mrf.mxu1  ;;  %11046 = vmatmul.mubr.f32.gmra.mxu1 %v18832_v62  ;;  %10835 = vmatprep.mubr.f32.mxu0 %v18872_v31  ;;  %v10303_v61 = vadd.f32 %v19022_v23, %v10302_v7 }
 0x85a   : > { %v19041_v51 = vadd.f32 %v10517_v45, %v10293_v60  ;;  %11050 = vmatprep.mubr.f32.mxu1 %v9668_v13  ;;  %v10304_v8 = vpop.f32.mrf.mxu0 }
 0x85b   : > { %v10519_v22 = vpop.f32.mrf.mxu1  ;;  %v9676_v8 = vld [vmem:[#allocation2 + $0x171] sm:$0xff] }
 0x85c   : > { %v10307_v54 = vpop.f32.mrf.mxu0  ;;  %10836 = vmatmul.mubr.f32.gmra.mxu0 %v9668_v13 }
 0x85d   : > { %v10522_v19 = vpop.f32.mrf.mxu1  ;;  %11051 = vmatmul.mubr.f32.gmra.mxu1 %v18846_v25  ;;  %10840 = vmatprep.mubr.f32.mxu0 %v18881_v39  ;;  %v10308_v35 = vadd.f32 %v19022_v23, %v10307_v54 }
 0x85e   : > { %v19046_v27 = vadd.f32 %v10522_v19, %v10298_v47  ;;  %11055 = vmatprep.mubr.f32.mxu1 %v9669_v50  ;;  %v10309_v62 = vpop.f32.mrf.mxu0  ;;  %v19084_v19 = vld [vmem:[#allocation2 + $0x182] sm:$0xff] }
 0x85f   : > { %v10524_v31 = vpop.f32.mrf.mxu1 }
 0x860   : > { %v10312_v28 = vpop.f32.mrf.mxu0  ;;  %10841 = vmatmul.mubr.f32.gmra.mxu0 %v9669_v50 }
 0x861   : > { %v10527_v41 = vpop.f32.mrf.mxu1  ;;  %11056 = vmatmul.mubr.f32.gmra.mxu1 %v18859_v11  ;;  %10845 = vmatprep.mubr.f32.mxu0 %v18890_v46  ;;  %v10313_v6 = vadd.f32 %v19022_v23, %v10312_v28 }
 0x862   : > { %v19051_v33 = vadd.f32 %v10527_v41, %v10303_v61  ;;  %11060 = vmatprep.mubr.f32.mxu1 %v9670_v58  ;;  %v10314_v25 = vpop.f32.mrf.mxu0  ;;  %v19091_v41 = vld [vmem:[#allocation2 + $0x18a] sm:$0xff] }
 0x863   : > { %v10529_v39 = vpop.f32.mrf.mxu1  ;;  %v19516_v25 = vld [vmem:[#allocation10_spill] sm:$0xff] }
 0x864   : > { %v10317_v43 = vpop.f32.mrf.mxu0  ;;  %10846 = vmatmul.mubr.f32.gmra.mxu0 %v9670_v58 }
 0x865   : > { %v10532_v34 = vpop.f32.mrf.mxu1  ;;  %11061 = vmatmul.mubr.f32.gmra.mxu1 %v18868_v21  ;;  %10850 = vmatprep.mubr.f32.mxu0 %v18899_v5  ;;  %v10318_v63 = vadd.f32 %v19022_v23, %v10317_v43 }
 0x866   : > { %v19056_v10 = vadd.f32 %v10532_v34, %v10308_v35  ;;  %11065 = vmatprep.mubr.f32.mxu1 %v9671_v56  ;;  %v10319_v11 = vpop.f32.mrf.mxu0  ;;  %v9679_v34 = vld [vmem:[#allocation2 + $0x199] sm:$0xff] }
 0x867   : > { %v10534_v46 = vpop.f32.mrf.mxu1 }
 0x868   : > { %v10322_v9 = vpop.f32.mrf.mxu0  ;;  %10851 = vmatmul.mubr.f32.gmra.mxu0 %v9671_v56  ;;  %v9713_v46 = vld [vmem:[#allocation2 + $0x32] sm:$0xff] }
 0x869   : > { %v10537_v4 = vpop.f32.mrf.mxu1  ;;  %11066 = vmatmul.mubr.f32.gmra.mxu1 %v18877_v57  ;;  %10855 = vmatprep.mubr.f32.mxu0 %v18908_v42  ;;  %v10323_v14 = vadd.f32 %v19022_v23, %v10322_v9 }
 0x86a   : > { %v19061_v12 = vadd.f32 %v10537_v4, %v10313_v6  ;;  %11070 = vmatprep.mubr.f32.mxu1 %v9672_v48  ;;  %v10324_v21 = vpop.f32.mrf.mxu0 }
 0x86b   : > { %v10539_v5 = vpop.f32.mrf.mxu1 }
 0x86c   : > { %v10327_v52 = vpop.f32.mrf.mxu0  ;;  %10856 = vmatmul.mubr.f32.gmra.mxu0 %v9672_v48  ;;  %v9615_v48 = vld [vmem:[#allocation2 + $0x198] sm:$0xff] }
 0x86d   : > { %v10542_v32 = vpop.f32.mrf.mxu1  ;;  %11071 = vmatmul.mubr.f32.gmra.mxu1 %v18886_v0  ;;  %10860 = vmatprep.mubr.f32.mxu0 %v18917_v37  ;;  %v10328_v30 = vadd.f32 %v19022_v23, %v10327_v52  ;;  %v9714_v5 = vld [vmem:[#allocation2 + $0x3a] sm:$0xff] }
 0x86e   : > { %v19066_v16 = vadd.f32 %v10542_v32, %v10318_v63  ;;  %11075 = vmatprep.mubr.f32.mxu1 %v9673_v29  ;;  %v10329_v57 = vpop.f32.mrf.mxu0  ;;  %v9680_v63 = vld [vmem:[#allocation2 + $0x1a1] sm:$0xff] }
 0x86f   : > { %v10544_v42 = vpop.f32.mrf.mxu1 }
 0x870   : > { %v10332_v24 = vpop.f32.mrf.mxu0  ;;  %10861 = vmatmul.mubr.f32.gmra.mxu0 %v9673_v29  ;;  %v9715_v29 = vld [vmem:[#allocation2 + $0x4a] sm:$0xff] }
 0x871   : > { %v10547_v1 = vpop.f32.mrf.mxu1  ;;  %11076 = vmatmul.mubr.f32.gmra.mxu1 %v18895_v59  ;;  %10865 = vmatprep.mubr.f32.mxu0 %v18926_v36  ;;  %v10333_v7 = vadd.f32 %v19022_v23, %v10332_v24  ;;  %v9716_v24 = vld [vmem:[#allocation2 + $0x52] sm:$0xff] }
 0x872   : > { %v19071_v40 = vadd.f32 %v10547_v1, %v10323_v14  ;;  %11080 = vmatprep.mubr.f32.mxu1 %v9674_v55  ;;  %v10334_v0 = vpop.f32.mrf.mxu0 }
 0x873   : > { %v10549_v37 = vpop.f32.mrf.mxu1  ;;  %v9717_v0 = vld [vmem:[#allocation2 + $0x62] sm:$0xff] }
 0x874   : > { %v10337_v2 = vpop.f32.mrf.mxu0  ;;  %10866 = vmatmul.mubr.f32.gmra.mxu0 %v9674_v55 }
 0x875   : > { %v10552_v49 = vpop.f32.mrf.mxu1  ;;  %11081 = vmatmul.mubr.f32.gmra.mxu1 %v18904_v15  ;;  %10870 = vmatprep.mubr.f32.mxu0 %v18933_v18  ;;  %v10338_v47 = vadd.f32 %v19022_v23, %v10337_v2 }
 0x876   : > { %v19076_v60 = vadd.f32 %v10552_v49, %v10328_v30  ;;  %11085 = vmatprep.mubr.f32.mxu1 %v9675_v38  ;;  %v10339_v59 = vpop.f32.mrf.mxu0  ;;  %v12637_v30 = vld [vmem:[#allocation2 + $0x8] sm:$0xff] }
 0x877   : > { %v10554_v36 = vpop.f32.mrf.mxu1  ;;  %v9718_v59 = vld [vmem:[#allocation2 + $0x6a] sm:$0xff] }
 0x878   : > { %v10342_v45 = vpop.f32.mrf.mxu0  ;;  %10871 = vmatmul.mubr.f32.gmra.mxu0 %v9675_v38 }
 0x879   : > { %v10557_v13 = vpop.f32.mrf.mxu1  ;;  %11086 = vmatmul.mubr.f32.gmra.mxu1 %v18913_v17  ;;  %10875 = vmatprep.mubr.f32.mxu0 %v18944_v53  ;;  %v9677_v17 = vld [vmem:[#allocation2 + $0x181] sm:$0xff]  ;;  %v10343_v61 = vadd.f32 %v19022_v23, %v10342_v45 }
 0x87a   : > { %v19081_v22 = vadd.f32 %v10557_v13, %v10333_v7  ;;  %11090 = vmatprep.mubr.f32.mxu1 %v9676_v8  ;;  %v10344_v15 = vpop.f32.mrf.mxu0  ;;  %v9719_v45 = vld [vmem:[#allocation2 + $0x7a] sm:$0xff] }
 0x87b   : > { %v10559_v18 = vpop.f32.mrf.mxu1 }
 0x87c   : > { %v10347_v54 = vpop.f32.mrf.mxu0  ;;  %10876 = vmatmul.mubr.f32.gmra.mxu0 %v9676_v8 }
 0x87d   : > { %v10562_v50 = vpop.f32.mrf.mxu1  ;;  %11091 = vmatmul.mubr.f32.gmra.mxu1 %v18922_v44  ;;  %10880 = vmatprep.mubr.f32.mxu0 %v19084_v19  ;;  %v9678_v44 = vld [vmem:[#allocation2 + $0x189] sm:$0xff]  ;;  %v10348_v56 = vadd.f32 %v19022_v23, %v10347_v54 }
 0x87e   : > { %v19088_v62 = vadd.f32 %v10562_v50, %v10338_v47  ;;  %11095 = vmatprep.mubr.f32.mxu1 %v9677_v17  ;;  %v10349_v53 = vpop.f32.mrf.mxu0  ;;  %v9720_v47 = vld [vmem:[#allocation2 + $0x82] sm:$0xff] }
 0x87f   : > { %v10564_v31 = vpop.f32.mrf.mxu1 }
 0x880   : > { %v10352_v28 = vpop.f32.mrf.mxu0  ;;  %10881 = vmatmul.mubr.f32.gmra.mxu0 %v9677_v17  ;;  %v9721_v17 = vld [vmem:[#allocation2 + $0x92] sm:$0xff] }
 0x881   : > { %v10567_v58 = vpop.f32.mrf.mxu1  ;;  %11096 = vmatmul.mubr.f32.gmra.mxu1 %v19516_v25  ;;  %10885 = vmatprep.mubr.f32.mxu0 %v19091_v41  ;;  %v10353_v52 = vadd.f32 %v19022_v23, %v10352_v28 }
 0x882   : > { %v19095_v39 = vadd.f32 %v10567_v58, %v10343_v61  ;;  %11100 = vmatprep.mubr.f32.mxu1 %v9678_v44  ;;  %v10354_v35 = vpop.f32.mrf.mxu0  ;;  %v9722_v58 = vld [vmem:[#allocation2 + $0x9a] sm:$0xff] }
 0x883   : > { %v10569_v43 = vpop.f32.mrf.mxu1  ;;  %v9723_v35 = vld [vmem:[#allocation2 + $0xaa] sm:$0xff] }
 0x884   : > { %v10357_v11 = vpop.f32.mrf.mxu0  ;;  %10886 = vmatmul.mubr.f32.gmra.mxu0 %v9678_v44 }
 0x885   : > { %v10572_v6 = vpop.f32.mrf.mxu1  ;;  %11101 = vmatmul.mubr.f32.gmra.mxu1 %v18939_v20  ;;  %12473 = vmatprep.mubr.f32.mxu0 %v9713_v46  ;;  %v10358_v1 = vadd.f32 %v19022_v23, %v10357_v11  ;;  %v9724_v46 = vld [vmem:[#allocation2 + $0xb2] sm:$0xff] }
 0x886   : > { %v19099_v9 = vadd.f32 %v10572_v6, %v10348_v56  ;;  %v10359_v4 = vpop.f32.mrf.mxu0  ;;  %11105 = vmatprep.mubr.f32.mxu1 %v9679_v34 }
 0x887   : > { %v10574_v21 = vpop.f32.mrf.mxu1 }
 0x888   : > { %v10362_v32 = vpop.f32.mrf.mxu0  ;;  %12474 = vmatmul.mubr.f32.vlgmr.msra.gmra.mxu0 %v9714_v5 }
 0x889   : > { %v10577_v57 = vpop.f32.mrf.mxu1  ;;  %11106 = vmatmul.mubr.f32.gmra.mxu1 %v9615_v48  ;;  %12476 = vmatprep.mubr.f32.mxu0 %v9715_v29  ;;  %v10363_v36 = vadd.f32 %v19022_v23, %v10362_v32  ;;  %v9725_v48 = vld [vmem:[#allocation2 + $0xc2] sm:$0xff]  ;;  %v9726_v32 = vld [vmem:[#allocation2 + $0xca] sm:$0xff] }
 0x88a   : > { %v19102_v42 = vadd.f32 %v10577_v57, %v10353_v52  ;;  %v10364_v20 = vpop.f32.mrf.mxu0  ;;  %11110 = vmatprep.mubr.f32.mxu1 %v9680_v63 }
 0x88b   : > { %v10579_v14 = vpop.f32.mrf.mxu1  ;;  %v9727_v20 = vld [vmem:[#allocation2 + $0xda] sm:$0xff] }
 0x88c   : > { %v10367_v55 = vpop.f32.mrf.mxu0  ;;  %12477 = vmatmul.mubr.f32.gmra.mxu0 %v9716_v24 }
 0x88d   : > { %v10582_v37 = vpop.f32.mrf.mxu1  ;;  %11111 = vmatmul.mubr.f32.gmra.mxu1 %v12637_v30  ;;  %12479 = vmatprep.mubr.f32.mxu0 %v9717_v0  ;;  %v10368_v54 = vadd.f32 %v19022_v23, %v10367_v55  ;;  %v9728_v0 = vld [vmem:[#allocation2 + $0xe2] sm:$0xff] }
 0x88e   : > { %v19105_v2 = vadd.f32 %v10582_v37, %v10358_v1  ;;  %v10369_v49 = vpop.f32.mrf.mxu0 }
 0x88f   : > { %v10584_v38 = vpop.f32.mrf.mxu1  ;;  %v9729_v49 = vld [vmem:[#allocation2 + $0xf2] sm:$0xff] }
 0x890   : > { %v10372_v7 = vpop.f32.mrf.mxu0  ;;  %12480 = vmatmul.mubr.f32.gmra.mxu0 %v9718_v59 }
 0x891   : > { %v10587_v13 = vpop.f32.mrf.mxu1  ;;  %12482 = vmatprep.mubr.f32.mxu0 %v9719_v45  ;;  %v10373_v25 = vadd.f32 %v19022_v23, %v10372_v7  ;;  %v9730_v45 = vld [vmem:[#allocation2 + $0xfa] sm:$0xff] }
 0x892   : > { %v19108_v8 = vadd.f32 %v10587_v13, %v10363_v36  ;;  %v10374_v15 = vpop.f32.mrf.mxu0 }
 0x893   : > { %v10589_v18 = vpop.f32.mrf.mxu1 }
 0x894   : > { %v10377_v50 = vpop.f32.mrf.mxu0  ;;  %12483 = vmatmul.mubr.f32.gmra.mxu0 %v9720_v47  ;;  %v9731_v18 = vld [vmem:[#allocation2 + $0x10a] sm:$0xff] }
 0x895   : > { %v10592_v53 = vpop.f32.mrf.mxu1  ;;  %12485 = vmatprep.mubr.f32.mxu0 %v9721_v17  ;;  %v10378_v6 = vadd.f32 %v19022_v23, %v10377_v50 }
 0x896   : > { %v19111_v31 = vadd.f32 %v10592_v53, %v10368_v54  ;;  %v10379_v61 = vpop.f32.mrf.mxu0  ;;  %v9732_v53 = vld [vmem:[#allocation2 + $0x112] sm:$0xff] }
 0x897   : > { %v10594_v28 = vpop.f32.mrf.mxu1 }
 0x898   : > { %v10382_v44 = vpop.f32.mrf.mxu0  ;;  %12486 = vmatmul.mubr.f32.gmra.mxu0 %v9722_v58  ;;  %v9733_v58 = vld [vmem:[#allocation2 + $0x122] sm:$0xff] }
 0x899   : > { %v10597_v43 = vpop.f32.mrf.mxu1  ;;  %12488 = vmatprep.mubr.f32.mxu0 %v9723_v35  ;;  %v10383_v29 = vadd.f32 %v19022_v23, %v10382_v44 }
 0x89a   : > { %v19114_v34 = vadd.f32 %v10597_v43, %v10373_v25  ;;  %v10384_v56 = vpop.f32.mrf.mxu0 }
 0x89b   : > { %v10599_v11 = vpop.f32.mrf.mxu1  ;;  %v9734_v56 = vld [vmem:[#allocation2 + $0x12a] sm:$0xff] }
 0x89c   : > { %v10387_v4 = vpop.f32.mrf.mxu0  ;;  %12489 = vmatmul.mubr.f32.gmra.mxu0 %v9724_v46 }
 0x89d   : > { %v10602_v21 = vpop.f32.mrf.mxu1  ;;  %12491 = vmatprep.mubr.f32.mxu0 %v9725_v48  ;;  %v10388_v37 = vadd.f32 %v19022_v23, %v10387_v4 }
 0x89e   : > { %v19117_v5 = vadd.f32 %v10602_v21, %v10378_v6  ;;  %v10389_v63 = vpop.f32.mrf.mxu0  ;;  %v9735_v6 = vld [vmem:[#allocation2 + $0x13a] sm:$0xff] }
 0x89f   : > { %v10604_v52 = vpop.f32.mrf.mxu1 }
 0x8a0   : > { %v10392_v57 = vpop.f32.mrf.mxu0  ;;  %12492 = vmatmul.mubr.f32.gmra.mxu0 %v9726_v32  ;;  %v9736_v52 = vld [vmem:[#allocation2 + $0x142] sm:$0xff] }
 0x8a1   : > { %v10607_v14 = vpop.f32.mrf.mxu1  ;;  %12494 = vmatprep.mubr.f32.mxu0 %v9727_v20  ;;  %v10393_v13 = vadd.f32 %v19022_v23, %v10392_v57  ;;  %v9737_v57 = vld [vmem:[#allocation2 + $0x152] sm:$0xff] }
 0x8a2   : > { %v19120_v24 = vadd.f32 %v10607_v14, %v10383_v29  ;;  %v10394_v1 = vpop.f32.mrf.mxu0 }
 0x8a3   : > { %v10609_v55 = vpop.f32.mrf.mxu1 }
 0x8a4   : > { %v10397_v30 = vpop.f32.mrf.mxu0  ;;  %12495 = vmatmul.mubr.f32.gmra.mxu0 %v9728_v0  ;;  %v9738_v0 = vld [vmem:[#allocation2 + $0x15a] sm:$0xff] }
 0x8a5   : > { %v10612_v38 = vpop.f32.mrf.mxu1  ;;  %12497 = vmatprep.mubr.f32.mxu0 %v9729_v49  ;;  %v10398_v61 = vadd.f32 %v19022_v23, %v10397_v30  ;;  %v9739_v49 = vld [vmem:[#allocation2 + $0x16a] sm:$0xff] }
 0x8a6   : > { %v19123_v59 = vadd.f32 %v10612_v38, %v10388_v37  ;;  %v10399_v36 = vpop.f32.mrf.mxu0 }
 0x8a7   : > { %v10614_v7 = vpop.f32.mrf.mxu1 }
 0x8a8   : > { %v10402_v15 = vpop.f32.mrf.mxu0  ;;  %12498 = vmatmul.mubr.f32.gmra.mxu0 %v9730_v45 }
 0x8a9   : > { %v10617_v47 = vpop.f32.mrf.mxu1  ;;  %12500 = vmatprep.mubr.f32.mxu0 %v9731_v18  ;;  %v10403_v11 = vadd.f32 %v19022_v23, %v10402_v15 }
 0x8aa   : > { %v19126_v54 = vadd.f32 %v10617_v47, %v10393_v13  ;;  %v10404_v50 = vpop.f32.mrf.mxu0  ;;  %v9740_v13 = vld [vmem:[#allocation2 + $0x172] sm:$0xff] }
 0x8ab   : > { %v10619_v17 = vpop.f32.mrf.mxu1 }
 0x8ac   : > { %v10407_v28 = vpop.f32.mrf.mxu0  ;;  %12501 = vmatmul.mubr.f32.gmra.mxu0 %v9732_v53  ;;  %v9743_v53 = vld [vmem:[#allocation2 + $0x19a] sm:$0xff] }
 0x8ad   : > { %v10622_v25 = vpop.f32.mrf.mxu1  ;;  %12503 = vmatprep.mubr.f32.mxu0 %v9733_v58  ;;  %v10408_v32 = vadd.f32 %v19022_v23, %v10407_v28 }
 0x8ae   : > { %v19129_v44 = vadd.f32 %v10622_v25, %v10398_v61  ;;  %v10409_v35 = vpop.f32.mrf.mxu0 }
 0x8af   : > { %v10624_v43 = vpop.f32.mrf.mxu1  ;;  %v9744_v35 = vld [vmem:[#allocation2 + $0x1a2] sm:$0xff] }
 0x8b0   : > { %v10412_v46 = vpop.f32.mrf.mxu0  ;;  %12504 = vmatmul.mubr.f32.gmra.mxu0 %v9734_v56 }
 0x8b1   : > { %v10627_v4 = vpop.f32.mrf.mxu1  ;;  %12506 = vmatprep.mubr.f32.mxu0 %v9735_v6  ;;  %v10413_v37 = vadd.f32 %v19022_v23, %v10412_v46 }
 0x8b2   : > { %v19132_v48 = vadd.f32 %v10627_v4, %v10403_v11  ;;  %v10414_v21 = vpop.f32.mrf.mxu0 }
 0x8b3   : > { %v10629_v63 = vpop.f32.mrf.mxu1 }
 0x8b4   : > { %v10417_v29 = vpop.f32.mrf.mxu0  ;;  %12507 = vmatmul.mubr.f32.gmra.mxu0 %v9736_v52 }
 0x8b5   : > { %v10632_v20 = vpop.f32.mrf.mxu1  ;;  %12509 = vmatprep.mubr.f32.mxu0 %v9737_v57  ;;  %v10418_v15 = vadd.f32 %v19022_v23, %v10417_v29 }
 0x8b6   : > { %v19135_v14 = vadd.f32 %v10632_v20, %v10408_v32  ;;  %v10419_v1 = vpop.f32.mrf.mxu0 }
 0x8b7   : > { %v10634_v55 = vpop.f32.mrf.mxu1 }
 0x8b8   : > { %v10422_v30 = vpop.f32.mrf.mxu0  ;;  %12510 = vmatmul.mubr.f32.gmra.mxu0 %v9738_v0 }
 0x8b9   : > { %v10637_v38 = vpop.f32.mrf.mxu1  ;;  %12512 = vmatprep.mubr.f32.mxu0 %v9739_v49  ;;  %v10423_v28 = vadd.f32 %v19022_v23, %v10422_v30 }
 0x8ba   : > { %v19138_v36 = vadd.f32 %v10637_v38, %v10413_v37  ;;  %v10424_v7 = vpop.f32.mrf.mxu0 }
 0x8bb   : > { %v10639_v45 = vpop.f32.mrf.mxu1 }
 0x8bc   : > { %v10427_v18 = vpop.f32.mrf.mxu0  ;;  %12513 = vmatmul.mubr.f32.gmra.mxu0 %v9740_v13 }
 0x8bd   : > { %v10642_v47 = vpop.f32.mrf.mxu1  ;;  %12515 = vmatprep.mubr.f32.mxu0 %v19084_v19  ;;  %v10428_v46 = vadd.f32 %v19022_v23, %v10427_v18 }
 0x8be   : > { %v19142_v50 = vadd.f32 %v10642_v47, %v10418_v15  ;;  %v10429_v17 = vpop.f32.mrf.mxu0 }
 0x8bf   : > { %v10644_v61 = vpop.f32.mrf.mxu1 }
 0x8c0   : > { %v10432_v58 = vpop.f32.mrf.mxu0  ;;  %12516 = vmatmul.mubr.f32.gmra.mxu0 %v19091_v41 }
 0x8c1   : > { %v10647_v25 = vpop.f32.mrf.mxu1  ;;  %12518 = vmatprep.mubr.f32.mxu0 %v9743_v53  ;;  %v10433_v52 = vadd.f32 %v19022_v23, %v10432_v58 }
 0x8c2   : > { %v19146_v43 = vadd.f32 %v10647_v25, %v10423_v28  ;;  %v10434_v56 = vpop.f32.mrf.mxu0 }
 0x8c3   : > { %v10649_v11 = vpop.f32.mrf.mxu1 }
 0x8c4   : > { %v10437_v19 = vpop.f32.mrf.mxu0  ;;  %12519 = vmatmul.mubr.f32.gmra.mxu0 %v9744_v35 }
 0x8c5   : > { %v10652_v6 = vpop.f32.mrf.mxu1  ;;  %v10438_v55 = vadd.f32 %v19022_v23, %v10437_v19 }
 0x8c6   : > { %v19149_v4 = vadd.f32 %v10652_v6, %v10428_v46  ;;  %v10439_v21 = vpop.f32.mrf.mxu0 }
 0x8c7   : > { %v10654_v63 = vpop.f32.mrf.mxu1 }
 0x8c8   : > { %v10732_v32 = vpop.f32.mrf.mxu0 }
 0x8c9   : > { %v10657_v41 = vpop.f32.mrf.mxu1  ;;  %v10733_v29 = vadd.f32 %v10732_v32, %v19030_v3 }
 0x8ca   : > { %v19153_v57 = vadd.f32 %v10657_v41, %v10433_v52  ;;  %v10734_v20 = vpop.f32.mrf.mxu0 }
 0x8cb   : > { %v10659_v1 = vpop.f32.mrf.mxu1 }
 0x8cc   : > { %v10737_v0 = vpop.f32.mrf.mxu0 }
 0x8cd   : > { %v10662_v37 = vpop.f32.mrf.mxu1  ;;  %v10738_v30 = vadd.f32 %v10737_v0, %v19036_v26 }
 0x8ce   : > { %v19157_v49 = vadd.f32 %v10662_v37, %v10438_v55  ;;  %v10739_v38 = vpop.f32.mrf.mxu0 }
 0x8cf   : > { %v10664_v7 = vpop.f32.mrf.mxu1 }
 0x8d0   : > { %v10742_v45 = vpop.f32.mrf.mxu0 }
 0x8d1   : > { %v10743_v13 = vadd.f32 %v10742_v45, %v19041_v51  ;;  %v10957_v15 = vpop.f32.mrf.mxu1 }
 0x8d2   : > { %v19160_v18 = vadd.f32 %v10957_v15, %v10733_v29  ;;  %v10744_v3 = vpop.f32.mrf.mxu0 }
 0x8d3   : > { %v10959_v47 = vpop.f32.mrf.mxu1 }
 0x8d4   : > { %v10747_v17 = vpop.f32.mrf.mxu0 }
 0x8d5   : > { %v10748_v53 = vadd.f32 %v10747_v17, %v19046_v27  ;;  %v10962_v23 = vpop.f32.mrf.mxu1 }
 0x8d6   : > { %v19163_v61 = vadd.f32 %v10962_v23, %v10738_v30  ;;  %v10749_v28 = vpop.f32.mrf.mxu0 }
 0x8d7   : > { %v10964_v26 = vpop.f32.mrf.mxu1 }
 0x8d8   : > { %v10752_v58 = vpop.f32.mrf.mxu0 }
 0x8d9   : > { %v10753_v25 = vadd.f32 %v10752_v58, %v19051_v33  ;;  %v10967_v35 = vpop.f32.mrf.mxu1 }
 0x8da   : > { %v19166_v56 = vadd.f32 %v10967_v35, %v10743_v13  ;;  %v10754_v51 = vpop.f32.mrf.mxu0 }
 0x8db   : > { %v10969_v11 = vpop.f32.mrf.mxu1 }
 0x8dc   : > { %v10757_v46 = vpop.f32.mrf.mxu0 }
 0x8dd   : > { %v10758_v19 = vadd.f32 %v10757_v46, %v19056_v10  ;;  %v10972_v6 = vpop.f32.mrf.mxu1 }
 0x8de   : > { %v19169_v21 = vadd.f32 %v10972_v6, %v10748_v53  ;;  %v10759_v27 = vpop.f32.mrf.mxu0 }
 0x8df   : > { %v10974_v63 = vpop.f32.mrf.mxu1 }
 0x8e0   : > { %v10762_v52 = vpop.f32.mrf.mxu0 }
 0x8e1   : > { %v10763_v32 = vadd.f32 %v10762_v52, %v19061_v12  ;;  %v10977_v41 = vpop.f32.mrf.mxu1 }
 0x8e2   : > { %v19172_v29 = vadd.f32 %v10977_v41, %v10753_v25  ;;  %v10764_v33 = vpop.f32.mrf.mxu0 }
 0x8e3   : > { %v10979_v20 = vpop.f32.mrf.mxu1 }
 0x8e4   : > { %v10767_v1 = vpop.f32.mrf.mxu0 }
 0x8e5   : > { %v10768_v55 = vadd.f32 %v10767_v1, %v19066_v16  ;;  %v10982_v0 = vpop.f32.mrf.mxu1 }
 0x8e6   : > { %v19175_v37 = vadd.f32 %v10982_v0, %v10758_v19  ;;  %v10769_v10 = vpop.f32.mrf.mxu0 }
 0x8e7   : > { %v10984_v30 = vpop.f32.mrf.mxu1 }
 0x8e8   : > { %v10772_v38 = vpop.f32.mrf.mxu0 }
 0x8e9   : > { %v10773_v7 = vadd.f32 %v10772_v38, %v19071_v40  ;;  %v10987_v45 = vpop.f32.mrf.mxu1 }
 0x8ea   : > { %v19178_v13 = vadd.f32 %v10987_v45, %v10763_v32  ;;  %v10774_v12 = vpop.f32.mrf.mxu0 }
 0x8eb   : > { %v10989_v15 = vpop.f32.mrf.mxu1 }
 0x8ec   : > { %v10777_v3 = vpop.f32.mrf.mxu0 }
 0x8ed   : > { %v10778_v47 = vadd.f32 %v10777_v3, %v19076_v60  ;;  %v10992_v17 = vpop.f32.mrf.mxu1 }
 0x8ee   : > { %v19181_v53 = vadd.f32 %v10992_v17, %v10768_v55  ;;  %v10779_v16 = vpop.f32.mrf.mxu0 }
 0x8ef   : > { %v10994_v23 = vpop.f32.mrf.mxu1 }
 0x8f0   : > { %v10782_v28 = vpop.f32.mrf.mxu0 }
 0x8f1   : > { %v10783_v26 = vadd.f32 %v10782_v28, %v19081_v22  ;;  %v10997_v58 = vpop.f32.mrf.mxu1 }
 0x8f2   : > { %v19184_v25 = vadd.f32 %v10997_v58, %v10773_v7  ;;  %v10784_v40 = vpop.f32.mrf.mxu0 }
 0x8f3   : > { %v10999_v35 = vpop.f32.mrf.mxu1 }
 0x8f4   : > { %v10787_v51 = vpop.f32.mrf.mxu0 }
 0x8f5   : > { %v10788_v11 = vadd.f32 %v10787_v51, %v19088_v62  ;;  %v11002_v46 = vpop.f32.mrf.mxu1 }
 0x8f6   : > { %v19187_v19 = vadd.f32 %v11002_v46, %v10778_v47  ;;  %v10789_v60 = vpop.f32.mrf.mxu0 }
 0x8f7   : > { %v11004_v6 = vpop.f32.mrf.mxu1 }
 0x8f8   : > { %v10792_v27 = vpop.f32.mrf.mxu0 }
 0x8f9   : > { %v10793_v63 = vadd.f32 %v10792_v27, %v19095_v39  ;;  %v11007_v52 = vpop.f32.mrf.mxu1 }
 0x8fa   : > { %v19190_v32 = vadd.f32 %v11007_v52, %v10783_v26  ;;  %v10794_v22 = vpop.f32.mrf.mxu0 }
 0x8fb   : > { %v11009_v41 = vpop.f32.mrf.mxu1 }
 0x8fc   : > { %v10797_v33 = vpop.f32.mrf.mxu0 }
 0x8fd   : > { %v10798_v20 = vadd.f32 %v10797_v33, %v19099_v9  ;;  %v11012_v1 = vpop.f32.mrf.mxu1 }
 0x8fe   : > { %v19193_v55 = vadd.f32 %v11012_v1, %v10788_v11  ;;  %v10799_v62 = vpop.f32.mrf.mxu0 }
 0x8ff   : > { %v11014_v0 = vpop.f32.mrf.mxu1 }
 0x900   : > { %v10802_v10 = vpop.f32.mrf.mxu0 }
 0x901   : > { %v10803_v30 = vadd.f32 %v10802_v10, %v19102_v42  ;;  %v11017_v38 = vpop.f32.mrf.mxu1 }
 0x902   : > { %v19196_v7 = vadd.f32 %v11017_v38, %v10793_v63  ;;  %v10804_v39 = vpop.f32.mrf.mxu0 }
 0x903   : > { %v11019_v45 = vpop.f32.mrf.mxu1 }
 0x904   : > { %v10807_v12 = vpop.f32.mrf.mxu0 }
 0x905   : > { %v10808_v15 = vadd.f32 %v10807_v12, %v19105_v2  ;;  %v11022_v3 = vpop.f32.mrf.mxu1 }
 0x906   : > { %v19199_v47 = vadd.f32 %v11022_v3, %v10798_v20  ;;  %v10809_v9 = vpop.f32.mrf.mxu0 }
 0x907   : > { %v11024_v17 = vpop.f32.mrf.mxu1 }
 0x908   : > { %v10812_v16 = vpop.f32.mrf.mxu0 }
 0x909   : > { %v10813_v23 = vadd.f32 %v10812_v16, %v19108_v8  ;;  %v11027_v28 = vpop.f32.mrf.mxu1 }
 0x90a   : > { %v19202_v26 = vadd.f32 %v11027_v28, %v10803_v30  ;;  %v10814_v42 = vpop.f32.mrf.mxu0 }
 0x90b   : > { %v11029_v58 = vpop.f32.mrf.mxu1 }
 0x90c   : > { %v10817_v40 = vpop.f32.mrf.mxu0 }
 0x90d   : > { %v10818_v35 = vadd.f32 %v10817_v40, %v19111_v31  ;;  %v11032_v51 = vpop.f32.mrf.mxu1 }
 0x90e   : > { %v19205_v11 = vadd.f32 %v11032_v51, %v10808_v15  ;;  %v10819_v2 = vpop.f32.mrf.mxu0 }
 0x90f   : > { %v11034_v46 = vpop.f32.mrf.mxu1 }
 0x910   : > { %v10822_v60 = vpop.f32.mrf.mxu0 }
 0x911   : > { %v10823_v6 = vadd.f32 %v10822_v60, %v19114_v34  ;;  %v11037_v27 = vpop.f32.mrf.mxu1 }
 0x912   : > { %v19208_v63 = vadd.f32 %v11037_v27, %v10813_v23  ;;  %v10824_v8 = vpop.f32.mrf.mxu0 }
 0x913   : > { %v11039_v52 = vpop.f32.mrf.mxu1 }
 0x914   : > { %v10827_v22 = vpop.f32.mrf.mxu0 }
 0x915   : > { %v10828_v41 = vadd.f32 %v10827_v22, %v19117_v5  ;;  %v11042_v33 = vpop.f32.mrf.mxu1 }
 0x916   : > { %v19211_v20 = vadd.f32 %v11042_v33, %v10818_v35  ;;  %v10829_v31 = vpop.f32.mrf.mxu0 }
 0x917   : > { %v11044_v1 = vpop.f32.mrf.mxu1 }
 0x918   : > { %v10832_v62 = vpop.f32.mrf.mxu0 }
 0x919   : > { %v10833_v0 = vadd.f32 %v10832_v62, %v19120_v24  ;;  %v11047_v10 = vpop.f32.mrf.mxu1 }
 0x91a   : > { %v19214_v30 = vadd.f32 %v11047_v10, %v10823_v6  ;;  %v10834_v34 = vpop.f32.mrf.mxu0 }
 0x91b   : > { %v11049_v38 = vpop.f32.mrf.mxu1 }
 0x91c   : > { %v10837_v39 = vpop.f32.mrf.mxu0 }
 0x91d   : > { %v10838_v45 = vadd.f32 %v10837_v39, %v19123_v59  ;;  %v11052_v12 = vpop.f32.mrf.mxu1 }
 0x91e   : > { %v19217_v15 = vadd.f32 %v11052_v12, %v10828_v41  ;;  %v10839_v5 = vpop.f32.mrf.mxu0 }
 0x91f   : > { %v11054_v3 = vpop.f32.mrf.mxu1 }
 0x920   : > { %v10842_v9 = vpop.f32.mrf.mxu0 }
 0x921   : > { %v10843_v17 = vadd.f32 %v10842_v9, %v19126_v54  ;;  %v11057_v16 = vpop.f32.mrf.mxu1 }
 0x922   : > { %v19220_v23 = vadd.f32 %v11057_v16, %v10833_v0  ;;  %v10844_v24 = vpop.f32.mrf.mxu0 }
 0x923   : > { %v11059_v28 = vpop.f32.mrf.mxu1 }
 0x924   : > { %v10847_v42 = vpop.f32.mrf.mxu0 }
 0x925   : > { %v10848_v58 = vadd.f32 %v10847_v42, %v19129_v44  ;;  %v11062_v40 = vpop.f32.mrf.mxu1 }
 0x926   : > { %v19223_v35 = vadd.f32 %v11062_v40, %v10838_v45  ;;  %v10849_v59 = vpop.f32.mrf.mxu0 }
 0x927   : > { %v11064_v51 = vpop.f32.mrf.mxu1 }
 0x928   : > { %v10852_v2 = vpop.f32.mrf.mxu0 }
 0x929   : > { %v10853_v46 = vadd.f32 %v10852_v2, %v19132_v48  ;;  %v11067_v60 = vpop.f32.mrf.mxu1 }
 0x92a   : > { %v19226_v6 = vadd.f32 %v11067_v60, %v10843_v17  ;;  %v10854_v54 = vpop.f32.mrf.mxu0 }
 0x92b   : > { %v11069_v27 = vpop.f32.mrf.mxu1 }
 0x92c   : > { %v10857_v8 = vpop.f32.mrf.mxu0 }
 0x92d   : > { %v10858_v52 = vadd.f32 %v10857_v8, %v19135_v14  ;;  %v11072_v22 = vpop.f32.mrf.mxu1 }
 0x92e   : > { %v19229_v41 = vadd.f32 %v11072_v22, %v10848_v58  ;;  %v10859_v44 = vpop.f32.mrf.mxu0 }
 0x92f   : > { %v11074_v33 = vpop.f32.mrf.mxu1 }
 0x930   : > { %v10862_v31 = vpop.f32.mrf.mxu0 }
 0x931   : > { %v10863_v1 = vadd.f32 %v10862_v31, %v19138_v36  ;;  %v11077_v62 = vpop.f32.mrf.mxu1 }
 0x932   : > { %v19232_v0 = vadd.f32 %v11077_v62, %v10853_v46  ;;  %v10864_v48 = vpop.f32.mrf.mxu0 }
 0x933   : > { %v11079_v10 = vpop.f32.mrf.mxu1 }
 0x934   : > { %v10867_v34 = vpop.f32.mrf.mxu0 }
 0x935   : > { %v19235_v38 = vadd.f32 %v10867_v34, %v19142_v50  ;;  %v11082_v39 = vpop.f32.mrf.mxu1 }
 0x936   : > { %v19237_v45 = vadd.f32 %v11082_v39, %v10858_v52  ;;  %v10869_v14 = vpop.f32.mrf.mxu0 }
 0x937   : > { %v11084_v12 = vpop.f32.mrf.mxu1 }
 0x938   : > { %v10872_v5 = vpop.f32.mrf.mxu0 }
 0x939   : > { %v19240_v3 = vadd.f32 %v10872_v5, %v19146_v43  ;;  %v11087_v9 = vpop.f32.mrf.mxu1 }
 0x93a   : > { %v19242_v36 = vadd.f32 %v11087_v9, %v10863_v1  ;;  %v10874_v17 = vpop.f32.mrf.mxu0 }
 0x93b   : > { %v11089_v16 = vpop.f32.mrf.mxu1 }
 0x93c   : > { %v10877_v24 = vpop.f32.mrf.mxu0 }
 0x93d   : > { %v19245_v28 = vadd.f32 %v10877_v24, %v19149_v4  ;;  %v19247_v50 = vpop.f32.mrf.mxu1 }
 0x93e   : > { %v10879_v42 = vpop.f32.mrf.mxu0 }
 0x93f   : > { %v11094_v58 = vpop.f32.mrf.mxu1 }
 0x940   : > { %v10882_v40 = vpop.f32.mrf.mxu0 }
 0x941   : > { %v19250_v59 = vadd.f32 %v10882_v40, %v19153_v57  ;;  %v19252_v43 = vpop.f32.mrf.mxu1 }
 0x942   : > { %v10884_v51 = vpop.f32.mrf.mxu0 }
 0x943   : > { %v11099_v2 = vpop.f32.mrf.mxu1 }
 0x944   : > { %v19254_v46 = vpop.f32.mrf.mxu0 }
 0x945   : > { %v19256_v60 = vpop.f32.mrf.mxu1 }
 0x946   : > { %v10889_v54 = vpop.f32.mrf.mxu0 }
 0x947   : > { %v11104_v27 = vpop.f32.mrf.mxu1 }
 0x948   : > { %v12475_v4 = vpop.f32.mrf.mxu0 }
 0x949   : > { %v19265_v57 = vpop.f32.mrf.mxu1  ;;  %v11188_v8 = vadd.f32 %v12475_v4, %v19163_v61 }
 0x94a   : > { %v11182_v52 = vpop.f32.mrf.mxu0 }
 0x94b   : > { %11342 = vst [vmem:[%s19263_s26 + $0x8] sm:$0xff] %v11188_v8  ;;  %v11109_v22 = vpop.f32.mrf.mxu1  ;;  %v11183_v44 = vadd.f32 %v11182_v52, %v19160_v18 }
 0x94c   : > { %v12478_v33 = vpop.f32.mrf.mxu0 }
 0x94d   : > { %11341 = vst [vmem:[%s19263_s26] sm:$0xff] %v11183_v44  ;;  %v19271_v31 = vpop.f32.mrf.mxu1  ;;  %v11198_v1 = vadd.f32 %v12478_v33, %v19169_v21 }
 0x94e   : > { %v11192_v62 = vpop.f32.mrf.mxu0 }
 0x94f   : > { %11344 = vst [vmem:[%s19263_s26 + $0x18] sm:$0xff] %v11198_v1  ;;  %v11193_v48 = vadd.f32 %v11192_v62, %v19166_v56  ;;  %v11114_v61 = vpop.f32.mrf.mxu1  ;;  %v11093_v1 = vadd.f32 %v19247_v50, %v19235_v38  ;;  %v11098_v38 = vadd.f32 %v19252_v43, %v19240_v3 }
 0x950   : > { %v12481_v10 = vpop.f32.mrf.mxu0 }
 0x951   : > { %11343 = vst [vmem:[%s19263_s26 + $0x10] sm:$0xff] %v11193_v48  ;;  %v11208_v34 = vadd.f32 %v12481_v10, %v19175_v37 }
 0x952   : > { %v11202_v18 = vpop.f32.mrf.mxu0 }
 0x953   : > { %11346 = vst [vmem:[%s19263_s26 + $0x28] sm:$0xff] %v11208_v34  ;;  %v11203_v39 = vadd.f32 %v11202_v18, %v19172_v29 }
 0x954   : > { %v12484_v14 = vpop.f32.mrf.mxu0 }
 0x955   : > { %11345 = vst [vmem:[%s19263_s26 + $0x20] sm:$0xff] %v11203_v39  ;;  %v11218_v21 = vadd.f32 %v12484_v14, %v19181_v53 }
 0x956   : > { %v11212_v12 = vpop.f32.mrf.mxu0 }
 0x957   : > { %11348 = vst [vmem:[%s19263_s26 + $0x38] sm:$0xff] %v11218_v21  ;;  %v11213_v56 = vadd.f32 %v11212_v12, %v19178_v13 }
 0x958   : > { %v12487_v5 = vpop.f32.mrf.mxu0 }
 0x959   : > { %11347 = vst [vmem:[%s19263_s26 + $0x30] sm:$0xff] %v11213_v56  ;;  %v11228_v37 = vadd.f32 %v12487_v5, %v19187_v19 }
 0x95a   : > { %v11222_v9 = vpop.f32.mrf.mxu0 }
 0x95b   : > { %11350 = vst [vmem:[%s19263_s26 + $0x48] sm:$0xff] %v11228_v37  ;;  %v11223_v29 = vadd.f32 %v11222_v9, %v19184_v25 }
 0x95c   : > { %v12490_v17 = vpop.f32.mrf.mxu0 }
 0x95d   : > { %11349 = vst [vmem:[%s19263_s26 + $0x40] sm:$0xff] %v11223_v29  ;;  %v11238_v53 = vadd.f32 %v12490_v17, %v19193_v55 }
 0x95e   : > { %v11232_v16 = vpop.f32.mrf.mxu0 }
 0x95f   : > { %11352 = vst [vmem:[%s19263_s26 + $0x58] sm:$0xff] %v11238_v53  ;;  %v11233_v13 = vadd.f32 %v11232_v16, %v19190_v32 }
 0x960   : > { %v12493_v24 = vpop.f32.mrf.mxu0 }
 0x961   : > { %11351 = vst [vmem:[%s19263_s26 + $0x50] sm:$0xff] %v11233_v13  ;;  %v11248_v19 = vadd.f32 %v12493_v24, %v19199_v47 }
 0x962   : > { %v11242_v42 = vpop.f32.mrf.mxu0 }
 0x963   : > { %11354 = vst [vmem:[%s19263_s26 + $0x68] sm:$0xff] %v11248_v19  ;;  %v11243_v25 = vadd.f32 %v11242_v42, %v19196_v7 }
 0x964   : > { %v12496_v58 = vpop.f32.mrf.mxu0 }
 0x965   : > { %11353 = vst [vmem:[%s19263_s26 + $0x60] sm:$0xff] %v11243_v25  ;;  %v11258_v55 = vadd.f32 %v12496_v58, %v19205_v11 }
 0x966   : > { %v11252_v40 = vpop.f32.mrf.mxu0 }
 0x967   : > { %11356 = vst [vmem:[%s19263_s26 + $0x78] sm:$0xff] %v11258_v55  ;;  %v11253_v32 = vadd.f32 %v11252_v40, %v19202_v26 }
 0x968   : > { %v12499_v51 = vpop.f32.mrf.mxu0 }
 0x969   : > { %11355 = vst [vmem:[%s19263_s26 + $0x70] sm:$0xff] %v11253_v32  ;;  %v11268_v47 = vadd.f32 %v12499_v51, %v19211_v20 }
 0x96a   : > { %v11262_v2 = vpop.f32.mrf.mxu0 }
 0x96b   : > { %11358 = vst [vmem:[%s19263_s26 + $0x88] sm:$0xff] %v11268_v47  ;;  %v11263_v7 = vadd.f32 %v11262_v2, %v19208_v63 }
 0x96c   : > { %v12502_v54 = vpop.f32.mrf.mxu0 }
 0x96d   : > { %11357 = vst [vmem:[%s19263_s26 + $0x80] sm:$0xff] %v11263_v7  ;;  %v11278_v11 = vadd.f32 %v12502_v54, %v19217_v15 }
 0x96e   : > { %v11272_v27 = vpop.f32.mrf.mxu0 }
 0x96f   : > { %11360 = vst [vmem:[%s19263_s26 + $0x98] sm:$0xff] %v11278_v11  ;;  %v11273_v26 = vadd.f32 %v11272_v27, %v19214_v30 }
 0x970   : > { %v12505_v4 = vpop.f32.mrf.mxu0 }
 0x971   : > { %11359 = vst [vmem:[%s19263_s26 + $0x90] sm:$0xff] %v11273_v26  ;;  %v11288_v20 = vadd.f32 %v12505_v4, %v19223_v35 }
 0x972   : > { %v11282_v8 = vpop.f32.mrf.mxu0 }
 0x973   : > { %11362 = vst [vmem:[%s19263_s26 + $0xa8] sm:$0xff] %v11288_v20  ;;  %v11283_v63 = vadd.f32 %v11282_v8, %v19220_v23 }
 0x974   : > { %v12508_v52 = vpop.f32.mrf.mxu0 }
 0x975   : > { %11361 = vst [vmem:[%s19263_s26 + $0xa0] sm:$0xff] %v11283_v63  ;;  %v11298_v22 = vadd.f32 %v12508_v52, %v19229_v41 }
 0x976   : > { %v11292_v15 = vpop.f32.mrf.mxu0 }
 0x977   : > { %11364 = vst [vmem:[%s19263_s26 + $0xb8] sm:$0xff] %v11298_v22  ;;  %v11293_v44 = vadd.f32 %v11292_v15, %v19226_v6  ;;  %v11103_v6 = vadd.f32 %v19256_v60, %v19245_v28  ;;  %v11108_v60 = vadd.f32 %v19265_v57, %v19250_v59 }
 0x978   : > { %v12511_v30 = vpop.f32.mrf.mxu0 }
 0x979   : > { %11363 = vst [vmem:[%s19263_s26 + $0xb0] sm:$0xff] %v11293_v44  ;;  %v11308_v33 = vadd.f32 %v12511_v30, %v19237_v45 }
 0x97a   : > { %v11302_v35 = vpop.f32.mrf.mxu0 }
 0x97b   : > { %11366 = vst [vmem:[%s19263_s26 + $0xc8] sm:$0xff] %v11308_v33  ;;  %v11303_v23 = vadd.f32 %v11302_v35, %v19232_v0  ;;  %v10888_v0 = vadd.f32 %v19254_v46, %v19157_v49 }
 0x97c   : > { %v12514_v62 = vpop.f32.mrf.mxu0 }
 0x97d   : > { %11365 = vst [vmem:[%s19263_s26 + $0xc0] sm:$0xff] %v11303_v23  ;;  %v11318_v41 = vadd.f32 %v12514_v62, %v11093_v1  ;;  %v11113_v34 = vadd.f32 %v19271_v31, %v10888_v0 }
 0x97e   : > { %v11312_v48 = vpop.f32.mrf.mxu0 }
 0x97f   : > { %11368 = vst [vmem:[%s19263_s26 + $0xd8] sm:$0xff] %v11318_v41  ;;  %v11313_v45 = vadd.f32 %v11312_v48, %v19242_v36 }
 0x980   : > { %v12517_v61 = vpop.f32.mrf.mxu0 }
 0x981   : > { %11367 = vst [vmem:[%s19263_s26 + $0xd0] sm:$0xff] %v11313_v45  ;;  %v11328_v50 = vadd.f32 %v12517_v61, %v11103_v6 }
 0x982   : > { %v11322_v10 = vpop.f32.mrf.mxu0 }
 0x983   : > { %11370 = vst [vmem:[%s19263_s26 + $0xe8] sm:$0xff] %v11328_v50  ;;  %v11323_v18 = vadd.f32 %v11322_v10, %v11098_v38 }
 0x984   : > { %v12520_v28 = vpop.f32.mrf.mxu0 }
 0x985   : > { %11369 = vst [vmem:[%s19263_s26 + $0xe0] sm:$0xff] %v11323_v18  ;;  %v11338_v36 = vadd.f32 %v12520_v28, %v11113_v34 }
 0x986   : > { %v11332_v39 = vpop.f32.mrf.mxu0 }
 0x987   : > { %11372 = vst [vmem:[%s19263_s26 + $0xf8] sm:$0xff] %v11338_v36  ;;  %v11333_v14 = vadd.f32 %v11332_v39, %v11108_v60 }
 0x989   : > { %11371 = vst [vmem:[%s19263_s26 + $0xf0] sm:$0xff] %v11333_v14 }
 0x98a PF: > { %s15_s18 = sadd.s32 1, %s12644_s18  }
 0x98b   : > { %p12_p4 = scmp.ge.s32.totalorder %s15_s18, 4  }
 0x98d   :  { %14 = sbr.rel (!%p12_p4) target bundleno = 1 (0x1), region = 82 }

</bundles_post_ra>
